<compile_context>
chip_gen: v7x
topology: tpu7x:2x2x1
jax: 0.10.0
libtpu: 0.0.40
codegen_flags: <defaults>
</compile_context>

<pallas_src>
import jax
import jax.numpy as jnp
from jax.experimental import pallas as pl

# ---------------- scaled-down TwinViT config ----------------
B = 2
C = 3
IMG = 16
PATCH = 4
GRID_HW = IMG // PATCH
NUM_PATCHES = GRID_HW * GRID_HW      # 16
SEQ = NUM_PATCHES + 1                # 17 (CLS first, then patches)
SEQ_PAD = 24                         # padded to a multiple of 8 sublanes
PAD = SEQ_PAD - SEQ                  # 7 zero-padded rows per batch
HIDDEN = 32                          # stands in for 768
HEADS = 2
HEAD_DIM = HIDDEN // HEADS
LAYERS = 2                           # stands in for 12
INTERMEDIATE = 4 * HIDDEN
NUM_CLASSES = 4
NUM_STREAMS = 2                      # pre / post image streams
# mirrors 1536 -> 1024 -> 512 -> 256 -> 128 -> num_classes at toy scale
CLS_DIMS = [2 * HIDDEN, 128, 64, 32, 16, NUM_CLASSES]
LN_EPS = 1e-12                       # HF ViT layer_norm_eps
BN_EPS = 1e-5                        # PyTorch BatchNorm1d default


# ---------------- in-kernel helpers ----------------
def _gelu_tanh(x):
    # TODO(synk): HF ViT uses exact (erf) GELU; tanh approximation keeps Mosaic lowering simple.
    return 0.5 * x * (1.0 + jnp.tanh(0.7978845608028654 * (x + 0.044715 * x * x * x)))


def _layernorm(x, g, b):
    mu = jnp.mean(x, axis=-1, keepdims=True)
    var = jnp.mean(jnp.square(x - mu), axis=-1, keepdims=True)
    return (x - mu) * jax.lax.rsqrt(var + LN_EPS) * g + b


# ---------------- the single fused TwinViT kernel ----------------
def _twin_vit_kernel(
        patch_x_ref,
        patch_w_ref, patch_b_ref, cls_ref, pos_cls_ref, pos_patch_ref,
        ln1_g_ref, ln1_b_ref, wqkv_ref, bqkv_ref, wo_ref, bo_ref,
        ln2_g_ref, ln2_b_ref, wi_ref, bi_ref, wo2_ref, bo2_ref,
        lnf_g_ref, lnf_b_ref, pool_w_ref, pool_b_ref,
        *cls_refs_and_out):
    out_ref = cls_refs_and_out[-1]
    cls_wb = cls_refs_and_out[:-1]

    scale = 1.0 / float(HEAD_DIM) ** 0.5
    # Hoisted constants shared by every stream / layer / batch / head.
    key_valid = jax.lax.broadcasted_iota(jnp.int32, (SEQ_PAD, SEQ_PAD), 1) < SEQ
    neg_big = jnp.float32(-1e30)
    zeros_pad = jnp.zeros((PAD, HIDDEN), jnp.float32)

    pooled = []
    for s in range(NUM_STREAMS):
        # -------- embeddings: patch matmul + positional + CLS --------
        pe = jnp.dot(patch_x_ref[s], patch_w_ref[s],
                     preferred_element_type=jnp.float32) + patch_b_ref[s]   # (B*NP, H)
        cls_row = cls_ref[s] + pos_cls_ref[s]                               # (1, H)
        pos_p = pos_patch_ref[s]                                            # (NP, H)
        pieces = []
        for b in range(B):
            pieces += [cls_row,
                       pe[b * NUM_PATCHES:(b + 1) * NUM_PATCHES, :] + pos_p,
                       zeros_pad]
        x = jnp.concatenate(pieces, axis=0)                                 # (B*SEQ_PAD, H)

        # -------- pre-LN transformer layers (unrolled in-kernel) --------
        for l in range(LAYERS):
            h = _layernorm(x, ln1_g_ref[s, l], ln1_b_ref[s, l])
            qkv = jnp.dot(h.astype(jnp.bfloat16), wqkv_ref[s, l],
                          preferred_element_type=jnp.float32) + bqkv_ref[s, l]   # (B*SP, 3H)

            # attention scores/softmax per (batch, head); everything else batched.
            ctx_rows = []
            for b in range(B):
                r0 = b * SEQ_PAD
                head_ctx = []
                for hh in range(HEADS):
                    c0 = hh * HEAD_DIM
                    q = qkv[r0:r0 + SEQ_PAD, c0:c0 + HEAD_DIM]
                    k = qkv[r0:r0 + SEQ_PAD, HIDDEN + c0:HIDDEN + c0 + HEAD_DIM]
                    v = qkv[r0:r0 + SEQ_PAD, 2 * HIDDEN + c0:2 * HIDDEN + c0 + HEAD_DIM]
                    sc = jax.lax.dot_general(q, k, (((1,), (1,)), ((), ())),
                                             preferred_element_type=jnp.float32) * scale
                    sc = jnp.where(key_valid, sc, neg_big)   # mask padded key columns
                    sc = sc - jnp.max(sc, axis=-1, keepdims=True)
                    p = jnp.exp(sc)
                    p = p * pl.reciprocal(jnp.sum(p, axis=-1, keepdims=True), approx=True)
                    head_ctx.append(jnp.dot(p, v, preferred_element_type=jnp.float32))
                ctx_rows.append(jnp.concatenate(head_ctx, axis=-1))          # (SP, H)
            ctx = jnp.concatenate(ctx_rows, axis=0)                          # (B*SP, H)

            # one full-width output projection + residual 1
            x = x + jnp.dot(ctx.astype(jnp.bfloat16), wo_ref[s, l],
                            preferred_element_type=jnp.float32) + bo_ref[s, l]

            # MLP + residual 2
            h2 = _layernorm(x, ln2_g_ref[s, l], ln2_b_ref[s, l])
            mid = _gelu_tanh(jnp.dot(h2.astype(jnp.bfloat16), wi_ref[s, l],
                                     preferred_element_type=jnp.float32) + bi_ref[s, l])
            x = x + jnp.dot(mid.astype(jnp.bfloat16), wo2_ref[s, l],
                            preferred_element_type=jnp.float32) + bo2_ref[s, l]

        # -------- final LN + tanh pooler on the CLS rows (row 0 of each batch block)
        cls_tok = jnp.concatenate(
            [x[b * SEQ_PAD:b * SEQ_PAD + 1, :] for b in range(B)], axis=0)   # (B, H)
        cls_tok = _layernorm(cls_tok, lnf_g_ref[s], lnf_b_ref[s])
        pooled.append(jnp.tanh(
            jnp.dot(cls_tok.astype(jnp.bfloat16), pool_w_ref[s],
                    preferred_element_type=jnp.float32) + pool_b_ref[s]))     # (B, H)

    # -------- fused classifier (BN folded into Linears, dropout = identity) --------
    # First layer consumes concat(pre, post); implemented as a split-K matmul so no
    # lane concatenation is needed.
    w0 = cls_wb[0][...]
    b0 = cls_wb[1][...]
    y = (jnp.dot(pooled[0], w0[:HIDDEN, :], preferred_element_type=jnp.float32) +
         jnp.dot(pooled[1], w0[HIDDEN:, :], preferred_element_type=jnp.float32) + b0)
    y = jnp.maximum(y, 0.0)
    n = len(cls_wb) // 2
    for i in range(1, n):
        y = jnp.dot(y, cls_wb[2 * i][...],
                    preferred_element_type=jnp.float32) + cls_wb[2 * i + 1][...]
        if i < n - 1:                # all but the final Linear have (folded BN +) ReLU
            y = jnp.maximum(y, 0.0)
    out_ref[...] = y


def twin_vit_pallas(enc, cls_params, patch_x):
    """patch_x: (2, B*NUM_PATCHES, C*P*P) bf16 -> logits (B, NUM_CLASSES) f32."""
    cls_flat = []
    for w, b in cls_params:
        cls_flat += [w, b]
    # Single launch, no grid: every operand is a full-array VMEM block; the only
    # HBM output is the (B, NUM_CLASSES) logits.
    return pl.pallas_call(
        _twin_vit_kernel,
        out_shape=jax.ShapeDtypeStruct((B, NUM_CLASSES), jnp.float32),
    )(patch_x,
      enc["patch_w"], enc["patch_b"], enc["cls"], enc["pos_cls"], enc["pos_patch"],
      enc["ln1_g"], enc["ln1_b"], enc["wqkv"], enc["bqkv"], enc["wo"], enc["bo"],
      enc["ln2_g"], enc["ln2_b"], enc["wi"], enc["bi"], enc["wo2"], enc["bo2"],
      enc["lnf_g"], enc["lnf_b"], enc["pool_w"], enc["pool_b"],
      *cls_flat)


# ---------------- deterministic parameter init ----------------
def _keys(key):
    while True:
        key, sub = jax.random.split(key)
        yield sub


def _w(kit, shape, scale=0.02):
    return (scale * jax.random.normal(next(kit), shape)).astype(jnp.float32)


def _init_stream(key):
    kit = _keys(key)
    ones = lambda *s: jnp.ones(s, jnp.float32)
    zeros = lambda *s: jnp.zeros(s, jnp.float32)
    pos = _w(kit, (SEQ, HIDDEN))        # HF order: row 0 = CLS position, rows 1: = patches
    p = {
        "patch_w": _w(kit, (C * PATCH * PATCH, HIDDEN)),
        "patch_b": zeros(1, HIDDEN),
        "cls": _w(kit, (1, HIDDEN)),
        "pos_cls": pos[0:1, :],
        "pos_patch": pos[1:, :],
        "lnf_g": ones(1, HIDDEN), "lnf_b": zeros(1, HIDDEN),
        "pool_w": _w(kit, (HIDDEN, HIDDEN)), "pool_b": zeros(1, HIDDEN),
    }
    per_layer = {k: [] for k in ("ln1_g", "ln1_b", "wqkv", "bqkv", "wo", "bo",
                                 "ln2_g", "ln2_b", "wi", "bi", "wo2", "bo2")}
    for _ in range(LAYERS):
        per_layer["ln1_g"].append(ones(1, HIDDEN))
        per_layer["ln1_b"].append(zeros(1, HIDDEN))
        wq = _w(kit, (HIDDEN, HIDDEN))
        wk = _w(kit, (HIDDEN, HIDDEN))
        wv = _w(kit, (HIDDEN, HIDDEN))
        per_layer["wqkv"].append(jnp.concatenate([wq, wk, wv], axis=1))   # fused QKV
        per_layer["bqkv"].append(zeros(1, 3 * HIDDEN))
        per_layer["wo"].append(_w(kit, (HIDDEN, HIDDEN)))
        per_layer["bo"].append(zeros(1, HIDDEN))
        per_layer["ln2_g"].append(ones(1, HIDDEN))
        per_layer["ln2_b"].append(zeros(1, HIDDEN))
        per_layer["wi"].append(_w(kit, (HIDDEN, INTERMEDIATE)))
        per_layer["bi"].append(zeros(1, INTERMEDIATE))
        per_layer["wo2"].append(_w(kit, (INTERMEDIATE, HIDDEN)))
        per_layer["bo2"].append(zeros(1, HIDDEN))
    p.update({k: jnp.stack(v, axis=0) for k, v in per_layer.items()})
    return p


def _init_classifier(key):
    kit = _keys(key)
    layers = []
    for i in range(len(CLS_DIMS) - 1):
        din, dout = CLS_DIMS[i], CLS_DIMS[i + 1]
        w = _w(kit, (din, dout))
        b = jnp.zeros((1, dout), jnp.float32)
        if i < len(CLS_DIMS) - 2:
            # Fold eval-mode BatchNorm1d into the preceding Linear:
            #   w' = w * gamma/sqrt(var+eps); b' = (b-mean)*gamma/sqrt(var+eps)+beta
            gamma = jnp.ones((1, dout), jnp.float32)
            beta = jnp.zeros((1, dout), jnp.float32)
            mean = jnp.zeros((1, dout), jnp.float32)
            var = jnp.ones((1, dout), jnp.float32)
            inv = gamma * jax.lax.rsqrt(var + BN_EPS)
            w = w * inv
            b = (b - mean) * inv + beta
        layers.append((w, b))
    return layers


def init_params(key):
    k_pre, k_post, k_cls = jax.random.split(key, 3)
    pre, post = _init_stream(k_pre), _init_stream(k_post)
    enc = {k: jnp.stack([pre[k], post[k]], axis=0) for k in pre}   # leading (2, ...) = stream
    for k in ("patch_w", "wqkv", "wo", "wi", "wo2", "pool_w"):
        enc[k] = enc[k].astype(jnp.bfloat16)   # bf16 MXU weights, f32 accumulation
    return {"enc": enc, "cls": _init_classifier(k_cls)}


# ---------------- forward pass ----------------
def _patchify(img):
    """NCHW image -> (B*NUM_PATCHES, C*P*P), matching Conv2d(kernel=stride=P)."""
    b = img.shape[0]
    x = img.reshape(b, C, GRID_HW, PATCH, GRID_HW, PATCH)
    x = x.transpose(0, 2, 4, 1, 3, 5).reshape(b * NUM_PATCHES, C * PATCH * PATCH)
    return x


def twin_vit_forward(params, pre_img, post_img):
    patch_x = jnp.stack([_patchify(pre_img), _patchify(post_img)],
                        axis=0).astype(jnp.bfloat16)               # (2, B*NP, CPP)
    return twin_vit_pallas(params["enc"], params["cls"], patch_x)  # (B, NUM_CLASSES)


# ---------------- main ----------------
if __name__ == "__main__":
    key = jax.random.PRNGKey(0)
    k_params, k_x1, k_x2 = jax.random.split(key, 3)

    params = init_params(k_params)
    pre_img = jax.random.normal(k_x1, (B, C, IMG, IMG), jnp.float32)
    post_img = jax.random.normal(k_x2, (B, C, IMG, IMG), jnp.float32)

    fwd = jax.jit(twin_vit_forward)
    logits = fwd(params, pre_img, post_img)
    jax.block_until_ready(logits)

    assert logits.shape == (B, NUM_CLASSES) and logits.dtype == jnp.float32
    print("KERNEL_OK")
</pallas_src>

<mosaic_0001>
module attributes {stable_mosaic.version = 11 : i64} {
  func.func @_twin_vit_kernel(%arg0: memref<2x32x48xbf16, #tpu.memory_space<vmem>>, %arg1: memref<2x48x32xbf16, #tpu.memory_space<vmem>>, %arg2: memref<2x1x32xf32, #tpu.memory_space<vmem>>, %arg3: memref<2x1x32xf32, #tpu.memory_space<vmem>>, %arg4: memref<2x1x32xf32, #tpu.memory_space<vmem>>, %arg5: memref<2x16x32xf32, #tpu.memory_space<vmem>>, %arg6: memref<2x2x1x32xf32, #tpu.memory_space<vmem>>, %arg7: memref<2x2x1x32xf32, #tpu.memory_space<vmem>>, %arg8: memref<2x2x32x96xbf16, #tpu.memory_space<vmem>>, %arg9: memref<2x2x1x96xf32, #tpu.memory_space<vmem>>, %arg10: memref<2x2x32x32xbf16, #tpu.memory_space<vmem>>, %arg11: memref<2x2x1x32xf32, #tpu.memory_space<vmem>>, %arg12: memref<2x2x1x32xf32, #tpu.memory_space<vmem>>, %arg13: memref<2x2x1x32xf32, #tpu.memory_space<vmem>>, %arg14: memref<2x2x32x128xbf16, #tpu.memory_space<vmem>>, %arg15: memref<2x2x1x128xf32, #tpu.memory_space<vmem>>, %arg16: memref<2x2x128x32xbf16, #tpu.memory_space<vmem>>, %arg17: memref<2x2x1x32xf32, #tpu.memory_space<vmem>>, %arg18: memref<2x1x32xf32, #tpu.memory_space<vmem>>, %arg19: memref<2x1x32xf32, #tpu.memory_space<vmem>>, %arg20: memref<2x32x32xbf16, #tpu.memory_space<vmem>>, %arg21: memref<2x1x32xf32, #tpu.memory_space<vmem>>, %arg22: memref<64x128xf32, #tpu.memory_space<vmem>>, %arg23: memref<1x128xf32, #tpu.memory_space<vmem>>, %arg24: memref<128x64xf32, #tpu.memory_space<vmem>>, %arg25: memref<1x64xf32, #tpu.memory_space<vmem>>, %arg26: memref<64x32xf32, #tpu.memory_space<vmem>>, %arg27: memref<1x32xf32, #tpu.memory_space<vmem>>, %arg28: memref<32x16xf32, #tpu.memory_space<vmem>>, %arg29: memref<1x16xf32, #tpu.memory_space<vmem>>, %arg30: memref<16x4xf32, #tpu.memory_space<vmem>>, %arg31: memref<1x4xf32, #tpu.memory_space<vmem>>, %arg32: memref<2x4xf32, #tpu.memory_space<vmem>>) attributes {dimension_semantics = [], scalar_prefetch = 0 : i64, scratch_operands = 0 : i64, tpu.core_type = #tpu.core_type<tc>} {
    %0 = tpu.iota {dimensions = array<i32: 1>} : vector<24x24xi32>
    %c17_i32 = arith.constant 17 : i32
    %1 = vector.broadcast %c17_i32 : i32 to vector<24x24xi32>
    %2 = arith.cmpi slt, %0, %1 : vector<24x24xi32>
    %cst = arith.constant 0.000000e+00 : f32
    %3 = vector.broadcast %cst : f32 to vector<7x32xf32>
    %c0 = arith.constant 0 : index
    %c0_0 = arith.constant 0 : index
    %c0_1 = arith.constant 0 : index
    %4 = vector.load %arg0[%c0, %c0_0, %c0_1] : memref<2x32x48xbf16, #tpu.memory_space<vmem>>, vector<1x32x48xbf16>
    %5 = vector.shape_cast %4 : vector<1x32x48xbf16> to vector<32x48xbf16>
    %c0_2 = arith.constant 0 : index
    %c0_3 = arith.constant 0 : index
    %c0_4 = arith.constant 0 : index
    %6 = vector.load %arg1[%c0_2, %c0_3, %c0_4] : memref<2x48x32xbf16, #tpu.memory_space<vmem>>, vector<1x48x32xbf16>
    %7 = vector.shape_cast %6 : vector<1x48x32xbf16> to vector<48x32xbf16>
    %cst_5 = arith.constant dense<0.000000e+00> : vector<32x32xf32>
    %8 = tpu.matmul %5, %7, %cst_5 {dimension_numbers = #tpu.dot_dimension_numbers<[1], [0], [0], [1], [0, 0, 1, 1], [], []>} : vector<32x48xbf16>, vector<48x32xbf16>, vector<32x32xf32> -> vector<32x32xf32>
    %c0_6 = arith.constant 0 : index
    %c0_7 = arith.constant 0 : index
    %c0_8 = arith.constant 0 : index
    %9 = vector.load %arg2[%c0_6, %c0_7, %c0_8] : memref<2x1x32xf32, #tpu.memory_space<vmem>>, vector<1x1x32xf32>
    %10 = vector.shape_cast %9 : vector<1x1x32xf32> to vector<1x32xf32>
    %11 = vector.broadcast %10 : vector<1x32xf32> to vector<32x32xf32>
    %12 = arith.addf %8, %11 : vector<32x32xf32>
    %c0_9 = arith.constant 0 : index
    %c0_10 = arith.constant 0 : index
    %c0_11 = arith.constant 0 : index
    %13 = vector.load %arg3[%c0_9, %c0_10, %c0_11] : memref<2x1x32xf32, #tpu.memory_space<vmem>>, vector<1x1x32xf32>
    %14 = vector.shape_cast %13 : vector<1x1x32xf32> to vector<1x32xf32>
    %c0_12 = arith.constant 0 : index
    %c0_13 = arith.constant 0 : index
    %c0_14 = arith.constant 0 : index
    %15 = vector.load %arg4[%c0_12, %c0_13, %c0_14] : memref<2x1x32xf32, #tpu.memory_space<vmem>>, vector<1x1x32xf32>
    %16 = vector.shape_cast %15 : vector<1x1x32xf32> to vector<1x32xf32>
    %17 = arith.addf %14, %16 : vector<1x32xf32>
    %c0_15 = arith.constant 0 : index
    %c0_16 = arith.constant 0 : index
    %c0_17 = arith.constant 0 : index
    %18 = vector.load %arg5[%c0_15, %c0_16, %c0_17] : memref<2x16x32xf32, #tpu.memory_space<vmem>>, vector<1x16x32xf32>
    %19 = vector.shape_cast %18 : vector<1x16x32xf32> to vector<16x32xf32>
    %20 = vector.extract_strided_slice %12 {offsets = [0, 0], sizes = [16, 32], strides = [1, 1]} : vector<32x32xf32> to vector<16x32xf32>
    %21 = arith.addf %20, %19 : vector<16x32xf32>
    %22 = vector.extract_strided_slice %12 {offsets = [16, 0], sizes = [16, 32], strides = [1, 1]} : vector<32x32xf32> to vector<16x32xf32>
    %23 = arith.addf %22, %19 : vector<16x32xf32>
    %24 = tpu.concatenate %17, %21, %3, %17, %23, %3 in 0 : vector<1x32xf32>, vector<16x32xf32>, vector<7x32xf32>, vector<1x32xf32>, vector<16x32xf32>, vector<7x32xf32> -> vector<48x32xf32>
    %c0_18 = arith.constant 0 : index
    %c0_19 = arith.constant 0 : index
    %c0_20 = arith.constant 0 : index
    %c0_21 = arith.constant 0 : index
    %25 = vector.load %arg6[%c0_18, %c0_19, %c0_20, %c0_21] : memref<2x2x1x32xf32, #tpu.memory_space<vmem>>, vector<1x1x1x32xf32>
    %26 = vector.shape_cast %25 : vector<1x1x1x32xf32> to vector<1x32xf32>
    %c0_22 = arith.constant 0 : index
    %c0_23 = arith.constant 0 : index
    %c0_24 = arith.constant 0 : index
    %c0_25 = arith.constant 0 : index
    %27 = vector.load %arg7[%c0_22, %c0_23, %c0_24, %c0_25] : memref<2x2x1x32xf32, #tpu.memory_space<vmem>>, vector<1x1x1x32xf32>
    %28 = vector.shape_cast %27 : vector<1x1x1x32xf32> to vector<1x32xf32>
    %cst_26 = arith.constant dense<0.000000e+00> : vector<48xf32>
    %29 = vector.multi_reduction <add>, %24, %cst_26 [1] : vector<48x32xf32> to vector<48xf32>
    %30 = vector.shape_cast %29 : vector<48xf32> to vector<48x1xf32>
    %cst_27 = arith.constant 3.200000e+01 : f32
    %31 = vector.broadcast %cst_27 : f32 to vector<48x1xf32>
    %32 = arith.divf %30, %31 : vector<48x1xf32>
    %33 = vector.broadcast %32 : vector<48x1xf32> to vector<48x32xf32>
    %34 = arith.subf %24, %33 : vector<48x32xf32>
    %35 = arith.mulf %34, %34 : vector<48x32xf32>
    %cst_28 = arith.constant dense<0.000000e+00> : vector<48xf32>
    %36 = vector.multi_reduction <add>, %35, %cst_28 [1] : vector<48x32xf32> to vector<48xf32>
    %37 = vector.shape_cast %36 : vector<48xf32> to vector<48x1xf32>
    %cst_29 = arith.constant 3.200000e+01 : f32
    %38 = vector.broadcast %cst_29 : f32 to vector<48x1xf32>
    %39 = arith.divf %37, %38 : vector<48x1xf32>
    %40 = vector.broadcast %32 : vector<48x1xf32> to vector<48x32xf32>
    %41 = arith.subf %24, %40 : vector<48x32xf32>
    %cst_30 = arith.constant 9.99999996E-13 : f32
    %42 = vector.broadcast %cst_30 : f32 to vector<48x1xf32>
    %43 = arith.addf %39, %42 : vector<48x1xf32>
    %44 = math.rsqrt %43 : vector<48x1xf32>
    %45 = vector.broadcast %44 : vector<48x1xf32> to vector<48x32xf32>
    %46 = arith.mulf %41, %45 : vector<48x32xf32>
    %47 = vector.broadcast %26 : vector<1x32xf32> to vector<48x32xf32>
    %48 = arith.mulf %46, %47 : vector<48x32xf32>
    %49 = vector.broadcast %28 : vector<1x32xf32> to vector<48x32xf32>
    %50 = arith.addf %48, %49 : vector<48x32xf32>
    %51 = arith.truncf %50 : vector<48x32xf32> to vector<48x32xbf16>
    %c0_31 = arith.constant 0 : index
    %c0_32 = arith.constant 0 : index
    %c0_33 = arith.constant 0 : index
    %c0_34 = arith.constant 0 : index
    %52 = vector.load %arg8[%c0_31, %c0_32, %c0_33, %c0_34] : memref<2x2x32x96xbf16, #tpu.memory_space<vmem>>, vector<1x1x32x96xbf16>
    %53 = vector.shape_cast %52 : vector<1x1x32x96xbf16> to vector<32x96xbf16>
    %cst_35 = arith.constant dense<0.000000e+00> : vector<48x96xf32>
    %54 = tpu.matmul %51, %53, %cst_35 {dimension_numbers = #tpu.dot_dimension_numbers<[1], [0], [0], [1], [0, 0, 1, 1], [], []>} : vector<48x32xbf16>, vector<32x96xbf16>, vector<48x96xf32> -> vector<48x96xf32>
    %c0_36 = arith.constant 0 : index
    %c0_37 = arith.constant 0 : index
    %c0_38 = arith.constant 0 : index
    %c0_39 = arith.constant 0 : index
    %55 = vector.load %arg9[%c0_36, %c0_37, %c0_38, %c0_39] : memref<2x2x1x96xf32, #tpu.memory_space<vmem>>, vector<1x1x1x96xf32>
    %56 = vector.shape_cast %55 : vector<1x1x1x96xf32> to vector<1x96xf32>
    %57 = vector.broadcast %56 : vector<1x96xf32> to vector<48x96xf32>
    %58 = arith.addf %54, %57 : vector<48x96xf32>
    %59 = vector.extract_strided_slice %58 {offsets = [0, 0], sizes = [24, 16], strides = [1, 1]} : vector<48x96xf32> to vector<24x16xf32>
    %60 = vector.extract_strided_slice %58 {offsets = [0, 32], sizes = [24, 16], strides = [1, 1]} : vector<48x96xf32> to vector<24x16xf32>
    %61 = vector.extract_strided_slice %58 {offsets = [0, 64], sizes = [24, 16], strides = [1, 1]} : vector<48x96xf32> to vector<24x16xf32>
    %cst_40 = arith.constant dense<0.000000e+00> : vector<24x24xf32>
    %62 = tpu.matmul %59, %60, %cst_40 {dimension_numbers = #tpu.dot_dimension_numbers<[1], [1], [0], [0], [0, 0, 1, 0], [], []>} : vector<24x16xf32>, vector<24x16xf32>, vector<24x24xf32> -> vector<24x24xf32>
    %cst_41 = arith.constant 2.500000e-01 : f32
    %63 = vector.broadcast %cst_41 : f32 to vector<24x24xf32>
    %64 = arith.mulf %62, %63 : vector<24x24xf32>
    %cst_42 = arith.constant -1.000000e+30 : f32
    %65 = vector.broadcast %cst_42 : f32 to vector<24x24xf32>
    %66 = arith.select %2, %64, %65 : vector<24x24xi1>, vector<24x24xf32>
    %cst_43 = arith.constant dense<0xFF800000> : vector<24xf32>
    %67 = vector.multi_reduction <maximumf>, %66, %cst_43 [1] : vector<24x24xf32> to vector<24xf32>
    %68 = vector.shape_cast %67 : vector<24xf32> to vector<24x1xf32>
    %69 = vector.broadcast %68 : vector<24x1xf32> to vector<24x24xf32>
    %70 = arith.subf %66, %69 : vector<24x24xf32>
    %71 = math.exp %70 : vector<24x24xf32>
    %cst_44 = arith.constant dense<0.000000e+00> : vector<24xf32>
    %72 = vector.multi_reduction <add>, %71, %cst_44 [1] : vector<24x24xf32> to vector<24xf32>
    %73 = vector.shape_cast %72 : vector<24xf32> to vector<24x1xf32>
    %74 = tpu.reciprocal %73 {approx = true} : vector<24x1xf32> -> vector<24x1xf32>
    %75 = vector.broadcast %74 : vector<24x1xf32> to vector<24x24xf32>
    %76 = arith.mulf %71, %75 : vector<24x24xf32>
    %cst_45 = arith.constant dense<0.000000e+00> : vector<24x16xf32>
    %77 = tpu.matmul %76, %61, %cst_45 {dimension_numbers = #tpu.dot_dimension_numbers<[1], [0], [0], [1], [0, 0, 1, 1], [], []>} : vector<24x24xf32>, vector<24x16xf32>, vector<24x16xf32> -> vector<24x16xf32>
    %78 = vector.extract_strided_slice %58 {offsets = [0, 16], sizes = [24, 16], strides = [1, 1]} : vector<48x96xf32> to vector<24x16xf32>
    %79 = vector.extract_strided_slice %58 {offsets = [0, 48], sizes = [24, 16], strides = [1, 1]} : vector<48x96xf32> to vector<24x16xf32>
    %80 = vector.extract_strided_slice %58 {offsets = [0, 80], sizes = [24, 16], strides = [1, 1]} : vector<48x96xf32> to vector<24x16xf32>
    %cst_46 = arith.constant dense<0.000000e+00> : vector<24x24xf32>
    %81 = tpu.matmul %78, %79, %cst_46 {dimension_numbers = #tpu.dot_dimension_numbers<[1], [1], [0], [0], [0, 0, 1, 0], [], []>} : vector<24x16xf32>, vector<24x16xf32>, vector<24x24xf32> -> vector<24x24xf32>
    %cst_47 = arith.constant 2.500000e-01 : f32
    %82 = vector.broadcast %cst_47 : f32 to vector<24x24xf32>
    %83 = arith.mulf %81, %82 : vector<24x24xf32>
    %cst_48 = arith.constant -1.000000e+30 : f32
    %84 = vector.broadcast %cst_48 : f32 to vector<24x24xf32>
    %85 = arith.select %2, %83, %84 : vector<24x24xi1>, vector<24x24xf32>
    %cst_49 = arith.constant dense<0xFF800000> : vector<24xf32>
    %86 = vector.multi_reduction <maximumf>, %85, %cst_49 [1] : vector<24x24xf32> to vector<24xf32>
    %87 = vector.shape_cast %86 : vector<24xf32> to vector<24x1xf32>
    %88 = vector.broadcast %87 : vector<24x1xf32> to vector<24x24xf32>
    %89 = arith.subf %85, %88 : vector<24x24xf32>
    %90 = math.exp %89 : vector<24x24xf32>
    %cst_50 = arith.constant dense<0.000000e+00> : vector<24xf32>
    %91 = vector.multi_reduction <add>, %90, %cst_50 [1] : vector<24x24xf32> to vector<24xf32>
    %92 = vector.shape_cast %91 : vector<24xf32> to vector<24x1xf32>
    %93 = tpu.reciprocal %92 {approx = true} : vector<24x1xf32> -> vector<24x1xf32>
    %94 = vector.broadcast %93 : vector<24x1xf32> to vector<24x24xf32>
    %95 = arith.mulf %90, %94 : vector<24x24xf32>
    %cst_51 = arith.constant dense<0.000000e+00> : vector<24x16xf32>
    %96 = tpu.matmul %95, %80, %cst_51 {dimension_numbers = #tpu.dot_dimension_numbers<[1], [0], [0], [1], [0, 0, 1, 1], [], []>} : vector<24x24xf32>, vector<24x16xf32>, vector<24x16xf32> -> vector<24x16xf32>
    %97 = tpu.concatenate %77, %96 in 1 : vector<24x16xf32>, vector<24x16xf32> -> vector<24x32xf32>
    %98 = vector.extract_strided_slice %58 {offsets = [24, 0], sizes = [24, 16], strides = [1, 1]} : vector<48x96xf32> to vector<24x16xf32>
    %99 = vector.extract_strided_slice %58 {offsets = [24, 32], sizes = [24, 16], strides = [1, 1]} : vector<48x96xf32> to vector<24x16xf32>
    %100 = vector.extract_strided_slice %58 {offsets = [24, 64], sizes = [24, 16], strides = [1, 1]} : vector<48x96xf32> to vector<24x16xf32>
    %cst_52 = arith.constant dense<0.000000e+00> : vector<24x24xf32>
    %101 = tpu.matmul %98, %99, %cst_52 {dimension_numbers = #tpu.dot_dimension_numbers<[1], [1], [0], [0], [0, 0, 1, 0], [], []>} : vector<24x16xf32>, vector<24x16xf32>, vector<24x24xf32> -> vector<24x24xf32>
    %cst_53 = arith.constant 2.500000e-01 : f32
    %102 = vector.broadcast %cst_53 : f32 to vector<24x24xf32>
    %103 = arith.mulf %101, %102 : vector<24x24xf32>
    %cst_54 = arith.constant -1.000000e+30 : f32
    %104 = vector.broadcast %cst_54 : f32 to vector<24x24xf32>
    %105 = arith.select %2, %103, %104 : vector<24x24xi1>, vector<24x24xf32>
    %cst_55 = arith.constant dense<0xFF800000> : vector<24xf32>
    %106 = vector.multi_reduction <maximumf>, %105, %cst_55 [1] : vector<24x24xf32> to vector<24xf32>
    %107 = vector.shape_cast %106 : vector<24xf32> to vector<24x1xf32>
    %108 = vector.broadcast %107 : vector<24x1xf32> to vector<24x24xf32>
    %109 = arith.subf %105, %108 : vector<24x24xf32>
    %110 = math.exp %109 : vector<24x24xf32>
    %cst_56 = arith.constant dense<0.000000e+00> : vector<24xf32>
    %111 = vector.multi_reduction <add>, %110, %cst_56 [1] : vector<24x24xf32> to vector<24xf32>
    %112 = vector.shape_cast %111 : vector<24xf32> to vector<24x1xf32>
    %113 = tpu.reciprocal %112 {approx = true} : vector<24x1xf32> -> vector<24x1xf32>
    %114 = vector.broadcast %113 : vector<24x1xf32> to vector<24x24xf32>
    %115 = arith.mulf %110, %114 : vector<24x24xf32>
    %cst_57 = arith.constant dense<0.000000e+00> : vector<24x16xf32>
    %116 = tpu.matmul %115, %100, %cst_57 {dimension_numbers = #tpu.dot_dimension_numbers<[1], [0], [0], [1], [0, 0, 1, 1], [], []>} : vector<24x24xf32>, vector<24x16xf32>, vector<24x16xf32> -> vector<24x16xf32>
    %117 = vector.extract_strided_slice %58 {offsets = [24, 16], sizes = [24, 16], strides = [1, 1]} : vector<48x96xf32> to vector<24x16xf32>
    %118 = vector.extract_strided_slice %58 {offsets = [24, 48], sizes = [24, 16], strides = [1, 1]} : vector<48x96xf32> to vector<24x16xf32>
    %119 = vector.extract_strided_slice %58 {offsets = [24, 80], sizes = [24, 16], strides = [1, 1]} : vector<48x96xf32> to vector<24x16xf32>
    %cst_58 = arith.constant dense<0.000000e+00> : vector<24x24xf32>
    %120 = tpu.matmul %117, %118, %cst_58 {dimension_numbers = #tpu.dot_dimension_numbers<[1], [1], [0], [0], [0, 0, 1, 0], [], []>} : vector<24x16xf32>, vector<24x16xf32>, vector<24x24xf32> -> vector<24x24xf32>
    %cst_59 = arith.constant 2.500000e-01 : f32
    %121 = vector.broadcast %cst_59 : f32 to vector<24x24xf32>
    %122 = arith.mulf %120, %121 : vector<24x24xf32>
    %cst_60 = arith.constant -1.000000e+30 : f32
    %123 = vector.broadcast %cst_60 : f32 to vector<24x24xf32>
    %124 = arith.select %2, %122, %123 : vector<24x24xi1>, vector<24x24xf32>
    %cst_61 = arith.constant dense<0xFF800000> : vector<24xf32>
    %125 = vector.multi_reduction <maximumf>, %124, %cst_61 [1] : vector<24x24xf32> to vector<24xf32>
    %126 = vector.shape_cast %125 : vector<24xf32> to vector<24x1xf32>
    %127 = vector.broadcast %126 : vector<24x1xf32> to vector<24x24xf32>
    %128 = arith.subf %124, %127 : vector<24x24xf32>
    %129 = math.exp %128 : vector<24x24xf32>
    %cst_62 = arith.constant dense<0.000000e+00> : vector<24xf32>
    %130 = vector.multi_reduction <add>, %129, %cst_62 [1] : vector<24x24xf32> to vector<24xf32>
    %131 = vector.shape_cast %130 : vector<24xf32> to vector<24x1xf32>
    %132 = tpu.reciprocal %131 {approx = true} : vector<24x1xf32> -> vector<24x1xf32>
    %133 = vector.broadcast %132 : vector<24x1xf32> to vector<24x24xf32>
    %134 = arith.mulf %129, %133 : vector<24x24xf32>
    %cst_63 = arith.constant dense<0.000000e+00> : vector<24x16xf32>
    %135 = tpu.matmul %134, %119, %cst_63 {dimension_numbers = #tpu.dot_dimension_numbers<[1], [0], [0], [1], [0, 0, 1, 1], [], []>} : vector<24x24xf32>, vector<24x16xf32>, vector<24x16xf32> -> vector<24x16xf32>
    %136 = tpu.concatenate %116, %135 in 1 : vector<24x16xf32>, vector<24x16xf32> -> vector<24x32xf32>
    %137 = tpu.concatenate %97, %136 in 0 : vector<24x32xf32>, vector<24x32xf32> -> vector<48x32xf32>
    %138 = arith.truncf %137 : vector<48x32xf32> to vector<48x32xbf16>
    %c0_64 = arith.constant 0 : index
    %c0_65 = arith.constant 0 : index
    %c0_66 = arith.constant 0 : index
    %c0_67 = arith.constant 0 : index
    %139 = vector.load %arg10[%c0_64, %c0_65, %c0_66, %c0_67] : memref<2x2x32x32xbf16, #tpu.memory_space<vmem>>, vector<1x1x32x32xbf16>
    %140 = vector.shape_cast %139 : vector<1x1x32x32xbf16> to vector<32x32xbf16>
    %cst_68 = arith.constant dense<0.000000e+00> : vector<48x32xf32>
    %141 = tpu.matmul %138, %140, %cst_68 {dimension_numbers = #tpu.dot_dimension_numbers<[1], [0], [0], [1], [0, 0, 1, 1], [], []>} : vector<48x32xbf16>, vector<32x32xbf16>, vector<48x32xf32> -> vector<48x32xf32>
    %142 = arith.addf %24, %141 : vector<48x32xf32>
    %c0_69 = arith.constant 0 : index
    %c0_70 = arith.constant 0 : index
    %c0_71 = arith.constant 0 : index
    %c0_72 = arith.constant 0 : index
    %143 = vector.load %arg11[%c0_69, %c0_70, %c0_71, %c0_72] : memref<2x2x1x32xf32, #tpu.memory_space<vmem>>, vector<1x1x1x32xf32>
    %144 = vector.shape_cast %143 : vector<1x1x1x32xf32> to vector<1x32xf32>
    %145 = vector.broadcast %144 : vector<1x32xf32> to vector<48x32xf32>
    %146 = arith.addf %142, %145 : vector<48x32xf32>
    %c0_73 = arith.constant 0 : index
    %c0_74 = arith.constant 0 : index
    %c0_75 = arith.constant 0 : index
    %c0_76 = arith.constant 0 : index
    %147 = vector.load %arg12[%c0_73, %c0_74, %c0_75, %c0_76] : memref<2x2x1x32xf32, #tpu.memory_space<vmem>>, vector<1x1x1x32xf32>
    %148 = vector.shape_cast %147 : vector<1x1x1x32xf32> to vector<1x32xf32>
    %c0_77 = arith.constant 0 : index
    %c0_78 = arith.constant 0 : index
    %c0_79 = arith.constant 0 : index
    %c0_80 = arith.constant 0 : index
    %149 = vector.load %arg13[%c0_77, %c0_78, %c0_79, %c0_80] : memref<2x2x1x32xf32, #tpu.memory_space<vmem>>, vector<1x1x1x32xf32>
    %150 = vector.shape_cast %149 : vector<1x1x1x32xf32> to vector<1x32xf32>
    %cst_81 = arith.constant dense<0.000000e+00> : vector<48xf32>
    %151 = vector.multi_reduction <add>, %146, %cst_81 [1] : vector<48x32xf32> to vector<48xf32>
    %152 = vector.shape_cast %151 : vector<48xf32> to vector<48x1xf32>
    %cst_82 = arith.constant 3.200000e+01 : f32
    %153 = vector.broadcast %cst_82 : f32 to vector<48x1xf32>
    %154 = arith.divf %152, %153 : vector<48x1xf32>
    %155 = vector.broadcast %154 : vector<48x1xf32> to vector<48x32xf32>
    %156 = arith.subf %146, %155 : vector<48x32xf32>
    %157 = arith.mulf %156, %156 : vector<48x32xf32>
    %cst_83 = arith.constant dense<0.000000e+00> : vector<48xf32>
    %158 = vector.multi_reduction <add>, %157, %cst_83 [1] : vector<48x32xf32> to vector<48xf32>
    %159 = vector.shape_cast %158 : vector<48xf32> to vector<48x1xf32>
    %cst_84 = arith.constant 3.200000e+01 : f32
    %160 = vector.broadcast %cst_84 : f32 to vector<48x1xf32>
    %161 = arith.divf %159, %160 : vector<48x1xf32>
    %162 = vector.broadcast %154 : vector<48x1xf32> to vector<48x32xf32>
    %163 = arith.subf %146, %162 : vector<48x32xf32>
    %cst_85 = arith.constant 9.99999996E-13 : f32
    %164 = vector.broadcast %cst_85 : f32 to vector<48x1xf32>
    %165 = arith.addf %161, %164 : vector<48x1xf32>
    %166 = math.rsqrt %165 : vector<48x1xf32>
    %167 = vector.broadcast %166 : vector<48x1xf32> to vector<48x32xf32>
    %168 = arith.mulf %163, %167 : vector<48x32xf32>
    %169 = vector.broadcast %148 : vector<1x32xf32> to vector<48x32xf32>
    %170 = arith.mulf %168, %169 : vector<48x32xf32>
    %171 = vector.broadcast %150 : vector<1x32xf32> to vector<48x32xf32>
    %172 = arith.addf %170, %171 : vector<48x32xf32>
    %173 = arith.truncf %172 : vector<48x32xf32> to vector<48x32xbf16>
    %c0_86 = arith.constant 0 : index
    %c0_87 = arith.constant 0 : index
    %c0_88 = arith.constant 0 : index
    %c0_89 = arith.constant 0 : index
    %174 = vector.load %arg14[%c0_86, %c0_87, %c0_88, %c0_89] : memref<2x2x32x128xbf16, #tpu.memory_space<vmem>>, vector<1x1x32x128xbf16>
    %175 = vector.shape_cast %174 : vector<1x1x32x128xbf16> to vector<32x128xbf16>
    %cst_90 = arith.constant dense<0.000000e+00> : vector<48x128xf32>
    %176 = tpu.matmul %173, %175, %cst_90 {dimension_numbers = #tpu.dot_dimension_numbers<[1], [0], [0], [1], [0, 0, 1, 1], [], []>} : vector<48x32xbf16>, vector<32x128xbf16>, vector<48x128xf32> -> vector<48x128xf32>
    %c0_91 = arith.constant 0 : index
    %c0_92 = arith.constant 0 : index
    %c0_93 = arith.constant 0 : index
    %c0_94 = arith.constant 0 : index
    %177 = vector.load %arg15[%c0_91, %c0_92, %c0_93, %c0_94] : memref<2x2x1x128xf32, #tpu.memory_space<vmem>>, vector<1x1x1x128xf32>
    %178 = vector.shape_cast %177 : vector<1x1x1x128xf32> to vector<1x128xf32>
    %179 = vector.broadcast %178 : vector<1x128xf32> to vector<48x128xf32>
    %180 = arith.addf %176, %179 : vector<48x128xf32>
    %cst_95 = arith.constant 5.000000e-01 : f32
    %181 = vector.broadcast %cst_95 : f32 to vector<48x128xf32>
    %182 = arith.mulf %181, %180 : vector<48x128xf32>
    %cst_96 = arith.constant 4.471500e-02 : f32
    %183 = vector.broadcast %cst_96 : f32 to vector<48x128xf32>
    %184 = arith.mulf %183, %180 : vector<48x128xf32>
    %185 = arith.mulf %184, %180 : vector<48x128xf32>
    %186 = arith.mulf %185, %180 : vector<48x128xf32>
    %187 = arith.addf %180, %186 : vector<48x128xf32>
    %cst_97 = arith.constant 0.797884583 : f32
    %188 = vector.broadcast %cst_97 : f32 to vector<48x128xf32>
    %189 = arith.mulf %188, %187 : vector<48x128xf32>
    %190 = math.tanh %189 : vector<48x128xf32>
    %cst_98 = arith.constant 1.000000e+00 : f32
    %191 = vector.broadcast %cst_98 : f32 to vector<48x128xf32>
    %192 = arith.addf %191, %190 : vector<48x128xf32>
    %193 = arith.mulf %182, %192 : vector<48x128xf32>
    %194 = arith.truncf %193 : vector<48x128xf32> to vector<48x128xbf16>
    %c0_99 = arith.constant 0 : index
    %c0_100 = arith.constant 0 : index
    %c0_101 = arith.constant 0 : index
    %c0_102 = arith.constant 0 : index
    %195 = vector.load %arg16[%c0_99, %c0_100, %c0_101, %c0_102] : memref<2x2x128x32xbf16, #tpu.memory_space<vmem>>, vector<1x1x128x32xbf16>
    %196 = vector.shape_cast %195 : vector<1x1x128x32xbf16> to vector<128x32xbf16>
    %cst_103 = arith.constant dense<0.000000e+00> : vector<48x32xf32>
    %197 = tpu.matmul %194, %196, %cst_103 {dimension_numbers = #tpu.dot_dimension_numbers<[1], [0], [0], [1], [0, 0, 1, 1], [], []>} : vector<48x128xbf16>, vector<128x32xbf16>, vector<48x32xf32> -> vector<48x32xf32>
    %198 = arith.addf %146, %197 : vector<48x32xf32>
    %c0_104 = arith.constant 0 : index
    %c0_105 = arith.constant 0 : index
    %c0_106 = arith.constant 0 : index
    %c0_107 = arith.constant 0 : index
    %199 = vector.load %arg17[%c0_104, %c0_105, %c0_106, %c0_107] : memref<2x2x1x32xf32, #tpu.memory_space<vmem>>, vector<1x1x1x32xf32>
    %200 = vector.shape_cast %199 : vector<1x1x1x32xf32> to vector<1x32xf32>
    %201 = vector.broadcast %200 : vector<1x32xf32> to vector<48x32xf32>
    %202 = arith.addf %198, %201 : vector<48x32xf32>
    %c0_108 = arith.constant 0 : index
    %c1 = arith.constant 1 : index
    %c0_109 = arith.constant 0 : index
    %c0_110 = arith.constant 0 : index
    %203 = vector.load %arg6[%c0_108, %c1, %c0_109, %c0_110] : memref<2x2x1x32xf32, #tpu.memory_space<vmem>>, vector<1x1x1x32xf32>
    %204 = vector.shape_cast %203 : vector<1x1x1x32xf32> to vector<1x32xf32>
    %c0_111 = arith.constant 0 : index
    %c1_112 = arith.constant 1 : index
    %c0_113 = arith.constant 0 : index
    %c0_114 = arith.constant 0 : index
    %205 = vector.load %arg7[%c0_111, %c1_112, %c0_113, %c0_114] : memref<2x2x1x32xf32, #tpu.memory_space<vmem>>, vector<1x1x1x32xf32>
    %206 = vector.shape_cast %205 : vector<1x1x1x32xf32> to vector<1x32xf32>
    %cst_115 = arith.constant dense<0.000000e+00> : vector<48xf32>
    %207 = vector.multi_reduction <add>, %202, %cst_115 [1] : vector<48x32xf32> to vector<48xf32>
    %208 = vector.shape_cast %207 : vector<48xf32> to vector<48x1xf32>
    %cst_116 = arith.constant 3.200000e+01 : f32
    %209 = vector.broadcast %cst_116 : f32 to vector<48x1xf32>
    %210 = arith.divf %208, %209 : vector<48x1xf32>
    %211 = vector.broadcast %210 : vector<48x1xf32> to vector<48x32xf32>
    %212 = arith.subf %202, %211 : vector<48x32xf32>
    %213 = arith.mulf %212, %212 : vector<48x32xf32>
    %cst_117 = arith.constant dense<0.000000e+00> : vector<48xf32>
    %214 = vector.multi_reduction <add>, %213, %cst_117 [1] : vector<48x32xf32> to vector<48xf32>
    %215 = vector.shape_cast %214 : vector<48xf32> to vector<48x1xf32>
    %cst_118 = arith.constant 3.200000e+01 : f32
    %216 = vector.broadcast %cst_118 : f32 to vector<48x1xf32>
    %217 = arith.divf %215, %216 : vector<48x1xf32>
    %218 = vector.broadcast %210 : vector<48x1xf32> to vector<48x32xf32>
    %219 = arith.subf %202, %218 : vector<48x32xf32>
    %cst_119 = arith.constant 9.99999996E-13 : f32
    %220 = vector.broadcast %cst_119 : f32 to vector<48x1xf32>
    %221 = arith.addf %217, %220 : vector<48x1xf32>
    %222 = math.rsqrt %221 : vector<48x1xf32>
    %223 = vector.broadcast %222 : vector<48x1xf32> to vector<48x32xf32>
    %224 = arith.mulf %219, %223 : vector<48x32xf32>
    %225 = vector.broadcast %204 : vector<1x32xf32> to vector<48x32xf32>
    %226 = arith.mulf %224, %225 : vector<48x32xf32>
    %227 = vector.broadcast %206 : vector<1x32xf32> to vector<48x32xf32>
    %228 = arith.addf %226, %227 : vector<48x32xf32>
    %229 = arith.truncf %228 : vector<48x32xf32> to vector<48x32xbf16>
    %c0_120 = arith.constant 0 : index
    %c1_121 = arith.constant 1 : index
    %c0_122 = arith.constant 0 : index
    %c0_123 = arith.constant 0 : index
    %230 = vector.load %arg8[%c0_120, %c1_121, %c0_122, %c0_123] : memref<2x2x32x96xbf16, #tpu.memory_space<vmem>>, vector<1x1x32x96xbf16>
    %231 = vector.shape_cast %230 : vector<1x1x32x96xbf16> to vector<32x96xbf16>
    %cst_124 = arith.constant dense<0.000000e+00> : vector<48x96xf32>
    %232 = tpu.matmul %229, %231, %cst_124 {dimension_numbers = #tpu.dot_dimension_numbers<[1], [0], [0], [1], [0, 0, 1, 1], [], []>} : vector<48x32xbf16>, vector<32x96xbf16>, vector<48x96xf32> -> vector<48x96xf32>
    %c0_125 = arith.constant 0 : index
    %c1_126 = arith.constant 1 : index
    %c0_127 = arith.constant 0 : index
    %c0_128 = arith.constant 0 : index
    %233 = vector.load %arg9[%c0_125, %c1_126, %c0_127, %c0_128] : memref<2x2x1x96xf32, #tpu.memory_space<vmem>>, vector<1x1x1x96xf32>
    %234 = vector.shape_cast %233 : vector<1x1x1x96xf32> to vector<1x96xf32>
    %235 = vector.broadcast %234 : vector<1x96xf32> to vector<48x96xf32>
    %236 = arith.addf %232, %235 : vector<48x96xf32>
    %237 = vector.extract_strided_slice %236 {offsets = [0, 0], sizes = [24, 16], strides = [1, 1]} : vector<48x96xf32> to vector<24x16xf32>
    %238 = vector.extract_strided_slice %236 {offsets = [0, 32], sizes = [24, 16], strides = [1, 1]} : vector<48x96xf32> to vector<24x16xf32>
    %239 = vector.extract_strided_slice %236 {offsets = [0, 64], sizes = [24, 16], strides = [1, 1]} : vector<48x96xf32> to vector<24x16xf32>
    %cst_129 = arith.constant dense<0.000000e+00> : vector<24x24xf32>
    %240 = tpu.matmul %237, %238, %cst_129 {dimension_numbers = #tpu.dot_dimension_numbers<[1], [1], [0], [0], [0, 0, 1, 0], [], []>} : vector<24x16xf32>, vector<24x16xf32>, vector<24x24xf32> -> vector<24x24xf32>
    %cst_130 = arith.constant 2.500000e-01 : f32
    %241 = vector.broadcast %cst_130 : f32 to vector<24x24xf32>
    %242 = arith.mulf %240, %241 : vector<24x24xf32>
    %cst_131 = arith.constant -1.000000e+30 : f32
    %243 = vector.broadcast %cst_131 : f32 to vector<24x24xf32>
    %244 = arith.select %2, %242, %243 : vector<24x24xi1>, vector<24x24xf32>
    %cst_132 = arith.constant dense<0xFF800000> : vector<24xf32>
    %245 = vector.multi_reduction <maximumf>, %244, %cst_132 [1] : vector<24x24xf32> to vector<24xf32>
    %246 = vector.shape_cast %245 : vector<24xf32> to vector<24x1xf32>
    %247 = vector.broadcast %246 : vector<24x1xf32> to vector<24x24xf32>
    %248 = arith.subf %244, %247 : vector<24x24xf32>
    %249 = math.exp %248 : vector<24x24xf32>
    %cst_133 = arith.constant dense<0.000000e+00> : vector<24xf32>
    %250 = vector.multi_reduction <add>, %249, %cst_133 [1] : vector<24x24xf32> to vector<24xf32>
    %251 = vector.shape_cast %250 : vector<24xf32> to vector<24x1xf32>
    %252 = tpu.reciprocal %251 {approx = true} : vector<24x1xf32> -> vector<24x1xf32>
    %253 = vector.broadcast %252 : vector<24x1xf32> to vector<24x24xf32>
    %254 = arith.mulf %249, %253 : vector<24x24xf32>
    %cst_134 = arith.constant dense<0.000000e+00> : vector<24x16xf32>
    %255 = tpu.matmul %254, %239, %cst_134 {dimension_numbers = #tpu.dot_dimension_numbers<[1], [0], [0], [1], [0, 0, 1, 1], [], []>} : vector<24x24xf32>, vector<24x16xf32>, vector<24x16xf32> -> vector<24x16xf32>
    %256 = vector.extract_strided_slice %236 {offsets = [0, 16], sizes = [24, 16], strides = [1, 1]} : vector<48x96xf32> to vector<24x16xf32>
    %257 = vector.extract_strided_slice %236 {offsets = [0, 48], sizes = [24, 16], strides = [1, 1]} : vector<48x96xf32> to vector<24x16xf32>
    %258 = vector.extract_strided_slice %236 {offsets = [0, 80], sizes = [24, 16], strides = [1, 1]} : vector<48x96xf32> to vector<24x16xf32>
    %cst_135 = arith.constant dense<0.000000e+00> : vector<24x24xf32>
    %259 = tpu.matmul %256, %257, %cst_135 {dimension_numbers = #tpu.dot_dimension_numbers<[1], [1], [0], [0], [0, 0, 1, 0], [], []>} : vector<24x16xf32>, vector<24x16xf32>, vector<24x24xf32> -> vector<24x24xf32>
    %cst_136 = arith.constant 2.500000e-01 : f32
    %260 = vector.broadcast %cst_136 : f32 to vector<24x24xf32>
    %261 = arith.mulf %259, %260 : vector<24x24xf32>
    %cst_137 = arith.constant -1.000000e+30 : f32
    %262 = vector.broadcast %cst_137 : f32 to vector<24x24xf32>
    %263 = arith.select %2, %261, %262 : vector<24x24xi1>, vector<24x24xf32>
    %cst_138 = arith.constant dense<0xFF800000> : vector<24xf32>
    %264 = vector.multi_reduction <maximumf>, %263, %cst_138 [1] : vector<24x24xf32> to vector<24xf32>
    %265 = vector.shape_cast %264 : vector<24xf32> to vector<24x1xf32>
    %266 = vector.broadcast %265 : vector<24x1xf32> to vector<24x24xf32>
    %267 = arith.subf %263, %266 : vector<24x24xf32>
    %268 = math.exp %267 : vector<24x24xf32>
    %cst_139 = arith.constant dense<0.000000e+00> : vector<24xf32>
    %269 = vector.multi_reduction <add>, %268, %cst_139 [1] : vector<24x24xf32> to vector<24xf32>
    %270 = vector.shape_cast %269 : vector<24xf32> to vector<24x1xf32>
    %271 = tpu.reciprocal %270 {approx = true} : vector<24x1xf32> -> vector<24x1xf32>
    %272 = vector.broadcast %271 : vector<24x1xf32> to vector<24x24xf32>
    %273 = arith.mulf %268, %272 : vector<24x24xf32>
    %cst_140 = arith.constant dense<0.000000e+00> : vector<24x16xf32>
    %274 = tpu.matmul %273, %258, %cst_140 {dimension_numbers = #tpu.dot_dimension_numbers<[1], [0], [0], [1], [0, 0, 1, 1], [], []>} : vector<24x24xf32>, vector<24x16xf32>, vector<24x16xf32> -> vector<24x16xf32>
    %275 = tpu.concatenate %255, %274 in 1 : vector<24x16xf32>, vector<24x16xf32> -> vector<24x32xf32>
    %276 = vector.extract_strided_slice %236 {offsets = [24, 0], sizes = [24, 16], strides = [1, 1]} : vector<48x96xf32> to vector<24x16xf32>
    %277 = vector.extract_strided_slice %236 {offsets = [24, 32], sizes = [24, 16], strides = [1, 1]} : vector<48x96xf32> to vector<24x16xf32>
    %278 = vector.extract_strided_slice %236 {offsets = [24, 64], sizes = [24, 16], strides = [1, 1]} : vector<48x96xf32> to vector<24x16xf32>
    %cst_141 = arith.constant dense<0.000000e+00> : vector<24x24xf32>
    %279 = tpu.matmul %276, %277, %cst_141 {dimension_numbers = #tpu.dot_dimension_numbers<[1], [1], [0], [0], [0, 0, 1, 0], [], []>} : vector<24x16xf32>, vector<24x16xf32>, vector<24x24xf32> -> vector<24x24xf32>
    %cst_142 = arith.constant 2.500000e-01 : f32
    %280 = vector.broadcast %cst_142 : f32 to vector<24x24xf32>
    %281 = arith.mulf %279, %280 : vector<24x24xf32>
    %cst_143 = arith.constant -1.000000e+30 : f32
    %282 = vector.broadcast %cst_143 : f32 to vector<24x24xf32>
    %283 = arith.select %2, %281, %282 : vector<24x24xi1>, vector<24x24xf32>
    %cst_144 = arith.constant dense<0xFF800000> : vector<24xf32>
    %284 = vector.multi_reduction <maximumf>, %283, %cst_144 [1] : vector<24x24xf32> to vector<24xf32>
    %285 = vector.shape_cast %284 : vector<24xf32> to vector<24x1xf32>
    %286 = vector.broadcast %285 : vector<24x1xf32> to vector<24x24xf32>
    %287 = arith.subf %283, %286 : vector<24x24xf32>
    %288 = math.exp %287 : vector<24x24xf32>
    %cst_145 = arith.constant dense<0.000000e+00> : vector<24xf32>
    %289 = vector.multi_reduction <add>, %288, %cst_145 [1] : vector<24x24xf32> to vector<24xf32>
    %290 = vector.shape_cast %289 : vector<24xf32> to vector<24x1xf32>
    %291 = tpu.reciprocal %290 {approx = true} : vector<24x1xf32> -> vector<24x1xf32>
    %292 = vector.broadcast %291 : vector<24x1xf32> to vector<24x24xf32>
    %293 = arith.mulf %288, %292 : vector<24x24xf32>
    %cst_146 = arith.constant dense<0.000000e+00> : vector<24x16xf32>
    %294 = tpu.matmul %293, %278, %cst_146 {dimension_numbers = #tpu.dot_dimension_numbers<[1], [0], [0], [1], [0, 0, 1, 1], [], []>} : vector<24x24xf32>, vector<24x16xf32>, vector<24x16xf32> -> vector<24x16xf32>
    %295 = vector.extract_strided_slice %236 {offsets = [24, 16], sizes = [24, 16], strides = [1, 1]} : vector<48x96xf32> to vector<24x16xf32>
    %296 = vector.extract_strided_slice %236 {offsets = [24, 48], sizes = [24, 16], strides = [1, 1]} : vector<48x96xf32> to vector<24x16xf32>
    %297 = vector.extract_strided_slice %236 {offsets = [24, 80], sizes = [24, 16], strides = [1, 1]} : vector<48x96xf32> to vector<24x16xf32>
    %cst_147 = arith.constant dense<0.000000e+00> : vector<24x24xf32>
    %298 = tpu.matmul %295, %296, %cst_147 {dimension_numbers = #tpu.dot_dimension_numbers<[1], [1], [0], [0], [0, 0, 1, 0], [], []>} : vector<24x16xf32>, vector<24x16xf32>, vector<24x24xf32> -> vector<24x24xf32>
    %cst_148 = arith.constant 2.500000e-01 : f32
    %299 = vector.broadcast %cst_148 : f32 to vector<24x24xf32>
    %300 = arith.mulf %298, %299 : vector<24x24xf32>
    %cst_149 = arith.constant -1.000000e+30 : f32
    %301 = vector.broadcast %cst_149 : f32 to vector<24x24xf32>
    %302 = arith.select %2, %300, %301 : vector<24x24xi1>, vector<24x24xf32>
    %cst_150 = arith.constant dense<0xFF800000> : vector<24xf32>
    %303 = vector.multi_reduction <maximumf>, %302, %cst_150 [1] : vector<24x24xf32> to vector<24xf32>
    %304 = vector.shape_cast %303 : vector<24xf32> to vector<24x1xf32>
    %305 = vector.broadcast %304 : vector<24x1xf32> to vector<24x24xf32>
    %306 = arith.subf %302, %305 : vector<24x24xf32>
    %307 = math.exp %306 : vector<24x24xf32>
    %cst_151 = arith.constant dense<0.000000e+00> : vector<24xf32>
    %308 = vector.multi_reduction <add>, %307, %cst_151 [1] : vector<24x24xf32> to vector<24xf32>
    %309 = vector.shape_cast %308 : vector<24xf32> to vector<24x1xf32>
    %310 = tpu.reciprocal %309 {approx = true} : vector<24x1xf32> -> vector<24x1xf32>
    %311 = vector.broadcast %310 : vector<24x1xf32> to vector<24x24xf32>
    %312 = arith.mulf %307, %311 : vector<24x24xf32>
    %cst_152 = arith.constant dense<0.000000e+00> : vector<24x16xf32>
    %313 = tpu.matmul %312, %297, %cst_152 {dimension_numbers = #tpu.dot_dimension_numbers<[1], [0], [0], [1], [0, 0, 1, 1], [], []>} : vector<24x24xf32>, vector<24x16xf32>, vector<24x16xf32> -> vector<24x16xf32>
    %314 = tpu.concatenate %294, %313 in 1 : vector<24x16xf32>, vector<24x16xf32> -> vector<24x32xf32>
    %315 = tpu.concatenate %275, %314 in 0 : vector<24x32xf32>, vector<24x32xf32> -> vector<48x32xf32>
    %316 = arith.truncf %315 : vector<48x32xf32> to vector<48x32xbf16>
    %c0_153 = arith.constant 0 : index
    %c1_154 = arith.constant 1 : index
    %c0_155 = arith.constant 0 : index
    %c0_156 = arith.constant 0 : index
    %317 = vector.load %arg10[%c0_153, %c1_154, %c0_155, %c0_156] : memref<2x2x32x32xbf16, #tpu.memory_space<vmem>>, vector<1x1x32x32xbf16>
    %318 = vector.shape_cast %317 : vector<1x1x32x32xbf16> to vector<32x32xbf16>
    %cst_157 = arith.constant dense<0.000000e+00> : vector<48x32xf32>
    %319 = tpu.matmul %316, %318, %cst_157 {dimension_numbers = #tpu.dot_dimension_numbers<[1], [0], [0], [1], [0, 0, 1, 1], [], []>} : vector<48x32xbf16>, vector<32x32xbf16>, vector<48x32xf32> -> vector<48x32xf32>
    %320 = arith.addf %202, %319 : vector<48x32xf32>
    %c0_158 = arith.constant 0 : index
    %c1_159 = arith.constant 1 : index
    %c0_160 = arith.constant 0 : index
    %c0_161 = arith.constant 0 : index
    %321 = vector.load %arg11[%c0_158, %c1_159, %c0_160, %c0_161] : memref<2x2x1x32xf32, #tpu.memory_space<vmem>>, vector<1x1x1x32xf32>
    %322 = vector.shape_cast %321 : vector<1x1x1x32xf32> to vector<1x32xf32>
    %323 = vector.broadcast %322 : vector<1x32xf32> to vector<48x32xf32>
    %324 = arith.addf %320, %323 : vector<48x32xf32>
    %c0_162 = arith.constant 0 : index
    %c1_163 = arith.constant 1 : index
    %c0_164 = arith.constant 0 : index
    %c0_165 = arith.constant 0 : index
    %325 = vector.load %arg12[%c0_162, %c1_163, %c0_164, %c0_165] : memref<2x2x1x32xf32, #tpu.memory_space<vmem>>, vector<1x1x1x32xf32>
    %326 = vector.shape_cast %325 : vector<1x1x1x32xf32> to vector<1x32xf32>
    %c0_166 = arith.constant 0 : index
    %c1_167 = arith.constant 1 : index
    %c0_168 = arith.constant 0 : index
    %c0_169 = arith.constant 0 : index
    %327 = vector.load %arg13[%c0_166, %c1_167, %c0_168, %c0_169] : memref<2x2x1x32xf32, #tpu.memory_space<vmem>>, vector<1x1x1x32xf32>
    %328 = vector.shape_cast %327 : vector<1x1x1x32xf32> to vector<1x32xf32>
    %cst_170 = arith.constant dense<0.000000e+00> : vector<48xf32>
    %329 = vector.multi_reduction <add>, %324, %cst_170 [1] : vector<48x32xf32> to vector<48xf32>
    %330 = vector.shape_cast %329 : vector<48xf32> to vector<48x1xf32>
    %cst_171 = arith.constant 3.200000e+01 : f32
    %331 = vector.broadcast %cst_171 : f32 to vector<48x1xf32>
    %332 = arith.divf %330, %331 : vector<48x1xf32>
    %333 = vector.broadcast %332 : vector<48x1xf32> to vector<48x32xf32>
    %334 = arith.subf %324, %333 : vector<48x32xf32>
    %335 = arith.mulf %334, %334 : vector<48x32xf32>
    %cst_172 = arith.constant dense<0.000000e+00> : vector<48xf32>
    %336 = vector.multi_reduction <add>, %335, %cst_172 [1] : vector<48x32xf32> to vector<48xf32>
    %337 = vector.shape_cast %336 : vector<48xf32> to vector<48x1xf32>
    %cst_173 = arith.constant 3.200000e+01 : f32
    %338 = vector.broadcast %cst_173 : f32 to vector<48x1xf32>
    %339 = arith.divf %337, %338 : vector<48x1xf32>
    %340 = vector.broadcast %332 : vector<48x1xf32> to vector<48x32xf32>
    %341 = arith.subf %324, %340 : vector<48x32xf32>
    %cst_174 = arith.constant 9.99999996E-13 : f32
    %342 = vector.broadcast %cst_174 : f32 to vector<48x1xf32>
    %343 = arith.addf %339, %342 : vector<48x1xf32>
    %344 = math.rsqrt %343 : vector<48x1xf32>
    %345 = vector.broadcast %344 : vector<48x1xf32> to vector<48x32xf32>
    %346 = arith.mulf %341, %345 : vector<48x32xf32>
    %347 = vector.broadcast %326 : vector<1x32xf32> to vector<48x32xf32>
    %348 = arith.mulf %346, %347 : vector<48x32xf32>
    %349 = vector.broadcast %328 : vector<1x32xf32> to vector<48x32xf32>
    %350 = arith.addf %348, %349 : vector<48x32xf32>
    %351 = arith.truncf %350 : vector<48x32xf32> to vector<48x32xbf16>
    %c0_175 = arith.constant 0 : index
    %c1_176 = arith.constant 1 : index
    %c0_177 = arith.constant 0 : index
    %c0_178 = arith.constant 0 : index
    %352 = vector.load %arg14[%c0_175, %c1_176, %c0_177, %c0_178] : memref<2x2x32x128xbf16, #tpu.memory_space<vmem>>, vector<1x1x32x128xbf16>
    %353 = vector.shape_cast %352 : vector<1x1x32x128xbf16> to vector<32x128xbf16>
    %cst_179 = arith.constant dense<0.000000e+00> : vector<48x128xf32>
    %354 = tpu.matmul %351, %353, %cst_179 {dimension_numbers = #tpu.dot_dimension_numbers<[1], [0], [0], [1], [0, 0, 1, 1], [], []>} : vector<48x32xbf16>, vector<32x128xbf16>, vector<48x128xf32> -> vector<48x128xf32>
    %c0_180 = arith.constant 0 : index
    %c1_181 = arith.constant 1 : index
    %c0_182 = arith.constant 0 : index
    %c0_183 = arith.constant 0 : index
    %355 = vector.load %arg15[%c0_180, %c1_181, %c0_182, %c0_183] : memref<2x2x1x128xf32, #tpu.memory_space<vmem>>, vector<1x1x1x128xf32>
    %356 = vector.shape_cast %355 : vector<1x1x1x128xf32> to vector<1x128xf32>
    %357 = vector.broadcast %356 : vector<1x128xf32> to vector<48x128xf32>
    %358 = arith.addf %354, %357 : vector<48x128xf32>
    %cst_184 = arith.constant 5.000000e-01 : f32
    %359 = vector.broadcast %cst_184 : f32 to vector<48x128xf32>
    %360 = arith.mulf %359, %358 : vector<48x128xf32>
    %cst_185 = arith.constant 4.471500e-02 : f32
    %361 = vector.broadcast %cst_185 : f32 to vector<48x128xf32>
    %362 = arith.mulf %361, %358 : vector<48x128xf32>
    %363 = arith.mulf %362, %358 : vector<48x128xf32>
    %364 = arith.mulf %363, %358 : vector<48x128xf32>
    %365 = arith.addf %358, %364 : vector<48x128xf32>
    %cst_186 = arith.constant 0.797884583 : f32
    %366 = vector.broadcast %cst_186 : f32 to vector<48x128xf32>
    %367 = arith.mulf %366, %365 : vector<48x128xf32>
    %368 = math.tanh %367 : vector<48x128xf32>
    %cst_187 = arith.constant 1.000000e+00 : f32
    %369 = vector.broadcast %cst_187 : f32 to vector<48x128xf32>
    %370 = arith.addf %369, %368 : vector<48x128xf32>
    %371 = arith.mulf %360, %370 : vector<48x128xf32>
    %372 = arith.truncf %371 : vector<48x128xf32> to vector<48x128xbf16>
    %c0_188 = arith.constant 0 : index
    %c1_189 = arith.constant 1 : index
    %c0_190 = arith.constant 0 : index
    %c0_191 = arith.constant 0 : index
    %373 = vector.load %arg16[%c0_188, %c1_189, %c0_190, %c0_191] : memref<2x2x128x32xbf16, #tpu.memory_space<vmem>>, vector<1x1x128x32xbf16>
    %374 = vector.shape_cast %373 : vector<1x1x128x32xbf16> to vector<128x32xbf16>
    %cst_192 = arith.constant dense<0.000000e+00> : vector<48x32xf32>
    %375 = tpu.matmul %372, %374, %cst_192 {dimension_numbers = #tpu.dot_dimension_numbers<[1], [0], [0], [1], [0, 0, 1, 1], [], []>} : vector<48x128xbf16>, vector<128x32xbf16>, vector<48x32xf32> -> vector<48x32xf32>
    %376 = arith.addf %324, %375 : vector<48x32xf32>
    %c0_193 = arith.constant 0 : index
    %c1_194 = arith.constant 1 : index
    %c0_195 = arith.constant 0 : index
    %c0_196 = arith.constant 0 : index
    %377 = vector.load %arg17[%c0_193, %c1_194, %c0_195, %c0_196] : memref<2x2x1x32xf32, #tpu.memory_space<vmem>>, vector<1x1x1x32xf32>
    %378 = vector.shape_cast %377 : vector<1x1x1x32xf32> to vector<1x32xf32>
    %379 = vector.broadcast %378 : vector<1x32xf32> to vector<48x32xf32>
    %380 = arith.addf %376, %379 : vector<48x32xf32>
    %381 = vector.extract_strided_slice %380 {offsets = [0, 0], sizes = [1, 32], strides = [1, 1]} : vector<48x32xf32> to vector<1x32xf32>
    %382 = vector.extract_strided_slice %380 {offsets = [24, 0], sizes = [1, 32], strides = [1, 1]} : vector<48x32xf32> to vector<1x32xf32>
    %383 = tpu.concatenate %381, %382 in 0 : vector<1x32xf32>, vector<1x32xf32> -> vector<2x32xf32>
    %c0_197 = arith.constant 0 : index
    %c0_198 = arith.constant 0 : index
    %c0_199 = arith.constant 0 : index
    %384 = vector.load %arg18[%c0_197, %c0_198, %c0_199] : memref<2x1x32xf32, #tpu.memory_space<vmem>>, vector<1x1x32xf32>
    %385 = vector.shape_cast %384 : vector<1x1x32xf32> to vector<1x32xf32>
    %c0_200 = arith.constant 0 : index
    %c0_201 = arith.constant 0 : index
    %c0_202 = arith.constant 0 : index
    %386 = vector.load %arg19[%c0_200, %c0_201, %c0_202] : memref<2x1x32xf32, #tpu.memory_space<vmem>>, vector<1x1x32xf32>
    %387 = vector.shape_cast %386 : vector<1x1x32xf32> to vector<1x32xf32>
    %cst_203 = arith.constant dense<0.000000e+00> : vector<2xf32>
    %388 = vector.multi_reduction <add>, %383, %cst_203 [1] : vector<2x32xf32> to vector<2xf32>
    %389 = vector.shape_cast %388 : vector<2xf32> to vector<2x1xf32>
    %cst_204 = arith.constant 3.200000e+01 : f32
    %390 = vector.broadcast %cst_204 : f32 to vector<2x1xf32>
    %391 = arith.divf %389, %390 : vector<2x1xf32>
    %392 = vector.broadcast %391 : vector<2x1xf32> to vector<2x32xf32>
    %393 = arith.subf %383, %392 : vector<2x32xf32>
    %394 = arith.mulf %393, %393 : vector<2x32xf32>
    %cst_205 = arith.constant dense<0.000000e+00> : vector<2xf32>
    %395 = vector.multi_reduction <add>, %394, %cst_205 [1] : vector<2x32xf32> to vector<2xf32>
    %396 = vector.shape_cast %395 : vector<2xf32> to vector<2x1xf32>
    %cst_206 = arith.constant 3.200000e+01 : f32
    %397 = vector.broadcast %cst_206 : f32 to vector<2x1xf32>
    %398 = arith.divf %396, %397 : vector<2x1xf32>
    %399 = vector.broadcast %391 : vector<2x1xf32> to vector<2x32xf32>
    %400 = arith.subf %383, %399 : vector<2x32xf32>
    %cst_207 = arith.constant 9.99999996E-13 : f32
    %401 = vector.broadcast %cst_207 : f32 to vector<2x1xf32>
    %402 = arith.addf %398, %401 : vector<2x1xf32>
    %403 = math.rsqrt %402 : vector<2x1xf32>
    %404 = vector.broadcast %403 : vector<2x1xf32> to vector<2x32xf32>
    %405 = arith.mulf %400, %404 : vector<2x32xf32>
    %406 = vector.broadcast %385 : vector<1x32xf32> to vector<2x32xf32>
    %407 = arith.mulf %405, %406 : vector<2x32xf32>
    %408 = vector.broadcast %387 : vector<1x32xf32> to vector<2x32xf32>
    %409 = arith.addf %407, %408 : vector<2x32xf32>
    %410 = arith.truncf %409 : vector<2x32xf32> to vector<2x32xbf16>
    %c0_208 = arith.constant 0 : index
    %c0_209 = arith.constant 0 : index
    %c0_210 = arith.constant 0 : index
    %411 = vector.load %arg20[%c0_208, %c0_209, %c0_210] : memref<2x32x32xbf16, #tpu.memory_space<vmem>>, vector<1x32x32xbf16>
    %412 = vector.shape_cast %411 : vector<1x32x32xbf16> to vector<32x32xbf16>
    %cst_211 = arith.constant dense<0.000000e+00> : vector<2x32xf32>
    %413 = tpu.matmul %410, %412, %cst_211 {dimension_numbers = #tpu.dot_dimension_numbers<[1], [0], [0], [1], [0, 0, 1, 1], [], []>} : vector<2x32xbf16>, vector<32x32xbf16>, vector<2x32xf32> -> vector<2x32xf32>
    %c0_212 = arith.constant 0 : index
    %c0_213 = arith.constant 0 : index
    %c0_214 = arith.constant 0 : index
    %414 = vector.load %arg21[%c0_212, %c0_213, %c0_214] : memref<2x1x32xf32, #tpu.memory_space<vmem>>, vector<1x1x32xf32>
    %415 = vector.shape_cast %414 : vector<1x1x32xf32> to vector<1x32xf32>
    %416 = vector.broadcast %415 : vector<1x32xf32> to vector<2x32xf32>
    %417 = arith.addf %413, %416 : vector<2x32xf32>
    %418 = math.tanh %417 : vector<2x32xf32>
    %c1_215 = arith.constant 1 : index
    %c0_216 = arith.constant 0 : index
    %c0_217 = arith.constant 0 : index
    %419 = vector.load %arg0[%c1_215, %c0_216, %c0_217] : memref<2x32x48xbf16, #tpu.memory_space<vmem>>, vector<1x32x48xbf16>
    %420 = vector.shape_cast %419 : vector<1x32x48xbf16> to vector<32x48xbf16>
    %c1_218 = arith.constant 1 : index
    %c0_219 = arith.constant 0 : index
    %c0_220 = arith.constant 0 : index
    %421 = vector.load %arg1[%c1_218, %c0_219, %c0_220] : memref<2x48x32xbf16, #tpu.memory_space<vmem>>, vector<1x48x32xbf16>
    %422 = vector.shape_cast %421 : vector<1x48x32xbf16> to vector<48x32xbf16>
    %cst_221 = arith.constant dense<0.000000e+00> : vector<32x32xf32>
    %423 = tpu.matmul %420, %422, %cst_221 {dimension_numbers = #tpu.dot_dimension_numbers<[1], [0], [0], [1], [0, 0, 1, 1], [], []>} : vector<32x48xbf16>, vector<48x32xbf16>, vector<32x32xf32> -> vector<32x32xf32>
    %c1_222 = arith.constant 1 : index
    %c0_223 = arith.constant 0 : index
    %c0_224 = arith.constant 0 : index
    %424 = vector.load %arg2[%c1_222, %c0_223, %c0_224] : memref<2x1x32xf32, #tpu.memory_space<vmem>>, vector<1x1x32xf32>
    %425 = vector.shape_cast %424 : vector<1x1x32xf32> to vector<1x32xf32>
    %426 = vector.broadcast %425 : vector<1x32xf32> to vector<32x32xf32>
    %427 = arith.addf %423, %426 : vector<32x32xf32>
    %c1_225 = arith.constant 1 : index
    %c0_226 = arith.constant 0 : index
    %c0_227 = arith.constant 0 : index
    %428 = vector.load %arg3[%c1_225, %c0_226, %c0_227] : memref<2x1x32xf32, #tpu.memory_space<vmem>>, vector<1x1x32xf32>
    %429 = vector.shape_cast %428 : vector<1x1x32xf32> to vector<1x32xf32>
    %c1_228 = arith.constant 1 : index
    %c0_229 = arith.constant 0 : index
    %c0_230 = arith.constant 0 : index
    %430 = vector.load %arg4[%c1_228, %c0_229, %c0_230] : memref<2x1x32xf32, #tpu.memory_space<vmem>>, vector<1x1x32xf32>
    %431 = vector.shape_cast %430 : vector<1x1x32xf32> to vector<1x32xf32>
    %432 = arith.addf %429, %431 : vector<1x32xf32>
    %c1_231 = arith.constant 1 : index
    %c0_232 = arith.constant 0 : index
    %c0_233 = arith.constant 0 : index
    %433 = vector.load %arg5[%c1_231, %c0_232, %c0_233] : memref<2x16x32xf32, #tpu.memory_space<vmem>>, vector<1x16x32xf32>
    %434 = vector.shape_cast %433 : vector<1x16x32xf32> to vector<16x32xf32>
    %435 = vector.extract_strided_slice %427 {offsets = [0, 0], sizes = [16, 32], strides = [1, 1]} : vector<32x32xf32> to vector<16x32xf32>
    %436 = arith.addf %435, %434 : vector<16x32xf32>
    %437 = vector.extract_strided_slice %427 {offsets = [16, 0], sizes = [16, 32], strides = [1, 1]} : vector<32x32xf32> to vector<16x32xf32>
    %438 = arith.addf %437, %434 : vector<16x32xf32>
    %439 = tpu.concatenate %432, %436, %3, %432, %438, %3 in 0 : vector<1x32xf32>, vector<16x32xf32>, vector<7x32xf32>, vector<1x32xf32>, vector<16x32xf32>, vector<7x32xf32> -> vector<48x32xf32>
    %c1_234 = arith.constant 1 : index
    %c0_235 = arith.constant 0 : index
    %c0_236 = arith.constant 0 : index
    %c0_237 = arith.constant 0 : index
    %440 = vector.load %arg6[%c1_234, %c0_235, %c0_236, %c0_237] : memref<2x2x1x32xf32, #tpu.memory_space<vmem>>, vector<1x1x1x32xf32>
    %441 = vector.shape_cast %440 : vector<1x1x1x32xf32> to vector<1x32xf32>
    %c1_238 = arith.constant 1 : index
    %c0_239 = arith.constant 0 : index
    %c0_240 = arith.constant 0 : index
    %c0_241 = arith.constant 0 : index
    %442 = vector.load %arg7[%c1_238, %c0_239, %c0_240, %c0_241] : memref<2x2x1x32xf32, #tpu.memory_space<vmem>>, vector<1x1x1x32xf32>
    %443 = vector.shape_cast %442 : vector<1x1x1x32xf32> to vector<1x32xf32>
    %cst_242 = arith.constant dense<0.000000e+00> : vector<48xf32>
    %444 = vector.multi_reduction <add>, %439, %cst_242 [1] : vector<48x32xf32> to vector<48xf32>
    %445 = vector.shape_cast %444 : vector<48xf32> to vector<48x1xf32>
    %cst_243 = arith.constant 3.200000e+01 : f32
    %446 = vector.broadcast %cst_243 : f32 to vector<48x1xf32>
    %447 = arith.divf %445, %446 : vector<48x1xf32>
    %448 = vector.broadcast %447 : vector<48x1xf32> to vector<48x32xf32>
    %449 = arith.subf %439, %448 : vector<48x32xf32>
    %450 = arith.mulf %449, %449 : vector<48x32xf32>
    %cst_244 = arith.constant dense<0.000000e+00> : vector<48xf32>
    %451 = vector.multi_reduction <add>, %450, %cst_244 [1] : vector<48x32xf32> to vector<48xf32>
    %452 = vector.shape_cast %451 : vector<48xf32> to vector<48x1xf32>
    %cst_245 = arith.constant 3.200000e+01 : f32
    %453 = vector.broadcast %cst_245 : f32 to vector<48x1xf32>
    %454 = arith.divf %452, %453 : vector<48x1xf32>
    %455 = vector.broadcast %447 : vector<48x1xf32> to vector<48x32xf32>
    %456 = arith.subf %439, %455 : vector<48x32xf32>
    %cst_246 = arith.constant 9.99999996E-13 : f32
    %457 = vector.broadcast %cst_246 : f32 to vector<48x1xf32>
    %458 = arith.addf %454, %457 : vector<48x1xf32>
    %459 = math.rsqrt %458 : vector<48x1xf32>
    %460 = vector.broadcast %459 : vector<48x1xf32> to vector<48x32xf32>
    %461 = arith.mulf %456, %460 : vector<48x32xf32>
    %462 = vector.broadcast %441 : vector<1x32xf32> to vector<48x32xf32>
    %463 = arith.mulf %461, %462 : vector<48x32xf32>
    %464 = vector.broadcast %443 : vector<1x32xf32> to vector<48x32xf32>
    %465 = arith.addf %463, %464 : vector<48x32xf32>
    %466 = arith.truncf %465 : vector<48x32xf32> to vector<48x32xbf16>
    %c1_247 = arith.constant 1 : index
    %c0_248 = arith.constant 0 : index
    %c0_249 = arith.constant 0 : index
    %c0_250 = arith.constant 0 : index
    %467 = vector.load %arg8[%c1_247, %c0_248, %c0_249, %c0_250] : memref<2x2x32x96xbf16, #tpu.memory_space<vmem>>, vector<1x1x32x96xbf16>
    %468 = vector.shape_cast %467 : vector<1x1x32x96xbf16> to vector<32x96xbf16>
    %cst_251 = arith.constant dense<0.000000e+00> : vector<48x96xf32>
    %469 = tpu.matmul %466, %468, %cst_251 {dimension_numbers = #tpu.dot_dimension_numbers<[1], [0], [0], [1], [0, 0, 1, 1], [], []>} : vector<48x32xbf16>, vector<32x96xbf16>, vector<48x96xf32> -> vector<48x96xf32>
    %c1_252 = arith.constant 1 : index
    %c0_253 = arith.constant 0 : index
    %c0_254 = arith.constant 0 : index
    %c0_255 = arith.constant 0 : index
    %470 = vector.load %arg9[%c1_252, %c0_253, %c0_254, %c0_255] : memref<2x2x1x96xf32, #tpu.memory_space<vmem>>, vector<1x1x1x96xf32>
    %471 = vector.shape_cast %470 : vector<1x1x1x96xf32> to vector<1x96xf32>
    %472 = vector.broadcast %471 : vector<1x96xf32> to vector<48x96xf32>
    %473 = arith.addf %469, %472 : vector<48x96xf32>
    %474 = vector.extract_strided_slice %473 {offsets = [0, 0], sizes = [24, 16], strides = [1, 1]} : vector<48x96xf32> to vector<24x16xf32>
    %475 = vector.extract_strided_slice %473 {offsets = [0, 32], sizes = [24, 16], strides = [1, 1]} : vector<48x96xf32> to vector<24x16xf32>
    %476 = vector.extract_strided_slice %473 {offsets = [0, 64], sizes = [24, 16], strides = [1, 1]} : vector<48x96xf32> to vector<24x16xf32>
    %cst_256 = arith.constant dense<0.000000e+00> : vector<24x24xf32>
    %477 = tpu.matmul %474, %475, %cst_256 {dimension_numbers = #tpu.dot_dimension_numbers<[1], [1], [0], [0], [0, 0, 1, 0], [], []>} : vector<24x16xf32>, vector<24x16xf32>, vector<24x24xf32> -> vector<24x24xf32>
    %cst_257 = arith.constant 2.500000e-01 : f32
    %478 = vector.broadcast %cst_257 : f32 to vector<24x24xf32>
    %479 = arith.mulf %477, %478 : vector<24x24xf32>
    %cst_258 = arith.constant -1.000000e+30 : f32
    %480 = vector.broadcast %cst_258 : f32 to vector<24x24xf32>
    %481 = arith.select %2, %479, %480 : vector<24x24xi1>, vector<24x24xf32>
    %cst_259 = arith.constant dense<0xFF800000> : vector<24xf32>
    %482 = vector.multi_reduction <maximumf>, %481, %cst_259 [1] : vector<24x24xf32> to vector<24xf32>
    %483 = vector.shape_cast %482 : vector<24xf32> to vector<24x1xf32>
    %484 = vector.broadcast %483 : vector<24x1xf32> to vector<24x24xf32>
    %485 = arith.subf %481, %484 : vector<24x24xf32>
    %486 = math.exp %485 : vector<24x24xf32>
    %cst_260 = arith.constant dense<0.000000e+00> : vector<24xf32>
    %487 = vector.multi_reduction <add>, %486, %cst_260 [1] : vector<24x24xf32> to vector<24xf32>
    %488 = vector.shape_cast %487 : vector<24xf32> to vector<24x1xf32>
    %489 = tpu.reciprocal %488 {approx = true} : vector<24x1xf32> -> vector<24x1xf32>
    %490 = vector.broadcast %489 : vector<24x1xf32> to vector<24x24xf32>
    %491 = arith.mulf %486, %490 : vector<24x24xf32>
    %cst_261 = arith.constant dense<0.000000e+00> : vector<24x16xf32>
    %492 = tpu.matmul %491, %476, %cst_261 {dimension_numbers = #tpu.dot_dimension_numbers<[1], [0], [0], [1], [0, 0, 1, 1], [], []>} : vector<24x24xf32>, vector<24x16xf32>, vector<24x16xf32> -> vector<24x16xf32>
    %493 = vector.extract_strided_slice %473 {offsets = [0, 16], sizes = [24, 16], strides = [1, 1]} : vector<48x96xf32> to vector<24x16xf32>
    %494 = vector.extract_strided_slice %473 {offsets = [0, 48], sizes = [24, 16], strides = [1, 1]} : vector<48x96xf32> to vector<24x16xf32>
    %495 = vector.extract_strided_slice %473 {offsets = [0, 80], sizes = [24, 16], strides = [1, 1]} : vector<48x96xf32> to vector<24x16xf32>
    %cst_262 = arith.constant dense<0.000000e+00> : vector<24x24xf32>
    %496 = tpu.matmul %493, %494, %cst_262 {dimension_numbers = #tpu.dot_dimension_numbers<[1], [1], [0], [0], [0, 0, 1, 0], [], []>} : vector<24x16xf32>, vector<24x16xf32>, vector<24x24xf32> -> vector<24x24xf32>
    %cst_263 = arith.constant 2.500000e-01 : f32
    %497 = vector.broadcast %cst_263 : f32 to vector<24x24xf32>
    %498 = arith.mulf %496, %497 : vector<24x24xf32>
    %cst_264 = arith.constant -1.000000e+30 : f32
    %499 = vector.broadcast %cst_264 : f32 to vector<24x24xf32>
    %500 = arith.select %2, %498, %499 : vector<24x24xi1>, vector<24x24xf32>
    %cst_265 = arith.constant dense<0xFF800000> : vector<24xf32>
    %501 = vector.multi_reduction <maximumf>, %500, %cst_265 [1] : vector<24x24xf32> to vector<24xf32>
    %502 = vector.shape_cast %501 : vector<24xf32> to vector<24x1xf32>
    %503 = vector.broadcast %502 : vector<24x1xf32> to vector<24x24xf32>
    %504 = arith.subf %500, %503 : vector<24x24xf32>
    %505 = math.exp %504 : vector<24x24xf32>
    %cst_266 = arith.constant dense<0.000000e+00> : vector<24xf32>
    %506 = vector.multi_reduction <add>, %505, %cst_266 [1] : vector<24x24xf32> to vector<24xf32>
    %507 = vector.shape_cast %506 : vector<24xf32> to vector<24x1xf32>
    %508 = tpu.reciprocal %507 {approx = true} : vector<24x1xf32> -> vector<24x1xf32>
    %509 = vector.broadcast %508 : vector<24x1xf32> to vector<24x24xf32>
    %510 = arith.mulf %505, %509 : vector<24x24xf32>
    %cst_267 = arith.constant dense<0.000000e+00> : vector<24x16xf32>
    %511 = tpu.matmul %510, %495, %cst_267 {dimension_numbers = #tpu.dot_dimension_numbers<[1], [0], [0], [1], [0, 0, 1, 1], [], []>} : vector<24x24xf32>, vector<24x16xf32>, vector<24x16xf32> -> vector<24x16xf32>
    %512 = tpu.concatenate %492, %511 in 1 : vector<24x16xf32>, vector<24x16xf32> -> vector<24x32xf32>
    %513 = vector.extract_strided_slice %473 {offsets = [24, 0], sizes = [24, 16], strides = [1, 1]} : vector<48x96xf32> to vector<24x16xf32>
    %514 = vector.extract_strided_slice %473 {offsets = [24, 32], sizes = [24, 16], strides = [1, 1]} : vector<48x96xf32> to vector<24x16xf32>
    %515 = vector.extract_strided_slice %473 {offsets = [24, 64], sizes = [24, 16], strides = [1, 1]} : vector<48x96xf32> to vector<24x16xf32>
    %cst_268 = arith.constant dense<0.000000e+00> : vector<24x24xf32>
    %516 = tpu.matmul %513, %514, %cst_268 {dimension_numbers = #tpu.dot_dimension_numbers<[1], [1], [0], [0], [0, 0, 1, 0], [], []>} : vector<24x16xf32>, vector<24x16xf32>, vector<24x24xf32> -> vector<24x24xf32>
    %cst_269 = arith.constant 2.500000e-01 : f32
    %517 = vector.broadcast %cst_269 : f32 to vector<24x24xf32>
    %518 = arith.mulf %516, %517 : vector<24x24xf32>
    %cst_270 = arith.constant -1.000000e+30 : f32
    %519 = vector.broadcast %cst_270 : f32 to vector<24x24xf32>
    %520 = arith.select %2, %518, %519 : vector<24x24xi1>, vector<24x24xf32>
    %cst_271 = arith.constant dense<0xFF800000> : vector<24xf32>
    %521 = vector.multi_reduction <maximumf>, %520, %cst_271 [1] : vector<24x24xf32> to vector<24xf32>
    %522 = vector.shape_cast %521 : vector<24xf32> to vector<24x1xf32>
    %523 = vector.broadcast %522 : vector<24x1xf32> to vector<24x24xf32>
    %524 = arith.subf %520, %523 : vector<24x24xf32>
    %525 = math.exp %524 : vector<24x24xf32>
    %cst_272 = arith.constant dense<0.000000e+00> : vector<24xf32>
    %526 = vector.multi_reduction <add>, %525, %cst_272 [1] : vector<24x24xf32> to vector<24xf32>
    %527 = vector.shape_cast %526 : vector<24xf32> to vector<24x1xf32>
    %528 = tpu.reciprocal %527 {approx = true} : vector<24x1xf32> -> vector<24x1xf32>
    %529 = vector.broadcast %528 : vector<24x1xf32> to vector<24x24xf32>
    %530 = arith.mulf %525, %529 : vector<24x24xf32>
    %cst_273 = arith.constant dense<0.000000e+00> : vector<24x16xf32>
    %531 = tpu.matmul %530, %515, %cst_273 {dimension_numbers = #tpu.dot_dimension_numbers<[1], [0], [0], [1], [0, 0, 1, 1], [], []>} : vector<24x24xf32>, vector<24x16xf32>, vector<24x16xf32> -> vector<24x16xf32>
    %532 = vector.extract_strided_slice %473 {offsets = [24, 16], sizes = [24, 16], strides = [1, 1]} : vector<48x96xf32> to vector<24x16xf32>
    %533 = vector.extract_strided_slice %473 {offsets = [24, 48], sizes = [24, 16], strides = [1, 1]} : vector<48x96xf32> to vector<24x16xf32>
    %534 = vector.extract_strided_slice %473 {offsets = [24, 80], sizes = [24, 16], strides = [1, 1]} : vector<48x96xf32> to vector<24x16xf32>
    %cst_274 = arith.constant dense<0.000000e+00> : vector<24x24xf32>
    %535 = tpu.matmul %532, %533, %cst_274 {dimension_numbers = #tpu.dot_dimension_numbers<[1], [1], [0], [0], [0, 0, 1, 0], [], []>} : vector<24x16xf32>, vector<24x16xf32>, vector<24x24xf32> -> vector<24x24xf32>
    %cst_275 = arith.constant 2.500000e-01 : f32
    %536 = vector.broadcast %cst_275 : f32 to vector<24x24xf32>
    %537 = arith.mulf %535, %536 : vector<24x24xf32>
    %cst_276 = arith.constant -1.000000e+30 : f32
    %538 = vector.broadcast %cst_276 : f32 to vector<24x24xf32>
    %539 = arith.select %2, %537, %538 : vector<24x24xi1>, vector<24x24xf32>
    %cst_277 = arith.constant dense<0xFF800000> : vector<24xf32>
    %540 = vector.multi_reduction <maximumf>, %539, %cst_277 [1] : vector<24x24xf32> to vector<24xf32>
    %541 = vector.shape_cast %540 : vector<24xf32> to vector<24x1xf32>
    %542 = vector.broadcast %541 : vector<24x1xf32> to vector<24x24xf32>
    %543 = arith.subf %539, %542 : vector<24x24xf32>
    %544 = math.exp %543 : vector<24x24xf32>
    %cst_278 = arith.constant dense<0.000000e+00> : vector<24xf32>
    %545 = vector.multi_reduction <add>, %544, %cst_278 [1] : vector<24x24xf32> to vector<24xf32>
    %546 = vector.shape_cast %545 : vector<24xf32> to vector<24x1xf32>
    %547 = tpu.reciprocal %546 {approx = true} : vector<24x1xf32> -> vector<24x1xf32>
    %548 = vector.broadcast %547 : vector<24x1xf32> to vector<24x24xf32>
    %549 = arith.mulf %544, %548 : vector<24x24xf32>
    %cst_279 = arith.constant dense<0.000000e+00> : vector<24x16xf32>
    %550 = tpu.matmul %549, %534, %cst_279 {dimension_numbers = #tpu.dot_dimension_numbers<[1], [0], [0], [1], [0, 0, 1, 1], [], []>} : vector<24x24xf32>, vector<24x16xf32>, vector<24x16xf32> -> vector<24x16xf32>
    %551 = tpu.concatenate %531, %550 in 1 : vector<24x16xf32>, vector<24x16xf32> -> vector<24x32xf32>
    %552 = tpu.concatenate %512, %551 in 0 : vector<24x32xf32>, vector<24x32xf32> -> vector<48x32xf32>
    %553 = arith.truncf %552 : vector<48x32xf32> to vector<48x32xbf16>
    %c1_280 = arith.constant 1 : index
    %c0_281 = arith.constant 0 : index
    %c0_282 = arith.constant 0 : index
    %c0_283 = arith.constant 0 : index
    %554 = vector.load %arg10[%c1_280, %c0_281, %c0_282, %c0_283] : memref<2x2x32x32xbf16, #tpu.memory_space<vmem>>, vector<1x1x32x32xbf16>
    %555 = vector.shape_cast %554 : vector<1x1x32x32xbf16> to vector<32x32xbf16>
    %cst_284 = arith.constant dense<0.000000e+00> : vector<48x32xf32>
    %556 = tpu.matmul %553, %555, %cst_284 {dimension_numbers = #tpu.dot_dimension_numbers<[1], [0], [0], [1], [0, 0, 1, 1], [], []>} : vector<48x32xbf16>, vector<32x32xbf16>, vector<48x32xf32> -> vector<48x32xf32>
    %557 = arith.addf %439, %556 : vector<48x32xf32>
    %c1_285 = arith.constant 1 : index
    %c0_286 = arith.constant 0 : index
    %c0_287 = arith.constant 0 : index
    %c0_288 = arith.constant 0 : index
    %558 = vector.load %arg11[%c1_285, %c0_286, %c0_287, %c0_288] : memref<2x2x1x32xf32, #tpu.memory_space<vmem>>, vector<1x1x1x32xf32>
    %559 = vector.shape_cast %558 : vector<1x1x1x32xf32> to vector<1x32xf32>
    %560 = vector.broadcast %559 : vector<1x32xf32> to vector<48x32xf32>
    %561 = arith.addf %557, %560 : vector<48x32xf32>
    %c1_289 = arith.constant 1 : index
    %c0_290 = arith.constant 0 : index
    %c0_291 = arith.constant 0 : index
    %c0_292 = arith.constant 0 : index
    %562 = vector.load %arg12[%c1_289, %c0_290, %c0_291, %c0_292] : memref<2x2x1x32xf32, #tpu.memory_space<vmem>>, vector<1x1x1x32xf32>
    %563 = vector.shape_cast %562 : vector<1x1x1x32xf32> to vector<1x32xf32>
    %c1_293 = arith.constant 1 : index
    %c0_294 = arith.constant 0 : index
    %c0_295 = arith.constant 0 : index
    %c0_296 = arith.constant 0 : index
    %564 = vector.load %arg13[%c1_293, %c0_294, %c0_295, %c0_296] : memref<2x2x1x32xf32, #tpu.memory_space<vmem>>, vector<1x1x1x32xf32>
    %565 = vector.shape_cast %564 : vector<1x1x1x32xf32> to vector<1x32xf32>
    %cst_297 = arith.constant dense<0.000000e+00> : vector<48xf32>
    %566 = vector.multi_reduction <add>, %561, %cst_297 [1] : vector<48x32xf32> to vector<48xf32>
    %567 = vector.shape_cast %566 : vector<48xf32> to vector<48x1xf32>
    %cst_298 = arith.constant 3.200000e+01 : f32
    %568 = vector.broadcast %cst_298 : f32 to vector<48x1xf32>
    %569 = arith.divf %567, %568 : vector<48x1xf32>
    %570 = vector.broadcast %569 : vector<48x1xf32> to vector<48x32xf32>
    %571 = arith.subf %561, %570 : vector<48x32xf32>
    %572 = arith.mulf %571, %571 : vector<48x32xf32>
    %cst_299 = arith.constant dense<0.000000e+00> : vector<48xf32>
    %573 = vector.multi_reduction <add>, %572, %cst_299 [1] : vector<48x32xf32> to vector<48xf32>
    %574 = vector.shape_cast %573 : vector<48xf32> to vector<48x1xf32>
    %cst_300 = arith.constant 3.200000e+01 : f32
    %575 = vector.broadcast %cst_300 : f32 to vector<48x1xf32>
    %576 = arith.divf %574, %575 : vector<48x1xf32>
    %577 = vector.broadcast %569 : vector<48x1xf32> to vector<48x32xf32>
    %578 = arith.subf %561, %577 : vector<48x32xf32>
    %cst_301 = arith.constant 9.99999996E-13 : f32
    %579 = vector.broadcast %cst_301 : f32 to vector<48x1xf32>
    %580 = arith.addf %576, %579 : vector<48x1xf32>
    %581 = math.rsqrt %580 : vector<48x1xf32>
    %582 = vector.broadcast %581 : vector<48x1xf32> to vector<48x32xf32>
    %583 = arith.mulf %578, %582 : vector<48x32xf32>
    %584 = vector.broadcast %563 : vector<1x32xf32> to vector<48x32xf32>
    %585 = arith.mulf %583, %584 : vector<48x32xf32>
    %586 = vector.broadcast %565 : vector<1x32xf32> to vector<48x32xf32>
    %587 = arith.addf %585, %586 : vector<48x32xf32>
    %588 = arith.truncf %587 : vector<48x32xf32> to vector<48x32xbf16>
    %c1_302 = arith.constant 1 : index
    %c0_303 = arith.constant 0 : index
    %c0_304 = arith.constant 0 : index
    %c0_305 = arith.constant 0 : index
    %589 = vector.load %arg14[%c1_302, %c0_303, %c0_304, %c0_305] : memref<2x2x32x128xbf16, #tpu.memory_space<vmem>>, vector<1x1x32x128xbf16>
    %590 = vector.shape_cast %589 : vector<1x1x32x128xbf16> to vector<32x128xbf16>
    %cst_306 = arith.constant dense<0.000000e+00> : vector<48x128xf32>
    %591 = tpu.matmul %588, %590, %cst_306 {dimension_numbers = #tpu.dot_dimension_numbers<[1], [0], [0], [1], [0, 0, 1, 1], [], []>} : vector<48x32xbf16>, vector<32x128xbf16>, vector<48x128xf32> -> vector<48x128xf32>
    %c1_307 = arith.constant 1 : index
    %c0_308 = arith.constant 0 : index
    %c0_309 = arith.constant 0 : index
    %c0_310 = arith.constant 0 : index
    %592 = vector.load %arg15[%c1_307, %c0_308, %c0_309, %c0_310] : memref<2x2x1x128xf32, #tpu.memory_space<vmem>>, vector<1x1x1x128xf32>
    %593 = vector.shape_cast %592 : vector<1x1x1x128xf32> to vector<1x128xf32>
    %594 = vector.broadcast %593 : vector<1x128xf32> to vector<48x128xf32>
    %595 = arith.addf %591, %594 : vector<48x128xf32>
    %cst_311 = arith.constant 5.000000e-01 : f32
    %596 = vector.broadcast %cst_311 : f32 to vector<48x128xf32>
    %597 = arith.mulf %596, %595 : vector<48x128xf32>
    %cst_312 = arith.constant 4.471500e-02 : f32
    %598 = vector.broadcast %cst_312 : f32 to vector<48x128xf32>
    %599 = arith.mulf %598, %595 : vector<48x128xf32>
    %600 = arith.mulf %599, %595 : vector<48x128xf32>
    %601 = arith.mulf %600, %595 : vector<48x128xf32>
    %602 = arith.addf %595, %601 : vector<48x128xf32>
    %cst_313 = arith.constant 0.797884583 : f32
    %603 = vector.broadcast %cst_313 : f32 to vector<48x128xf32>
    %604 = arith.mulf %603, %602 : vector<48x128xf32>
    %605 = math.tanh %604 : vector<48x128xf32>
    %cst_314 = arith.constant 1.000000e+00 : f32
    %606 = vector.broadcast %cst_314 : f32 to vector<48x128xf32>
    %607 = arith.addf %606, %605 : vector<48x128xf32>
    %608 = arith.mulf %597, %607 : vector<48x128xf32>
    %609 = arith.truncf %608 : vector<48x128xf32> to vector<48x128xbf16>
    %c1_315 = arith.constant 1 : index
    %c0_316 = arith.constant 0 : index
    %c0_317 = arith.constant 0 : index
    %c0_318 = arith.constant 0 : index
    %610 = vector.load %arg16[%c1_315, %c0_316, %c0_317, %c0_318] : memref<2x2x128x32xbf16, #tpu.memory_space<vmem>>, vector<1x1x128x32xbf16>
    %611 = vector.shape_cast %610 : vector<1x1x128x32xbf16> to vector<128x32xbf16>
    %cst_319 = arith.constant dense<0.000000e+00> : vector<48x32xf32>
    %612 = tpu.matmul %609, %611, %cst_319 {dimension_numbers = #tpu.dot_dimension_numbers<[1], [0], [0], [1], [0, 0, 1, 1], [], []>} : vector<48x128xbf16>, vector<128x32xbf16>, vector<48x32xf32> -> vector<48x32xf32>
    %613 = arith.addf %561, %612 : vector<48x32xf32>
    %c1_320 = arith.constant 1 : index
    %c0_321 = arith.constant 0 : index
    %c0_322 = arith.constant 0 : index
    %c0_323 = arith.constant 0 : index
    %614 = vector.load %arg17[%c1_320, %c0_321, %c0_322, %c0_323] : memref<2x2x1x32xf32, #tpu.memory_space<vmem>>, vector<1x1x1x32xf32>
    %615 = vector.shape_cast %614 : vector<1x1x1x32xf32> to vector<1x32xf32>
    %616 = vector.broadcast %615 : vector<1x32xf32> to vector<48x32xf32>
    %617 = arith.addf %613, %616 : vector<48x32xf32>
    %c1_324 = arith.constant 1 : index
    %c1_325 = arith.constant 1 : index
    %c0_326 = arith.constant 0 : index
    %c0_327 = arith.constant 0 : index
    %618 = vector.load %arg6[%c1_324, %c1_325, %c0_326, %c0_327] : memref<2x2x1x32xf32, #tpu.memory_space<vmem>>, vector<1x1x1x32xf32>
    %619 = vector.shape_cast %618 : vector<1x1x1x32xf32> to vector<1x32xf32>
    %c1_328 = arith.constant 1 : index
    %c1_329 = arith.constant 1 : index
    %c0_330 = arith.constant 0 : index
    %c0_331 = arith.constant 0 : index
    %620 = vector.load %arg7[%c1_328, %c1_329, %c0_330, %c0_331] : memref<2x2x1x32xf32, #tpu.memory_space<vmem>>, vector<1x1x1x32xf32>
    %621 = vector.shape_cast %620 : vector<1x1x1x32xf32> to vector<1x32xf32>
    %cst_332 = arith.constant dense<0.000000e+00> : vector<48xf32>
    %622 = vector.multi_reduction <add>, %617, %cst_332 [1] : vector<48x32xf32> to vector<48xf32>
    %623 = vector.shape_cast %622 : vector<48xf32> to vector<48x1xf32>
    %cst_333 = arith.constant 3.200000e+01 : f32
    %624 = vector.broadcast %cst_333 : f32 to vector<48x1xf32>
    %625 = arith.divf %623, %624 : vector<48x1xf32>
    %626 = vector.broadcast %625 : vector<48x1xf32> to vector<48x32xf32>
    %627 = arith.subf %617, %626 : vector<48x32xf32>
    %628 = arith.mulf %627, %627 : vector<48x32xf32>
    %cst_334 = arith.constant dense<0.000000e+00> : vector<48xf32>
    %629 = vector.multi_reduction <add>, %628, %cst_334 [1] : vector<48x32xf32> to vector<48xf32>
    %630 = vector.shape_cast %629 : vector<48xf32> to vector<48x1xf32>
    %cst_335 = arith.constant 3.200000e+01 : f32
    %631 = vector.broadcast %cst_335 : f32 to vector<48x1xf32>
    %632 = arith.divf %630, %631 : vector<48x1xf32>
    %633 = vector.broadcast %625 : vector<48x1xf32> to vector<48x32xf32>
    %634 = arith.subf %617, %633 : vector<48x32xf32>
    %cst_336 = arith.constant 9.99999996E-13 : f32
    %635 = vector.broadcast %cst_336 : f32 to vector<48x1xf32>
    %636 = arith.addf %632, %635 : vector<48x1xf32>
    %637 = math.rsqrt %636 : vector<48x1xf32>
    %638 = vector.broadcast %637 : vector<48x1xf32> to vector<48x32xf32>
    %639 = arith.mulf %634, %638 : vector<48x32xf32>
    %640 = vector.broadcast %619 : vector<1x32xf32> to vector<48x32xf32>
    %641 = arith.mulf %639, %640 : vector<48x32xf32>
    %642 = vector.broadcast %621 : vector<1x32xf32> to vector<48x32xf32>
    %643 = arith.addf %641, %642 : vector<48x32xf32>
    %644 = arith.truncf %643 : vector<48x32xf32> to vector<48x32xbf16>
    %c1_337 = arith.constant 1 : index
    %c1_338 = arith.constant 1 : index
    %c0_339 = arith.constant 0 : index
    %c0_340 = arith.constant 0 : index
    %645 = vector.load %arg8[%c1_337, %c1_338, %c0_339, %c0_340] : memref<2x2x32x96xbf16, #tpu.memory_space<vmem>>, vector<1x1x32x96xbf16>
    %646 = vector.shape_cast %645 : vector<1x1x32x96xbf16> to vector<32x96xbf16>
    %cst_341 = arith.constant dense<0.000000e+00> : vector<48x96xf32>
    %647 = tpu.matmul %644, %646, %cst_341 {dimension_numbers = #tpu.dot_dimension_numbers<[1], [0], [0], [1], [0, 0, 1, 1], [], []>} : vector<48x32xbf16>, vector<32x96xbf16>, vector<48x96xf32> -> vector<48x96xf32>
    %c1_342 = arith.constant 1 : index
    %c1_343 = arith.constant 1 : index
    %c0_344 = arith.constant 0 : index
    %c0_345 = arith.constant 0 : index
    %648 = vector.load %arg9[%c1_342, %c1_343, %c0_344, %c0_345] : memref<2x2x1x96xf32, #tpu.memory_space<vmem>>, vector<1x1x1x96xf32>
    %649 = vector.shape_cast %648 : vector<1x1x1x96xf32> to vector<1x96xf32>
    %650 = vector.broadcast %649 : vector<1x96xf32> to vector<48x96xf32>
    %651 = arith.addf %647, %650 : vector<48x96xf32>
    %652 = vector.extract_strided_slice %651 {offsets = [0, 0], sizes = [24, 16], strides = [1, 1]} : vector<48x96xf32> to vector<24x16xf32>
    %653 = vector.extract_strided_slice %651 {offsets = [0, 32], sizes = [24, 16], strides = [1, 1]} : vector<48x96xf32> to vector<24x16xf32>
    %654 = vector.extract_strided_slice %651 {offsets = [0, 64], sizes = [24, 16], strides = [1, 1]} : vector<48x96xf32> to vector<24x16xf32>
    %cst_346 = arith.constant dense<0.000000e+00> : vector<24x24xf32>
    %655 = tpu.matmul %652, %653, %cst_346 {dimension_numbers = #tpu.dot_dimension_numbers<[1], [1], [0], [0], [0, 0, 1, 0], [], []>} : vector<24x16xf32>, vector<24x16xf32>, vector<24x24xf32> -> vector<24x24xf32>
    %cst_347 = arith.constant 2.500000e-01 : f32
    %656 = vector.broadcast %cst_347 : f32 to vector<24x24xf32>
    %657 = arith.mulf %655, %656 : vector<24x24xf32>
    %cst_348 = arith.constant -1.000000e+30 : f32
    %658 = vector.broadcast %cst_348 : f32 to vector<24x24xf32>
    %659 = arith.select %2, %657, %658 : vector<24x24xi1>, vector<24x24xf32>
    %cst_349 = arith.constant dense<0xFF800000> : vector<24xf32>
    %660 = vector.multi_reduction <maximumf>, %659, %cst_349 [1] : vector<24x24xf32> to vector<24xf32>
    %661 = vector.shape_cast %660 : vector<24xf32> to vector<24x1xf32>
    %662 = vector.broadcast %661 : vector<24x1xf32> to vector<24x24xf32>
    %663 = arith.subf %659, %662 : vector<24x24xf32>
    %664 = math.exp %663 : vector<24x24xf32>
    %cst_350 = arith.constant dense<0.000000e+00> : vector<24xf32>
    %665 = vector.multi_reduction <add>, %664, %cst_350 [1] : vector<24x24xf32> to vector<24xf32>
    %666 = vector.shape_cast %665 : vector<24xf32> to vector<24x1xf32>
    %667 = tpu.reciprocal %666 {approx = true} : vector<24x1xf32> -> vector<24x1xf32>
    %668 = vector.broadcast %667 : vector<24x1xf32> to vector<24x24xf32>
    %669 = arith.mulf %664, %668 : vector<24x24xf32>
    %cst_351 = arith.constant dense<0.000000e+00> : vector<24x16xf32>
    %670 = tpu.matmul %669, %654, %cst_351 {dimension_numbers = #tpu.dot_dimension_numbers<[1], [0], [0], [1], [0, 0, 1, 1], [], []>} : vector<24x24xf32>, vector<24x16xf32>, vector<24x16xf32> -> vector<24x16xf32>
    %671 = vector.extract_strided_slice %651 {offsets = [0, 16], sizes = [24, 16], strides = [1, 1]} : vector<48x96xf32> to vector<24x16xf32>
    %672 = vector.extract_strided_slice %651 {offsets = [0, 48], sizes = [24, 16], strides = [1, 1]} : vector<48x96xf32> to vector<24x16xf32>
    %673 = vector.extract_strided_slice %651 {offsets = [0, 80], sizes = [24, 16], strides = [1, 1]} : vector<48x96xf32> to vector<24x16xf32>
    %cst_352 = arith.constant dense<0.000000e+00> : vector<24x24xf32>
    %674 = tpu.matmul %671, %672, %cst_352 {dimension_numbers = #tpu.dot_dimension_numbers<[1], [1], [0], [0], [0, 0, 1, 0], [], []>} : vector<24x16xf32>, vector<24x16xf32>, vector<24x24xf32> -> vector<24x24xf32>
    %cst_353 = arith.constant 2.500000e-01 : f32
    %675 = vector.broadcast %cst_353 : f32 to vector<24x24xf32>
    %676 = arith.mulf %674, %675 : vector<24x24xf32>
    %cst_354 = arith.constant -1.000000e+30 : f32
    %677 = vector.broadcast %cst_354 : f32 to vector<24x24xf32>
    %678 = arith.select %2, %676, %677 : vector<24x24xi1>, vector<24x24xf32>
    %cst_355 = arith.constant dense<0xFF800000> : vector<24xf32>
    %679 = vector.multi_reduction <maximumf>, %678, %cst_355 [1] : vector<24x24xf32> to vector<24xf32>
    %680 = vector.shape_cast %679 : vector<24xf32> to vector<24x1xf32>
    %681 = vector.broadcast %680 : vector<24x1xf32> to vector<24x24xf32>
    %682 = arith.subf %678, %681 : vector<24x24xf32>
    %683 = math.exp %682 : vector<24x24xf32>
    %cst_356 = arith.constant dense<0.000000e+00> : vector<24xf32>
    %684 = vector.multi_reduction <add>, %683, %cst_356 [1] : vector<24x24xf32> to vector<24xf32>
    %685 = vector.shape_cast %684 : vector<24xf32> to vector<24x1xf32>
    %686 = tpu.reciprocal %685 {approx = true} : vector<24x1xf32> -> vector<24x1xf32>
    %687 = vector.broadcast %686 : vector<24x1xf32> to vector<24x24xf32>
    %688 = arith.mulf %683, %687 : vector<24x24xf32>
    %cst_357 = arith.constant dense<0.000000e+00> : vector<24x16xf32>
    %689 = tpu.matmul %688, %673, %cst_357 {dimension_numbers = #tpu.dot_dimension_numbers<[1], [0], [0], [1], [0, 0, 1, 1], [], []>} : vector<24x24xf32>, vector<24x16xf32>, vector<24x16xf32> -> vector<24x16xf32>
    %690 = tpu.concatenate %670, %689 in 1 : vector<24x16xf32>, vector<24x16xf32> -> vector<24x32xf32>
    %691 = vector.extract_strided_slice %651 {offsets = [24, 0], sizes = [24, 16], strides = [1, 1]} : vector<48x96xf32> to vector<24x16xf32>
    %692 = vector.extract_strided_slice %651 {offsets = [24, 32], sizes = [24, 16], strides = [1, 1]} : vector<48x96xf32> to vector<24x16xf32>
    %693 = vector.extract_strided_slice %651 {offsets = [24, 64], sizes = [24, 16], strides = [1, 1]} : vector<48x96xf32> to vector<24x16xf32>
    %cst_358 = arith.constant dense<0.000000e+00> : vector<24x24xf32>
    %694 = tpu.matmul %691, %692, %cst_358 {dimension_numbers = #tpu.dot_dimension_numbers<[1], [1], [0], [0], [0, 0, 1, 0], [], []>} : vector<24x16xf32>, vector<24x16xf32>, vector<24x24xf32> -> vector<24x24xf32>
    %cst_359 = arith.constant 2.500000e-01 : f32
    %695 = vector.broadcast %cst_359 : f32 to vector<24x24xf32>
    %696 = arith.mulf %694, %695 : vector<24x24xf32>
    %cst_360 = arith.constant -1.000000e+30 : f32
    %697 = vector.broadcast %cst_360 : f32 to vector<24x24xf32>
    %698 = arith.select %2, %696, %697 : vector<24x24xi1>, vector<24x24xf32>
    %cst_361 = arith.constant dense<0xFF800000> : vector<24xf32>
    %699 = vector.multi_reduction <maximumf>, %698, %cst_361 [1] : vector<24x24xf32> to vector<24xf32>
    %700 = vector.shape_cast %699 : vector<24xf32> to vector<24x1xf32>
    %701 = vector.broadcast %700 : vector<24x1xf32> to vector<24x24xf32>
    %702 = arith.subf %698, %701 : vector<24x24xf32>
    %703 = math.exp %702 : vector<24x24xf32>
    %cst_362 = arith.constant dense<0.000000e+00> : vector<24xf32>
    %704 = vector.multi_reduction <add>, %703, %cst_362 [1] : vector<24x24xf32> to vector<24xf32>
    %705 = vector.shape_cast %704 : vector<24xf32> to vector<24x1xf32>
    %706 = tpu.reciprocal %705 {approx = true} : vector<24x1xf32> -> vector<24x1xf32>
    %707 = vector.broadcast %706 : vector<24x1xf32> to vector<24x24xf32>
    %708 = arith.mulf %703, %707 : vector<24x24xf32>
    %cst_363 = arith.constant dense<0.000000e+00> : vector<24x16xf32>
    %709 = tpu.matmul %708, %693, %cst_363 {dimension_numbers = #tpu.dot_dimension_numbers<[1], [0], [0], [1], [0, 0, 1, 1], [], []>} : vector<24x24xf32>, vector<24x16xf32>, vector<24x16xf32> -> vector<24x16xf32>
    %710 = vector.extract_strided_slice %651 {offsets = [24, 16], sizes = [24, 16], strides = [1, 1]} : vector<48x96xf32> to vector<24x16xf32>
    %711 = vector.extract_strided_slice %651 {offsets = [24, 48], sizes = [24, 16], strides = [1, 1]} : vector<48x96xf32> to vector<24x16xf32>
    %712 = vector.extract_strided_slice %651 {offsets = [24, 80], sizes = [24, 16], strides = [1, 1]} : vector<48x96xf32> to vector<24x16xf32>
    %cst_364 = arith.constant dense<0.000000e+00> : vector<24x24xf32>
    %713 = tpu.matmul %710, %711, %cst_364 {dimension_numbers = #tpu.dot_dimension_numbers<[1], [1], [0], [0], [0, 0, 1, 0], [], []>} : vector<24x16xf32>, vector<24x16xf32>, vector<24x24xf32> -> vector<24x24xf32>
    %cst_365 = arith.constant 2.500000e-01 : f32
    %714 = vector.broadcast %cst_365 : f32 to vector<24x24xf32>
    %715 = arith.mulf %713, %714 : vector<24x24xf32>
    %cst_366 = arith.constant -1.000000e+30 : f32
    %716 = vector.broadcast %cst_366 : f32 to vector<24x24xf32>
    %717 = arith.select %2, %715, %716 : vector<24x24xi1>, vector<24x24xf32>
    %cst_367 = arith.constant dense<0xFF800000> : vector<24xf32>
    %718 = vector.multi_reduction <maximumf>, %717, %cst_367 [1] : vector<24x24xf32> to vector<24xf32>
    %719 = vector.shape_cast %718 : vector<24xf32> to vector<24x1xf32>
    %720 = vector.broadcast %719 : vector<24x1xf32> to vector<24x24xf32>
    %721 = arith.subf %717, %720 : vector<24x24xf32>
    %722 = math.exp %721 : vector<24x24xf32>
    %cst_368 = arith.constant dense<0.000000e+00> : vector<24xf32>
    %723 = vector.multi_reduction <add>, %722, %cst_368 [1] : vector<24x24xf32> to vector<24xf32>
    %724 = vector.shape_cast %723 : vector<24xf32> to vector<24x1xf32>
    %725 = tpu.reciprocal %724 {approx = true} : vector<24x1xf32> -> vector<24x1xf32>
    %726 = vector.broadcast %725 : vector<24x1xf32> to vector<24x24xf32>
    %727 = arith.mulf %722, %726 : vector<24x24xf32>
    %cst_369 = arith.constant dense<0.000000e+00> : vector<24x16xf32>
    %728 = tpu.matmul %727, %712, %cst_369 {dimension_numbers = #tpu.dot_dimension_numbers<[1], [0], [0], [1], [0, 0, 1, 1], [], []>} : vector<24x24xf32>, vector<24x16xf32>, vector<24x16xf32> -> vector<24x16xf32>
    %729 = tpu.concatenate %709, %728 in 1 : vector<24x16xf32>, vector<24x16xf32> -> vector<24x32xf32>
    %730 = tpu.concatenate %690, %729 in 0 : vector<24x32xf32>, vector<24x32xf32> -> vector<48x32xf32>
    %731 = arith.truncf %730 : vector<48x32xf32> to vector<48x32xbf16>
    %c1_370 = arith.constant 1 : index
    %c1_371 = arith.constant 1 : index
    %c0_372 = arith.constant 0 : index
    %c0_373 = arith.constant 0 : index
    %732 = vector.load %arg10[%c1_370, %c1_371, %c0_372, %c0_373] : memref<2x2x32x32xbf16, #tpu.memory_space<vmem>>, vector<1x1x32x32xbf16>
    %733 = vector.shape_cast %732 : vector<1x1x32x32xbf16> to vector<32x32xbf16>
    %cst_374 = arith.constant dense<0.000000e+00> : vector<48x32xf32>
    %734 = tpu.matmul %731, %733, %cst_374 {dimension_numbers = #tpu.dot_dimension_numbers<[1], [0], [0], [1], [0, 0, 1, 1], [], []>} : vector<48x32xbf16>, vector<32x32xbf16>, vector<48x32xf32> -> vector<48x32xf32>
    %735 = arith.addf %617, %734 : vector<48x32xf32>
    %c1_375 = arith.constant 1 : index
    %c1_376 = arith.constant 1 : index
    %c0_377 = arith.constant 0 : index
    %c0_378 = arith.constant 0 : index
    %736 = vector.load %arg11[%c1_375, %c1_376, %c0_377, %c0_378] : memref<2x2x1x32xf32, #tpu.memory_space<vmem>>, vector<1x1x1x32xf32>
    %737 = vector.shape_cast %736 : vector<1x1x1x32xf32> to vector<1x32xf32>
    %738 = vector.broadcast %737 : vector<1x32xf32> to vector<48x32xf32>
    %739 = arith.addf %735, %738 : vector<48x32xf32>
    %c1_379 = arith.constant 1 : index
    %c1_380 = arith.constant 1 : index
    %c0_381 = arith.constant 0 : index
    %c0_382 = arith.constant 0 : index
    %740 = vector.load %arg12[%c1_379, %c1_380, %c0_381, %c0_382] : memref<2x2x1x32xf32, #tpu.memory_space<vmem>>, vector<1x1x1x32xf32>
    %741 = vector.shape_cast %740 : vector<1x1x1x32xf32> to vector<1x32xf32>
    %c1_383 = arith.constant 1 : index
    %c1_384 = arith.constant 1 : index
    %c0_385 = arith.constant 0 : index
    %c0_386 = arith.constant 0 : index
    %742 = vector.load %arg13[%c1_383, %c1_384, %c0_385, %c0_386] : memref<2x2x1x32xf32, #tpu.memory_space<vmem>>, vector<1x1x1x32xf32>
    %743 = vector.shape_cast %742 : vector<1x1x1x32xf32> to vector<1x32xf32>
    %cst_387 = arith.constant dense<0.000000e+00> : vector<48xf32>
    %744 = vector.multi_reduction <add>, %739, %cst_387 [1] : vector<48x32xf32> to vector<48xf32>
    %745 = vector.shape_cast %744 : vector<48xf32> to vector<48x1xf32>
    %cst_388 = arith.constant 3.200000e+01 : f32
    %746 = vector.broadcast %cst_388 : f32 to vector<48x1xf32>
    %747 = arith.divf %745, %746 : vector<48x1xf32>
    %748 = vector.broadcast %747 : vector<48x1xf32> to vector<48x32xf32>
    %749 = arith.subf %739, %748 : vector<48x32xf32>
    %750 = arith.mulf %749, %749 : vector<48x32xf32>
    %cst_389 = arith.constant dense<0.000000e+00> : vector<48xf32>
    %751 = vector.multi_reduction <add>, %750, %cst_389 [1] : vector<48x32xf32> to vector<48xf32>
    %752 = vector.shape_cast %751 : vector<48xf32> to vector<48x1xf32>
    %cst_390 = arith.constant 3.200000e+01 : f32
    %753 = vector.broadcast %cst_390 : f32 to vector<48x1xf32>
    %754 = arith.divf %752, %753 : vector<48x1xf32>
    %755 = vector.broadcast %747 : vector<48x1xf32> to vector<48x32xf32>
    %756 = arith.subf %739, %755 : vector<48x32xf32>
    %cst_391 = arith.constant 9.99999996E-13 : f32
    %757 = vector.broadcast %cst_391 : f32 to vector<48x1xf32>
    %758 = arith.addf %754, %757 : vector<48x1xf32>
    %759 = math.rsqrt %758 : vector<48x1xf32>
    %760 = vector.broadcast %759 : vector<48x1xf32> to vector<48x32xf32>
    %761 = arith.mulf %756, %760 : vector<48x32xf32>
    %762 = vector.broadcast %741 : vector<1x32xf32> to vector<48x32xf32>
    %763 = arith.mulf %761, %762 : vector<48x32xf32>
    %764 = vector.broadcast %743 : vector<1x32xf32> to vector<48x32xf32>
    %765 = arith.addf %763, %764 : vector<48x32xf32>
    %766 = arith.truncf %765 : vector<48x32xf32> to vector<48x32xbf16>
    %c1_392 = arith.constant 1 : index
    %c1_393 = arith.constant 1 : index
    %c0_394 = arith.constant 0 : index
    %c0_395 = arith.constant 0 : index
    %767 = vector.load %arg14[%c1_392, %c1_393, %c0_394, %c0_395] : memref<2x2x32x128xbf16, #tpu.memory_space<vmem>>, vector<1x1x32x128xbf16>
    %768 = vector.shape_cast %767 : vector<1x1x32x128xbf16> to vector<32x128xbf16>
    %cst_396 = arith.constant dense<0.000000e+00> : vector<48x128xf32>
    %769 = tpu.matmul %766, %768, %cst_396 {dimension_numbers = #tpu.dot_dimension_numbers<[1], [0], [0], [1], [0, 0, 1, 1], [], []>} : vector<48x32xbf16>, vector<32x128xbf16>, vector<48x128xf32> -> vector<48x128xf32>
    %c1_397 = arith.constant 1 : index
    %c1_398 = arith.constant 1 : index
    %c0_399 = arith.constant 0 : index
    %c0_400 = arith.constant 0 : index
    %770 = vector.load %arg15[%c1_397, %c1_398, %c0_399, %c0_400] : memref<2x2x1x128xf32, #tpu.memory_space<vmem>>, vector<1x1x1x128xf32>
    %771 = vector.shape_cast %770 : vector<1x1x1x128xf32> to vector<1x128xf32>
    %772 = vector.broadcast %771 : vector<1x128xf32> to vector<48x128xf32>
    %773 = arith.addf %769, %772 : vector<48x128xf32>
    %cst_401 = arith.constant 5.000000e-01 : f32
    %774 = vector.broadcast %cst_401 : f32 to vector<48x128xf32>
    %775 = arith.mulf %774, %773 : vector<48x128xf32>
    %cst_402 = arith.constant 4.471500e-02 : f32
    %776 = vector.broadcast %cst_402 : f32 to vector<48x128xf32>
    %777 = arith.mulf %776, %773 : vector<48x128xf32>
    %778 = arith.mulf %777, %773 : vector<48x128xf32>
    %779 = arith.mulf %778, %773 : vector<48x128xf32>
    %780 = arith.addf %773, %779 : vector<48x128xf32>
    %cst_403 = arith.constant 0.797884583 : f32
    %781 = vector.broadcast %cst_403 : f32 to vector<48x128xf32>
    %782 = arith.mulf %781, %780 : vector<48x128xf32>
    %783 = math.tanh %782 : vector<48x128xf32>
    %cst_404 = arith.constant 1.000000e+00 : f32
    %784 = vector.broadcast %cst_404 : f32 to vector<48x128xf32>
    %785 = arith.addf %784, %783 : vector<48x128xf32>
    %786 = arith.mulf %775, %785 : vector<48x128xf32>
    %787 = arith.truncf %786 : vector<48x128xf32> to vector<48x128xbf16>
    %c1_405 = arith.constant 1 : index
    %c1_406 = arith.constant 1 : index
    %c0_407 = arith.constant 0 : index
    %c0_408 = arith.constant 0 : index
    %788 = vector.load %arg16[%c1_405, %c1_406, %c0_407, %c0_408] : memref<2x2x128x32xbf16, #tpu.memory_space<vmem>>, vector<1x1x128x32xbf16>
    %789 = vector.shape_cast %788 : vector<1x1x128x32xbf16> to vector<128x32xbf16>
    %cst_409 = arith.constant dense<0.000000e+00> : vector<48x32xf32>
    %790 = tpu.matmul %787, %789, %cst_409 {dimension_numbers = #tpu.dot_dimension_numbers<[1], [0], [0], [1], [0, 0, 1, 1], [], []>} : vector<48x128xbf16>, vector<128x32xbf16>, vector<48x32xf32> -> vector<48x32xf32>
    %791 = arith.addf %739, %790 : vector<48x32xf32>
    %c1_410 = arith.constant 1 : index
    %c1_411 = arith.constant 1 : index
    %c0_412 = arith.constant 0 : index
    %c0_413 = arith.constant 0 : index
    %792 = vector.load %arg17[%c1_410, %c1_411, %c0_412, %c0_413] : memref<2x2x1x32xf32, #tpu.memory_space<vmem>>, vector<1x1x1x32xf32>
    %793 = vector.shape_cast %792 : vector<1x1x1x32xf32> to vector<1x32xf32>
    %794 = vector.broadcast %793 : vector<1x32xf32> to vector<48x32xf32>
    %795 = arith.addf %791, %794 : vector<48x32xf32>
    %796 = vector.extract_strided_slice %795 {offsets = [0, 0], sizes = [1, 32], strides = [1, 1]} : vector<48x32xf32> to vector<1x32xf32>
    %797 = vector.extract_strided_slice %795 {offsets = [24, 0], sizes = [1, 32], strides = [1, 1]} : vector<48x32xf32> to vector<1x32xf32>
    %798 = tpu.concatenate %796, %797 in 0 : vector<1x32xf32>, vector<1x32xf32> -> vector<2x32xf32>
    %c1_414 = arith.constant 1 : index
    %c0_415 = arith.constant 0 : index
    %c0_416 = arith.constant 0 : index
    %799 = vector.load %arg18[%c1_414, %c0_415, %c0_416] : memref<2x1x32xf32, #tpu.memory_space<vmem>>, vector<1x1x32xf32>
    %800 = vector.shape_cast %799 : vector<1x1x32xf32> to vector<1x32xf32>
    %c1_417 = arith.constant 1 : index
    %c0_418 = arith.constant 0 : index
    %c0_419 = arith.constant 0 : index
    %801 = vector.load %arg19[%c1_417, %c0_418, %c0_419] : memref<2x1x32xf32, #tpu.memory_space<vmem>>, vector<1x1x32xf32>
    %802 = vector.shape_cast %801 : vector<1x1x32xf32> to vector<1x32xf32>
    %cst_420 = arith.constant dense<0.000000e+00> : vector<2xf32>
    %803 = vector.multi_reduction <add>, %798, %cst_420 [1] : vector<2x32xf32> to vector<2xf32>
    %804 = vector.shape_cast %803 : vector<2xf32> to vector<2x1xf32>
    %cst_421 = arith.constant 3.200000e+01 : f32
    %805 = vector.broadcast %cst_421 : f32 to vector<2x1xf32>
    %806 = arith.divf %804, %805 : vector<2x1xf32>
    %807 = vector.broadcast %806 : vector<2x1xf32> to vector<2x32xf32>
    %808 = arith.subf %798, %807 : vector<2x32xf32>
    %809 = arith.mulf %808, %808 : vector<2x32xf32>
    %cst_422 = arith.constant dense<0.000000e+00> : vector<2xf32>
    %810 = vector.multi_reduction <add>, %809, %cst_422 [1] : vector<2x32xf32> to vector<2xf32>
    %811 = vector.shape_cast %810 : vector<2xf32> to vector<2x1xf32>
    %cst_423 = arith.constant 3.200000e+01 : f32
    %812 = vector.broadcast %cst_423 : f32 to vector<2x1xf32>
    %813 = arith.divf %811, %812 : vector<2x1xf32>
    %814 = vector.broadcast %806 : vector<2x1xf32> to vector<2x32xf32>
    %815 = arith.subf %798, %814 : vector<2x32xf32>
    %cst_424 = arith.constant 9.99999996E-13 : f32
    %816 = vector.broadcast %cst_424 : f32 to vector<2x1xf32>
    %817 = arith.addf %813, %816 : vector<2x1xf32>
    %818 = math.rsqrt %817 : vector<2x1xf32>
    %819 = vector.broadcast %818 : vector<2x1xf32> to vector<2x32xf32>
    %820 = arith.mulf %815, %819 : vector<2x32xf32>
    %821 = vector.broadcast %800 : vector<1x32xf32> to vector<2x32xf32>
    %822 = arith.mulf %820, %821 : vector<2x32xf32>
    %823 = vector.broadcast %802 : vector<1x32xf32> to vector<2x32xf32>
    %824 = arith.addf %822, %823 : vector<2x32xf32>
    %825 = arith.truncf %824 : vector<2x32xf32> to vector<2x32xbf16>
    %c1_425 = arith.constant 1 : index
    %c0_426 = arith.constant 0 : index
    %c0_427 = arith.constant 0 : index
    %826 = vector.load %arg20[%c1_425, %c0_426, %c0_427] : memref<2x32x32xbf16, #tpu.memory_space<vmem>>, vector<1x32x32xbf16>
    %827 = vector.shape_cast %826 : vector<1x32x32xbf16> to vector<32x32xbf16>
    %cst_428 = arith.constant dense<0.000000e+00> : vector<2x32xf32>
    %828 = tpu.matmul %825, %827, %cst_428 {dimension_numbers = #tpu.dot_dimension_numbers<[1], [0], [0], [1], [0, 0, 1, 1], [], []>} : vector<2x32xbf16>, vector<32x32xbf16>, vector<2x32xf32> -> vector<2x32xf32>
    %c1_429 = arith.constant 1 : index
    %c0_430 = arith.constant 0 : index
    %c0_431 = arith.constant 0 : index
    %829 = vector.load %arg21[%c1_429, %c0_430, %c0_431] : memref<2x1x32xf32, #tpu.memory_space<vmem>>, vector<1x1x32xf32>
    %830 = vector.shape_cast %829 : vector<1x1x32xf32> to vector<1x32xf32>
    %831 = vector.broadcast %830 : vector<1x32xf32> to vector<2x32xf32>
    %832 = arith.addf %828, %831 : vector<2x32xf32>
    %833 = math.tanh %832 : vector<2x32xf32>
    %c0_432 = arith.constant 0 : index
    %c0_433 = arith.constant 0 : index
    %834 = vector.load %arg22[%c0_432, %c0_433] : memref<64x128xf32, #tpu.memory_space<vmem>>, vector<64x128xf32>
    %c0_434 = arith.constant 0 : index
    %c0_435 = arith.constant 0 : index
    %835 = vector.load %arg23[%c0_434, %c0_435] : memref<1x128xf32, #tpu.memory_space<vmem>>, vector<1x128xf32>
    %836 = vector.extract_strided_slice %834 {offsets = [0, 0], sizes = [32, 128], strides = [1, 1]} : vector<64x128xf32> to vector<32x128xf32>
    %cst_436 = arith.constant dense<0.000000e+00> : vector<2x128xf32>
    %837 = tpu.matmul %418, %836, %cst_436 {dimension_numbers = #tpu.dot_dimension_numbers<[1], [0], [0], [1], [0, 0, 1, 1], [], []>} : vector<2x32xf32>, vector<32x128xf32>, vector<2x128xf32> -> vector<2x128xf32>
    %838 = vector.extract_strided_slice %834 {offsets = [32, 0], sizes = [32, 128], strides = [1, 1]} : vector<64x128xf32> to vector<32x128xf32>
    %cst_437 = arith.constant dense<0.000000e+00> : vector<2x128xf32>
    %839 = tpu.matmul %833, %838, %cst_437 {dimension_numbers = #tpu.dot_dimension_numbers<[1], [0], [0], [1], [0, 0, 1, 1], [], []>} : vector<2x32xf32>, vector<32x128xf32>, vector<2x128xf32> -> vector<2x128xf32>
    %840 = arith.addf %837, %839 : vector<2x128xf32>
    %841 = vector.broadcast %835 : vector<1x128xf32> to vector<2x128xf32>
    %842 = arith.addf %840, %841 : vector<2x128xf32>
    %cst_438 = arith.constant 0.000000e+00 : f32
    %843 = vector.broadcast %cst_438 : f32 to vector<2x128xf32>
    %844 = arith.maximumf %842, %843 : vector<2x128xf32>
    %c0_439 = arith.constant 0 : index
    %c0_440 = arith.constant 0 : index
    %845 = vector.load %arg24[%c0_439, %c0_440] : memref<128x64xf32, #tpu.memory_space<vmem>>, vector<128x64xf32>
    %cst_441 = arith.constant dense<0.000000e+00> : vector<2x64xf32>
    %846 = tpu.matmul %844, %845, %cst_441 {dimension_numbers = #tpu.dot_dimension_numbers<[1], [0], [0], [1], [0, 0, 1, 1], [], []>} : vector<2x128xf32>, vector<128x64xf32>, vector<2x64xf32> -> vector<2x64xf32>
    %c0_442 = arith.constant 0 : index
    %c0_443 = arith.constant 0 : index
    %847 = vector.load %arg25[%c0_442, %c0_443] : memref<1x64xf32, #tpu.memory_space<vmem>>, vector<1x64xf32>
    %848 = vector.broadcast %847 : vector<1x64xf32> to vector<2x64xf32>
    %849 = arith.addf %846, %848 : vector<2x64xf32>
    %cst_444 = arith.constant 0.000000e+00 : f32
    %850 = vector.broadcast %cst_444 : f32 to vector<2x64xf32>
    %851 = arith.maximumf %849, %850 : vector<2x64xf32>
    %c0_445 = arith.constant 0 : index
    %c0_446 = arith.constant 0 : index
    %852 = vector.load %arg26[%c0_445, %c0_446] : memref<64x32xf32, #tpu.memory_space<vmem>>, vector<64x32xf32>
    %cst_447 = arith.constant dense<0.000000e+00> : vector<2x32xf32>
    %853 = tpu.matmul %851, %852, %cst_447 {dimension_numbers = #tpu.dot_dimension_numbers<[1], [0], [0], [1], [0, 0, 1, 1], [], []>} : vector<2x64xf32>, vector<64x32xf32>, vector<2x32xf32> -> vector<2x32xf32>
    %c0_448 = arith.constant 0 : index
    %c0_449 = arith.constant 0 : index
    %854 = vector.load %arg27[%c0_448, %c0_449] : memref<1x32xf32, #tpu.memory_space<vmem>>, vector<1x32xf32>
    %855 = vector.broadcast %854 : vector<1x32xf32> to vector<2x32xf32>
    %856 = arith.addf %853, %855 : vector<2x32xf32>
    %cst_450 = arith.constant 0.000000e+00 : f32
    %857 = vector.broadcast %cst_450 : f32 to vector<2x32xf32>
    %858 = arith.maximumf %856, %857 : vector<2x32xf32>
    %c0_451 = arith.constant 0 : index
    %c0_452 = arith.constant 0 : index
    %859 = vector.load %arg28[%c0_451, %c0_452] : memref<32x16xf32, #tpu.memory_space<vmem>>, vector<32x16xf32>
    %cst_453 = arith.constant dense<0.000000e+00> : vector<2x16xf32>
    %860 = tpu.matmul %858, %859, %cst_453 {dimension_numbers = #tpu.dot_dimension_numbers<[1], [0], [0], [1], [0, 0, 1, 1], [], []>} : vector<2x32xf32>, vector<32x16xf32>, vector<2x16xf32> -> vector<2x16xf32>
    %c0_454 = arith.constant 0 : index
    %c0_455 = arith.constant 0 : index
    %861 = vector.load %arg29[%c0_454, %c0_455] : memref<1x16xf32, #tpu.memory_space<vmem>>, vector<1x16xf32>
    %862 = vector.broadcast %861 : vector<1x16xf32> to vector<2x16xf32>
    %863 = arith.addf %860, %862 : vector<2x16xf32>
    %cst_456 = arith.constant 0.000000e+00 : f32
    %864 = vector.broadcast %cst_456 : f32 to vector<2x16xf32>
    %865 = arith.maximumf %863, %864 : vector<2x16xf32>
    %c0_457 = arith.constant 0 : index
    %c0_458 = arith.constant 0 : index
    %866 = vector.load %arg30[%c0_457, %c0_458] : memref<16x4xf32, #tpu.memory_space<vmem>>, vector<16x4xf32>
    %cst_459 = arith.constant dense<0.000000e+00> : vector<2x4xf32>
    %867 = tpu.matmul %865, %866, %cst_459 {dimension_numbers = #tpu.dot_dimension_numbers<[1], [0], [0], [1], [0, 0, 1, 1], [], []>} : vector<2x16xf32>, vector<16x4xf32>, vector<2x4xf32> -> vector<2x4xf32>
    %c0_460 = arith.constant 0 : index
    %c0_461 = arith.constant 0 : index
    %868 = vector.load %arg31[%c0_460, %c0_461] : memref<1x4xf32, #tpu.memory_space<vmem>>, vector<1x4xf32>
    %869 = vector.broadcast %868 : vector<1x4xf32> to vector<2x4xf32>
    %870 = arith.addf %867, %869 : vector<2x4xf32>
    %c0_462 = arith.constant 0 : index
    %c0_463 = arith.constant 0 : index
    %871 = vector.load %arg32[%c0_462, %c0_463] : memref<2x4xf32, #tpu.memory_space<vmem>>, vector<2x4xf32>
    tpu.vector_store %arg32[%c0_462, %c0_463], %870 {strides = array<i32>} : memref<2x4xf32, #tpu.memory_space<vmem>>, vector<2x4xf32>,
    return
  }
}

</mosaic_0001>

<bundles_post_ra>
// kernel: twin_vit_forward.1
= control target key start
LH: loop header
LB: loop body
LE: loop exit
PB: predicated region body
PF: predicated region fallthrough
CT: control target
= control target key end

     0   :  { %s10489_s6 = smov 1   ;;  %s10490_s10 = smov 2   ;;  %s12761_s0 = inlined_call_operand.smem [shape: u32[33], index: -1, kind: input, shape index: {}] }
   0x1   :  { %s10539_s5 = sld [smem:[%s12761_s0]]   ;;  %s10491_s14 = smov 3  }
   0x2   :  { %s10544_s9 = sld [smem:[%s12761_s0 + %s10489_s6]]   ;;  %s10492_s18 = smov 4  }
   0x3   :  { %s10549_s13 = sld [smem:[%s12761_s0 + %s10490_s10]]   ;;  %s10493_s22 = smov 5  }
   0x4   :  { %s10554_s17 = sld [smem:[%s12761_s0 + %s10491_s14]]   ;;  %s10494_s26 = smov 6  }
   0x5   :  { %s10559_s21 = sld [smem:[%s12761_s0 + %s10492_s18]]   ;;  %s10495_s30 = smov 7  }
   0x6   :  { %s10564_s25 = sld [smem:[%s12761_s0 + %s10493_s22]]   ;;  %s10496_s4 = smov 8  }
   0x7   :  { %s10569_s29 = sld [smem:[%s12761_s0 + %s10494_s26]]   ;;  %s10497_s10 = smov 9  }
   0x8   :  { %s10574_s3 = sld [smem:[%s12761_s0 + %s10495_s30]]   ;;  %s10498_s15 = smov 10  }
   0x9   :  { %s10579_s8 = sld [smem:[%s12761_s0 + %s10496_s4]]   ;;  %s10499_s20 = smov 11  }
   0xa   :  { %s10584_s14 = sld [smem:[%s12761_s0 + %s10497_s10]]   ;;  %s10500_s26 = smov 12  }
   0xb   :  { %s10589_s19 = sld [smem:[%s12761_s0 + %s10498_s15]]   ;;  %s10501_s1 = smov 13  }
   0xc   :  { %s10594_s24 = sld [smem:[%s12761_s0 + %s10499_s20]]   ;;  %s10502_s7 = smov 14  }
   0xd   :  { %s10599_s30 = sld [smem:[%s12761_s0 + %s10500_s26]]   ;;  %s10503_s15 = smov 15  }
   0xe   :  { %s10604_s6 = sld [smem:[%s12761_s0 + %s10501_s1]]   ;;  %s10504_s22 = smov 16  }
   0xf   :  { %s10609_s12 = sld [smem:[%s12761_s0 + %s10502_s7]]   ;;  %s10505_s28 = smov 17  }
  0x10   :  { %s10614_s20 = sld [smem:[%s12761_s0 + %s10503_s15]]   ;;  %s10506_s7 = smov 18  }
  0x11   :  { %s10619_s27 = sld [smem:[%s12761_s0 + %s10504_s22]]   ;;  %s10507_s15 = smov 19  }
  0x12   :  { %s10624_s4 = sld [smem:[%s12761_s0 + %s10505_s28]]   ;;  %s10508_s22 = smov 20  }
  0x13   :  { %s10509_s28 = smov 21  }
  0x14   :  { %12774 = sst [smem:[#allocation5_spill]] %s10604_s6 }
  0x15   :  { %s10629_s6 = sld [smem:[%s12761_s0 + %s10506_s7]]   ;;  %s10510_s7 = smov 22  }
  0x16   :  { %12775 = sst [smem:[#allocation6_spill]] %s10614_s20 }
  0x17   :  { %12776 = sst [smem:[#allocation7_spill]] %s10619_s27 }
  0x18   :  { %12777 = sst [smem:[#allocation8_spill]] %s10624_s4 }
  0x19   :  { %s10634_s20 = sld [smem:[%s12761_s0 + %s10507_s15]]   ;;  %s10511_s15 = smov 23  }
  0x1a   :  { %s10639_s27 = sld [smem:[%s12761_s0 + %s10508_s22]]   ;;  %s10512_s22 = smov 24  }
  0x1b   :  { %12778 = sst [smem:[#allocation9_spill]] %s10629_s6 }
  0x1c   :  { %s10644_s4 = sld [smem:[%s12761_s0 + %s10509_s28]]   ;;  %s10513_s28 = smov 25  }
  0x1d   :  { %s10649_s6 = sld [smem:[%s12761_s0 + %s10510_s7]]   ;;  %s10514_s7 = smov 26  }
  0x1f   :  { %12779 = sst [smem:[#allocation10_spill]] %s10634_s20 }
  0x20   :  { %12780 = sst [smem:[#allocation11_spill]] %s10639_s27 }
  0x21   :  { %s10654_s20 = sld [smem:[%s12761_s0 + %s10511_s15]]   ;;  %s10515_s15 = smov 27  }
  0x22   :  { %12781 = sst [smem:[#allocation12_spill]] %s10644_s4 }
  0x23   :  { %12782 = sst [smem:[#allocation13_spill]] %s10649_s6 }
  0x24   :  { %s10659_s27 = sld [smem:[%s12761_s0 + %s10512_s22]]   ;;  %s10516_s22 = smov 28  }
  0x25   :  { %s10664_s4 = sld [smem:[%s12761_s0 + %s10513_s28]]   ;;  %s10517_s28 = smov 29  }
  0x26   :  { %s10669_s6 = sld [smem:[%s12761_s0 + %s10514_s7]]   ;;  %s10518_s7 = smov 30  }
  0x27   :  { %12783 = sst [smem:[#allocation14_spill]] %s10654_s20 }
  0x28   :  { %s10674_s20 = sld [smem:[%s12761_s0 + %s10515_s15]]   ;;  %s10519_s15 = smov 31  }
  0x2a   :  { %12784 = sst [smem:[#allocation15_spill]] %s10659_s27 }
  0x2b   :  { %12785 = sst [smem:[#allocation16_spill]] %s10664_s4 }
  0x2c   :  { %12786 = sst [smem:[#allocation17_spill]] %s10669_s6 }
  0x2d   :  { %s10679_s27 = sld [smem:[%s12761_s0 + %s10516_s22]]   ;;  %s10520_s22 = smov 32  }
  0x2e   :  { %12787 = sst [smem:[#allocation18_spill]] %s10674_s20 }
  0x2f   :  { %s10684_s4 = sld [smem:[%s12761_s0 + %s10517_s28]]  }
  0x30   :  { %s10689_s6 = sld [smem:[%s12761_s0 + %s10518_s7]]  }
  0x31   :  { %s10694_s20 = sld [smem:[%s12761_s0 + %s10519_s15]]  }
  0x33   :  { %12788 = sst [smem:[#allocation19_spill]] %s10679_s27 }
  0x34   :  { %s10699_s27 = sld [smem:[%s12761_s0 + %s10520_s22]]  }
  0x35   :  { %v10051_v0 = vld [vmem:[%s10544_s9] sm:$0xff]   ;;  %v10052_v1 = vld [vmem:[%s10544_s9 + $0x8] sm:$0xff]   ;;  %vm184_vm0 = vcmask 392192   ;;  %v10053_v3 = vld [vmem:[%s10544_s9 + $0x10] sm:$0xff]  }
  0x36   :  { %8706 = vmatprep.subr.bf16.mxu0 %v10051_v0  ;;  %v10054_v2 = vld [vmem:[%s10539_s5] sm:$0xff]   ;;  %v10055_v4 = vld [vmem:[%s10539_s5 + $0x8] sm:$0xff]  }
  0x37   :  { %8707 = vmatpush3.bf16.msra.mxu0 %v10051_v0  ;;  %8712 = vmatprep.mubr.msk.bf16.mxu0 %vm184_vm0, %v10054_v2 }
  0x38   :  { %8708 = vmatprep.subr.bf16.mxu0 %v10052_v1 }
  0x3b   :  { %8709 = vmatpush3.bf16.msra.mxu0 %v10052_v1 }
  0x3c   :  { %8710 = vmatprep.subr.bf16.mxu0 %v10053_v3 }
  0x3f   :  { %8711 = vmatpush3.bf16.msra.mxu0 %v10053_v3 }
  0x42   :  { %8713 = vmatmul.mubr.msk.bf16.vlgmr.msra.gmra.mrb[0].mxu0 %vm184_vm0, %v10055_v4 }
  0x43   :  { %70 = vsyncpa [#allocation3], 0  ;;  %v7914_v5 = vld [vmem:[%s10549_s13] ss:$0 sm:$0xff]  ;;  %v244_v14 = vld [vmem:[%s10564_s25 + $0x8] sm:$0xff]  ;;  %vm251_vm1 = vcmask 1040384  }
  0x44   :  { %v243_v7 = vld [vmem:[%s10564_s25] sm:$0xff]  ;;  %vm272_vm2 = vcmask 261120   ;;  %vm10522_vm3 = vmmov 0   ;;  %s10524_s0 = smov 96   ;;  %s10525_s28 = smov 80   ;;  %vm477_vm4 = vcmask 130048  }
  0x45   :  { %v240_v10 = vld [vmem:[%s10554_s17] sm:$0x1]  ;;  %s10526_s1 = smov 112   ;;  %vm10849_vm5 = vmpackc.low %vm477_vm4, %vm477_vm4  ;;  %vm576_vm7 = vcmask 195584   ;;  %s10527_s2 = smov 64   ;;  %vm3642_vm8 = vcmask 254976  }
  0x46   :  { %v241_v11 = vld [vmem:[%s10559_s21] sm:$0x1]  ;;  %s10528_s7 = smov 48   ;;  %s10529_s10 = smov 16   ;;  %vm7624_vm9 = vcmask 523264   ;;  %vm7866_vm10 = vcmask 25600  }
  0x47   :  { %v242_v20 = vadd.f32 %v241_v11, %v240_v10  ;;  %s12791_s11 = sld [smem:[#allocation5_spill]]  ;;  %s12792_s15 = sld [smem:[#allocation7_spill]] }
  0x48   :  { %s12793_s16 = sld [smem:[#allocation6_spill]]  ;;  %s12794_s18 = sld [smem:[#allocation8_spill]] }
  0x49   :  { %s12795_s22 = sld [smem:[#allocation11_spill]]  ;;  %s12796_s23 = sld [smem:[#allocation9_spill]] }
  0x4a   :  { %s12797_s26 = sld [smem:[#allocation10_spill]] }
 0x115   :  { %v8714_v6 = vpop.f32.mrb[0].mxu0 }
 0x116   :  { %v234_v8 = vadd.f32 %v8714_v6, %v7914_v5  ;;  %v225_v9 = vpop.f32.mrb[1].mxu0  ;;  %v10521_v6 = vmov 0.0  }
 0x117   :  { %v226_v12 = vadd.f32 %v7914_v5, %v225_v9  ;;  %v8715_v13 = vpop.f32.mrb[2].mxu0  ;;  %8716 = vmatprep.subr.bf16.mxu1 %v10521_v6  ;;  %8720 = vmatprep.mubr.msk.bf16.mxu1 %vm10522_vm3, %v10521_v6 }
 0x118   :  { %v247_v15 = vadd.f32 %v243_v7, %v234_v8  ;;  %v237_v16 = vadd.f32 %v8715_v13, %v7914_v5  ;;  %v228_v17 = vpop.f32.mrb[3].mxu0  ;;  %8738 = vmatprep.mubr.msk.f32.mxu0 %vm10522_vm3, %v10521_v6 }
 0x119   :  { %v245_v18 = vadd.f32 %v243_v7, %v226_v12  ;;  %v229_v19 = vadd.f32 %v7914_v5, %v228_v17  ;;  %v10056_v5 = vld [vmem:[%s10579_s8] sm:$0xff]   ;;  %v10057_v7 = vld [vmem:[%s10579_s8 + $0x8] sm:$0xff]  }
 0x11a   :  { %v248_v21 = vadd.f32 %v244_v14, %v237_v16  ;;  %v260_v24 = vrot.slane %v247_v15, 7  ;;  %8717 = vmatpush3.bf16.msra.mxu1 %v10056_v5 }
 0x11b   :  { %v252_v22 = vrot.slane %v245_v18, 7  ;;  %v246_v23 = vadd.f32 %v244_v14, %v229_v19  ;;  %8718 = vmatprep.subr.bf16.mxu1 %v10521_v6 }
 0x11c   :  { %v261_v25 = vrot.slane %v248_v21, 7  ;;  %v10730_v33 = vsel %vm251_vm1, %v242_v20, %v260_v24 }
 0x11d   :  { %v253_v26 = vrot.slane %v246_v23, 7  ;;  %v10714_v27 = vsel %vm251_vm1, %v242_v20, %v252_v22  ;;  %v282_v35 = vsel %vm272_vm2, %v10730_v33, 0.0 }
 0x11e   :  { %v273_v28 = vsel %vm272_vm2, %v10714_v27, 0.0  ;;  %v10719_v29 = vsel %vm251_vm1, %v260_v24, %v261_v25  ;;  %v10737_v36 = vsel %vm251_vm1, %v261_v25, 0.0  ;;  %8719 = vmatpush3.bf16.msra.mxu1 %v10057_v7 }
 0x11f   :  { %274 = vadd.xlane.f32.xlu0 %v273_v28  ;;  %v10722_v30 = vsel %vm251_vm1, %v253_v26, 0.0  ;;  %v10725_v31 = vsel %vm251_vm1, %v252_v22, %v253_v26  ;;  %v285_v37 = vsel %vm272_vm2, %v10719_v29, 0.0  ;;  %v288_v38 = vsel %vm272_vm2, %v10737_v36, 0.0 }
 0x120   :  { %v279_v32 = vsel %vm272_vm2, %v10722_v30, 0.0  ;;  %v276_v34 = vsel %vm272_vm2, %v10725_v31, 0.0 }
 0x121   :  { %280 = vadd.xlane.f32.xlu1 %v279_v32  ;;  %v7922_v32 = vld [vmem:[%s10569_s29] ss:$0 sm:$0xff] }
 0x123   :  { %277 = vadd.xlane.f32.xlu0 %v276_v34 }
 0x125   :  { %283 = vadd.xlane.f32.xlu1 %v282_v35 }
 0x127   :  { %286 = vadd.xlane.f32.xlu0 %v285_v37 }
 0x129   :  { %289 = vadd.xlane.f32.xlu1 %v288_v38 }
 0x1ac   :  { %v275_v39 = vpop.xlane.xlu0 %274 }
 0x1ad   :  { %v292_v40 = vmul.f32 0.03125, %v275_v39  ;;  %v7923_v39 = vld [vmem:[%s10574_s3] ss:$0 sm:$0xff] }
 0x1ae   :  { %v281_v41 = vpop.xlane.xlu1 %280 }
 0x1af   :  { %v10744_v42 = vsub.f32 %v10714_v27, %v292_v40  ;;  %v294_v43 = vmul.f32 0.03125, %v281_v41 }
 0x1b0   :  { %v278_v44 = vpop.xlane.xlu0 %277 }
 0x1b1   :  { %v10747_v45 = vsub.f32 %v10722_v30, %v294_v43  ;;  %v293_v46 = vmul.f32 0.03125, %v278_v44  ;;  %v304_v47 = vmul.f32 %v10744_v42, %v10744_v42 }
 0x1b2   :  { %v284_v48 = vpop.xlane.xlu1 %283 }
 0x1b3   :  { %v10752_v49 = vsub.f32 %v10725_v31, %v293_v46  ;;  %v295_v50 = vmul.f32 0.03125, %v284_v48  ;;  %v310_v51 = vsel %vm272_vm2, %v304_v47, 0.0  ;;  %v306_v52 = vmul.f32 %v10747_v45, %v10747_v45 }
 0x1b4   :  { %311 = vadd.xlane.f32.xlu0 %v310_v51  ;;  %v287_v53 = vpop.xlane.xlu0 %286 }
 0x1b5   :  { %v10758_v54 = vsub.f32 %v10730_v33, %v295_v50  ;;  %v296_v55 = vmul.f32 0.03125, %v287_v53  ;;  %v305_v56 = vmul.f32 %v10752_v49, %v10752_v49  ;;  %v316_v58 = vsel %vm272_vm2, %v306_v52, 0.0 }
 0x1b6   :  { %v290_v57 = vpop.xlane.xlu1 %289 }
 0x1b7   :  { %v10764_v59 = vsub.f32 %v10719_v29, %v296_v55  ;;  %v297_v60 = vmul.f32 0.03125, %v290_v57  ;;  %v313_v61 = vsel %vm272_vm2, %v305_v56, 0.0  ;;  %v307_v62 = vmul.f32 %v10758_v54, %v10758_v54 }
 0x1b8   :  { %317 = vadd.xlane.f32.xlu0 %v316_v58  ;;  %314 = vadd.xlane.f32.xlu1 %v313_v61 }
 0x1b9   :  { %v10770_v63 = vsub.f32 %v10737_v36, %v297_v60  ;;  %v308_v0 = vmul.f32 %v10764_v59, %v10764_v59  ;;  %v319_v1 = vsel %vm272_vm2, %v307_v62, 0.0  ;;  %v10523_v62 = vmov 0.0|0.0  }
 0x1ba   :  { %9620 = vmatprep.subr.bf16.mxu0 %v10523_v62  ;;  %9624 = vmatprep.subr.bf16.mxu1 %v10523_v62 }
 0x1bb   :  { %v322_v2 = vsel %vm272_vm2, %v308_v0, 0.0  ;;  %v309_v3 = vmul.f32 %v10770_v63, %v10770_v63 }
 0x1bc   :  { %320 = vadd.xlane.f32.xlu1 %v319_v1  ;;  %323 = vadd.xlane.f32.xlu0 %v322_v2 }
 0x1bd   :  { %v325_v4 = vsel %vm272_vm2, %v309_v3, 0.0 }
 0x1c0   :  { %326 = vadd.xlane.f32.xlu1 %v325_v4 }
 0x241   :  { %v312_v8 = vpop.xlane.xlu0 %311 }
 0x242   :  { %v328_v9 = vmul.f32 0.03125, %v312_v8 }
 0x244   :  { %v334_v10 = vadd.f32 1e-12, %v328_v9 }
 0x245   :  { %v315_v11 = vpop.xlane.xlu1 %314  ;;  %v318_v12 = vpop.xlane.xlu0 %317 }
 0x246   :  { %10121 = vrsqrt.f32 %v334_v10  ;;  %v329_v13 = vmul.f32 0.03125, %v315_v11  ;;  %v330_v14 = vmul.f32 0.03125, %v318_v12 }
 0x248   :  { %v335_v15 = vadd.f32 1e-12, %v329_v13  ;;  %v336_v16 = vadd.f32 1e-12, %v330_v14 }
 0x249   :  { %v321_v17 = vpop.xlane.xlu1 %320  ;;  %v324_v18 = vpop.xlane.xlu0 %323 }
 0x24a   :  { %10123 = vrsqrt.f32 %v335_v15  ;;  %v331_v19 = vmul.f32 0.03125, %v321_v17  ;;  %v332_v21 = vmul.f32 0.03125, %v324_v18 }
 0x24b   :  { %10125 = vrsqrt.f32 %v336_v16 }
 0x24c   :  { %v337_v20 = vadd.f32 1e-12, %v331_v19  ;;  %v338_v25 = vadd.f32 1e-12, %v332_v21 }
 0x24d   :  { %v327_v22 = vpop.xlane.xlu1 %326 }
 0x24e   :  { %10127 = vrsqrt.f32 %v337_v20  ;;  %v333_v23 = vmul.f32 0.03125, %v327_v22 }
 0x250   :  { %v10122_v24 = vpop.eup %10121  ;;  %v339_v26 = vadd.f32 1e-12, %v333_v23 }
 0x251   :  { %v346_v28 = vmul.f32 %v10122_v24, %v10744_v42 }
 0x252   :  { %10129 = vrsqrt.f32 %v339_v26 }
 0x253   :  { %10131 = vrsqrt.f32 %v338_v25  ;;  %v358_v37 = vmul.f32 %v7922_v32, %v346_v28 }
 0x254   :  { %v10124_v34 = vpop.eup %10123 }
 0x255   :  { %v347_v35 = vmul.f32 %v10124_v34, %v10752_v49  ;;  %v10126_v38 = vpop.eup %10125  ;;  %v370_v43 = vadd.f32 %v7923_v39, %v358_v37 }
 0x256   :  { %v348_v46 = vmul.f32 %v10126_v38, %v10747_v45 }
 0x257   :  { %v359_v40 = vmul.f32 %v7922_v32, %v347_v35 }
 0x258   :  { %v10128_v41 = vpop.eup %10127  ;;  %v360_v51 = vmul.f32 %v7922_v32, %v348_v46 }
 0x259   :  { %v371_v44 = vadd.f32 %v7923_v39, %v359_v40  ;;  %v349_v47 = vmul.f32 %v10128_v41, %v10758_v54 }
 0x25a   :  { %v372_v55 = vadd.f32 %v7923_v39, %v360_v51 }
 0x25b   :  { %v376_v48 = vpack.c.bf16 %v371_v44, %v370_v43  ;;  %v361_v50 = vmul.f32 %v7922_v32, %v349_v47 }
 0x25c   :  { %v10130_v42 = vpop.eup %10129 }
 0x25d   :  { %8721 = vmatmul.mubr.msk.bf16.vlgmr.msra.gmra.mrb[0].mxu1 %vm272_vm2, %v376_v48  ;;  %v10132_v52 = vpop.eup %10131  ;;  %v373_v49 = vadd.f32 %v7923_v39, %v361_v50  ;;  %v351_v53 = vmul.f32 %v10130_v42, %v10770_v63 }
 0x25e   :  { %8724 = vmatprep.mubr.msk.bf16.mxu1 %vm10522_vm3, %v10521_v6  ;;  %v350_v56 = vmul.f32 %v10132_v52, %v10764_v59  ;;  %v7924_v59 = vld [vmem:[%s10584_s14] ss:$0 sm:$0xff] }
 0x25f   :  { %v377_v45 = vpack.c.bf16 %v373_v49, %v372_v55  ;;  %v363_v57 = vmul.f32 %v7922_v32, %v351_v53  ;;  %v136_v55 = vlaneseq }
 0x260   :  { %v362_v54 = vmul.f32 %v7922_v32, %v350_v56 }
 0x261   :  { %v375_v58 = vadd.f32 %v7923_v39, %v363_v57  ;;  %v10913_v56 = vand.u32 127, %v136_v55 }
 0x262   :  { %v374_v60 = vadd.f32 %v7923_v39, %v362_v54 }
 0x263   :  { %vm138_vm6 = vcmp.lt.s32.totalorder %v10913_v56, 17 }
 0x264   :  { %v378_v61 = vpack.c.bf16 %v375_v58, %v374_v60 }
 0x265   :  { %8725 = vmatmul.mubr.msk.bf16.gmra.mrb[4].mxu1 %vm272_vm2, %v377_v45 }
 0x266   :  { %8728 = vmatprep.mubr.msk.bf16.mxu1 %vm10522_vm3, %v10521_v6 }
 0x26d   :  { %8729 = vmatmul.mubr.msk.bf16.gmra.mrb[8].mxu1 %vm272_vm2, %v378_v61 }
 0x26e   :  { %8753 = vmatprep.mubr.msk.f32.mxu1 %vm10522_vm3, %v10521_v6 }
 0x330   :  { %v445_v63 = vpop.f32.mrb[0].mxu1 }
 0x331   :  { %v8722_v0 = vpop.f32.mrb[1].mxu1  ;;  %v446_v2 = vadd.f32 %v7924_v59, %v445_v63 }
 0x332   :  { %v448_v1 = vpop.f32.mrb[2].mxu1 }
 0x333   :  { %v449_v3 = vadd.f32 %v7924_v59, %v448_v1  ;;  %v8723_v4 = vpop.f32.mrb[3].mxu1 }
 0x335   :  { %v10807_v5 = vpack.i.bf16 %v449_v3, %v446_v2 }
 0x337   :  { %9832 = vrot.lane.b32.xlu0 %v10807_v5, %s10524_s0 }
 0x338   :  { %v453_v7 = vpop.f32.mrb[4].mxu1 }
 0x339   :  { %v10811_v8 = vadd.f32 %v7924_v59, %v453_v7  ;;  %v8726_v9 = vpop.f32.mrb[5].mxu1 }
 0x33a   :  { %v456_v10 = vpop.f32.mrb[6].mxu1 }
 0x33b   :  { %475 = vrot.lane.b32.xlu1 %v10811_v8, %s10524_s0  ;;  %v8727_v11 = vpop.f32.mrb[7].mxu1  ;;  %v10817_v13 = vadd.f32 %v7924_v59, %v456_v10 }
 0x33f   :  { %9837 = vrot.lane.b32.xlu1 %v10807_v5, %s10525_s28 }
 0x340   :  { %v461_v12 = vpop.f32.mrb[8].mxu1 }
 0x341   :  { %v10819_v14 = vadd.f32 %v7924_v59, %v461_v12  ;;  %v8730_v15 = vpop.f32.mrb[9].mxu1 }
 0x342   :  { %v464_v16 = vpop.f32.mrb[10].mxu1 }
 0x343   :  { %718 = vrot.lane.b32.xlu1 %v10811_v8, %s10525_s28  ;;  %v8731_v17 = vpop.f32.mrb[11].mxu1  ;;  %v10825_v18 = vpack.i.bf16 %v10819_v14, %v10817_v13  ;;  %v10831_v19 = vadd.f32 %v7924_v59, %v464_v16 }
 0x345   :  { %9842 = vrot.lane.b32.xlu0 %v10825_v18, %s10524_s0 }
 0x347   :  { %708 = vrot.lane.b32.xlu1 %v446_v2, %s10526_s1 }
 0x349   :  { %710 = vrot.lane.b32.xlu0 %v449_v3, %s10526_s1 }
 0x34b   :  { %712 = vrot.lane.b32.xlu1 %v10811_v8, %s10526_s1 }
 0x34d   :  { %971 = vrot.lane.b32.xlu0 %v10831_v19, %s10524_s0 }
 0x34f   :  { %9847 = vrot.lane.b32.xlu1 %v10825_v18, %s10525_s28 }
 0x351   :  { %1212 = vrot.lane.b32.xlu0 %v10831_v19, %s10525_s28 }
 0x353   :  { %1202 = vrot.lane.b32.xlu1 %v10817_v13, %s10526_s1 }
 0x355   :  { %1204 = vrot.lane.b32.xlu0 %v10819_v14, %s10526_s1 }
 0x357   :  { %1206 = vrot.lane.b32.xlu1 %v10831_v19, %s10526_s1 }
 0x3a9   :  { %v9833_v20 = vpop.permute.xlu0 %9832 }
 0x3aa   :  { %v9835_v21 = vunpack.i.h.bf16 %v9833_v20  ;;  %v9834_v22 = vunpack.i.l.bf16 %v9833_v20 }
 0x3ac   :  { %v9621_v24 = vpack.c.bf16 %v9835_v21, %v9834_v22 }
 0x3ad   :  { %v476_v25 = vpop.permute.xlu1 %475 }
 0x3ae   :  { %9623 = vmatpush3.bf16.xpose.msk.msra.mxu0 %vm10849_vm5, %v9621_v24 }
 0x3af   :  { %8736 = vmatprep.subr.mxu0 %v10521_v6 }
 0x3b1   :  { %v9838_v26 = vpop.permute.xlu1 %9837 }
 0x3b2   :  { %v9840_v28 = vunpack.i.h.bf16 %v9838_v26  ;;  %v9839_v32 = vunpack.i.l.bf16 %v9838_v26 }
 0x3b4   :  { %v9628_v35 = vpack.c.bf16 %v9840_v28, %v9839_v32 }
 0x3b5   :  { %v719_v34 = vpop.permute.xlu1 %718 }
 0x3b6   :  { %8737 = vmatpush3.xpose.msk.msra.mxu0 %vm477_vm4, %v476_v25 }
 0x3b7   :  { %9627 = vmatprep.subr.bf16.mxu0 %v10523_v62  ;;  %v9843_v37 = vpop.permute.xlu0 %9842 }
 0x3b8   :  { %v9845_v39 = vunpack.i.h.bf16 %v9843_v37  ;;  %v9844_v40 = vunpack.i.l.bf16 %v9843_v37 }
 0x3b9   :  { %8739 = vmatmul.mubr.msk.f32.vlgmr.msra.gmra.mrb[4].mxu0 %vm477_vm4, %v446_v2  ;;  %v709_v38 = vpop.permute.xlu1 %708 }
 0x3ba   :  { %9630 = vmatpush3.bf16.xpose.msk.msra.mxu0 %vm10849_vm5, %v9628_v35  ;;  %8741 = vmatprep.mubr.msk.f32.mxu0 %vm10522_vm3, %v10521_v6  ;;  %v9635_v43 = vpack.c.bf16 %v9845_v39, %v9844_v40 }
 0x3bb   :  { %8766 = vmatprep.subr.mxu0 %v10521_v6  ;;  %v711_v44 = vpop.permute.xlu0 %710 }
 0x3bd   :  { %8742 = vmatmul.mubr.msk.f32.gmra.mrb[6].mxu0 %vm477_vm4, %v449_v3  ;;  %v713_v41 = vpop.permute.xlu1 %712 }
 0x3be   :  { %8744 = vmatprep.mubr.msk.f32.mxu0 %vm10522_vm3, %v10521_v6 }
 0x3bf   :  { %v972_v50 = vpop.permute.xlu0 %971 }
 0x3c1   :  { %8745 = vmatmul.mubr.msk.f32.gmra.mrb[8].mxu0 %vm477_vm4, %v10811_v8  ;;  %v9848_v46 = vpop.permute.xlu1 %9847 }
 0x3c2   :  { %8767 = vmatpush3.xpose.msk.msra.mxu0 %vm477_vm4, %v719_v34  ;;  %8768 = vmatprep.mubr.msk.f32.mxu0 %vm10522_vm3, %v10521_v6  ;;  %v9850_v47 = vunpack.i.h.bf16 %v9848_v46  ;;  %v9849_v48 = vunpack.i.l.bf16 %v9848_v46 }
 0x3c3   :  { %9634 = vmatprep.subr.bf16.mxu0 %v10523_v62  ;;  %v1213_v51 = vpop.permute.xlu0 %1212 }
 0x3c4   :  { %v9642_v42 = vpack.c.bf16 %v9850_v47, %v9849_v48 }
 0x3c5   :  { %8769 = vmatmul.mubr.msk.f32.vlgmr.msra.gmra.mrb[10].mxu0 %vm477_vm4, %v709_v38  ;;  %v1203_v52 = vpop.permute.xlu1 %1202 }
 0x3c6   :  { %9637 = vmatpush3.bf16.xpose.msk.msra.mxu0 %vm10849_vm5, %v9635_v43  ;;  %8771 = vmatprep.mubr.msk.f32.mxu0 %vm10522_vm3, %v10521_v6 }
 0x3c7   :  { %8796 = vmatprep.subr.mxu0 %v10521_v6  ;;  %v1205_v49 = vpop.permute.xlu0 %1204 }
 0x3c9   :  { %8772 = vmatmul.mubr.msk.f32.gmra.mrb[12].mxu0 %vm477_vm4, %v711_v44  ;;  %v1207_v53 = vpop.permute.xlu1 %1206 }
 0x3ca   :  { %8774 = vmatprep.mubr.msk.f32.mxu0 %vm10522_vm3, %v10521_v6 }
 0x3cd   :  { %8775 = vmatmul.mubr.msk.f32.gmra.mrb[14].mxu0 %vm477_vm4, %v713_v41 }
 0x3ce   :  { %8797 = vmatpush3.xpose.msk.msra.mxu0 %vm477_vm4, %v972_v50  ;;  %8798 = vmatprep.mubr.msk.f32.mxu0 %vm10522_vm3, %v10521_v6 }
 0x3cf   :  { %9641 = vmatprep.subr.bf16.mxu0 %v10523_v62 }
 0x3d1   :  { %8799 = vmatmul.mubr.msk.f32.vlgmr.msra.gmra.mrb[16].mxu0 %vm477_vm4, %v10817_v13 }
 0x3d2   :  { %9644 = vmatpush3.bf16.xpose.msk.msra.mxu0 %vm10849_vm5, %v9642_v42  ;;  %8801 = vmatprep.mubr.msk.f32.mxu0 %vm10522_vm3, %v10521_v6 }
 0x3d3   :  { %8826 = vmatprep.subr.mxu0 %v10521_v6 }
 0x3d5   :  { %8802 = vmatmul.mubr.msk.f32.gmra.mrb[18].mxu0 %vm477_vm4, %v10819_v14 }
 0x3d6   :  { %8804 = vmatprep.mubr.msk.f32.mxu0 %vm10522_vm3, %v10521_v6 }
 0x3d9   :  { %8805 = vmatmul.mubr.msk.f32.gmra.mrb[20].mxu0 %vm477_vm4, %v10831_v19 }
 0x3da   :  { %8827 = vmatpush3.xpose.msk.msra.mxu0 %vm477_vm4, %v1213_v51  ;;  %8828 = vmatprep.mubr.msk.f32.mxu0 %vm10522_vm3, %v10521_v6 }
 0x3db   :  { %8852 = vmatprep.subr.bf16.mxu0 %v10521_v6 }
 0x3dd   :  { %8829 = vmatmul.mubr.msk.f32.vlgmr.msra.gmra.mrb[22].mxu0 %vm477_vm4, %v1203_v52 }
 0x3de   :  { %8831 = vmatprep.mubr.msk.f32.mxu0 %vm10522_vm3, %v10521_v6 }
 0x3e1   :  { %8832 = vmatmul.mubr.msk.f32.gmra.mrb[24].mxu0 %vm477_vm4, %v1205_v49 }
 0x3e2   :  { %8834 = vmatprep.mubr.msk.f32.mxu0 %vm10522_vm3, %v10521_v6 }
 0x3e5   :  { %8835 = vmatmul.mubr.msk.f32.gmra.mrb[26].mxu0 %vm477_vm4, %v1207_v53 }
 0x3e6   :  { %8856 = vmatprep.mubr.msk.bf16.mxu0 %vm10522_vm3, %v10521_v6 }
 0x48c   :  { %v556_v45 = vpop.f32.mrb[4].mxu0 }
 0x48d   :  { %v570_v57 = vmul.f32 0.25, %v556_v45  ;;  %v8740_v54 = vpop.f32.mrb[5].mxu0 }
 0x48f   :  { %v10918_v58 = vsel %vm138_vm6, %v570_v57, -1e+30 }
 0x490   :  { %v561_v60 = vpop.f32.mrb[6].mxu0  ;;  %v577_v61 = vsel %vm576_vm7, %v10918_v58, -inf }
 0x491   :  { %v571_v59 = vmul.f32 0.25, %v561_v60  ;;  %v8743_v63 = vpop.f32.mrb[7].mxu0  ;;  %578 = vmax.xlane.f32.xlu0 %v577_v61 }
 0x493   :  { %v10924_v0 = vsel %vm138_vm6, %v571_v59, -1e+30 }
 0x494   :  { %v566_v1 = vpop.f32.mrb[8].mxu0  ;;  %v580_v2 = vsel %vm576_vm7, %v10924_v0, -inf }
 0x495   :  { %v572_v3 = vmul.f32 0.25, %v566_v1  ;;  %v8746_v4 = vpop.f32.mrb[9].mxu0  ;;  %581 = vmax.xlane.f32.xlu1 %v580_v2 }
 0x497   :  { %v10930_v7 = vsel %vm138_vm6, %v572_v3, -1e+30 }
 0x498   :  { %v798_v9 = vpop.f32.mrb[10].mxu0  ;;  %v583_v10 = vsel %vm576_vm7, %v10930_v7, -inf }
 0x499   :  { %v812_v11 = vmul.f32 0.25, %v798_v9  ;;  %v8770_v12 = vpop.f32.mrb[11].mxu0  ;;  %584 = vmax.xlane.f32.xlu0 %v583_v10 }
 0x49b   :  { %v10936_v13 = vsel %vm138_vm6, %v812_v11, -1e+30 }
 0x49c   :  { %v803_v14 = vpop.f32.mrb[12].mxu0  ;;  %v818_v15 = vsel %vm576_vm7, %v10936_v13, -inf }
 0x49d   :  { %v813_v16 = vmul.f32 0.25, %v803_v14  ;;  %v8773_v17 = vpop.f32.mrb[13].mxu0  ;;  %819 = vmax.xlane.f32.xlu0 %v818_v15 }
 0x49f   :  { %v10942_v20 = vsel %vm138_vm6, %v813_v16, -1e+30 }
 0x4a0   :  { %v808_v21 = vpop.f32.mrb[14].mxu0  ;;  %v821_v22 = vsel %vm576_vm7, %v10942_v20, -inf }
 0x4a1   :  { %v814_v24 = vmul.f32 0.25, %v808_v21  ;;  %v8776_v25 = vpop.f32.mrb[15].mxu0  ;;  %822 = vmax.xlane.f32.xlu0 %v821_v22 }
 0x4a3   :  { %v10948_v26 = vsel %vm138_vm6, %v814_v24, -1e+30 }
 0x4a4   :  { %v1051_v28 = vpop.f32.mrb[16].mxu0  ;;  %v824_v32 = vsel %vm576_vm7, %v10948_v26, -inf }
 0x4a5   :  { %v1065_v34 = vmul.f32 0.25, %v1051_v28  ;;  %v8800_v35 = vpop.f32.mrb[17].mxu0  ;;  %825 = vmax.xlane.f32.xlu1 %v824_v32 }
 0x4a7   :  { %v10954_v37 = vsel %vm138_vm6, %v1065_v34, -1e+30 }
 0x4a8   :  { %v1056_v38 = vpop.f32.mrb[18].mxu0  ;;  %v1071_v39 = vsel %vm576_vm7, %v10954_v37, -inf }
 0x4a9   :  { %v1066_v40 = vmul.f32 0.25, %v1056_v38  ;;  %v8803_v41 = vpop.f32.mrb[19].mxu0  ;;  %1072 = vmax.xlane.f32.xlu0 %v1071_v39 }
 0x4ab   :  { %v10960_v43 = vsel %vm138_vm6, %v1066_v40, -1e+30 }
 0x4ac   :  { %v1061_v44 = vpop.f32.mrb[20].mxu0  ;;  %v1074_v46 = vsel %vm576_vm7, %v10960_v43, -inf }
 0x4ad   :  { %v8806_v47 = vpop.f32.mrb[21].mxu0  ;;  %1075 = vmax.xlane.f32.xlu1 %v1074_v46  ;;  %v1067_v53 = vmul.f32 0.25, %v1061_v44 }
 0x4af   :  { %v10976_v60 = vsel %vm138_vm6, %v1067_v53, -1e+30 }
 0x4b0   :  { %v1292_v48 = vpop.f32.mrb[22].mxu0  ;;  %v1077_v59 = vsel %vm576_vm7, %v10976_v60, -inf }
 0x4b1   :  { %v8830_v50 = vpop.f32.mrb[23].mxu0  ;;  %v1306_v55 = vmul.f32 0.25, %v1292_v48 }
 0x4b3   :  { %v10972_v54 = vsel %vm138_vm6, %v1306_v55, -1e+30 }
 0x4b4   :  { %v1297_v42 = vpop.f32.mrb[24].mxu0  ;;  %v1312_v61 = vsel %vm576_vm7, %v10972_v54, -inf }
 0x4b5   :  { %v8833_v51 = vpop.f32.mrb[25].mxu0  ;;  %v1307_v45 = vmul.f32 0.25, %v1297_v42 }
 0x4b7   :  { %v10988_v63 = vsel %vm138_vm6, %v1307_v45, -1e+30 }
 0x4b8   :  { %v1302_v52 = vpop.f32.mrb[26].mxu0  ;;  %v1315_v2 = vsel %vm576_vm7, %v10988_v63, -inf }
 0x4b9   :  { %v8836_v49 = vpop.f32.mrb[27].mxu0  ;;  %v1308_v57 = vmul.f32 0.25, %v1302_v52 }
 0x4be   :  { %9852 = vrot.lane.b32.xlu1 %v10807_v5, %s10527_s2 }
 0x4bf   :  { %614 = vrot.lane.b32.xlu0 %v10811_v8, %s10527_s2 }
 0x4c3   :  { %9857 = vrot.lane.b32.xlu0 %v10807_v5, %s10528_s7  ;;  %v10984_v5 = vsel %vm138_vm6, %v1308_v57, -1e+30 }
 0x4c4   :  { %v1318_v1 = vsel %vm576_vm7, %v10984_v5, -inf }
 0x4e2   :  { %1313 = vmax.xlane.f32.xlu1 %v1312_v61  ;;  %1078 = vmax.xlane.f32.xlu0 %v1077_v59 }
 0x4e6   :  { %1319 = vmax.xlane.f32.xlu1 %v1318_v1  ;;  %1316 = vmax.xlane.f32.xlu0 %v1315_v2 }
 0x4f7   :  { %855 = vrot.lane.b32.xlu1 %v10811_v8, %s10528_s7 }
 0x4fc   :  { %9862 = vrot.lane.b32.xlu0 %v10825_v18, %s10527_s2 }
 0x51e   :  { %v579_v3 = vpop.xlane.xlu0 %578 }
 0x51f   :  { %v586_v4 = vsub.f32 %v10918_v58, %v579_v3 }
 0x521   :  { %v589_v9 = vmul.f32 1.442695, %v586_v4 }
 0x522   :  { %v582_v10 = vpop.xlane.xlu1 %581 }
 0x523   :  { %10133 = vpow2.f32 %v589_v9  ;;  %v587_v11 = vsub.f32 %v10924_v0, %v582_v10 }
 0x525   :  { %v591_v12 = vmul.f32 1.442695, %v587_v11 }
 0x526   :  { %v585_v14 = vpop.xlane.xlu0 %584 }
 0x527   :  { %10135 = vpow2.f32 %v591_v12  ;;  %v588_v15 = vsub.f32 %v10930_v7, %v585_v14 }
 0x529   :  { %v593_v16 = vmul.f32 1.442695, %v588_v15 }
 0x52a   :  { %v820_v17 = vpop.xlane.xlu0 %819 }
 0x52b   :  { %10137 = vpow2.f32 %v593_v16  ;;  %v827_v8 = vsub.f32 %v10936_v13, %v820_v17 }
 0x52d   :  { %v11002_v21 = vpop.eup %10133  ;;  %v830_v22 = vmul.f32 1.442695, %v827_v8 }
 0x52e   :  { %v595_v58 = vsel %vm576_vm7, %v11002_v21, 0.0  ;;  %v823_v38 = vpop.xlane.xlu0 %822 }
 0x52f   :  { %10139 = vpow2.f32 %v830_v22  ;;  %596 = vadd.xlane.f32.xlu0 %v595_v58  ;;  %v828_v42 = vsub.f32 %v10942_v20, %v823_v38 }
 0x531   :  { %v11006_v24 = vpop.eup %10135  ;;  %v832_v51 = vmul.f32 1.442695, %v828_v42 }
 0x532   :  { %v598_v0 = vsel %vm576_vm7, %v11006_v24, 0.0  ;;  %v826_v25 = vpop.xlane.xlu1 %825 }
 0x533   :  { %599 = vadd.xlane.f32.xlu1 %v598_v0  ;;  %v829_v52 = vsub.f32 %v10948_v26, %v826_v25 }
 0x535   :  { %v11010_v7 = vpop.eup %10137  ;;  %v834_v49 = vmul.f32 1.442695, %v829_v52 }
 0x536   :  { %v601_v13 = vsel %vm576_vm7, %v11010_v7, 0.0  ;;  %v1073_v46 = vpop.xlane.xlu0 %1072 }
 0x537   :  { %602 = vadd.xlane.f32.xlu0 %v601_v13  ;;  %v1080_v53 = vsub.f32 %v10954_v37, %v1073_v46 }
 0x539   :  { %v11014_v28 = vpop.eup %10139  ;;  %v1083_v55 = vmul.f32 1.442695, %v1080_v53 }
 0x53a   :  { %v1076_v32 = vpop.xlane.xlu1 %1075  ;;  %v836_v34 = vsel %vm576_vm7, %v11014_v28, 0.0  ;;  %v615_v48 = vpop.permute.xlu0 %614 }
 0x53b   :  { %v1081_v35 = vsub.f32 %v10960_v43, %v1076_v32  ;;  %837 = vadd.xlane.f32.xlu1 %v836_v34 }
 0x53d   :  { %v1085_v39 = vmul.f32 1.442695, %v1081_v35 }
 0x53e   :  { %v9853_v40 = vpop.permute.xlu1 %9852  ;;  %v9858_v57 = vpop.permute.xlu0 %9857 }
 0x53f   :  { %10141 = vpow2.f32 %v1085_v39  ;;  %v9855_v41 = vunpack.i.h.bf16 %v9853_v40  ;;  %v9854_v44 = vunpack.i.l.bf16 %v9853_v40  ;;  %v9860_v38 = vunpack.i.h.bf16 %v9858_v57 }
 0x540   :  { %10143 = vpow2.f32 %v832_v51  ;;  %v9859_v39 = vunpack.i.l.bf16 %v9858_v57 }
 0x541   :  { %v9625_v47 = vpack.c.bf16 %v9855_v41, %v9854_v44  ;;  %10145 = vpow2.f32 %v834_v49 }
 0x542   :  { %10147 = vpow2.f32 %v1083_v55  ;;  %v9632_v46 = vpack.c.bf16 %v9860_v38, %v9859_v39  ;;  %v10059_v39 = vld [vmem:[%s10589_s19 + $0x8] sm:$0xff]  }
 0x543   :  { %9626 = vmatpush3.bf16.msra.mxu1 %v9625_v47 }
 0x544   :  { %8751 = vmatprep.subr.mxu1 %v10521_v6 }
 0x547   :  { %8752 = vmatpush3.msra.mxu1 %v615_v48 }
 0x548   :  { %9631 = vmatprep.subr.bf16.mxu1 %v10523_v62 }
 0x549   :  { %v11021_v50 = vpop.eup %10141 }
 0x54a   :  { %v1092_v43 = vsel %vm576_vm7, %v11021_v50, 0.0  ;;  %v11030_v45 = vpop.eup %10143 }
 0x54b   :  { %1093 = vadd.xlane.f32.xlu1 %v1092_v43  ;;  %v839_v61 = vsel %vm576_vm7, %v11030_v45, 0.0  ;;  %v11034_v59 = vpop.eup %10145 }
 0x54c   :  { %v842_v26 = vsel %vm576_vm7, %v11034_v59, 0.0  ;;  %v11038_v2 = vpop.eup %10147 }
 0x54d   :  { %1108 = vrot.lane.b32.xlu0 %v10831_v19, %s10527_s2  ;;  %v1089_v12 = vsel %vm576_vm7, %v11038_v2, 0.0 }
 0x56c   :  { %840 = vadd.xlane.f32.xlu0 %v839_v61 }
 0x56f   :  { %v1314_v20 = vpop.xlane.xlu1 %1313  ;;  %v1079_v1 = vpop.xlane.xlu0 %1078 }
 0x570   :  { %v1321_v37 = vsub.f32 %v10972_v54, %v1314_v20  ;;  %v1082_v3 = vsub.f32 %v10976_v60, %v1079_v1  ;;  %843 = vadd.xlane.f32.xlu0 %v842_v26 }
 0x572   :  { %v1324_v4 = vmul.f32 1.442695, %v1321_v37  ;;  %v1087_v9 = vmul.f32 1.442695, %v1082_v3 }
 0x573   :  { %v1320_v10 = vpop.xlane.xlu1 %1319  ;;  %v1317_v11 = vpop.xlane.xlu0 %1316 }
 0x574   :  { %10149 = vpow2.f32 %v1324_v4  ;;  %v1323_v14 = vsub.f32 %v10984_v5, %v1320_v10  ;;  %v1322_v15 = vsub.f32 %v10988_v63, %v1317_v11  ;;  %1090 = vadd.xlane.f32.xlu0 %v1089_v12 }
 0x575   :  { %10151 = vpow2.f32 %v1087_v9 }
 0x576   :  { %v1328_v16 = vmul.f32 1.442695, %v1323_v14  ;;  %v1326_v17 = vmul.f32 1.442695, %v1322_v15 }
 0x577   :  { %v9863_v25 = vpop.permute.xlu0 %9862  ;;  %v856_v13 = vpop.permute.xlu1 %855 }
 0x578   :  { %10153 = vpow2.f32 %v1328_v16  ;;  %v9865_v48 = vunpack.i.h.bf16 %v9863_v25  ;;  %v9864_v43 = vunpack.i.l.bf16 %v9863_v25 }
 0x579   :  { %10155 = vpow2.f32 %v1326_v17 }
 0x57a   :  { %v9639_v51 = vpack.c.bf16 %v9865_v48, %v9864_v43 }
 0x57e   :  { %v11046_v54 = vpop.eup %10149 }
 0x57f   :  { %v11048_v60 = vpop.eup %10151  ;;  %v1330_v8 = vsel %vm576_vm7, %v11046_v54, 0.0 }
 0x580   :  { %1331 = vadd.xlane.f32.xlu1 %v1330_v8  ;;  %v1095_v22 = vsel %vm576_vm7, %v11048_v60, 0.0 }
 0x581   :  { %1096 = vadd.xlane.f32.xlu0 %v1095_v22 }
 0x582   :  { %v11054_v5 = vpop.eup %10153 }
 0x583   :  { %v11056_v63 = vpop.eup %10155  ;;  %v1336_v58 = vsel %vm576_vm7, %v11054_v5, 0.0 }
 0x584   :  { %v1333_v0 = vsel %vm576_vm7, %v11056_v63, 0.0 }
 0x585   :  { %1337 = vadd.xlane.f32.xlu0 %v1336_v58  ;;  %1334 = vadd.xlane.f32.xlu1 %v1333_v0  ;;  %v10058_v58 = vld [vmem:[%s10589_s19] sm:$0xff]  }
 0x586   :  { %8853 = vmatpush3.bf16.msra.mxu0 %v10058_v58 }
 0x587   :  { %8854 = vmatprep.subr.bf16.mxu0 %v10521_v6 }
 0x58a   :  { %8855 = vmatpush3.bf16.msra.mxu0 %v10059_v39 }
 0x58b   :  { %8884 = vmatprep.subr.bf16.mxu0 %v10521_v6 }
 0x596   :  { %9867 = vrot.lane.b32.xlu1 %v10825_v18, %s10528_s7 }
 0x59b   :  { %1349 = vrot.lane.b32.xlu0 %v10831_v19, %s10528_s7 }
 0x5bc   :  { %v597_v32 = vpop.xlane.xlu0 %596 }
 0x5bd   :  { %10157 = vrcp.f32 %v597_v32 }
 0x5c0   :  { %v600_v34 = vpop.xlane.xlu1 %599 }
 0x5c1   :  { %10159 = vrcp.f32 %v600_v34 }
 0x5c4   :  { %v603_v35 = vpop.xlane.xlu0 %602 }
 0x5c5   :  { %10161 = vrcp.f32 %v603_v35 }
 0x5c7   :  { %v10158_v40 = vpop.eup %10157 }
 0x5c8   :  { %v607_v41 = vmul.f32 %v10158_v40, %v11002_v21  ;;  %v838_v44 = vpop.xlane.xlu1 %837 }
 0x5c9   :  { %10163 = vrcp.f32 %v838_v44 }
 0x5ca   :  { %8754 = vmatmul.mubr.msk.f32.vlgmr.msra.gmra.mrb[12].mxu1 %vm576_vm7, %v607_v41 }
 0x5cb   :  { %v10160_v18 = vpop.eup %10159  ;;  %9633 = vmatpush3.bf16.msra.mxu1 %v9632_v46  ;;  %8756 = vmatprep.mubr.msk.f32.mxu1 %vm10522_vm3, %v10521_v6 }
 0x5cc   :  { %8781 = vmatprep.subr.mxu1 %v10521_v6  ;;  %v608_v19 = vmul.f32 %v10160_v18, %v11006_v24 }
 0x5ce   :  { %8757 = vmatmul.mubr.msk.f32.gmra.mrb[14].mxu1 %vm576_vm7, %v608_v19 }
 0x5cf   :  { %v10162_v47 = vpop.eup %10161  ;;  %8782 = vmatpush3.msra.mxu1 %v856_v13  ;;  %8759 = vmatprep.mubr.msk.f32.mxu1 %vm10522_vm3, %v10521_v6 }
 0x5d0   :  { %v609_v21 = vmul.f32 %v10162_v47, %v11010_v7  ;;  %9638 = vmatprep.subr.bf16.mxu1 %v10523_v62  ;;  %v1109_v7 = vpop.permute.xlu0 %1108 }
 0x5d2   :  { %8760 = vmatmul.mubr.msk.f32.gmra.mrb[16].mxu1 %vm576_vm7, %v609_v21 }
 0x5d3   :  { %v10164_v42 = vpop.eup %10163  ;;  %8783 = vmatprep.mubr.msk.f32.mxu1 %vm10522_vm3, %v10521_v6 }
 0x5d4   :  { %v848_v24 = vmul.f32 %v10164_v42, %v11014_v28 }
 0x5d6   :  { %8784 = vmatmul.mubr.msk.f32.vlgmr.msra.gmra.mrb[18].mxu1 %vm576_vm7, %v848_v24 }
 0x5d7   :  { %9640 = vmatpush3.bf16.msra.mxu1 %v9639_v51  ;;  %8786 = vmatprep.mubr.msk.f32.mxu1 %vm10522_vm3, %v10521_v6 }
 0x5d8   :  { %8811 = vmatprep.subr.mxu1 %v10521_v6  ;;  %v1094_v53 = vpop.xlane.xlu1 %1093 }
 0x5db   :  { %8812 = vmatpush3.msra.mxu1 %v1109_v7 }
 0x5dc   :  { %9645 = vmatprep.subr.bf16.mxu1 %v10523_v62 }
 0x5f9   :  { %v841_v52 = vpop.xlane.xlu0 %840 }
 0x5fa   :  { %10165 = vrcp.f32 %v841_v52 }
 0x5fd   :  { %v844_v49 = vpop.xlane.xlu0 %843 }
 0x5fe   :  { %10167 = vrcp.f32 %v844_v49 }
 0x601   :  { %v1091_v55 = vpop.xlane.xlu0 %1090 }
 0x602   :  { %10169 = vrcp.f32 %v1091_v55 }
 0x603   :  { %10171 = vrcp.f32 %v1094_v53 }
 0x604   :  { %v10166_v28 = vpop.eup %10165 }
 0x605   :  { %v849_v57 = vmul.f32 %v10166_v28, %v11030_v45 }
 0x607   :  { %8787 = vmatmul.mubr.msk.f32.gmra.mrb[20].mxu1 %vm576_vm7, %v849_v57 }
 0x608   :  { %v10168_v61 = vpop.eup %10167  ;;  %8789 = vmatprep.mubr.msk.f32.mxu1 %vm10522_vm3, %v10521_v6 }
 0x609   :  { %v850_v20 = vmul.f32 %v10168_v61, %v11034_v59 }
 0x60b   :  { %8790 = vmatmul.mubr.msk.f32.gmra.mrb[22].mxu1 %vm576_vm7, %v850_v20 }
 0x60c   :  { %v10170_v1 = vpop.eup %10169  ;;  %8813 = vmatprep.mubr.msk.f32.mxu1 %vm10522_vm3, %v10521_v6 }
 0x60d   :  { %v1101_v26 = vmul.f32 %v10170_v1, %v11038_v2  ;;  %v1332_v37 = vpop.xlane.xlu1 %1331  ;;  %v10172_v3 = vpop.eup %10171 }
 0x60e   :  { %v1097_v4 = vpop.xlane.xlu0 %1096  ;;  %v1102_v45 = vmul.f32 %v10172_v3, %v11021_v50 }
 0x60f   :  { %10173 = vrcp.f32 %v1097_v4  ;;  %8814 = vmatmul.mubr.msk.f32.vlgmr.msra.gmra.mrb[24].mxu1 %vm576_vm7, %v1101_v26 }
 0x610   :  { %8816 = vmatprep.mubr.msk.f32.mxu1 %vm10522_vm3, %v10521_v6  ;;  %10175 = vrcp.f32 %v1332_v37 }
 0x612   :  { %v1335_v59 = vpop.xlane.xlu1 %1334  ;;  %v1338_v2 = vpop.xlane.xlu0 %1337 }
 0x613   :  { %8817 = vmatmul.mubr.msk.f32.gmra.mrb[26].mxu1 %vm576_vm7, %v1102_v45  ;;  %10177 = vrcp.f32 %v1335_v59 }
 0x614   :  { %8819 = vmatprep.mubr.msk.f32.mxu1 %vm10522_vm3, %v10521_v6  ;;  %10179 = vrcp.f32 %v1338_v2 }
 0x616   :  { %v9868_v9 = vpop.permute.xlu1 %9867  ;;  %v1350_v17 = vpop.permute.xlu0 %1349 }
 0x617   :  { %v9870_v10 = vunpack.i.h.bf16 %v9868_v9  ;;  %v9869_v11 = vunpack.i.l.bf16 %v9868_v9 }
 0x619   :  { %v10174_v12 = vpop.eup %10173  ;;  %v9646_v14 = vpack.c.bf16 %v9870_v10, %v9869_v11 }
 0x61a   :  { %v1103_v15 = vmul.f32 %v10174_v12, %v11048_v60  ;;  %v10176_v16 = vpop.eup %10175 }
 0x61b   :  { %9647 = vmatpush3.bf16.msra.mxu1 %v9646_v14  ;;  %v1342_v50 = vmul.f32 %v10176_v16, %v11046_v54 }
 0x61c   :  { %8820 = vmatmul.mubr.msk.f32.gmra.mrb[28].mxu1 %vm576_vm7, %v1103_v15  ;;  %8841 = vmatprep.subr.mxu1 %v10521_v6 }
 0x61d   :  { %8843 = vmatprep.mubr.msk.f32.mxu1 %vm10522_vm3, %v10521_v6  ;;  %v10178_v8 = vpop.eup %10177 }
 0x61e   :  { %v1343_v60 = vmul.f32 %v10178_v8, %v11056_v63  ;;  %v10180_v22 = vpop.eup %10179 }
 0x61f   :  { %8842 = vmatpush3.msra.mxu1 %v1350_v17  ;;  %v1344_v54 = vmul.f32 %v10180_v22, %v11054_v5 }
 0x620   :  { %8844 = vmatmul.mubr.msk.f32.vlgmr.msra.gmra.mrb[30].mxu1 %vm576_vm7, %v1342_v50  ;;  %8868 = vmatprep.subr.bf16.mxu1 %v10521_v6  ;;  %v7971_v50 = vld [vmem:[%s10594_s24] ss:$0 sm:$0xff] }
 0x621   :  { %8846 = vmatprep.mubr.msk.f32.mxu1 %vm10522_vm3, %v10521_v6 }
 0x624   :  { %8847 = vmatmul.mubr.msk.f32.gmra.mrb[32].mxu1 %vm576_vm7, %v1343_v60 }
 0x625   :  { %8849 = vmatprep.mubr.msk.f32.mxu1 %vm10522_vm3, %v10521_v6 }
 0x628   :  { %8850 = vmatmul.mubr.msk.f32.gmra.mrb[34].mxu1 %vm576_vm7, %v1344_v54 }
 0x629   :  { %8872 = vmatprep.mubr.msk.bf16.mxu1 %vm10522_vm3, %v10521_v6 }
 0x69d   :  { %v694_v0 = vpop.f32.mrb[12].mxu1 }
 0x69e   :  { %v8755_v63 = vpop.f32.mrb[13].mxu1 }
 0x6a1   :  { %v699_v25 = vpop.f32.mrb[14].mxu1 }
 0x6a2   :  { %v8758_v13 = vpop.f32.mrb[15].mxu1 }
 0x6a5   :  { %v704_v32 = vpop.f32.mrb[16].mxu1 }
 0x6a6   :  { %v8761_v34 = vpop.f32.mrb[17].mxu1 }
 0x6a9   :  { %v935_v35 = vpop.f32.mrb[18].mxu1 }
 0x6aa   :  { %v8785_v38 = vpop.f32.mrb[19].mxu1 }
 0x6da   :  { %v940_v5 = vpop.f32.mrb[20].mxu1 }
 0x6db   :  { %v9871_v40 = vpack.i.bf16 %v940_v5, %v935_v35  ;;  %v8788_v41 = vpop.f32.mrb[21].mxu1 }
 0x6dd   :  { %9872 = vrot.lane.b32.xlu1 %v9871_v40, %s10529_s10 }
 0x6de   :  { %v945_v44 = vpop.f32.mrb[22].mxu1 }
 0x6df   :  { %v8791_v46 = vpop.f32.mrb[23].mxu1 }
 0x6e2   :  { %v1188_v18 = vpop.f32.mrb[24].mxu1 }
 0x6e3   :  { %v8815_v19 = vpop.f32.mrb[25].mxu1 }
 0x6e6   :  { %v1193_v47 = vpop.f32.mrb[26].mxu1 }
 0x6e7   :  { %v8818_v21 = vpop.f32.mrb[27].mxu1 }
 0x6ef   :  { %v1198_v48 = vpop.f32.mrb[28].mxu1 }
 0x6f0   :  { %v8821_v43 = vpop.f32.mrb[29].mxu1 }
 0x6f3   :  { %v1429_v42 = vpop.f32.mrb[30].mxu1 }
 0x6f4   :  { %v9876_v24 = vpack.i.bf16 %v1429_v42, %v945_v44  ;;  %v8845_v51 = vpop.f32.mrb[31].mxu1 }
 0x6f6   :  { %9877 = vrot.lane.b32.xlu1 %v9876_v24, %s10529_s10 }
 0x6f7   :  { %v1434_v7 = vpop.f32.mrb[32].mxu1 }
 0x6f8   :  { %v8848_v52 = vpop.f32.mrb[33].mxu1 }
 0x6fb   :  { %v1439_v49 = vpop.f32.mrb[34].mxu1 }
 0x6fc   :  { %v9881_v53 = vpack.i.bf16 %v1439_v49, %v1434_v7  ;;  %v8851_v55 = vpop.f32.mrb[35].mxu1 }
 0x6fe   :  { %9882 = vrot.lane.b32.xlu1 %v9881_v53, %s10529_s10 }
 0x74f   :  { %v9873_v28 = vpop.permute.xlu1 %9872 }
 0x750   :  { %v9875_v57 = vunpack.i.h.bf16 %v9873_v28  ;;  %v9874_v61 = vunpack.i.l.bf16 %v9873_v28 }
 0x752   :  { %v962_v20 = vsel %vm477_vm4, %v699_v25, %v9875_v57  ;;  %v961_v1 = vsel %vm477_vm4, %v694_v0, %v9874_v61 }
 0x753   :  { %v1458_v26 = vpack.c.bf16 %v962_v20, %v961_v1 }
 0x755   :  { %8857 = vmatmul.mubr.msk.bf16.vlgmr.msra.gmra.mrb[28].mxu0 %vm272_vm2, %v1458_v26 }
 0x756   :  { %8860 = vmatprep.mubr.msk.bf16.mxu0 %vm10522_vm3, %v10521_v6 }
 0x768   :  { %v9878_v37 = vpop.permute.xlu1 %9877 }
 0x769   :  { %v9880_v3 = vunpack.i.h.bf16 %v9878_v37  ;;  %v9879_v4 = vunpack.i.l.bf16 %v9878_v37 }
 0x76b   :  { %v1455_v45 = vsel %vm477_vm4, %v1188_v18, %v9880_v3  ;;  %v963_v59 = vsel %vm477_vm4, %v704_v32, %v9879_v4 }
 0x76c   :  { %v1459_v2 = vpack.c.bf16 %v1455_v45, %v963_v59 }
 0x76e   :  { %8861 = vmatmul.mubr.msk.bf16.gmra.mrb[32].mxu0 %vm272_vm2, %v1459_v2 }
 0x76f   :  { %8864 = vmatprep.mubr.msk.bf16.mxu0 %vm10522_vm3, %v10521_v6 }
 0x770   :  { %v9883_v9 = vpop.permute.xlu1 %9882 }
 0x771   :  { %v9885_v10 = vunpack.i.h.bf16 %v9883_v9  ;;  %v9884_v11 = vunpack.i.l.bf16 %v9883_v9 }
 0x773   :  { %v1457_v12 = vsel %vm477_vm4, %v1198_v48, %v9885_v10  ;;  %v1456_v14 = vsel %vm477_vm4, %v1193_v47, %v9884_v11 }
 0x774   :  { %v1460_v15 = vpack.c.bf16 %v1457_v12, %v1456_v14 }
 0x776   :  { %8865 = vmatmul.mubr.msk.bf16.gmra.mrb[36].mxu0 %vm272_vm2, %v1460_v15 }
 0x777   :  { %8900 = vmatprep.mubr.msk.bf16.mxu0 %vm10522_vm3, %v10521_v6 }
 0x828   :  { %v1520_v16 = vpop.f32.mrb[28].mxu0 }
 0x829   :  { %v1543_v17 = vadd.f32 %v1520_v16, %v10714_v27  ;;  %v8858_v8 = vpop.f32.mrb[29].mxu0  ;;  %v10060_v16 = vld [vmem:[%s10609_s12] sm:$0xff]  }
 0x82a   :  { %v1523_v60 = vpop.f32.mrb[30].mxu0  ;;  %8869 = vmatpush3.bf16.msra.mxu1 %v10060_v16  ;;  %v10066_v16 = vld [vmem:[%s12792_s15 + $0x20] sm:$0xff]  }
 0x82b   :  { %v11144_v22 = vadd.f32 %v7971_v50, %v1543_v17  ;;  %v1544_v54 = vadd.f32 %v1523_v60, %v10725_v31  ;;  %v8859_v58 = vpop.f32.mrb[31].mxu0  ;;  %8870 = vmatprep.subr.bf16.mxu1 %v10521_v6  ;;  %v10061_v17 = vld [vmem:[%s10609_s12 + $0x8] sm:$0xff]  }
 0x82d   :  { %v11147_v0 = vadd.f32 %v7971_v50, %v1544_v54  ;;  %v1564_v63 = vsel %vm272_vm2, %v11144_v22, 0.0 }
 0x82e   :  { %1565 = vadd.xlane.f32.xlu1 %v1564_v63  ;;  %8871 = vmatpush3.bf16.msra.mxu1 %v10061_v17  ;;  %v10068_v17 = vld [vmem:[%s12792_s15 + $0x30] sm:$0xff]  }
 0x82f   :  { %v1567_v25 = vsel %vm272_vm2, %v11147_v0, 0.0  ;;  %8912 = vmatprep.subr.bf16.mxu1 %v10521_v6 }
 0x830   :  { %1568 = vadd.xlane.f32.xlu0 %v1567_v25 }
 0x841   :  { %v1528_v13 = vpop.f32.mrb[32].mxu0 }
 0x842   :  { %v1545_v27 = vadd.f32 %v1528_v13, %v10722_v30  ;;  %v8862_v32 = vpop.f32.mrb[33].mxu0 }
 0x843   :  { %v1531_v34 = vpop.f32.mrb[34].mxu0 }
 0x844   :  { %v11154_v35 = vadd.f32 %v7971_v50, %v1545_v27  ;;  %v1546_v31 = vadd.f32 %v1531_v34, %v10730_v33  ;;  %v8863_v38 = vpop.f32.mrb[35].mxu0  ;;  %v7972_v27 = vld [vmem:[%s10599_s30] ss:$0 sm:$0xff] }
 0x846   :  { %v11157_v39 = vadd.f32 %v7971_v50, %v1546_v31  ;;  %v1570_v5 = vsel %vm272_vm2, %v11154_v35, 0.0 }
 0x847   :  { %1571 = vadd.xlane.f32.xlu1 %v1570_v5  ;;  %v7973_v5 = vld [vmem:[%s12791_s11] ss:$0 sm:$0xff] }
 0x848   :  { %v1573_v40 = vsel %vm272_vm2, %v11157_v39, 0.0 }
 0x849   :  { %1574 = vadd.xlane.f32.xlu0 %v1573_v40  ;;  %v1536_v41 = vpop.f32.mrb[36].mxu0 }
 0x84a   :  { %v1547_v30 = vadd.f32 %v1536_v41, %v10719_v29  ;;  %v8866_v44 = vpop.f32.mrb[37].mxu0 }
 0x84b   :  { %v1539_v46 = vpop.f32.mrb[38].mxu0 }
 0x84c   :  { %v11164_v18 = vadd.f32 %v7971_v50, %v1547_v30  ;;  %v1548_v33 = vadd.f32 %v1539_v46, %v10737_v36  ;;  %v8867_v19 = vpop.f32.mrb[39].mxu0 }
 0x84e   :  { %v11167_v47 = vadd.f32 %v7971_v50, %v1548_v33  ;;  %v1576_v21 = vsel %vm272_vm2, %v11164_v18, 0.0 }
 0x84f   :  { %1577 = vadd.xlane.f32.xlu1 %v1576_v21 }
 0x850   :  { %v1579_v48 = vsel %vm272_vm2, %v11167_v47, 0.0 }
 0x851   :  { %1580 = vadd.xlane.f32.xlu0 %v1579_v48 }
 0x8bb   :  { %v1566_v43 = vpop.xlane.xlu1 %1565 }
 0x8bc   :  { %v1582_v42 = vmul.f32 0.03125, %v1566_v43 }
 0x8bd   :  { %v1569_v29 = vpop.xlane.xlu0 %1568 }
 0x8be   :  { %v1588_v24 = vsub.f32 %v11144_v22, %v1582_v42  ;;  %v1583_v51 = vmul.f32 0.03125, %v1569_v29 }
 0x8c0   :  { %v1589_v7 = vsub.f32 %v11147_v0, %v1583_v51  ;;  %v1594_v36 = vmul.f32 %v1588_v24, %v1588_v24 }
 0x8c2   :  { %v1600_v52 = vsel %vm272_vm2, %v1594_v36, 0.0  ;;  %v1595_v49 = vmul.f32 %v1589_v7, %v1589_v7 }
 0x8c3   :  { %1601 = vadd.xlane.f32.xlu1 %v1600_v52 }
 0x8c4   :  { %v1603_v53 = vsel %vm272_vm2, %v1595_v49, 0.0 }
 0x8c5   :  { %1604 = vadd.xlane.f32.xlu0 %v1603_v53 }
 0x8d4   :  { %v1572_v55 = vpop.xlane.xlu1 %1571 }
 0x8d5   :  { %v1584_v28 = vmul.f32 0.03125, %v1572_v55 }
 0x8d6   :  { %v1575_v57 = vpop.xlane.xlu0 %1574 }
 0x8d7   :  { %v11178_v61 = vsub.f32 %v11154_v35, %v1584_v28  ;;  %v1585_v20 = vmul.f32 0.03125, %v1575_v57 }
 0x8d9   :  { %v11181_v1 = vsub.f32 %v11157_v39, %v1585_v20  ;;  %v1596_v26 = vmul.f32 %v11178_v61, %v11178_v61 }
 0x8db   :  { %v1606_v37 = vsel %vm272_vm2, %v1596_v26, 0.0  ;;  %v1597_v3 = vmul.f32 %v11181_v1, %v11181_v1 }
 0x8dc   :  { %1607 = vadd.xlane.f32.xlu1 %v1606_v37  ;;  %v1578_v4 = vpop.xlane.xlu1 %1577 }
 0x8dd   :  { %v1586_v45 = vmul.f32 0.03125, %v1578_v4  ;;  %v1609_v59 = vsel %vm272_vm2, %v1597_v3, 0.0 }
 0x8de   :  { %1610 = vadd.xlane.f32.xlu0 %v1609_v59  ;;  %v1581_v2 = vpop.xlane.xlu0 %1580 }
 0x8df   :  { %v1592_v9 = vsub.f32 %v11164_v18, %v1586_v45  ;;  %v1587_v10 = vmul.f32 0.03125, %v1581_v2 }
 0x8e1   :  { %v11191_v11 = vsub.f32 %v11167_v47, %v1587_v10  ;;  %v1598_v12 = vmul.f32 %v1592_v9, %v1592_v9 }
 0x8e3   :  { %v1612_v14 = vsel %vm272_vm2, %v1598_v12, 0.0  ;;  %v1599_v15 = vmul.f32 %v11191_v11, %v11191_v11 }
 0x8e4   :  { %1613 = vadd.xlane.f32.xlu1 %v1612_v14  ;;  %v10064_v14 = vld [vmem:[%s12792_s15 + $0x10] sm:$0xff]  }
 0x8e5   :  { %v1615_v50 = vsel %vm272_vm2, %v1599_v15, 0.0  ;;  %v10065_v15 = vld [vmem:[%s12792_s15 + $0x18] sm:$0xff]  }
 0x8e6   :  { %1616 = vadd.xlane.f32.xlu0 %v1615_v50  ;;  %v10067_v50 = vld [vmem:[%s12792_s15 + $0x28] sm:$0xff]  }
 0x950   :  { %v1602_v8 = vpop.xlane.xlu1 %1601 }
 0x951   :  { %v1618_v60 = vmul.f32 0.03125, %v1602_v8  ;;  %v10069_v8 = vld [vmem:[%s12792_s15 + $0x38] sm:$0xff]  }
 0x952   :  { %v1605_v54 = vpop.xlane.xlu0 %1604 }
 0x953   :  { %v1624_v58 = vadd.f32 1e-12, %v1618_v60  ;;  %v1619_v63 = vmul.f32 0.03125, %v1605_v54  ;;  %v7974_v60 = vld [vmem:[%s12793_s16] ss:$0 sm:$0xff] }
 0x955   :  { %10181 = vrsqrt.f32 %v1624_v58  ;;  %v1625_v25 = vadd.f32 1e-12, %v1619_v63 }
 0x957   :  { %10183 = vrsqrt.f32 %v1625_v25 }
 0x95f   :  { %v10182_v13 = vpop.eup %10181 }
 0x960   :  { %v1636_v32 = vmul.f32 %v10182_v13, %v1588_v24 }
 0x961   :  { %v10184_v34 = vpop.eup %10183 }
 0x962   :  { %v1648_v31 = vmul.f32 %v7972_v27, %v1636_v32  ;;  %v1637_v38 = vmul.f32 %v10184_v34, %v1589_v7 }
 0x964   :  { %v1649_v40 = vmul.f32 %v7972_v27, %v1637_v38  ;;  %v1660_v41 = vadd.f32 %v7973_v5, %v1648_v31 }
 0x966   :  { %v1661_v30 = vadd.f32 %v7973_v5, %v1649_v40 }
 0x968   :  { %v1666_v44 = vpack.c.bf16 %v1661_v30, %v1660_v41 }
 0x969   :  { %v1608_v46 = vpop.xlane.xlu1 %1607 }
 0x96a   :  { %v1620_v33 = vmul.f32 0.03125, %v1608_v46  ;;  %8873 = vmatmul.mubr.msk.bf16.vlgmr.msra.gmra.mrb[36].mxu1 %vm272_vm2, %v1666_v44 }
 0x96b   :  { %v1611_v19 = vpop.xlane.xlu0 %1610  ;;  %8876 = vmatprep.mubr.msk.bf16.mxu1 %vm10522_vm3, %v10521_v6 }
 0x96c   :  { %v1626_v21 = vadd.f32 1e-12, %v1620_v33  ;;  %v1621_v48 = vmul.f32 0.03125, %v1611_v19 }
 0x96e   :  { %10185 = vrsqrt.f32 %v1626_v21  ;;  %v1627_v43 = vadd.f32 1e-12, %v1621_v48 }
 0x970   :  { %10187 = vrsqrt.f32 %v1627_v43 }
 0x971   :  { %v1614_v42 = vpop.xlane.xlu1 %1613 }
 0x972   :  { %v1622_v29 = vmul.f32 0.03125, %v1614_v42 }
 0x973   :  { %v1617_v24 = vpop.xlane.xlu0 %1616 }
 0x974   :  { %v1628_v51 = vadd.f32 1e-12, %v1622_v29  ;;  %v1623_v7 = vmul.f32 0.03125, %v1617_v24 }
 0x976   :  { %10189 = vrsqrt.f32 %v1628_v51  ;;  %v1629_v36 = vadd.f32 1e-12, %v1623_v7 }
 0x978   :  { %v10186_v52 = vpop.eup %10185  ;;  %10191 = vrsqrt.f32 %v1629_v36 }
 0x979   :  { %v1638_v49 = vmul.f32 %v10186_v52, %v11178_v61 }
 0x97a   :  { %v10188_v53 = vpop.eup %10187 }
 0x97b   :  { %v1639_v55 = vmul.f32 %v10188_v53, %v11181_v1  ;;  %v1650_v28 = vmul.f32 %v7972_v27, %v1638_v49 }
 0x97d   :  { %v1651_v57 = vmul.f32 %v7972_v27, %v1639_v55  ;;  %v1662_v20 = vadd.f32 %v7973_v5, %v1650_v28 }
 0x97f   :  { %v1663_v26 = vadd.f32 %v7973_v5, %v1651_v57 }
 0x980   :  { %v10190_v37 = vpop.eup %10189 }
 0x981   :  { %v1667_v3 = vpack.c.bf16 %v1663_v26, %v1662_v20  ;;  %v1640_v4 = vmul.f32 %v10190_v37, %v1592_v9  ;;  %v10062_v9 = vld [vmem:[%s12792_s15] sm:$0xff]  }
 0x982   :  { %v10192_v45 = vpop.eup %10191  ;;  %8885 = vmatpush3.bf16.msra.mxu0 %v10062_v9 }
 0x983   :  { %8877 = vmatmul.mubr.msk.bf16.gmra.mrb[40].mxu1 %vm272_vm2, %v1667_v3  ;;  %v1641_v59 = vmul.f32 %v10192_v45, %v11191_v11  ;;  %v1652_v2 = vmul.f32 %v7972_v27, %v1640_v4  ;;  %8886 = vmatprep.subr.bf16.mxu0 %v10521_v6  ;;  %v10063_v11 = vld [vmem:[%s12792_s15 + $0x8] sm:$0xff]  }
 0x984   :  { %8880 = vmatprep.mubr.msk.bf16.mxu1 %vm10522_vm3, %v10521_v6 }
 0x985   :  { %v1653_v61 = vmul.f32 %v7972_v27, %v1641_v59  ;;  %v1664_v1 = vadd.f32 %v7973_v5, %v1652_v2 }
 0x986   :  { %8887 = vmatpush3.bf16.msra.mxu0 %v10063_v11 }
 0x987   :  { %v1665_v10 = vadd.f32 %v7973_v5, %v1653_v61  ;;  %8888 = vmatprep.subr.bf16.mxu0 %v10521_v6 }
 0x989   :  { %v1668_v12 = vpack.c.bf16 %v1665_v10, %v1664_v1 }
 0x98a   :  { %8889 = vmatpush3.bf16.msra.mxu0 %v10064_v14 }
 0x98b   :  { %8881 = vmatmul.mubr.msk.bf16.gmra.mrb[44].mxu1 %vm272_vm2, %v1668_v12  ;;  %8890 = vmatprep.subr.bf16.mxu0 %v10521_v6 }
 0x98c   :  { %8916 = vmatprep.mubr.msk.bf16.mxu1 %vm10522_vm3, %v10521_v6 }
 0x98e   :  { %8891 = vmatpush3.bf16.msra.mxu0 %v10065_v15 }
 0x98f   :  { %8892 = vmatprep.subr.bf16.mxu0 %v10521_v6 }
 0x992   :  { %8893 = vmatpush3.bf16.msra.mxu0 %v10066_v16 }
 0x993   :  { %8894 = vmatprep.subr.bf16.mxu0 %v10521_v6 }
 0x996   :  { %8895 = vmatpush3.bf16.msra.mxu0 %v10067_v50 }
 0x997   :  { %8896 = vmatprep.subr.bf16.mxu0 %v10521_v6 }
 0x99a   :  { %8897 = vmatpush3.bf16.msra.mxu0 %v10068_v17 }
 0x99b   :  { %8898 = vmatprep.subr.bf16.mxu0 %v10521_v6 }
 0x99e   :  { %8899 = vmatpush3.bf16.msra.mxu0 %v10069_v8 }
 0x99f   :  { %9648 = vmatprep.subr.bf16.mxu0 %v10523_v62 }
 0xa3d   :  { %v1735_v54 = vpop.f32.mrb[36].mxu1 }
 0xa3e   :  { %v1736_v58 = vadd.f32 %v7974_v60, %v1735_v54  ;;  %v8874_v63 = vpop.f32.mrb[37].mxu1 }
 0xa3f   :  { %v1738_v25 = vpop.f32.mrb[38].mxu1 }
 0xa40   :  { %v1764_v13 = vmul.f32 0.044715, %v1736_v58  ;;  %v1739_v27 = vadd.f32 %v7974_v60, %v1738_v25  ;;  %v8875_v32 = vpop.f32.mrb[39].mxu1  ;;  %v1758_v43 = vmul.f32 0.5, %v1736_v58 }
 0xa42   :  { %v1770_v34 = vmul.f32 %v1764_v13, %v1736_v58  ;;  %v1765_v31 = vmul.f32 0.044715, %v1739_v27  ;;  %v1759_v42 = vmul.f32 0.5, %v1739_v27 }
 0xa44   :  { %v1776_v38 = vmul.f32 %v1770_v34, %v1736_v58  ;;  %v1771_v5 = vmul.f32 %v1765_v31, %v1739_v27 }
 0xa46   :  { %v1782_v40 = vadd.f32 %v1776_v38, %v1736_v58  ;;  %v1777_v41 = vmul.f32 %v1771_v5, %v1739_v27 }
 0xa48   :  { %v1788_v30 = vmul.f32 0.7978846, %v1782_v40  ;;  %v1783_v44 = vadd.f32 %v1777_v41, %v1739_v27 }
 0xa4a   :  { %10193 = vtanh.f32 %v1788_v30  ;;  %v1789_v46 = vmul.f32 0.7978846, %v1783_v44 }
 0xa4c   :  { %10195 = vtanh.f32 %v1789_v46 }
 0xa54   :  { %v10194_v33 = vpop.eup %10193 }
 0xa55   :  { %v1800_v19 = vadd.f32 1.0, %v10194_v33 }
 0xa56   :  { %v10196_v21 = vpop.eup %10195  ;;  %v1743_v48 = vpop.f32.mrb[40].mxu1 }
 0xa57   :  { %v1744_v29 = vadd.f32 %v7974_v60, %v1743_v48  ;;  %v8878_v24 = vpop.f32.mrb[41].mxu1  ;;  %v1801_v51 = vadd.f32 1.0, %v10196_v21  ;;  %v1806_v53 = vmul.f32 %v1800_v19, %v1758_v43 }
 0xa58   :  { %v1746_v7 = vpop.f32.mrb[42].mxu1 }
 0xa59   :  { %v1766_v36 = vmul.f32 0.044715, %v1744_v29  ;;  %v1747_v52 = vadd.f32 %v7974_v60, %v1746_v7  ;;  %v8879_v49 = vpop.f32.mrb[43].mxu1  ;;  %v1807_v55 = vmul.f32 %v1801_v51, %v1759_v42  ;;  %v1760_v32 = vmul.f32 0.5, %v1744_v29 }
 0xa5b   :  { %v1772_v28 = vmul.f32 %v1766_v36, %v1744_v29  ;;  %v1767_v57 = vmul.f32 0.044715, %v1747_v52  ;;  %v1812_v20 = vpack.c.bf16 %v1807_v55, %v1806_v53  ;;  %v1761_v34 = vmul.f32 0.5, %v1747_v52 }
 0xa5d   :  { %v1778_v26 = vmul.f32 %v1772_v28, %v1744_v29  ;;  %v1773_v37 = vmul.f32 %v1767_v57, %v1747_v52  ;;  %8901 = vmatmul.mubr.bf16.vlgmr.msra.gmra.mrb[40].mxu0 %v1812_v20 }
 0xa5e   :  { %v1751_v3 = vpop.f32.mrb[44].mxu1  ;;  %8904 = vmatprep.mubr.msk.bf16.mxu0 %vm10522_vm3, %v10521_v6 }
 0xa5f   :  { %v1779_v4 = vmul.f32 %v1773_v37, %v1747_v52  ;;  %v1752_v45 = vadd.f32 %v7974_v60, %v1751_v3  ;;  %v8882_v59 = vpop.f32.mrb[45].mxu1  ;;  %v1784_v2 = vadd.f32 %v1778_v26, %v1744_v29  ;;  %v7988_v29 = vld [vmem:[%s12794_s18] ss:$0 sm:$0xff] }
 0xa60   :  { %v1754_v61 = vpop.f32.mrb[46].mxu1 }
 0xa61   :  { %v1768_v1 = vmul.f32 0.044715, %v1752_v45  ;;  %v1755_v10 = vadd.f32 %v7974_v60, %v1754_v61  ;;  %v8883_v12 = vpop.f32.mrb[47].mxu1  ;;  %v1785_v9 = vadd.f32 %v1779_v4, %v1747_v52  ;;  %v1790_v11 = vmul.f32 0.7978846, %v1784_v2 }
 0xa62   :  { %v1762_v46 = vmul.f32 0.5, %v1752_v45 }
 0xa63   :  { %v1774_v14 = vmul.f32 %v1768_v1, %v1752_v45  ;;  %v1769_v15 = vmul.f32 0.044715, %v1755_v10  ;;  %v1791_v16 = vmul.f32 0.7978846, %v1785_v9  ;;  %10197 = vtanh.f32 %v1790_v11 }
 0xa64   :  { %v1763_v33 = vmul.f32 0.5, %v1755_v10 }
 0xa65   :  { %v1780_v50 = vmul.f32 %v1774_v14, %v1752_v45  ;;  %v1775_v17 = vmul.f32 %v1769_v15, %v1755_v10  ;;  %10199 = vtanh.f32 %v1791_v16 }
 0xa67   :  { %v1781_v8 = vmul.f32 %v1775_v17, %v1755_v10  ;;  %v1786_v54 = vadd.f32 %v1780_v50, %v1752_v45 }
 0xa69   :  { %v1787_v58 = vadd.f32 %v1781_v8, %v1755_v10  ;;  %v1792_v63 = vmul.f32 0.7978846, %v1786_v54 }
 0xa6b   :  { %v1793_v25 = vmul.f32 0.7978846, %v1787_v58  ;;  %10201 = vtanh.f32 %v1792_v63 }
 0xa6d   :  { %v10198_v13 = vpop.eup %10197  ;;  %10203 = vtanh.f32 %v1793_v25 }
 0xa6e   :  { %v1802_v27 = vadd.f32 1.0, %v10198_v13 }
 0xa6f   :  { %v10200_v60 = vpop.eup %10199 }
 0xa70   :  { %v1803_v31 = vadd.f32 1.0, %v10200_v60  ;;  %v1808_v38 = vmul.f32 %v1802_v27, %v1760_v32 }
 0xa72   :  { %v1809_v5 = vmul.f32 %v1803_v31, %v1761_v34 }
 0xa74   :  { %v1813_v40 = vpack.c.bf16 %v1809_v5, %v1808_v38 }
 0xa75   :  { %v10202_v41 = vpop.eup %10201 }
 0xa76   :  { %8905 = vmatmul.mubr.bf16.gmra.mrb[44].mxu0 %v1813_v40  ;;  %v1804_v30 = vadd.f32 1.0, %v10202_v41 }
 0xa77   :  { %v10204_v44 = vpop.eup %10203  ;;  %8908 = vmatprep.mubr.msk.bf16.mxu0 %vm10522_vm3, %v10521_v6 }
 0xa78   :  { %v1805_v19 = vadd.f32 1.0, %v10204_v44  ;;  %v1810_v21 = vmul.f32 %v1804_v30, %v1762_v46 }
 0xa7a   :  { %v1811_v48 = vmul.f32 %v1805_v19, %v1763_v33 }
 0xa7c   :  { %v1814_v43 = vpack.c.bf16 %v1811_v48, %v1810_v21 }
 0xa7e   :  { %8909 = vmatmul.mubr.bf16.gmra.mrb[48].mxu0 %v1814_v43 }
 0xa7f   :  { %8934 = vmatprep.mubr.msk.f32.mxu0 %vm10522_vm3, %v10521_v6 }
 0xb30   :  { %v1913_v42 = vpop.f32.mrb[40].mxu0 }
 0xb31   :  { %v1936_v24 = vadd.f32 %v1913_v42, %v11144_v22  ;;  %v8902_v51 = vpop.f32.mrb[41].mxu0  ;;  %v10070_v42 = vld [vmem:[%s10579_s8 + $0x10] sm:$0xff]  }
 0xb32   :  { %v1916_v7 = vpop.f32.mrb[42].mxu0  ;;  %8913 = vmatpush3.bf16.msra.mxu1 %v10070_v42 }
 0xb33   :  { %v11240_v36 = vadd.f32 %v7988_v29, %v1936_v24  ;;  %v1937_v52 = vadd.f32 %v1916_v7, %v11147_v0  ;;  %v8903_v49 = vpop.f32.mrb[43].mxu0  ;;  %8914 = vmatprep.subr.bf16.mxu1 %v10521_v6  ;;  %v10071_v24 = vld [vmem:[%s10579_s8 + $0x18] sm:$0xff]  }
 0xb35   :  { %v11243_v53 = vadd.f32 %v7988_v29, %v1937_v52  ;;  %v1959_v55 = vsel %vm272_vm2, %v11240_v36, 0.0 }
 0xb36   :  { %1960 = vadd.xlane.f32.xlu1 %v1959_v55  ;;  %8915 = vmatpush3.bf16.msra.mxu1 %v10071_v24 }
 0xb37   :  { %v1962_v28 = vsel %vm272_vm2, %v11243_v53, 0.0  ;;  %9652 = vmatprep.subr.bf16.mxu1 %v10523_v62 }
 0xb38   :  { %1963 = vadd.xlane.f32.xlu0 %v1962_v28 }
 0xb49   :  { %v1921_v57 = vpop.f32.mrb[44].mxu0 }
 0xb4a   :  { %v1938_v22 = vadd.f32 %v1921_v57, %v11154_v35  ;;  %v8906_v20 = vpop.f32.mrb[45].mxu0 }
 0xb4b   :  { %v1924_v26 = vpop.f32.mrb[46].mxu0 }
 0xb4c   :  { %v11250_v37 = vadd.f32 %v7988_v29, %v1938_v22  ;;  %v1939_v0 = vadd.f32 %v1924_v26, %v11157_v39  ;;  %v8907_v3 = vpop.f32.mrb[47].mxu0  ;;  %v7991_v22 = vld [vmem:[%s10569_s29 + $0x1] ss:$0 sm:$0xff] }
 0xb4e   :  { %v11253_v4 = vadd.f32 %v7988_v29, %v1939_v0  ;;  %v1965_v45 = vsel %vm272_vm2, %v11250_v37, 0.0 }
 0xb4f   :  { %1966 = vadd.xlane.f32.xlu1 %v1965_v45  ;;  %v7992_v45 = vld [vmem:[%s10574_s3 + $0x1] ss:$0 sm:$0xff] }
 0xb50   :  { %v1968_v59 = vsel %vm272_vm2, %v11253_v4, 0.0 }
 0xb51   :  { %1969 = vadd.xlane.f32.xlu0 %v1968_v59  ;;  %v1929_v2 = vpop.f32.mrb[48].mxu0 }
 0xb52   :  { %v1940_v35 = vadd.f32 %v1929_v2, %v11164_v18  ;;  %v8910_v61 = vpop.f32.mrb[49].mxu0 }
 0xb53   :  { %v1932_v1 = vpop.f32.mrb[50].mxu0 }
 0xb54   :  { %v11260_v10 = vadd.f32 %v7988_v29, %v1940_v35  ;;  %v1941_v39 = vadd.f32 %v1932_v1, %v11167_v47  ;;  %v8911_v12 = vpop.f32.mrb[51].mxu0 }
 0xb56   :  { %v11263_v9 = vadd.f32 %v7988_v29, %v1941_v39  ;;  %v1971_v11 = vsel %vm272_vm2, %v11260_v10, 0.0 }
 0xb57   :  { %1972 = vadd.xlane.f32.xlu1 %v1971_v11 }
 0xb58   :  { %v1974_v14 = vsel %vm272_vm2, %v11263_v9, 0.0 }
 0xb59   :  { %1975 = vadd.xlane.f32.xlu0 %v1974_v14 }
 0xbc3   :  { %v1961_v15 = vpop.xlane.xlu1 %1960 }
 0xbc4   :  { %v1977_v16 = vmul.f32 0.03125, %v1961_v15 }
 0xbc5   :  { %v1964_v18 = vpop.xlane.xlu0 %1963 }
 0xbc6   :  { %v1983_v50 = vsub.f32 %v11240_v36, %v1977_v16  ;;  %v1978_v17 = vmul.f32 0.03125, %v1964_v18 }
 0xbc8   :  { %v1984_v8 = vsub.f32 %v11243_v53, %v1978_v17  ;;  %v1989_v47 = vmul.f32 %v1983_v50, %v1983_v50 }
 0xbca   :  { %v1995_v54 = vsel %vm272_vm2, %v1989_v47, 0.0  ;;  %v1990_v58 = vmul.f32 %v1984_v8, %v1984_v8 }
 0xbcb   :  { %1996 = vadd.xlane.f32.xlu1 %v1995_v54 }
 0xbcc   :  { %v1998_v63 = vsel %vm272_vm2, %v1990_v58, 0.0 }
 0xbcd   :  { %1999 = vadd.xlane.f32.xlu0 %v1998_v63 }
 0xbdc   :  { %v1967_v25 = vpop.xlane.xlu1 %1966 }
 0xbdd   :  { %v1979_v13 = vmul.f32 0.03125, %v1967_v25 }
 0xbde   :  { %v1970_v27 = vpop.xlane.xlu0 %1969 }
 0xbdf   :  { %v11274_v60 = vsub.f32 %v11250_v37, %v1979_v13  ;;  %v1980_v32 = vmul.f32 0.03125, %v1970_v27 }
 0xbe1   :  { %v11277_v34 = vsub.f32 %v11253_v4, %v1980_v32  ;;  %v1991_v31 = vmul.f32 %v11274_v60, %v11274_v60 }
 0xbe3   :  { %v2001_v38 = vsel %vm272_vm2, %v1991_v31, 0.0  ;;  %v1992_v5 = vmul.f32 %v11277_v34, %v11277_v34 }
 0xbe4   :  { %2002 = vadd.xlane.f32.xlu1 %v2001_v38  ;;  %v1973_v40 = vpop.xlane.xlu1 %1972 }
 0xbe5   :  { %v1981_v41 = vmul.f32 0.03125, %v1973_v40  ;;  %v2004_v30 = vsel %vm272_vm2, %v1992_v5, 0.0 }
 0xbe6   :  { %2005 = vadd.xlane.f32.xlu0 %v2004_v30  ;;  %v1976_v44 = vpop.xlane.xlu0 %1975 }
 0xbe7   :  { %v1987_v46 = vsub.f32 %v11260_v10, %v1981_v41  ;;  %v1982_v33 = vmul.f32 0.03125, %v1976_v44 }
 0xbe9   :  { %v11287_v19 = vsub.f32 %v11263_v9, %v1982_v33  ;;  %v1993_v21 = vmul.f32 %v1987_v46, %v1987_v46 }
 0xbeb   :  { %v2007_v48 = vsel %vm272_vm2, %v1993_v21, 0.0  ;;  %v1994_v43 = vmul.f32 %v11287_v19, %v11287_v19 }
 0xbec   :  { %2008 = vadd.xlane.f32.xlu1 %v2007_v48  ;;  %v7998_v48 = vld [vmem:[%s10584_s14 + $0x1] ss:$0 sm:$0xff] }
 0xbed   :  { %v2010_v29 = vsel %vm272_vm2, %v1994_v43, 0.0 }
 0xbee   :  { %2011 = vadd.xlane.f32.xlu0 %v2010_v29 }
 0xc58   :  { %v1997_v51 = vpop.xlane.xlu1 %1996 }
 0xc59   :  { %v2013_v7 = vmul.f32 0.03125, %v1997_v51 }
 0xc5a   :  { %v2000_v52 = vpop.xlane.xlu0 %1999 }
 0xc5b   :  { %v2019_v49 = vadd.f32 1e-12, %v2013_v7  ;;  %v2014_v55 = vmul.f32 0.03125, %v2000_v52 }
 0xc5d   :  { %10205 = vrsqrt.f32 %v2019_v49  ;;  %v2020_v28 = vadd.f32 1e-12, %v2014_v55 }
 0xc5f   :  { %10207 = vrsqrt.f32 %v2020_v28 }
 0xc67   :  { %v10206_v57 = vpop.eup %10205 }
 0xc68   :  { %v2031_v20 = vmul.f32 %v10206_v57, %v1983_v50 }
 0xc69   :  { %v10208_v26 = vpop.eup %10207 }
 0xc6a   :  { %v2043_v0 = vmul.f32 %v7991_v22, %v2031_v20  ;;  %v2032_v3 = vmul.f32 %v10208_v26, %v1984_v8 }
 0xc6c   :  { %v2044_v59 = vmul.f32 %v7991_v22, %v2032_v3  ;;  %v2055_v2 = vadd.f32 %v7992_v45, %v2043_v0 }
 0xc6e   :  { %v2056_v35 = vadd.f32 %v7992_v45, %v2044_v59 }
 0xc70   :  { %v2061_v61 = vpack.c.bf16 %v2056_v35, %v2055_v2 }
 0xc71   :  { %v2003_v1 = vpop.xlane.xlu1 %2002 }
 0xc72   :  { %v2015_v39 = vmul.f32 0.03125, %v2003_v1  ;;  %8917 = vmatmul.mubr.msk.bf16.vlgmr.msra.gmra.mrb[48].mxu1 %vm272_vm2, %v2061_v61 }
 0xc73   :  { %v2006_v12 = vpop.xlane.xlu0 %2005  ;;  %8920 = vmatprep.mubr.msk.bf16.mxu1 %vm10522_vm3, %v10521_v6 }
 0xc74   :  { %v2021_v11 = vadd.f32 1e-12, %v2015_v39  ;;  %v2016_v14 = vmul.f32 0.03125, %v2006_v12 }
 0xc76   :  { %10209 = vrsqrt.f32 %v2021_v11  ;;  %v2022_v15 = vadd.f32 1e-12, %v2016_v14 }
 0xc78   :  { %10211 = vrsqrt.f32 %v2022_v15 }
 0xc79   :  { %v2009_v16 = vpop.xlane.xlu1 %2008 }
 0xc7a   :  { %v2017_v18 = vmul.f32 0.03125, %v2009_v16 }
 0xc7b   :  { %v2012_v50 = vpop.xlane.xlu0 %2011 }
 0xc7c   :  { %v2023_v17 = vadd.f32 1e-12, %v2017_v18  ;;  %v2018_v8 = vmul.f32 0.03125, %v2012_v50 }
 0xc7e   :  { %10213 = vrsqrt.f32 %v2023_v17  ;;  %v2024_v47 = vadd.f32 1e-12, %v2018_v8 }
 0xc80   :  { %v10210_v54 = vpop.eup %10209  ;;  %10215 = vrsqrt.f32 %v2024_v47 }
 0xc81   :  { %v2033_v58 = vmul.f32 %v10210_v54, %v11274_v60 }
 0xc82   :  { %v10212_v63 = vpop.eup %10211 }
 0xc83   :  { %v2034_v25 = vmul.f32 %v10212_v63, %v11277_v34  ;;  %v2045_v13 = vmul.f32 %v7991_v22, %v2033_v58 }
 0xc85   :  { %v2046_v27 = vmul.f32 %v7991_v22, %v2034_v25  ;;  %v2057_v32 = vadd.f32 %v7992_v45, %v2045_v13 }
 0xc87   :  { %v2058_v31 = vadd.f32 %v7992_v45, %v2046_v27 }
 0xc88   :  { %v10214_v38 = vpop.eup %10213 }
 0xc89   :  { %v2062_v5 = vpack.c.bf16 %v2058_v31, %v2057_v32  ;;  %v2035_v40 = vmul.f32 %v10214_v38, %v1987_v46 }
 0xc8a   :  { %v10216_v41 = vpop.eup %10215 }
 0xc8b   :  { %8921 = vmatmul.mubr.msk.bf16.gmra.mrb[52].mxu1 %vm272_vm2, %v2062_v5  ;;  %v2036_v30 = vmul.f32 %v10216_v41, %v11287_v19  ;;  %v2047_v44 = vmul.f32 %v7991_v22, %v2035_v40 }
 0xc8c   :  { %8924 = vmatprep.mubr.msk.bf16.mxu1 %vm10522_vm3, %v10521_v6 }
 0xc8d   :  { %v2048_v60 = vmul.f32 %v7991_v22, %v2036_v30  ;;  %v2059_v33 = vadd.f32 %v7992_v45, %v2047_v44 }
 0xc8f   :  { %v2060_v34 = vadd.f32 %v7992_v45, %v2048_v60 }
 0xc91   :  { %v2063_v21 = vpack.c.bf16 %v2060_v34, %v2059_v33 }
 0xc93   :  { %8925 = vmatmul.mubr.msk.bf16.gmra.mrb[56].mxu1 %vm272_vm2, %v2063_v21 }
 0xc94   :  { %8949 = vmatprep.mubr.msk.f32.mxu1 %vm10522_vm3, %v10521_v6 }
 0xd45   :  { %v2132_v46 = vpop.f32.mrb[48].mxu1 }
 0xd46   :  { %v8918_v43 = vpop.f32.mrb[49].mxu1  ;;  %v2133_v29 = vadd.f32 %v7998_v48, %v2132_v46 }
 0xd47   :  { %v2135_v42 = vpop.f32.mrb[50].mxu1 }
 0xd48   :  { %v2136_v24 = vadd.f32 %v7998_v48, %v2135_v42  ;;  %v8919_v19 = vpop.f32.mrb[51].mxu1 }
 0xd4a   :  { %v11312_v51 = vpack.i.bf16 %v2136_v24, %v2133_v29 }
 0xd4c   :  { %9887 = vrot.lane.b32.xlu1 %v11312_v51, %s10524_s0 }
 0xd50   :  { %9892 = vrot.lane.b32.xlu1 %v11312_v51, %s10525_s28 }
 0xd5e   :  { %v2140_v7 = vpop.f32.mrb[52].mxu1 }
 0xd5f   :  { %v11318_v52 = vadd.f32 %v7998_v48, %v2140_v7  ;;  %v8922_v49 = vpop.f32.mrb[53].mxu1 }
 0xd60   :  { %v2143_v55 = vpop.f32.mrb[54].mxu1 }
 0xd61   :  { %2403 = vrot.lane.b32.xlu1 %v11318_v52, %s10525_s28  ;;  %2162 = vrot.lane.b32.xlu0 %v11318_v52, %s10524_s0  ;;  %v8923_v28 = vpop.f32.mrb[55].mxu1  ;;  %v11325_v22 = vadd.f32 %v7998_v48, %v2143_v55 }
 0xd65   :  { %2393 = vrot.lane.b32.xlu0 %v2133_v29, %s10526_s1 }
 0xd66   :  { %v2148_v57 = vpop.f32.mrb[56].mxu1 }
 0xd67   :  { %v11327_v20 = vadd.f32 %v7998_v48, %v2148_v57  ;;  %v8926_v26 = vpop.f32.mrb[57].mxu1 }
 0xd68   :  { %v2151_v0 = vpop.f32.mrb[58].mxu1 }
 0xd69   :  { %2397 = vrot.lane.b32.xlu0 %v11318_v52, %s10526_s1  ;;  %v8927_v3 = vpop.f32.mrb[59].mxu1  ;;  %v11333_v45 = vpack.i.bf16 %v11327_v20, %v11325_v22  ;;  %v11340_v59 = vadd.f32 %v7998_v48, %v2151_v0 }
 0xd6b   :  { %9897 = vrot.lane.b32.xlu1 %v11333_v45, %s10524_s0 }
 0xd6d   :  { %9902 = vrot.lane.b32.xlu0 %v11333_v45, %s10525_s28 }
 0xd6f   :  { %2395 = vrot.lane.b32.xlu1 %v2136_v24, %s10526_s1 }
 0xd71   :  { %2887 = vrot.lane.b32.xlu0 %v11325_v22, %s10526_s1 }
 0xd73   :  { %2656 = vrot.lane.b32.xlu1 %v11340_v59, %s10524_s0 }
 0xd75   :  { %9907 = vrot.lane.b32.xlu0 %v11312_v51, %s10527_s2 }
 0xd77   :  { %2897 = vrot.lane.b32.xlu1 %v11340_v59, %s10525_s28 }
 0xdbe   :  { %v9888_v2 = vpop.permute.xlu1 %9887 }
 0xdbf   :  { %v9890_v35 = vunpack.i.h.bf16 %v9888_v2  ;;  %v9889_v61 = vunpack.i.l.bf16 %v9888_v2 }
 0xdc1   :  { %v9649_v1 = vpack.c.bf16 %v9890_v35, %v9889_v61 }
 0xdc2   :  { %v9893_v39 = vpop.permute.xlu1 %9892 }
 0xdc3   :  { %9651 = vmatpush3.bf16.xpose.msk.msra.mxu0 %vm10849_vm5, %v9649_v1  ;;  %v9895_v12 = vunpack.i.h.bf16 %v9893_v39  ;;  %v9894_v11 = vunpack.i.l.bf16 %v9893_v39 }
 0xdc4   :  { %8932 = vmatprep.subr.mxu0 %v10521_v6 }
 0xdc5   :  { %v9656_v15 = vpack.c.bf16 %v9895_v12, %v9894_v11 }
 0xdd3   :  { %v2163_v14 = vpop.permute.xlu0 %2162  ;;  %v2404_v18 = vpop.permute.xlu1 %2403 }
 0xdd4   :  { %8933 = vmatpush3.xpose.msk.msra.mxu0 %vm477_vm4, %v2163_v14 }
 0xdd5   :  { %9655 = vmatprep.subr.bf16.mxu0 %v10523_v62 }
 0xdd7   :  { %8935 = vmatmul.mubr.msk.f32.vlgmr.msra.gmra.mrb[52].mxu0 %vm477_vm4, %v2133_v29  ;;  %v2394_v16 = vpop.permute.xlu0 %2393 }
 0xdd8   :  { %9658 = vmatpush3.bf16.xpose.msk.msra.mxu0 %vm10849_vm5, %v9656_v15  ;;  %8937 = vmatprep.mubr.msk.f32.mxu0 %vm10522_vm3, %v10521_v6 }
 0xdd9   :  { %8962 = vmatprep.subr.mxu0 %v10521_v6 }
 0xddb   :  { %8938 = vmatmul.mubr.msk.f32.gmra.mrb[54].mxu0 %vm477_vm4, %v2136_v24  ;;  %v2398_v50 = vpop.permute.xlu0 %2397 }
 0xddc   :  { %8940 = vmatprep.mubr.msk.f32.mxu0 %vm10522_vm3, %v10521_v6 }
 0xddd   :  { %v9898_v17 = vpop.permute.xlu1 %9897 }
 0xdde   :  { %v9900_v8 = vunpack.i.h.bf16 %v9898_v17  ;;  %v9899_v47 = vunpack.i.l.bf16 %v9898_v17 }
 0xddf   :  { %8941 = vmatmul.mubr.msk.f32.gmra.mrb[56].mxu0 %vm477_vm4, %v11318_v52  ;;  %v9903_v54 = vpop.permute.xlu0 %9902 }
 0xde0   :  { %8963 = vmatpush3.xpose.msk.msra.mxu0 %vm477_vm4, %v2404_v18  ;;  %8964 = vmatprep.mubr.msk.f32.mxu0 %vm10522_vm3, %v10521_v6  ;;  %v9663_v58 = vpack.c.bf16 %v9900_v8, %v9899_v47  ;;  %v9905_v31 = vunpack.i.h.bf16 %v9903_v54  ;;  %v9904_v38 = vunpack.i.l.bf16 %v9903_v54 }
 0xde1   :  { %9662 = vmatprep.subr.bf16.mxu0 %v10523_v62  ;;  %v2396_v25 = vpop.permute.xlu1 %2395 }
 0xde2   :  { %v9670_v41 = vpack.c.bf16 %v9905_v31, %v9904_v38 }
 0xde3   :  { %8965 = vmatmul.mubr.msk.f32.vlgmr.msra.gmra.mrb[58].mxu0 %vm477_vm4, %v2394_v16  ;;  %v2888_v63 = vpop.permute.xlu0 %2887 }
 0xde4   :  { %9665 = vmatpush3.bf16.xpose.msk.msra.mxu0 %vm10849_vm5, %v9663_v58  ;;  %8967 = vmatprep.mubr.msk.f32.mxu0 %vm10522_vm3, %v10521_v6 }
 0xde5   :  { %8992 = vmatprep.subr.mxu0 %v10521_v6  ;;  %v2657_v40 = vpop.permute.xlu1 %2656 }
 0xde7   :  { %v9908_v13 = vpop.permute.xlu0 %9907  ;;  %8968 = vmatmul.mubr.msk.f32.gmra.mrb[60].mxu0 %vm477_vm4, %v2396_v25 }
 0xde8   :  { %v9910_v27 = vunpack.i.h.bf16 %v9908_v13  ;;  %v9909_v32 = vunpack.i.l.bf16 %v9908_v13  ;;  %8970 = vmatprep.mubr.msk.f32.mxu0 %vm10522_vm3, %v10521_v6 }
 0xde9   :  { %v2898_v30 = vpop.permute.xlu1 %2897 }
 0xdea   :  { %v9653_v5 = vpack.c.bf16 %v9910_v27, %v9909_v32 }
 0xdeb   :  { %8971 = vmatmul.mubr.msk.f32.gmra.mrb[62].mxu0 %vm477_vm4, %v2398_v50 }
 0xdec   :  { %9654 = vmatpush3.bf16.msra.mxu1 %v9653_v5  ;;  %8993 = vmatpush3.xpose.msk.msra.mxu0 %vm477_vm4, %v2657_v40 }
 0xded   :  { %8994 = vmatprep.mubr.msk.f32.mxu0 %vm10522_vm3, %v10521_v6  ;;  %9669 = vmatprep.subr.bf16.mxu0 %v10523_v62 }
 0xdee   :  { %8947 = vmatprep.subr.mxu1 %v10521_v6 }
 0xdef   :  { %8995 = vmatmul.mubr.msk.f32.vlgmr.msra.gmra.mrb[64].mxu0 %vm477_vm4, %v11325_v22 }
 0xdf0   :  { %9672 = vmatpush3.bf16.xpose.msk.msra.mxu0 %vm10849_vm5, %v9670_v41  ;;  %8997 = vmatprep.mubr.msk.f32.mxu0 %vm10522_vm3, %v10521_v6 }
 0xdf1   :  { %9022 = vmatprep.subr.mxu0 %v10521_v6 }
 0xdf3   :  { %8998 = vmatmul.mubr.msk.f32.gmra.mrb[66].mxu0 %vm477_vm4, %v11327_v20 }
 0xdf4   :  { %9000 = vmatprep.mubr.msk.f32.mxu0 %vm10522_vm3, %v10521_v6 }
 0xdf7   :  { %9001 = vmatmul.mubr.msk.f32.gmra.mrb[68].mxu0 %vm477_vm4, %v11340_v59 }
 0xdf8   :  { %9023 = vmatpush3.xpose.msk.msra.mxu0 %vm477_vm4, %v2898_v30  ;;  %9024 = vmatprep.mubr.msk.f32.mxu0 %vm10522_vm3, %v10521_v6 }
 0xdf9   :  { %9048 = vmatprep.subr.bf16.mxu0 %v10521_v6 }
 0xdfb   :  { %9025 = vmatmul.mubr.msk.f32.vlgmr.msra.gmra.mrb[70].mxu0 %vm477_vm4, %v2888_v63 }
 0xdfc   :  { %9027 = vmatprep.mubr.msk.f32.mxu0 %vm10522_vm3, %v10521_v6 }
 0xeaa   :  { %v2242_v44 = vpop.f32.mrb[52].mxu0 }
 0xeab   :  { %v2256_v60 = vmul.f32 0.25, %v2242_v44  ;;  %v8936_v33 = vpop.f32.mrb[53].mxu0 }
 0xead   :  { %v11407_v34 = vsel %vm138_vm6, %v2256_v60, -1e+30 }
 0xeae   :  { %v2247_v21 = vpop.f32.mrb[54].mxu0  ;;  %v2262_v48 = vsel %vm576_vm7, %v11407_v34, -inf }
 0xeaf   :  { %v2257_v46 = vmul.f32 0.25, %v2247_v21  ;;  %v8939_v43 = vpop.f32.mrb[55].mxu0  ;;  %2263 = vmax.xlane.f32.xlu1 %v2262_v48 }
 0xeb1   :  { %v2260_v42 = vsel %vm138_vm6, %v2257_v46, -1e+30 }
 0xeb2   :  { %v2252_v29 = vpop.f32.mrb[56].mxu0  ;;  %v2265_v24 = vsel %vm576_vm7, %v2260_v42, -inf }
 0xeb3   :  { %v2258_v19 = vmul.f32 0.25, %v2252_v29  ;;  %v8942_v7 = vpop.f32.mrb[57].mxu0  ;;  %2266 = vmax.xlane.f32.xlu0 %v2265_v24 }
 0xeb5   :  { %v2261_v49 = vsel %vm138_vm6, %v2258_v19, -1e+30 }
 0xeb6   :  { %v2483_v55 = vpop.f32.mrb[58].mxu0  ;;  %v2268_v28 = vsel %vm576_vm7, %v2261_v49, -inf }
 0xeb7   :  { %v2497_v57 = vmul.f32 0.25, %v2483_v55  ;;  %v8966_v22 = vpop.f32.mrb[59].mxu0  ;;  %2269 = vmax.xlane.f32.xlu0 %v2268_v28 }
 0xeb9   :  { %v2500_v26 = vsel %vm138_vm6, %v2497_v57, -1e+30 }
 0xeba   :  { %v2488_v0 = vpop.f32.mrb[60].mxu0  ;;  %v2503_v3 = vsel %vm576_vm7, %v2500_v26, -inf }
 0xebb   :  { %v2498_v2 = vmul.f32 0.25, %v2488_v0  ;;  %2504 = vmax.xlane.f32.xlu0 %v2503_v3  ;;  %v8969_v35 = vpop.f32.mrb[61].mxu0 }
 0xebd   :  { %v2501_v61 = vsel %vm138_vm6, %v2498_v2, -1e+30 }
 0xebe   :  { %v2493_v1 = vpop.f32.mrb[62].mxu0  ;;  %v2506_v39 = vsel %vm576_vm7, %v2501_v61, -inf }
 0xebf   :  { %v2499_v12 = vmul.f32 0.25, %v2493_v1  ;;  %v8972_v11 = vpop.f32.mrb[63].mxu0  ;;  %2507 = vmax.xlane.f32.xlu1 %v2506_v39 }
 0xec1   :  { %v2502_v14 = vsel %vm138_vm6, %v2499_v12, -1e+30 }
 0xec2   :  { %v2736_v15 = vpop.f32.mrb[64].mxu0  ;;  %v2509_v16 = vsel %vm576_vm7, %v2502_v14, -inf }
 0xec3   :  { %v2750_v18 = vmul.f32 0.25, %v2736_v15  ;;  %2510 = vmax.xlane.f32.xlu0 %v2509_v16  ;;  %v8996_v50 = vpop.f32.mrb[65].mxu0 }
 0xec5   :  { %v2753_v17 = vsel %vm138_vm6, %v2750_v18, -1e+30 }
 0xec6   :  { %v2741_v8 = vpop.f32.mrb[66].mxu0  ;;  %v2756_v47 = vsel %vm576_vm7, %v2753_v17, -inf }
 0xec7   :  { %v2751_v54 = vmul.f32 0.25, %v2741_v8  ;;  %2757 = vmax.xlane.f32.xlu1 %v2756_v47  ;;  %v8999_v58 = vpop.f32.mrb[67].mxu0 }
 0xec9   :  { %v11431_v63 = vsel %vm138_vm6, %v2751_v54, -1e+30 }
 0xeca   :  { %v2746_v25 = vpop.f32.mrb[68].mxu0  ;;  %v2759_v13 = vsel %vm576_vm7, %v11431_v63, -inf }
 0xecb   :  { %2760 = vmax.xlane.f32.xlu0 %v2759_v13  ;;  %v9002_v27 = vpop.f32.mrb[69].mxu0  ;;  %v2752_v41 = vmul.f32 0.25, %v2746_v25 }
 0xecd   :  { %v11447_v30 = vsel %vm138_vm6, %v2752_v41, -1e+30 }
 0xece   :  { %v2977_v32 = vpop.f32.mrb[70].mxu0  ;;  %v2762_v44 = vsel %vm576_vm7, %v11447_v30, -inf }
 0xecf   :  { %v2991_v31 = vmul.f32 0.25, %v2977_v32  ;;  %v9026_v38 = vpop.f32.mrb[71].mxu0 }
 0xed1   :  { %v11437_v5 = vsel %vm138_vm6, %v2991_v31, -1e+30 }
 0xed2   :  { %v2997_v40 = vsel %vm576_vm7, %v11437_v5, -inf }
 0xed3   :  { %2998 = vmax.xlane.f32.xlu0 %v2997_v40 }
 0xed8   :  { %2299 = vrot.lane.b32.xlu1 %v11318_v52, %s10527_s2 }
 0xee9   :  { %2540 = vrot.lane.b32.xlu0 %v11318_v52, %s10528_s7 }
 0xefc   :  { %2763 = vmax.xlane.f32.xlu1 %v2762_v44 }
 0xf0d   :  { %9912 = vrot.lane.b32.xlu1 %v11312_v51, %s10528_s7 }
 0xf11   :  { %9917 = vrot.lane.b32.xlu1 %v11333_v45, %s10527_s2 }
 0xf3c   :  { %v2264_v60 = vpop.xlane.xlu1 %2263 }
 0xf3d   :  { %v2271_v33 = vsub.f32 %v11407_v34, %v2264_v60 }
 0xf3f   :  { %v2274_v21 = vmul.f32 1.442695, %v2271_v33 }
 0xf40   :  { %v2267_v52 = vpop.xlane.xlu0 %2266 }
 0xf41   :  { %10217 = vpow2.f32 %v2274_v21  ;;  %v2272_v48 = vsub.f32 %v2260_v42, %v2267_v52 }
 0xf43   :  { %v2276_v46 = vmul.f32 1.442695, %v2272_v48 }
 0xf44   :  { %v2270_v43 = vpop.xlane.xlu0 %2269 }
 0xf45   :  { %10219 = vpow2.f32 %v2276_v46  ;;  %v2273_v29 = vsub.f32 %v2261_v49, %v2270_v43 }
 0xf47   :  { %v2278_v24 = vmul.f32 1.442695, %v2273_v29 }
 0xf48   :  { %v2505_v19 = vpop.xlane.xlu0 %2504 }
 0xf49   :  { %10221 = vpow2.f32 %v2278_v24  ;;  %v2512_v7 = vsub.f32 %v2500_v26, %v2505_v19 }
 0xf4b   :  { %v11456_v55 = vpop.eup %10217  ;;  %v2515_v51 = vmul.f32 1.442695, %v2512_v7 }
 0xf4c   :  { %v2508_v28 = vpop.xlane.xlu1 %2507  ;;  %v2280_v57 = vsel %vm576_vm7, %v11456_v55, 0.0 }
 0xf4d   :  { %10223 = vpow2.f32 %v2515_v51  ;;  %v2513_v34 = vsub.f32 %v2501_v61, %v2508_v28  ;;  %2281 = vadd.xlane.f32.xlu1 %v2280_v57 }
 0xf4f   :  { %v11460_v22 = vpop.eup %10219  ;;  %v2517_v42 = vmul.f32 1.442695, %v2513_v34 }
 0xf50   :  { %v2511_v0 = vpop.xlane.xlu0 %2510  ;;  %v2283_v49 = vsel %vm576_vm7, %v11460_v22, 0.0 }
 0xf51   :  { %10225 = vpow2.f32 %v2517_v42  ;;  %v2514_v3 = vsub.f32 %v2502_v14, %v2511_v0  ;;  %2284 = vadd.xlane.f32.xlu0 %v2283_v49 }
 0xf53   :  { %v11464_v26 = vpop.eup %10221  ;;  %v2519_v2 = vmul.f32 1.442695, %v2514_v3 }
 0xf54   :  { %v2758_v35 = vpop.xlane.xlu1 %2757  ;;  %v2286_v1 = vsel %vm576_vm7, %v11464_v26, 0.0 }
 0xf55   :  { %10227 = vpow2.f32 %v2519_v2  ;;  %v2765_v61 = vsub.f32 %v2753_v17, %v2758_v35  ;;  %2287 = vadd.xlane.f32.xlu1 %v2286_v1 }
 0xf57   :  { %v11468_v39 = vpop.eup %10223  ;;  %v2768_v12 = vmul.f32 1.442695, %v2765_v61 }
 0xf58   :  { %v2300_v11 = vpop.permute.xlu1 %2299  ;;  %v2521_v15 = vsel %vm576_vm7, %v11468_v39, 0.0  ;;  %v2761_v47 = vpop.xlane.xlu0 %2760 }
 0xf59   :  { %10229 = vpow2.f32 %v2768_v12  ;;  %2522 = vadd.xlane.f32.xlu0 %v2521_v15  ;;  %8948 = vmatpush3.msra.mxu1 %v2300_v11  ;;  %v2766_v54 = vsub.f32 %v11431_v63, %v2761_v47 }
 0xf5a   :  { %9659 = vmatprep.subr.bf16.mxu1 %v10523_v62 }
 0xf5b   :  { %v11473_v14 = vpop.eup %10225  ;;  %v2770_v25 = vmul.f32 1.442695, %v2766_v54 }
 0xf5c   :  { %v2524_v16 = vsel %vm576_vm7, %v11473_v14, 0.0 }
 0xf5d   :  { %2525 = vadd.xlane.f32.xlu1 %v2524_v16  ;;  %10231 = vpow2.f32 %v2770_v25 }
 0xf5f   :  { %v11477_v18 = vpop.eup %10227 }
 0xf60   :  { %v2527_v50 = vsel %vm576_vm7, %v11477_v18, 0.0  ;;  %v2999_v58 = vpop.xlane.xlu0 %2998 }
 0xf61   :  { %2528 = vadd.xlane.f32.xlu1 %v2527_v50  ;;  %v3006_v13 = vsub.f32 %v11437_v5, %v2999_v58 }
 0xf63   :  { %v11481_v17 = vpop.eup %10229  ;;  %v3009_v27 = vmul.f32 1.442695, %v3006_v13 }
 0xf64   :  { %v2774_v8 = vsel %vm576_vm7, %v11481_v17, 0.0  ;;  %v2541_v21 = vpop.permute.xlu0 %2540 }
 0xf65   :  { %2775 = vadd.xlane.f32.xlu1 %v2774_v8  ;;  %10233 = vpow2.f32 %v3009_v27 }
 0xf67   :  { %v11489_v31 = vpop.eup %10231 }
 0xf68   :  { %v2777_v41 = vsel %vm576_vm7, %v11489_v31, 0.0 }
 0xf6f   :  { %2793 = vrot.lane.b32.xlu0 %v11340_v59, %s10527_s2  ;;  %v11494_v44 = vpop.eup %10233 }
 0xf70   :  { %v3015_v63 = vsel %vm576_vm7, %v11494_v44, 0.0 }
 0xf89   :  { %v2764_v32 = vpop.xlane.xlu1 %2763 }
 0xf8a   :  { %v2767_v38 = vsub.f32 %v11447_v30, %v2764_v32 }
 0xf8c   :  { %v2772_v40 = vmul.f32 1.442695, %v2767_v38  ;;  %v10072_v38 = vld [vmem:[%s10589_s19 + $0x10] sm:$0xff]  }
 0xf8d   :  { %v9913_v30 = vpop.permute.xlu1 %9912  ;;  %9049 = vmatpush3.bf16.msra.mxu0 %v10072_v38 }
 0xf8e   :  { %10235 = vpow2.f32 %v2772_v40  ;;  %2778 = vadd.xlane.f32.xlu0 %v2777_v41  ;;  %v9915_v43 = vunpack.i.h.bf16 %v9913_v30  ;;  %v9914_v29 = vunpack.i.l.bf16 %v9913_v30  ;;  %9050 = vmatprep.subr.bf16.mxu0 %v10521_v6 }
 0xf90   :  { %v9660_v7 = vpack.c.bf16 %v9915_v43, %v9914_v29 }
 0xf91   :  { %v9918_v33 = vpop.permute.xlu1 %9917 }
 0xf92   :  { %3016 = vadd.xlane.f32.xlu0 %v3015_v63  ;;  %v9920_v34 = vunpack.i.h.bf16 %v9918_v33  ;;  %v9919_v42 = vunpack.i.l.bf16 %v9918_v33 }
 0xf94   :  { %v9667_v3 = vpack.c.bf16 %v9920_v34, %v9919_v42 }
 0xf98   :  { %v11498_v5 = vpop.eup %10235 }
 0xf99   :  { %v2780_v60 = vsel %vm576_vm7, %v11498_v5, 0.0 }
 0xf9a   :  { %2781 = vadd.xlane.f32.xlu1 %v2780_v60  ;;  %v10073_v60 = vld [vmem:[%s10589_s19 + $0x18] sm:$0xff]  }
 0xf9b   :  { %9051 = vmatpush3.bf16.msra.mxu0 %v10073_v60 }
 0xf9c   :  { %9080 = vmatprep.subr.bf16.mxu0 %v10521_v6 }
 0xfa8   :  { %3034 = vrot.lane.b32.xlu0 %v11340_v59, %s10528_s7 }
 0xfab   :  { %9922 = vrot.lane.b32.xlu1 %v11333_v45, %s10528_s7 }
 0xfac   :  { %2891 = vrot.lane.b32.xlu0 %v11340_v59, %s10526_s1 }
 0xfaf   :  { %2889 = vrot.lane.b32.xlu1 %v11327_v20, %s10526_s1 }
 0xfda   :  { %v2282_v52 = vpop.xlane.xlu1 %2281 }
 0xfdb   :  { %10237 = vrcp.f32 %v2282_v52 }
 0xfde   :  { %v2285_v48 = vpop.xlane.xlu0 %2284 }
 0xfdf   :  { %10239 = vrcp.f32 %v2285_v48 }
 0xfe2   :  { %v2288_v46 = vpop.xlane.xlu1 %2287 }
 0xfe3   :  { %10241 = vrcp.f32 %v2288_v46 }
 0xfe5   :  { %v10238_v24 = vpop.eup %10237 }
 0xfe6   :  { %v2292_v45 = vmul.f32 %v10238_v24, %v11456_v55  ;;  %v2523_v19 = vpop.xlane.xlu0 %2522 }
 0xfe7   :  { %10243 = vrcp.f32 %v2523_v19 }
 0xfe8   :  { %8950 = vmatmul.mubr.msk.f32.vlgmr.msra.gmra.mrb[60].mxu1 %vm576_vm7, %v2292_v45 }
 0xfe9   :  { %v10240_v20 = vpop.eup %10239  ;;  %9661 = vmatpush3.bf16.msra.mxu1 %v9660_v7  ;;  %8952 = vmatprep.mubr.msk.f32.mxu1 %vm10522_vm3, %v10521_v6 }
 0xfea   :  { %v2526_v59 = vpop.xlane.xlu1 %2525  ;;  %8977 = vmatprep.subr.mxu1 %v10521_v6  ;;  %v2293_v51 = vmul.f32 %v10240_v20, %v11460_v22  ;;  %v2794_v35 = vpop.permute.xlu0 %2793 }
 0xfeb   :  { %10245 = vrcp.f32 %v2526_v59 }
 0xfec   :  { %8953 = vmatmul.mubr.msk.f32.gmra.mrb[62].mxu1 %vm576_vm7, %v2293_v51 }
 0xfed   :  { %v10242_v28 = vpop.eup %10241  ;;  %8978 = vmatpush3.msra.mxu1 %v2541_v21  ;;  %8955 = vmatprep.mubr.msk.f32.mxu1 %vm10522_vm3, %v10521_v6 }
 0xfee   :  { %v2529_v55 = vpop.xlane.xlu1 %2528  ;;  %v2294_v57 = vmul.f32 %v10242_v28, %v11464_v26  ;;  %9666 = vmatprep.subr.bf16.mxu1 %v10523_v62 }
 0xfef   :  { %10247 = vrcp.f32 %v2529_v55 }
 0xff0   :  { %8956 = vmatmul.mubr.msk.f32.gmra.mrb[64].mxu1 %vm576_vm7, %v2294_v57 }
 0xff1   :  { %v10244_v0 = vpop.eup %10243  ;;  %8979 = vmatprep.mubr.msk.f32.mxu1 %vm10522_vm3, %v10521_v6 }
 0xff2   :  { %v2533_v22 = vmul.f32 %v10244_v0, %v11468_v39  ;;  %v2776_v49 = vpop.xlane.xlu1 %2775 }
 0xff3   :  { %10249 = vrcp.f32 %v2776_v49 }
 0xff4   :  { %8980 = vmatmul.mubr.msk.f32.vlgmr.msra.gmra.mrb[66].mxu1 %vm576_vm7, %v2533_v22 }
 0xff5   :  { %v10246_v2 = vpop.eup %10245  ;;  %9668 = vmatpush3.bf16.msra.mxu1 %v9667_v3  ;;  %8982 = vmatprep.mubr.msk.f32.mxu1 %vm10522_vm3, %v10521_v6 }
 0xff6   :  { %9007 = vmatprep.subr.mxu1 %v10521_v6  ;;  %v2534_v26 = vmul.f32 %v10246_v2, %v11473_v14 }
 0xff8   :  { %8983 = vmatmul.mubr.msk.f32.gmra.mrb[68].mxu1 %vm576_vm7, %v2534_v26 }
 0xff9   :  { %v10248_v1 = vpop.eup %10247  ;;  %9008 = vmatpush3.msra.mxu1 %v2794_v35  ;;  %8985 = vmatprep.mubr.msk.f32.mxu1 %vm10522_vm3, %v10521_v6 }
 0xffa   :  { %v2535_v61 = vmul.f32 %v10248_v1, %v11477_v18  ;;  %9673 = vmatprep.subr.bf16.mxu1 %v10523_v62 }
 0xffc   :  { %8986 = vmatmul.mubr.msk.f32.gmra.mrb[70].mxu1 %vm576_vm7, %v2535_v61 }
 0xffd   :  { %v10250_v39 = vpop.eup %10249  ;;  %9009 = vmatprep.mubr.msk.f32.mxu1 %vm10522_vm3, %v10521_v6 }
 0xffe   :  { %v2786_v12 = vmul.f32 %v10250_v39, %v11481_v17 }
0x1000   :  { %9010 = vmatmul.mubr.msk.f32.vlgmr.msra.gmra.mrb[72].mxu1 %vm576_vm7, %v2786_v12 }
0x1001   :  { %9012 = vmatprep.mubr.msk.f32.mxu1 %vm10522_vm3, %v10521_v6 }
0x101b   :  { %v2779_v11 = vpop.xlane.xlu0 %2778 }
0x101c   :  { %10251 = vrcp.f32 %v2779_v11 }
0x101f   :  { %v3017_v14 = vpop.xlane.xlu0 %3016 }
0x1023   :  { %v3035_v47 = vpop.permute.xlu0 %3034 }
0x1026   :  { %v10252_v15 = vpop.eup %10251 }
0x1027   :  { %v2782_v16 = vpop.xlane.xlu1 %2781  ;;  %v2787_v18 = vmul.f32 %v10252_v15, %v11489_v31  ;;  %v2892_v13 = vpop.permute.xlu0 %2891 }
0x1028   :  { %10253 = vrcp.f32 %v2782_v16 }
0x1029   :  { %9013 = vmatmul.mubr.msk.f32.gmra.mrb[74].mxu1 %vm576_vm7, %v2787_v18  ;;  %10255 = vrcp.f32 %v3017_v14 }
0x102a   :  { %9015 = vmatprep.mubr.msk.f32.mxu1 %vm10522_vm3, %v10521_v6 }
0x102b   :  { %v9923_v50 = vpop.permute.xlu1 %9922 }
0x102c   :  { %v9925_v17 = vunpack.i.h.bf16 %v9923_v50  ;;  %v9924_v8 = vunpack.i.l.bf16 %v9923_v50 }
0x102e   :  { %v9674_v54 = vpack.c.bf16 %v9925_v17, %v9924_v8 }
0x102f   :  { %v2890_v58 = vpop.permute.xlu1 %2889 }
0x1030   :  { %9028 = vmatmul.mubr.msk.f32.gmra.mrb[72].mxu0 %vm477_vm4, %v2890_v58  ;;  %9675 = vmatpush3.bf16.msra.mxu1 %v9674_v54  ;;  %v11589_v54 = vld [vmem:[%s10594_s24 + $0x1] ss:$0 sm:$0xff] }
0x1031   :  { %9030 = vmatprep.mubr.msk.f32.mxu0 %vm10522_vm3, %v10521_v6  ;;  %9037 = vmatprep.subr.mxu1 %v10521_v6 }
0x1032   :  { %v10254_v25 = vpop.eup %10253 }
0x1033   :  { %v2788_v27 = vmul.f32 %v10254_v25, %v11498_v5  ;;  %v10256_v32 = vpop.eup %10255 }
0x1034   :  { %9031 = vmatmul.mubr.msk.f32.gmra.mrb[74].mxu0 %vm477_vm4, %v2892_v13  ;;  %9038 = vmatpush3.msra.mxu1 %v3035_v47  ;;  %v3027_v31 = vmul.f32 %v10256_v32, %v11494_v44 }
0x1035   :  { %9016 = vmatmul.mubr.msk.f32.gmra.mrb[76].mxu1 %vm576_vm7, %v2788_v27  ;;  %9052 = vmatprep.mubr.msk.bf16.mxu0 %vm10522_vm3, %v10521_v6 }
0x1036   :  { %9039 = vmatprep.mubr.msk.f32.mxu1 %vm10522_vm3, %v10521_v6  ;;  %9064 = vmatprep.subr.bf16.mxu1 %v10521_v6 }
0x1039   :  { %9040 = vmatmul.mubr.msk.f32.vlgmr.msra.gmra.mrb[78].mxu1 %vm576_vm7, %v3027_v31 }
0x103a   :  { %9042 = vmatprep.mubr.msk.f32.mxu1 %vm10522_vm3, %v10521_v6 }
0x10bb   :  { %v2379_v40 = vpop.f32.mrb[60].mxu1 }
0x10bc   :  { %v8951_v41 = vpop.f32.mrb[61].mxu1 }
0x10bf   :  { %v2384_v63 = vpop.f32.mrb[62].mxu1 }
0x10c0   :  { %v8954_v5 = vpop.f32.mrb[63].mxu1 }
0x10c3   :  { %v2389_v30 = vpop.f32.mrb[64].mxu1 }
0x10c4   :  { %v8957_v33 = vpop.f32.mrb[65].mxu1 }
0x10c7   :  { %v2620_v44 = vpop.f32.mrb[66].mxu1 }
0x10c8   :  { %v8981_v21 = vpop.f32.mrb[67].mxu1 }
0x10cb   :  { %v2625_v52 = vpop.f32.mrb[68].mxu1 }
0x10cc   :  { %v9926_v48 = vpack.i.bf16 %v2625_v52, %v2620_v44  ;;  %v8984_v46 = vpop.f32.mrb[69].mxu1 }
0x10ce   :  { %9927 = vrot.lane.b32.xlu1 %v9926_v48, %s10529_s10 }
0x10cf   :  { %v2630_v43 = vpop.f32.mrb[70].mxu1 }
0x10d0   :  { %v8987_v29 = vpop.f32.mrb[71].mxu1 }
0x10d3   :  { %v2873_v24 = vpop.f32.mrb[72].mxu1 }
0x10d4   :  { %v9011_v45 = vpop.f32.mrb[73].mxu1 }
0x10fc   :  { %v11567_v19 = vpop.f32.mrb[74].mxu1 }
0x10fd   :  { %v9014_v7 = vpop.f32.mrb[75].mxu1 }
0x1103   :  { %v2982_v20 = vpop.f32.mrb[72].mxu0 }
0x1104   :  { %v2992_v59 = vmul.f32 0.25, %v2982_v20  ;;  %v9029_v51 = vpop.f32.mrb[73].mxu0 }
0x1106   :  { %v2995_v28 = vsel %vm138_vm6, %v2992_v59, -1e+30 }
0x1107   :  { %v2987_v55 = vpop.f32.mrb[74].mxu0  ;;  %v3000_v57 = vsel %vm576_vm7, %v2995_v28, -inf }
0x1108   :  { %v9032_v34 = vpop.f32.mrb[75].mxu0  ;;  %3001 = vmax.xlane.f32.xlu1 %v3000_v57  ;;  %v11572_v42 = vpop.f32.mrb[76].mxu1  ;;  %v2993_v2 = vmul.f32 0.25, %v2987_v55 }
0x1109   :  { %v9017_v0 = vpop.f32.mrb[77].mxu1 }
0x110a   :  { %v2996_v26 = vsel %vm138_vm6, %v2993_v2, -1e+30  ;;  %v10074_v2 = vld [vmem:[%s10609_s12 + $0x10] sm:$0xff]  }
0x110b   :  { %v3003_v35 = vsel %vm576_vm7, %v2996_v26, -inf  ;;  %9065 = vmatpush3.bf16.msra.mxu1 %v10074_v2  ;;  %v10079_v2 = vld [vmem:[%s12792_s15 + $0x58] sm:$0xff]  }
0x110c   :  { %v3114_v22 = vpop.f32.mrb[78].mxu1  ;;  %9066 = vmatprep.subr.bf16.mxu1 %v10521_v6 }
0x110d   :  { %v9931_v49 = vpack.i.bf16 %v3114_v22, %v2630_v43  ;;  %v9041_v3 = vpop.f32.mrb[79].mxu1 }
0x110f   :  { %9932 = vrot.lane.b32.xlu0 %v9931_v49, %s10529_s10 }
0x112e   :  { %3004 = vmax.xlane.f32.xlu0 %v3003_v35 }
0x1140   :  { %v9928_v1 = vpop.permute.xlu1 %9927 }
0x1141   :  { %v9930_v61 = vunpack.i.h.bf16 %v9928_v1  ;;  %v9929_v39 = vunpack.i.l.bf16 %v9928_v1 }
0x1143   :  { %v2647_v12 = vsel %vm477_vm4, %v2384_v63, %v9930_v61  ;;  %v2646_v11 = vsel %vm477_vm4, %v2379_v40, %v9929_v39 }
0x1144   :  { %v3143_v15 = vpack.c.bf16 %v2647_v12, %v2646_v11 }
0x1146   :  { %9053 = vmatmul.mubr.msk.bf16.vlgmr.msra.gmra.mrb[76].mxu0 %vm272_vm2, %v3143_v15 }
0x1147   :  { %9056 = vmatprep.mubr.msk.bf16.mxu0 %vm10522_vm3, %v10521_v6 }
0x1181   :  { %v9933_v14 = vpop.permute.xlu0 %9932 }
0x1182   :  { %v9935_v16 = vunpack.i.h.bf16 %v9933_v14  ;;  %v9934_v18 = vunpack.i.l.bf16 %v9933_v14 }
0x1184   :  { %v3140_v50 = vsel %vm477_vm4, %v2873_v24, %v9935_v16  ;;  %v2648_v17 = vsel %vm477_vm4, %v2389_v30, %v9934_v18 }
0x1185   :  { %v3144_v8 = vpack.c.bf16 %v3140_v50, %v2648_v17 }
0x1187   :  { %9057 = vmatmul.mubr.msk.bf16.gmra.mrb[80].mxu0 %vm272_vm2, %v3144_v8 }
0x1188   :  { %9060 = vmatprep.mubr.msk.bf16.mxu0 %vm10522_vm3, %v10521_v6 }
0x1195   :  { %v3002_v63 = vpop.xlane.xlu1 %3001 }
0x11bb   :  { %v3005_v5 = vpop.xlane.xlu0 %3004 }
0x11bc   :  { %v3008_v60 = vsub.f32 %v2996_v26, %v3005_v5  ;;  %v10075_v26 = vld [vmem:[%s10609_s12 + $0x18] sm:$0xff]  }
0x11bd   :  { %9067 = vmatpush3.bf16.msra.mxu1 %v10075_v26  ;;  %v10080_v26 = vld [vmem:[%s12792_s15 + $0x60] sm:$0xff]  }
0x11be   :  { %v3013_v33 = vmul.f32 1.442695, %v3008_v60  ;;  %9108 = vmatprep.subr.bf16.mxu1 %v10521_v6 }
0x1219   :  { %v3206_v47 = vpop.f32.mrb[76].mxu0 }
0x121a   :  { %v3229_v58 = vadd.f32 %v3206_v47, %v11240_v36  ;;  %v9054_v25 = vpop.f32.mrb[77].mxu0  ;;  %v3007_v36 = vsub.f32 %v2995_v28, %v3002_v63 }
0x121b   :  { %v3209_v13 = vpop.f32.mrb[78].mxu0 }
0x121c   :  { %v11593_v27 = vadd.f32 %v11589_v54, %v3229_v58  ;;  %v3230_v32 = vadd.f32 %v3209_v13, %v11243_v53  ;;  %v9055_v31 = vpop.f32.mrb[79].mxu0  ;;  %v3011_v30 = vmul.f32 1.442695, %v3007_v36  ;;  %v11628_v36 = vld [vmem:[%s10599_s30 + $0x1] ss:$0 sm:$0xff] }
0x121e   :  { %v3244_v38 = vadd.f32 %v11589_v54, %v3230_v32  ;;  %v3253_v40 = vsel %vm272_vm2, %v11593_v27, 0.0  ;;  %10257 = vpow2.f32 %v3011_v30 }
0x121f   :  { %3254 = vadd.xlane.f32.xlu0 %v3253_v40  ;;  %10259 = vpow2.f32 %v3013_v33 }
0x1220   :  { %v3256_v41 = vsel %vm272_vm2, %v3244_v38, 0.0 }
0x1223   :  { %3257 = vadd.xlane.f32.xlu0 %v3256_v41 }
0x1228   :  { %v10258_v45 = vpop.eup %10257 }
0x1229   :  { %v10260_v20 = vpop.eup %10259 }
0x122a   :  { %v3021_v59 = vsel %vm576_vm7, %v10260_v20, 0.0 }
0x125a   :  { %v3214_v44 = vpop.f32.mrb[80].mxu0 }
0x125b   :  { %v3231_v53 = vadd.f32 %v3214_v44, %v11250_v37  ;;  %v9058_v21 = vpop.f32.mrb[81].mxu0  ;;  %v3018_v37 = vsel %vm576_vm7, %v10258_v45, 0.0  ;;  %v11632_v44 = vld [vmem:[%s12791_s11 + $0x1] ss:$0 sm:$0xff] }
0x125c   :  { %v3217_v52 = vpop.f32.mrb[82].mxu0 }
0x125d   :  { %v3245_v48 = vadd.f32 %v11589_v54, %v3231_v53  ;;  %v3232_v46 = vadd.f32 %v3217_v52, %v11253_v4  ;;  %v9059_v43 = vpop.f32.mrb[83].mxu0 }
0x125f   :  { %v11604_v29 = vadd.f32 %v11589_v54, %v3232_v46  ;;  %v3259_v24 = vsel %vm272_vm2, %v3245_v48, 0.0 }
0x1260   :  { %3260 = vadd.xlane.f32.xlu1 %v3259_v24 }
0x1261   :  { %v3262_v7 = vsel %vm272_vm2, %v11604_v29, 0.0 }
0x1262   :  { %3263 = vadd.xlane.f32.xlu0 %v3262_v7 }
0x1264   :  { %3019 = vadd.xlane.f32.xlu1 %v3018_v37 }
0x1266   :  { %3022 = vadd.xlane.f32.xlu0 %v3021_v59 }
0x12ac   :  { %v3255_v4 = vpop.xlane.xlu0 %3254 }
0x12ad   :  { %v3271_v51 = vmul.f32 0.03125, %v3255_v4 }
0x12af   :  { %v3277_v28 = vsub.f32 %v11593_v27, %v3271_v51 }
0x12b0   :  { %v3258_v55 = vpop.xlane.xlu0 %3257 }
0x12b1   :  { %v3272_v57 = vmul.f32 0.03125, %v3258_v55  ;;  %v3283_v34 = vmul.f32 %v3277_v28, %v3277_v28 }
0x12b3   :  { %v3278_v0 = vsub.f32 %v3244_v38, %v3272_v57  ;;  %v3289_v22 = vsel %vm272_vm2, %v3283_v34, 0.0 }
0x12b4   :  { %3290 = vadd.xlane.f32.xlu1 %v3289_v22  ;;  %v10076_v22 = vld [vmem:[%s12792_s15 + $0x40] sm:$0xff]  }
0x12b5   :  { %v3284_v49 = vmul.f32 %v3278_v0, %v3278_v0  ;;  %9081 = vmatpush3.bf16.msra.mxu0 %v10076_v22 }
0x12b6   :  { %9082 = vmatprep.subr.bf16.mxu0 %v10521_v6 }
0x12b7   :  { %v3292_v3 = vsel %vm272_vm2, %v3284_v49, 0.0  ;;  %v10077_v49 = vld [vmem:[%s12792_s15 + $0x48] sm:$0xff]  }
0x12b8   :  { %3293 = vadd.xlane.f32.xlu0 %v3292_v3  ;;  %v10078_v3 = vld [vmem:[%s12792_s15 + $0x50] sm:$0xff]  }
0x12b9   :  { %9083 = vmatpush3.bf16.msra.mxu0 %v10077_v49 }
0x12ba   :  { %9084 = vmatprep.subr.bf16.mxu0 %v10521_v6 }
0x12bd   :  { %9085 = vmatpush3.bf16.msra.mxu0 %v10078_v3 }
0x12be   :  { %9086 = vmatprep.subr.bf16.mxu0 %v10521_v6 }
0x12c1   :  { %9087 = vmatpush3.bf16.msra.mxu0 %v10079_v2 }
0x12c2   :  { %9088 = vmatprep.subr.bf16.mxu0 %v10521_v6 }
0x12c5   :  { %9089 = vmatpush3.bf16.msra.mxu0 %v10080_v26 }
0x12c6   :  { %9090 = vmatprep.subr.bf16.mxu0 %v10521_v6 }
0x12ed   :  { %v3261_v35 = vpop.xlane.xlu1 %3260 }
0x12ee   :  { %v3273_v1 = vmul.f32 0.03125, %v3261_v35  ;;  %v10081_v35 = vld [vmem:[%s12792_s15 + $0x68] sm:$0xff]  }
0x12ef   :  { %v3264_v61 = vpop.xlane.xlu0 %3263  ;;  %9091 = vmatpush3.bf16.msra.mxu0 %v10081_v35 }
0x12f0   :  { %v3279_v39 = vsub.f32 %v3245_v48, %v3273_v1  ;;  %v3274_v12 = vmul.f32 0.03125, %v3264_v61  ;;  %9092 = vmatprep.subr.bf16.mxu0 %v10521_v6  ;;  %v10082_v1 = vld [vmem:[%s12792_s15 + $0x70] sm:$0xff]  }
0x12f1   :  { %v3020_v11 = vpop.xlane.xlu1 %3019 }
0x12f2   :  { %v3280_v15 = vsub.f32 %v11604_v29, %v3274_v12  ;;  %10261 = vrcp.f32 %v3020_v11  ;;  %v3285_v14 = vmul.f32 %v3279_v39, %v3279_v39  ;;  %v10083_v12 = vld [vmem:[%s12792_s15 + $0x78] sm:$0xff]  }
0x12f3   :  { %v3023_v16 = vpop.xlane.xlu0 %3022  ;;  %9093 = vmatpush3.bf16.msra.mxu0 %v10082_v1 }
0x12f4   :  { %10263 = vrcp.f32 %v3023_v16  ;;  %v3295_v18 = vsel %vm272_vm2, %v3285_v14, 0.0  ;;  %v3286_v50 = vmul.f32 %v3280_v15, %v3280_v15  ;;  %9094 = vmatprep.subr.bf16.mxu0 %v10521_v6  ;;  %v11665_v16 = vld [vmem:[%s12793_s16 + $0x1] ss:$0 sm:$0xff] }
0x12f5   :  { %3296 = vadd.xlane.f32.xlu1 %v3295_v18 }
0x12f6   :  { %v3298_v17 = vsel %vm272_vm2, %v3286_v50, 0.0 }
0x12f7   :  { %3299 = vadd.xlane.f32.xlu0 %v3298_v17  ;;  %9095 = vmatpush3.bf16.msra.mxu0 %v10083_v12 }
0x12f8   :  { %9676 = vmatprep.subr.bf16.mxu0 %v10523_v62 }
0x12fc   :  { %v10262_v8 = vpop.eup %10261 }
0x12fd   :  { %v3028_v47 = vmul.f32 %v10262_v8, %v10258_v45 }
0x12fe   :  { %v10264_v58 = vpop.eup %10263 }
0x12ff   :  { %9043 = vmatmul.mubr.msk.f32.gmra.mrb[80].mxu1 %vm576_vm7, %v3028_v47  ;;  %v3029_v25 = vmul.f32 %v10264_v58, %v10260_v20 }
0x1300   :  { %9045 = vmatprep.mubr.msk.f32.mxu1 %vm10522_vm3, %v10521_v6 }
0x1303   :  { %9046 = vmatmul.mubr.msk.f32.gmra.mrb[82].mxu1 %vm576_vm7, %v3029_v25 }
0x1304   :  { %9068 = vmatprep.mubr.msk.bf16.mxu1 %vm10522_vm3, %v10521_v6 }
0x1341   :  { %v3291_v13 = vpop.xlane.xlu1 %3290 }
0x1342   :  { %v3307_v32 = vmul.f32 0.03125, %v3291_v13 }
0x1344   :  { %v3313_v31 = vadd.f32 1e-12, %v3307_v32 }
0x1345   :  { %v3294_v38 = vpop.xlane.xlu0 %3293 }
0x1346   :  { %10265 = vrsqrt.f32 %v3313_v31  ;;  %v3308_v40 = vmul.f32 0.03125, %v3294_v38 }
0x1348   :  { %v3314_v41 = vadd.f32 1e-12, %v3308_v40 }
0x134a   :  { %10267 = vrsqrt.f32 %v3314_v41 }
0x1350   :  { %v10266_v63 = vpop.eup %10265 }
0x1351   :  { %v3325_v5 = vmul.f32 %v10266_v63, %v3277_v28 }
0x1353   :  { %v3337_v30 = vmul.f32 %v11628_v36, %v3325_v5 }
0x1354   :  { %v10268_v60 = vpop.eup %10267 }
0x1355   :  { %v3326_v33 = vmul.f32 %v10268_v60, %v3278_v0  ;;  %v3349_v21 = vadd.f32 %v11632_v44, %v3337_v30 }
0x1357   :  { %v3338_v53 = vmul.f32 %v11628_v36, %v3326_v33 }
0x1359   :  { %v3350_v52 = vadd.f32 %v11632_v44, %v3338_v53 }
0x135b   :  { %v3355_v48 = vpack.c.bf16 %v3350_v52, %v3349_v21 }
0x135d   :  { %9069 = vmatmul.mubr.msk.bf16.vlgmr.msra.gmra.mrb[84].mxu1 %vm272_vm2, %v3355_v48 }
0x135e   :  { %9072 = vmatprep.mubr.msk.bf16.mxu1 %vm10522_vm3, %v10521_v6 }
0x1382   :  { %v3297_v46 = vpop.xlane.xlu1 %3296 }
0x1383   :  { %v3309_v43 = vmul.f32 0.03125, %v3297_v46 }
0x1384   :  { %v3300_v24 = vpop.xlane.xlu0 %3299 }
0x1385   :  { %v3315_v45 = vadd.f32 1e-12, %v3309_v43  ;;  %v3310_v7 = vmul.f32 0.03125, %v3300_v24 }
0x1387   :  { %10269 = vrsqrt.f32 %v3315_v45  ;;  %v3316_v20 = vadd.f32 1e-12, %v3310_v7 }
0x1389   :  { %10271 = vrsqrt.f32 %v3316_v20 }
0x1391   :  { %v10270_v37 = vpop.eup %10269 }
0x1392   :  { %v3327_v59 = vmul.f32 %v10270_v37, %v3279_v39 }
0x1393   :  { %v10272_v4 = vpop.eup %10271 }
0x1394   :  { %v3328_v51 = vmul.f32 %v10272_v4, %v3280_v15  ;;  %v3339_v28 = vmul.f32 %v11628_v36, %v3327_v59 }
0x1396   :  { %v3340_v55 = vmul.f32 %v11628_v36, %v3328_v51  ;;  %v3351_v57 = vadd.f32 %v11632_v44, %v3339_v28 }
0x1398   :  { %v3352_v34 = vadd.f32 %v11632_v44, %v3340_v55 }
0x139a   :  { %v3356_v0 = vpack.c.bf16 %v3352_v34, %v3351_v57 }
0x139c   :  { %9073 = vmatmul.mubr.msk.bf16.gmra.mrb[88].mxu1 %vm272_vm2, %v3356_v0 }
0x139d   :  { %9076 = vmatprep.mubr.msk.bf16.mxu1 %vm10522_vm3, %v10521_v6 }
0x13d2   :  { %v3119_v61 = vpop.f32.mrb[80].mxu1 }
0x13d3   :  { %v9044_v39 = vpop.f32.mrb[81].mxu1 }
0x13d6   :  { %v3124_v11 = vpop.f32.mrb[82].mxu1 }
0x13d7   :  { %v9936_v15 = vpack.i.bf16 %v3124_v11, %v3119_v61  ;;  %v9047_v14 = vpop.f32.mrb[83].mxu1 }
0x13d9   :  { %9937 = vrot.lane.b32.xlu1 %v9936_v15, %s10529_s10 }
0x1430   :  { %v3426_v18 = vpop.f32.mrb[84].mxu1 }
0x1431   :  { %v3427_v50 = vadd.f32 %v11665_v16, %v3426_v18  ;;  %v9070_v17 = vpop.f32.mrb[85].mxu1 }
0x1432   :  { %v3429_v8 = vpop.f32.mrb[86].mxu1 }
0x1433   :  { %v3455_v47 = vmul.f32 0.044715, %v3427_v50  ;;  %v3430_v58 = vadd.f32 %v11665_v16, %v3429_v8  ;;  %v9071_v25 = vpop.f32.mrb[87].mxu1  ;;  %v3449_v21 = vmul.f32 0.5, %v3427_v50 }
0x1435   :  { %v3461_v13 = vmul.f32 %v3455_v47, %v3427_v50  ;;  %v3456_v32 = vmul.f32 0.044715, %v3430_v58  ;;  %v3450_v52 = vmul.f32 0.5, %v3430_v58 }
0x1437   :  { %v3467_v31 = vmul.f32 %v3461_v13, %v3427_v50  ;;  %v3462_v38 = vmul.f32 %v3456_v32, %v3430_v58 }
0x1439   :  { %v3473_v40 = vadd.f32 %v3467_v31, %v3427_v50  ;;  %v3468_v41 = vmul.f32 %v3462_v38, %v3430_v58 }
0x143b   :  { %v3479_v63 = vmul.f32 0.7978846, %v3473_v40  ;;  %v3474_v5 = vadd.f32 %v3468_v41, %v3430_v58 }
0x143d   :  { %10273 = vtanh.f32 %v3479_v63  ;;  %v3480_v60 = vmul.f32 0.7978846, %v3474_v5 }
0x143f   :  { %10275 = vtanh.f32 %v3480_v60 }
0x1447   :  { %v10274_v30 = vpop.eup %10273 }
0x1448   :  { %v3491_v33 = vadd.f32 1.0, %v10274_v30 }
0x1449   :  { %v10276_v53 = vpop.eup %10275 }
0x144a   :  { %v3492_v48 = vadd.f32 1.0, %v10276_v53  ;;  %v3497_v45 = vmul.f32 %v3491_v33, %v3449_v21 }
0x144b   :  { %v9938_v46 = vpop.permute.xlu1 %9937 }
0x144c   :  { %v9940_v43 = vunpack.i.h.bf16 %v9938_v46  ;;  %v9939_v24 = vunpack.i.l.bf16 %v9938_v46  ;;  %v3498_v7 = vmul.f32 %v3492_v48, %v3450_v52  ;;  %v8091_v46 = vld [vmem:[%s12794_s18 + $0x1] ss:$0 sm:$0xff] }
0x144e   :  { %v3142_v20 = vsel %vm477_vm4, %v11572_v42, %v9940_v43  ;;  %v3141_v37 = vsel %vm477_vm4, %v11567_v19, %v9939_v24  ;;  %v3503_v59 = vpack.c.bf16 %v3498_v7, %v3497_v45 }
0x144f   :  { %v3145_v4 = vpack.c.bf16 %v3142_v20, %v3141_v37 }
0x1451   :  { %9061 = vmatmul.mubr.msk.bf16.gmra.mrb[84].mxu0 %vm272_vm2, %v3145_v4 }
0x1452   :  { %9096 = vmatprep.mubr.msk.bf16.mxu0 %vm10522_vm3, %v10521_v6 }
0x1459   :  { %9097 = vmatmul.mubr.bf16.vlgmr.msra.gmra.mrb[88].mxu0 %v3503_v59 }
0x145a   :  { %9100 = vmatprep.mubr.msk.bf16.mxu0 %vm10522_vm3, %v10521_v6 }
0x146f   :  { %v3434_v51 = vpop.f32.mrb[88].mxu1 }
0x1470   :  { %v3435_v28 = vadd.f32 %v11665_v16, %v3434_v51  ;;  %v9074_v55 = vpop.f32.mrb[89].mxu1 }
0x1471   :  { %v3437_v57 = vpop.f32.mrb[90].mxu1 }
0x1472   :  { %v3457_v42 = vmul.f32 0.044715, %v3435_v28  ;;  %v3438_v34 = vadd.f32 %v11665_v16, %v3437_v57  ;;  %v9075_v19 = vpop.f32.mrb[91].mxu1  ;;  %v3451_v15 = vmul.f32 0.5, %v3435_v28 }
0x1474   :  { %v3463_v0 = vmul.f32 %v3457_v42, %v3435_v28  ;;  %v3458_v22 = vmul.f32 0.044715, %v3438_v34  ;;  %v3452_v14 = vmul.f32 0.5, %v3438_v34 }
0x1476   :  { %v3469_v49 = vmul.f32 %v3463_v0, %v3435_v28  ;;  %v3464_v3 = vmul.f32 %v3458_v22, %v3438_v34 }
0x1478   :  { %v3470_v2 = vmul.f32 %v3464_v3, %v3438_v34  ;;  %v3475_v26 = vadd.f32 %v3469_v49, %v3435_v28  ;;  %v10084_v49 = vld [vmem:[%s12795_s22] sm:$0xff]   ;;  %v10085_v3 = vld [vmem:[%s12795_s22 + $0x8] sm:$0xff]  }
0x1479   :  { %9109 = vmatpush3.bf16.msra.mxu1 %v10084_v49 }
0x147a   :  { %v3476_v35 = vadd.f32 %v3470_v2, %v3438_v34  ;;  %v3481_v1 = vmul.f32 0.7978846, %v3475_v26  ;;  %9110 = vmatprep.subr.bf16.mxu1 %v10521_v6  ;;  %v10086_v2 = vld [vmem:[%s10544_s9 + $0x18] sm:$0xff]  }
0x147c   :  { %v3482_v61 = vmul.f32 0.7978846, %v3476_v35  ;;  %10277 = vtanh.f32 %v3481_v1 }
0x147d   :  { %9111 = vmatpush3.bf16.msra.mxu1 %v10085_v3  ;;  %v8109_v3 = vld [vmem:[%s10549_s13 + $0x1] ss:$0 sm:$0xff]  ;;  %s12800_s13 = sld [smem:[#allocation15_spill]] }
0x147e   :  { %10279 = vtanh.f32 %v3482_v61  ;;  %9116 = vmatprep.subr.bf16.mxu1 %v10086_v2 }
0x1486   :  { %v10278_v39 = vpop.eup %10277 }
0x1487   :  { %v3493_v12 = vadd.f32 1.0, %v10278_v39 }
0x1488   :  { %v10280_v11 = vpop.eup %10279 }
0x1489   :  { %v3494_v18 = vadd.f32 1.0, %v10280_v11  ;;  %v3499_v50 = vmul.f32 %v3493_v12, %v3451_v15 }
0x148b   :  { %v3500_v17 = vmul.f32 %v3494_v18, %v3452_v14 }
0x148d   :  { %v3504_v8 = vpack.c.bf16 %v3500_v17, %v3499_v50 }
0x148f   :  { %9101 = vmatmul.mubr.bf16.gmra.mrb[92].mxu0 %v3504_v8 }
0x1490   :  { %9104 = vmatprep.mubr.msk.bf16.mxu0 %vm10522_vm3, %v10521_v6 }
0x1524   :  { %v3222_v47 = vpop.f32.mrb[84].mxu0 }
0x1525   :  { %v3233_v58 = vadd.f32 %v3222_v47, %v11260_v10  ;;  %v9062_v25 = vpop.f32.mrb[85].mxu0 }
0x1526   :  { %v3225_v13 = vpop.f32.mrb[86].mxu0 }
0x1527   :  { %v3247_v32 = vadd.f32 %v11589_v54, %v3233_v58  ;;  %v3234_v31 = vadd.f32 %v3225_v13, %v11263_v9  ;;  %v9063_v38 = vpop.f32.mrb[87].mxu0 }
0x1529   :  { %v3248_v40 = vadd.f32 %v11589_v54, %v3234_v31  ;;  %v3265_v41 = vsel %vm272_vm2, %v3247_v32, 0.0 }
0x152a   :  { %3266 = vadd.xlane.f32.xlu0 %v3265_v41 }
0x152b   :  { %v3268_v60 = vsel %vm272_vm2, %v3248_v40, 0.0 }
0x152c   :  { %v3605_v63 = vpop.f32.mrb[88].mxu0 }
0x152d   :  { %v9098_v5 = vpop.f32.mrb[89].mxu0  ;;  %v3624_v52 = vadd.f32 %v3605_v63, %v11593_v27 }
0x152e   :  { %3269 = vadd.xlane.f32.xlu0 %v3268_v60  ;;  %v3608_v30 = vpop.f32.mrb[90].mxu0  ;;  %v10087_v60 = vld [vmem:[%s10544_s9 + $0x20] sm:$0xff]  }
0x152f   :  { %v9099_v10 = vpop.f32.mrb[91].mxu0  ;;  %v3634_v43 = vadd.f32 %v8091_v46, %v3624_v52  ;;  %v10088_v30 = vld [vmem:[%s10544_s9 + $0x28] sm:$0xff]   ;;  %s12799_s9 = sld [smem:[#allocation12_spill]] }
0x1530   :  { %v10090_v10 = vld [vmem:[%s10539_s5 + $0x18] sm:$0xff]  }
0x1562   :  { %v3612_v33 = vpop.f32.mrb[92].mxu0 }
0x1563   :  { %v9102_v53 = vpop.f32.mrb[93].mxu0 }
0x1564   :  { %v3614_v21 = vpop.f32.mrb[94].mxu0 }
0x1565   :  { %v3625_v9 = vadd.f32 %v3614_v21, %v11604_v29  ;;  %v9103_v48 = vpop.f32.mrb[95].mxu0 }
0x1567   :  { %v3635_v54 = vadd.f32 %v8091_v46, %v3625_v9 }
0x1569   :  { %v3637_v24 = vrot.slane %v3635_v54, 7 }
0x156b   :  { %v3639_v45 = vsel %vm251_vm1, %v3634_v43, %v3637_v24 }
0x156c   :  { %v3643_v7 = vsel %vm3642_vm8, %v3639_v45, 0.0 }
0x156d   :  { %3644 = vadd.xlane.f32.xlu0 %v3643_v7 }
0x15b7   :  { %v3267_v20 = vpop.xlane.xlu0 %3266 }
0x15b8   :  { %v3275_v37 = vmul.f32 0.03125, %v3267_v20 }
0x15ba   :  { %v3281_v59 = vsub.f32 %v3247_v32, %v3275_v37 }
0x15bb   :  { %v3270_v4 = vpop.xlane.xlu0 %3269 }
0x15bc   :  { %v3276_v51 = vmul.f32 0.03125, %v3270_v4  ;;  %v3287_v27 = vmul.f32 %v3281_v59, %v3281_v59 }
0x15be   :  { %v3282_v29 = vsub.f32 %v3248_v40, %v3276_v51  ;;  %v3301_v28 = vsel %vm272_vm2, %v3287_v27, 0.0  ;;  %v8093_v40 = vld [vmem:[%s12797_s26] ss:$0 sm:$0xff] }
0x15bf   :  { %3302 = vadd.xlane.f32.xlu0 %v3301_v28 }
0x15c0   :  { %v3288_v55 = vmul.f32 %v3282_v29, %v3282_v29 }
0x15c2   :  { %v3304_v57 = vsel %vm272_vm2, %v3288_v55, 0.0 }
0x15c3   :  { %3305 = vadd.xlane.f32.xlu1 %v3304_v57 }
0x15fa   :  { %v3645_v42 = vpop.xlane.xlu0 %3644 }
0x15fb   :  { %v3646_v34 = vmul.f32 0.03125, %v3645_v42 }
0x15fd   :  { %v3647_v19 = vsub.f32 %v3639_v45, %v3646_v34 }
0x15ff   :  { %v3648_v0 = vmul.f32 %v3647_v19, %v3647_v19 }
0x1601   :  { %v3649_v22 = vsel %vm3642_vm8, %v3648_v0, 0.0 }
0x1602   :  { %3650 = vadd.xlane.f32.xlu0 %v3649_v22 }
0x164c   :  { %v3303_v26 = vpop.xlane.xlu0 %3302 }
0x164d   :  { %v3311_v35 = vmul.f32 0.03125, %v3303_v26  ;;  %v8119_v26 = vld [vmem:[%s10564_s25 + $0x10] sm:$0xff] }
0x164f   :  { %v3317_v1 = vadd.f32 1e-12, %v3311_v35 }
0x1650   :  { %v3306_v61 = vpop.xlane.xlu1 %3305 }
0x1651   :  { %10281 = vrsqrt.f32 %v3317_v1  ;;  %v3312_v39 = vmul.f32 0.03125, %v3306_v61  ;;  %v8117_v61 = vld [vmem:[%s10554_s17 + $0x1] sm:$0x1]  ;;  %s12801_s17 = sld [smem:[#allocation17_spill]] }
0x1653   :  { %v3318_v12 = vadd.f32 1e-12, %v3312_v39  ;;  %v8118_v39 = vld [vmem:[%s10559_s21 + $0x1] sm:$0x1]  ;;  %s12802_s21 = sld [smem:[#allocation14_spill]] }
0x1655   :  { %10283 = vrsqrt.f32 %v3318_v12 }
0x165b   :  { %v10282_v11 = vpop.eup %10281 }
0x165c   :  { %v3329_v15 = vmul.f32 %v10282_v11, %v3281_v59 }
0x165e   :  { %v3341_v50 = vmul.f32 %v11628_v36, %v3329_v15  ;;  %v8120_v15 = vld [vmem:[%s10564_s25 + $0x18] sm:$0xff]  ;;  %s12803_s25 = sld [smem:[#allocation16_spill]] }
0x165f   :  { %v10284_v14 = vpop.eup %10283 }
0x1660   :  { %v3330_v18 = vmul.f32 %v10284_v14, %v3282_v29  ;;  %v3353_v8 = vadd.f32 %v11632_v44, %v3341_v50 }
0x1662   :  { %v3342_v17 = vmul.f32 %v11628_v36, %v3330_v18  ;;  %v8092_v36 = vld [vmem:[%s12796_s23] ss:$0 sm:$0xff] }
0x1664   :  { %v3354_v47 = vadd.f32 %v11632_v44, %v3342_v17  ;;  %v10089_v44 = vld [vmem:[%s10539_s5 + $0x10] sm:$0xff]   ;;  %s12798_s5 = sld [smem:[#allocation13_spill]] }
0x1666   :  { %v3357_v58 = vpack.c.bf16 %v3354_v47, %v3353_v8  ;;  %v3845_v47 = vadd.f32 %v8118_v39, %v8117_v61 }
0x1668   :  { %9077 = vmatmul.mubr.msk.bf16.gmra.mrb[92].mxu1 %vm272_vm2, %v3357_v58 }
0x1669   :  { %9112 = vmatprep.mubr.msk.bf16.mxu1 %vm10522_vm3, %v10521_v6 }
0x168f   :  { %v3651_v25 = vpop.xlane.xlu0 %3650 }
0x1690   :  { %v3652_v13 = vmul.f32 0.03125, %v3651_v25 }
0x1692   :  { %v3653_v32 = vadd.f32 1e-12, %v3652_v13 }
0x1694   :  { %10285 = vrsqrt.f32 %v3653_v32 }
0x169e   :  { %v10286_v31 = vpop.eup %10285 }
0x169f   :  { %v3655_v38 = vmul.f32 %v10286_v31, %v3647_v19 }
0x16a1   :  { %v3662_v41 = vmul.f32 %v8092_v36, %v3655_v38 }
0x16a3   :  { %v3669_v63 = vadd.f32 %v8093_v40, %v3662_v41 }
0x16a5   :  { %v3670_v5 = vpack.c.bf16 %v3669_v63, %v3669_v63 }
0x16a7   :  { %9113 = vmatmul.mubr.msk.bf16.vlgmr.msra.gmra.mrb[96].mxu1 %vm272_vm2, %v3670_v5 }
0x16a8   :  { %9117 = vmatpush3.bf16.msra.mxu1 %v10086_v2  ;;  %9122 = vmatprep.mubr.msk.bf16.mxu1 %vm184_vm0, %v10089_v44 }
0x16a9   :  { %9118 = vmatprep.subr.bf16.mxu1 %v10087_v60 }
0x16ac   :  { %9119 = vmatpush3.bf16.msra.mxu1 %v10087_v60 }
0x16ad   :  { %9120 = vmatprep.subr.bf16.mxu1 %v10088_v30 }
0x16b0   :  { %9121 = vmatpush3.bf16.msra.mxu1 %v10088_v30 }
0x16b1   :  { %9126 = vmatprep.subr.bf16.mxu1 %v10521_v6 }
0x16b3   :  { %9123 = vmatmul.mubr.msk.bf16.vlgmr.msra.gmra.mrb[100].mxu1 %vm184_vm0, %v10090_v10 }
0x16b4   :  { %9130 = vmatprep.mubr.msk.bf16.mxu1 %vm10522_vm3, %v10521_v6 }
0x173b   :  { %v3442_v33 = vpop.f32.mrb[92].mxu1 }
0x173c   :  { %v3443_v53 = vadd.f32 %v11665_v16, %v3442_v33  ;;  %v9078_v21 = vpop.f32.mrb[93].mxu1 }
0x173d   :  { %v3445_v52 = vpop.f32.mrb[94].mxu1 }
0x173e   :  { %v3459_v9 = vmul.f32 0.044715, %v3443_v53  ;;  %v3446_v48 = vadd.f32 %v11665_v16, %v3445_v52  ;;  %v9079_v46 = vpop.f32.mrb[95].mxu1  ;;  %v3453_v28 = vmul.f32 0.5, %v3443_v53 }
0x1740   :  { %v3465_v54 = vmul.f32 %v3459_v9, %v3443_v53  ;;  %v3460_v43 = vmul.f32 0.044715, %v3446_v48  ;;  %v3454_v55 = vmul.f32 0.5, %v3446_v48 }
0x1742   :  { %v3471_v24 = vmul.f32 %v3465_v54, %v3443_v53  ;;  %v3466_v45 = vmul.f32 %v3460_v43, %v3446_v48 }
0x1744   :  { %v3472_v7 = vmul.f32 %v3466_v45, %v3446_v48  ;;  %v3477_v20 = vadd.f32 %v3471_v24, %v3443_v53 }
0x1746   :  { %v3478_v37 = vadd.f32 %v3472_v7, %v3446_v48  ;;  %v3483_v59 = vmul.f32 0.7978846, %v3477_v20 }
0x1748   :  { %v3484_v4 = vmul.f32 0.7978846, %v3478_v37  ;;  %10287 = vtanh.f32 %v3483_v59 }
0x174a   :  { %10289 = vtanh.f32 %v3484_v4 }
0x1752   :  { %v10288_v51 = vpop.eup %10287 }
0x1753   :  { %v3495_v27 = vadd.f32 1.0, %v10288_v51 }
0x1754   :  { %v10290_v29 = vpop.eup %10289 }
0x1755   :  { %v3496_v16 = vadd.f32 1.0, %v10290_v29  ;;  %v3501_v57 = vmul.f32 %v3495_v27, %v3453_v28 }
0x1757   :  { %v3502_v42 = vmul.f32 %v3496_v16, %v3454_v55 }
0x1759   :  { %v3505_v34 = vpack.c.bf16 %v3502_v42, %v3501_v57 }
0x175b   :  { %9105 = vmatmul.mubr.bf16.gmra.mrb[96].mxu0 %v3505_v34 }
0x175c   :  { %9148 = vmatprep.mubr.msk.f32.mxu0 %vm10522_vm3, %v10521_v6 }
0x177a   :  { %v11723_v19 = vpop.f32.mrb[96].mxu1 }
0x177b   :  { %v9114_v0 = vpop.f32.mrb[97].mxu1 }
0x177c   :  { %v3734_v22 = vpop.f32.mrb[98].mxu1 }
0x177d   :  { %v9115_v49 = vpop.f32.mrb[99].mxu1 }
0x1786   :  { %v9124_v2 = vpop.f32.mrb[100].mxu1 }
0x1787   :  { %v3835_v35 = vadd.f32 %v9124_v2, %v8109_v3  ;;  %v3826_v1 = vpop.f32.mrb[101].mxu1 }
0x1788   :  { %v3827_v12 = vadd.f32 %v8109_v3, %v3826_v1  ;;  %v9125_v11 = vpop.f32.mrb[102].mxu1 }
0x1789   :  { %v3851_v14 = vadd.f32 %v8119_v26, %v3835_v35  ;;  %v3838_v18 = vadd.f32 %v9125_v11, %v8109_v3  ;;  %v3829_v50 = vpop.f32.mrb[103].mxu1 }
0x178a   :  { %v3849_v17 = vadd.f32 %v8119_v26, %v3827_v12  ;;  %v3830_v8 = vadd.f32 %v8109_v3, %v3829_v50 }
0x178b   :  { %v3852_v58 = vadd.f32 %v8120_v15, %v3838_v18  ;;  %v3863_v32 = vrot.slane %v3851_v14, 7  ;;  %v10092_v14 = vld [vmem:[%s10579_s8 + $0x28] sm:$0xff]  }
0x178c   :  { %v3855_v25 = vrot.slane %v3849_v17, 7  ;;  %v3850_v13 = vadd.f32 %v8120_v15, %v3830_v8  ;;  %v10091_v15 = vld [vmem:[%s10579_s8 + $0x20] sm:$0xff]  }
0x178d   :  { %v3864_v31 = vrot.slane %v3852_v58, 7  ;;  %v11749_v30 = vsel %vm251_vm1, %v3845_v47, %v3863_v32  ;;  %9127 = vmatpush3.bf16.msra.mxu1 %v10091_v15 }
0x178e   :  { %v3856_v36 = vrot.slane %v3850_v13, 7  ;;  %v11731_v38 = vsel %vm251_vm1, %v3845_v47, %v3855_v25  ;;  %v3886_v10 = vsel %vm272_vm2, %v11749_v30, 0.0  ;;  %9128 = vmatprep.subr.bf16.mxu1 %v10521_v6 }
0x178f   :  { %v3877_v40 = vsel %vm272_vm2, %v11731_v38, 0.0  ;;  %v11736_v41 = vsel %vm251_vm1, %v3863_v32, %v3864_v31  ;;  %v11756_v53 = vsel %vm251_vm1, %v3864_v31, 0.0 }
0x1790   :  { %3878 = vadd.xlane.f32.xlu0 %v3877_v40  ;;  %v11739_v63 = vsel %vm251_vm1, %v3855_v25, %v3856_v36  ;;  %v11744_v5 = vsel %vm251_vm1, %v3856_v36, 0.0  ;;  %v3889_v33 = vsel %vm272_vm2, %v11736_v41, 0.0  ;;  %v3892_v21 = vsel %vm272_vm2, %v11756_v53, 0.0 }
0x1791   :  { %v3880_v44 = vsel %vm272_vm2, %v11739_v63, 0.0  ;;  %v3883_v60 = vsel %vm272_vm2, %v11744_v5, 0.0  ;;  %9129 = vmatpush3.bf16.msra.mxu1 %v10092_v14 }
0x1792   :  { %9683 = vmatprep.subr.bf16.mxu1 %v10523_v62 }
0x1794   :  { %3881 = vadd.xlane.f32.xlu0 %v3880_v44 }
0x1798   :  { %3884 = vadd.xlane.f32.xlu0 %v3883_v60 }
0x179c   :  { %3887 = vadd.xlane.f32.xlu0 %v3886_v10 }
0x17a0   :  { %3890 = vadd.xlane.f32.xlu0 %v3889_v33  ;;  %v8123_v33 = vld [vmem:[%s10569_s29 + $0x2] ss:$0 sm:$0xff] }
0x17a4   :  { %3893 = vadd.xlane.f32.xlu0 %v3892_v21 }
0x181d   :  { %v3879_v52 = vpop.xlane.xlu0 %3878 }
0x181e   :  { %v3895_v9 = vmul.f32 0.03125, %v3879_v52 }
0x1820   :  { %v3901_v48 = vsub.f32 %v11731_v38, %v3895_v9 }
0x1821   :  { %v3882_v46 = vpop.xlane.xlu0 %3881 }
0x1822   :  { %v3896_v54 = vmul.f32 0.03125, %v3882_v46  ;;  %v3907_v43 = vmul.f32 %v3901_v48, %v3901_v48 }
0x1824   :  { %v11762_v24 = vsub.f32 %v11739_v63, %v3896_v54  ;;  %v3913_v45 = vsel %vm272_vm2, %v3907_v43, 0.0 }
0x1825   :  { %3914 = vadd.xlane.f32.xlu0 %v3913_v45  ;;  %v3885_v7 = vpop.xlane.xlu0 %3884 }
0x1826   :  { %v3897_v20 = vmul.f32 0.03125, %v3885_v7  ;;  %v3908_v37 = vmul.f32 %v11762_v24, %v11762_v24  ;;  %v8124_v7 = vld [vmem:[%s10574_s3 + $0x2] ss:$0 sm:$0xff] }
0x1828   :  { %v11768_v59 = vsub.f32 %v11744_v5, %v3897_v20  ;;  %v3916_v4 = vsel %vm272_vm2, %v3908_v37, 0.0 }
0x1829   :  { %3917 = vadd.xlane.f32.xlu0 %v3916_v4  ;;  %v3888_v51 = vpop.xlane.xlu0 %3887 }
0x182a   :  { %v3898_v27 = vmul.f32 0.03125, %v3888_v51  ;;  %v3909_v29 = vmul.f32 %v11768_v59, %v11768_v59 }
0x182c   :  { %v11774_v28 = vsub.f32 %v11749_v30, %v3898_v27  ;;  %v3919_v55 = vsel %vm272_vm2, %v3909_v29, 0.0 }
0x182d   :  { %3920 = vadd.xlane.f32.xlu1 %v3919_v55  ;;  %v3891_v16 = vpop.xlane.xlu0 %3890 }
0x182e   :  { %v3899_v57 = vmul.f32 0.03125, %v3891_v16  ;;  %v3619_v42 = vpop.f32.mrb[96].mxu0  ;;  %v3910_v34 = vmul.f32 %v11774_v28, %v11774_v28 }
0x182f   :  { %v9106_v0 = vpop.f32.mrb[97].mxu0 }
0x1830   :  { %v11780_v22 = vsub.f32 %v11736_v41, %v3899_v57  ;;  %v3621_v49 = vpop.f32.mrb[98].mxu0  ;;  %v3922_v3 = vsel %vm272_vm2, %v3910_v34, 0.0 }
0x1831   :  { %3923 = vadd.xlane.f32.xlu0 %v3922_v3  ;;  %v3894_v2 = vpop.xlane.xlu0 %3893  ;;  %v9107_v26 = vpop.f32.mrb[99].mxu0 }
0x1832   :  { %v3900_v35 = vmul.f32 0.03125, %v3894_v2  ;;  %v3911_v1 = vmul.f32 %v11780_v22, %v11780_v22 }
0x1834   :  { %v3906_v61 = vsub.f32 %v11756_v53, %v3900_v35  ;;  %v3925_v39 = vsel %vm272_vm2, %v3911_v1, 0.0 }
0x1835   :  { %3926 = vadd.xlane.f32.xlu1 %v3925_v39 }
0x1836   :  { %v3912_v12 = vmul.f32 %v3906_v61, %v3906_v61 }
0x1838   :  { %v3928_v11 = vsel %vm272_vm2, %v3912_v12, 0.0  ;;  %v8130_v12 = vld [vmem:[%s10584_s14 + $0x2] ss:$0 sm:$0xff] }
0x1839   :  { %3929 = vadd.xlane.f32.xlu0 %v3928_v11 }
0x18b2   :  { %v3915_v18 = vpop.xlane.xlu0 %3914 }
0x18b3   :  { %v3931_v50 = vmul.f32 0.03125, %v3915_v18 }
0x18b5   :  { %v3937_v17 = vadd.f32 1e-12, %v3931_v50 }
0x18b6   :  { %v3918_v8 = vpop.xlane.xlu0 %3917 }
0x18b7   :  { %10291 = vrsqrt.f32 %v3937_v17  ;;  %v3932_v47 = vmul.f32 0.03125, %v3918_v8 }
0x18b9   :  { %v3938_v58 = vadd.f32 1e-12, %v3932_v47 }
0x18ba   :  { %v3921_v25 = vpop.xlane.xlu1 %3920 }
0x18bb   :  { %10293 = vrsqrt.f32 %v3938_v58  ;;  %v3933_v13 = vmul.f32 0.03125, %v3921_v25 }
0x18bd   :  { %v3939_v32 = vadd.f32 1e-12, %v3933_v13 }
0x18be   :  { %v3924_v31 = vpop.xlane.xlu0 %3923 }
0x18bf   :  { %10295 = vrsqrt.f32 %v3939_v32  ;;  %v3934_v36 = vmul.f32 0.03125, %v3924_v31 }
0x18c1   :  { %v10292_v40 = vpop.eup %10291  ;;  %v3940_v44 = vadd.f32 1e-12, %v3934_v36 }
0x18c2   :  { %v3949_v60 = vmul.f32 %v10292_v40, %v3901_v48  ;;  %v3927_v10 = vpop.xlane.xlu1 %3926 }
0x18c3   :  { %10297 = vrsqrt.f32 %v3940_v44  ;;  %v3935_v21 = vmul.f32 0.03125, %v3927_v10 }
0x18c4   :  { %v3961_v46 = vmul.f32 %v8123_v33, %v3949_v60 }
0x18c5   :  { %v10294_v52 = vpop.eup %10293  ;;  %v3941_v9 = vadd.f32 1e-12, %v3935_v21 }
0x18c6   :  { %v3950_v54 = vmul.f32 %v10294_v52, %v11762_v24  ;;  %v3930_v43 = vpop.xlane.xlu0 %3929  ;;  %v3973_v51 = vadd.f32 %v8124_v7, %v3961_v46 }
0x18c7   :  { %10299 = vrsqrt.f32 %v3941_v9  ;;  %v3936_v45 = vmul.f32 0.03125, %v3930_v43 }
0x18c8   :  { %v3962_v20 = vmul.f32 %v8123_v33, %v3950_v54 }
0x18c9   :  { %v10296_v37 = vpop.eup %10295  ;;  %v3942_v4 = vadd.f32 1e-12, %v3936_v45 }
0x18ca   :  { %v3974_v27 = vadd.f32 %v8124_v7, %v3962_v20  ;;  %v3951_v48 = vmul.f32 %v10296_v37, %v11768_v59 }
0x18cb   :  { %10301 = vrsqrt.f32 %v3942_v4 }
0x18cc   :  { %v3979_v29 = vpack.c.bf16 %v3974_v27, %v3973_v51  ;;  %v3963_v57 = vmul.f32 %v8123_v33, %v3951_v48 }
0x18cd   :  { %v10298_v55 = vpop.eup %10297 }
0x18ce   :  { %9131 = vmatmul.mubr.msk.bf16.vlgmr.msra.gmra.mrb[104].mxu1 %vm272_vm2, %v3979_v29  ;;  %v3952_v16 = vmul.f32 %v10298_v55, %v11774_v28  ;;  %v3975_v34 = vadd.f32 %v8124_v7, %v3963_v57 }
0x18cf   :  { %9134 = vmatprep.mubr.msk.bf16.mxu1 %vm10522_vm3, %v10521_v6 }
0x18d0   :  { %v3964_v24 = vmul.f32 %v8123_v33, %v3952_v16 }
0x18d1   :  { %v10300_v42 = vpop.eup %10299 }
0x18d2   :  { %v3976_v0 = vadd.f32 %v8124_v7, %v3964_v24  ;;  %v3953_v49 = vmul.f32 %v10300_v42, %v11780_v22 }
0x18d4   :  { %v3980_v3 = vpack.c.bf16 %v3976_v0, %v3975_v34  ;;  %v3965_v26 = vmul.f32 %v8123_v33, %v3953_v49 }
0x18d5   :  { %v10302_v59 = vpop.eup %10301 }
0x18d6   :  { %9135 = vmatmul.mubr.msk.bf16.gmra.mrb[108].mxu1 %vm272_vm2, %v3980_v3  ;;  %v3954_v2 = vmul.f32 %v10302_v59, %v3906_v61  ;;  %v3977_v35 = vadd.f32 %v8124_v7, %v3965_v26 }
0x18d7   :  { %9138 = vmatprep.mubr.msk.bf16.mxu1 %vm10522_vm3, %v10521_v6 }
0x18d8   :  { %v3966_v28 = vmul.f32 %v8123_v33, %v3954_v2 }
0x18da   :  { %v3978_v1 = vadd.f32 %v8124_v7, %v3966_v28 }
0x18dc   :  { %v3981_v39 = vpack.c.bf16 %v3978_v1, %v3977_v35 }
0x18de   :  { %9139 = vmatmul.mubr.msk.bf16.gmra.mrb[112].mxu1 %vm272_vm2, %v3981_v39 }
0x18df   :  { %9178 = vmatprep.mubr.msk.f32.mxu1 %vm10522_vm3, %v10521_v6 }
0x19a1   :  { %v4050_v22 = vpop.f32.mrb[104].mxu1 }
0x19a2   :  { %v9132_v11 = vpop.f32.mrb[105].mxu1  ;;  %v4051_v14 = vadd.f32 %v8130_v12, %v4050_v22 }
0x19a3   :  { %v4053_v15 = vpop.f32.mrb[106].mxu1 }
0x19a4   :  { %v4054_v18 = vadd.f32 %v8130_v12, %v4053_v15  ;;  %v9133_v61 = vpop.f32.mrb[107].mxu1 }
0x19a6   :  { %v11808_v50 = vpack.i.bf16 %v4054_v18, %v4051_v14 }
0x19a8   :  { %9942 = vrot.lane.b32.xlu1 %v11808_v50, %s10524_s0 }
0x19a9   :  { %v4058_v17 = vpop.f32.mrb[108].mxu1 }
0x19aa   :  { %v11812_v8 = vadd.f32 %v8130_v12, %v4058_v17  ;;  %v9136_v47 = vpop.f32.mrb[109].mxu1 }
0x19ab   :  { %v4061_v58 = vpop.f32.mrb[110].mxu1 }
0x19ac   :  { %9947 = vrot.lane.b32.xlu1 %v11808_v50, %s10525_s28  ;;  %4080 = vrot.lane.b32.xlu0 %v11812_v8, %s10524_s0  ;;  %v9137_v25 = vpop.f32.mrb[111].mxu1  ;;  %v11820_v32 = vadd.f32 %v8130_v12, %v4061_v58 }
0x19b0   :  { %4321 = vrot.lane.b32.xlu1 %v11812_v8, %s10525_s28 }
0x19b1   :  { %v4066_v13 = vpop.f32.mrb[112].mxu1 }
0x19b2   :  { %v11822_v31 = vadd.f32 %v8130_v12, %v4066_v13  ;;  %v9140_v36 = vpop.f32.mrb[113].mxu1 }
0x19b3   :  { %v4069_v40 = vpop.f32.mrb[114].mxu1 }
0x19b4   :  { %4311 = vrot.lane.b32.xlu1 %v4051_v14, %s10526_s1  ;;  %v9141_v44 = vpop.f32.mrb[115].mxu1  ;;  %v11827_v60 = vpack.i.bf16 %v11822_v31, %v11820_v32  ;;  %v11834_v10 = vadd.f32 %v8130_v12, %v4069_v40 }
0x19b6   :  { %9952 = vrot.lane.b32.xlu0 %v11827_v60, %s10524_s0 }
0x19b8   :  { %4315 = vrot.lane.b32.xlu1 %v11812_v8, %s10526_s1 }
0x19ba   :  { %4313 = vrot.lane.b32.xlu0 %v4054_v18, %s10526_s1 }
0x19bc   :  { %9957 = vrot.lane.b32.xlu1 %v11827_v60, %s10525_s28 }
0x19be   :  { %4574 = vrot.lane.b32.xlu0 %v11834_v10, %s10524_s0 }
0x19c0   :  { %4805 = vrot.lane.b32.xlu1 %v11820_v32, %s10526_s1 }
0x19c2   :  { %4815 = vrot.lane.b32.xlu0 %v11834_v10, %s10525_s28 }
0x19c4   :  { %4809 = vrot.lane.b32.xlu1 %v11834_v10, %s10526_s1 }
0x19c6   :  { %4807 = vrot.lane.b32.xlu0 %v11822_v31, %s10526_s1 }
0x1a1a   :  { %v9943_v33 = vpop.permute.xlu1 %9942 }
0x1a1b   :  { %v9945_v21 = vunpack.i.h.bf16 %v9943_v33  ;;  %v9944_v52 = vunpack.i.l.bf16 %v9943_v33 }
0x1a1d   :  { %v9677_v9 = vpack.c.bf16 %v9945_v21, %v9944_v52 }
0x1a1e   :  { %v9948_v46 = vpop.permute.xlu1 %9947  ;;  %v4081_v20 = vpop.permute.xlu0 %4080 }
0x1a1f   :  { %v9950_v54 = vunpack.i.h.bf16 %v9948_v46  ;;  %v9949_v43 = vunpack.i.l.bf16 %v9948_v46  ;;  %9679 = vmatpush3.bf16.xpose.msk.msra.mxu0 %vm10849_vm5, %v9677_v9 }
0x1a20   :  { %9146 = vmatprep.subr.mxu0 %v10521_v6 }
0x1a21   :  { %v9684_v45 = vpack.c.bf16 %v9950_v54, %v9949_v43 }
0x1a22   :  { %v4322_v7 = vpop.permute.xlu1 %4321 }
0x1a23   :  { %9686 = vmatpush3.bf16.xpose.msk.msra.mxu1 %vm10849_vm5, %v9684_v45 }
0x1a24   :  { %9176 = vmatprep.subr.mxu1 %v10521_v6 }
0x1a26   :  { %v4312_v37 = vpop.permute.xlu1 %4311 }
0x1a27   :  { %9147 = vmatpush3.xpose.msk.msra.mxu0 %vm477_vm4, %v4081_v20 }
0x1a28   :  { %v9953_v4 = vpop.permute.xlu0 %9952  ;;  %9680 = vmatprep.subr.bf16.mxu0 %v10523_v62 }
0x1a29   :  { %v9955_v51 = vunpack.i.h.bf16 %v9953_v4  ;;  %v9954_v27 = vunpack.i.l.bf16 %v9953_v4 }
0x1a2a   :  { %9149 = vmatmul.mubr.msk.f32.vlgmr.msra.gmra.mrb[100].mxu0 %vm477_vm4, %v4051_v14  ;;  %v4316_v48 = vpop.permute.xlu1 %4315 }
0x1a2b   :  { %9177 = vmatpush3.xpose.msk.msra.mxu1 %vm477_vm4, %v4322_v7  ;;  %9151 = vmatprep.mubr.msk.f32.mxu0 %vm10522_vm3, %v10521_v6  ;;  %v9691_v29 = vpack.c.bf16 %v9955_v51, %v9954_v27 }
0x1a2c   :  { %9690 = vmatprep.subr.bf16.mxu1 %v10523_v62  ;;  %v4314_v55 = vpop.permute.xlu0 %4313 }
0x1a2e   :  { %9179 = vmatmul.mubr.msk.f32.vlgmr.msra.gmra.mrb[116].mxu1 %vm477_vm4, %v4312_v37  ;;  %9152 = vmatmul.mubr.msk.f32.gmra.mrb[102].mxu0 %vm477_vm4, %v4054_v18  ;;  %v9958_v16 = vpop.permute.xlu1 %9957 }
0x1a2f   :  { %9693 = vmatpush3.bf16.xpose.msk.msra.mxu1 %vm10849_vm5, %v9691_v29  ;;  %9154 = vmatprep.mubr.msk.f32.mxu0 %vm10522_vm3, %v10521_v6  ;;  %v9960_v57 = vunpack.i.h.bf16 %v9958_v16  ;;  %v9959_v24 = vunpack.i.l.bf16 %v9958_v16 }
0x1a30   :  { %9181 = vmatprep.mubr.msk.f32.mxu1 %vm10522_vm3, %v10521_v6  ;;  %9206 = vmatprep.subr.mxu1 %v10521_v6  ;;  %v4575_v42 = vpop.permute.xlu0 %4574 }
0x1a31   :  { %v9698_v34 = vpack.c.bf16 %v9960_v57, %v9959_v24 }
0x1a32   :  { %9155 = vmatmul.mubr.msk.f32.gmra.mrb[104].mxu0 %vm477_vm4, %v11812_v8  ;;  %9182 = vmatmul.mubr.msk.f32.gmra.mrb[118].mxu1 %vm477_vm4, %v4314_v55  ;;  %v4806_v49 = vpop.permute.xlu1 %4805 }
0x1a33   :  { %9184 = vmatprep.mubr.msk.f32.mxu1 %vm10522_vm3, %v10521_v6  ;;  %9163 = vmatprep.mubr.msk.f32.mxu0 %vm10522_vm3, %v10521_v6 }
0x1a34   :  { %v4816_v0 = vpop.permute.xlu0 %4815 }
0x1a36   :  { %9185 = vmatmul.mubr.msk.f32.gmra.mrb[120].mxu1 %vm477_vm4, %v4316_v48  ;;  %v4810_v59 = vpop.permute.xlu1 %4809 }
0x1a37   :  { %9207 = vmatpush3.xpose.msk.msra.mxu1 %vm477_vm4, %v4575_v42  ;;  %9208 = vmatprep.mubr.msk.f32.mxu1 %vm10522_vm3, %v10521_v6 }
0x1a38   :  { %9697 = vmatprep.subr.bf16.mxu1 %v10523_v62  ;;  %v4808_v3 = vpop.permute.xlu0 %4807 }
0x1a3a   :  { %9209 = vmatmul.mubr.msk.f32.vlgmr.msra.gmra.mrb[122].mxu1 %vm477_vm4, %v11820_v32 }
0x1a3b   :  { %9700 = vmatpush3.bf16.xpose.msk.msra.mxu1 %vm10849_vm5, %v9698_v34  ;;  %9211 = vmatprep.mubr.msk.f32.mxu1 %vm10522_vm3, %v10521_v6 }
0x1a3c   :  { %9236 = vmatprep.subr.mxu1 %v10521_v6 }
0x1a3e   :  { %9212 = vmatmul.mubr.msk.f32.gmra.mrb[124].mxu1 %vm477_vm4, %v11822_v31 }
0x1a3f   :  { %9214 = vmatprep.mubr.msk.f32.mxu1 %vm10522_vm3, %v10521_v6 }
0x1a42   :  { %9215 = vmatmul.mubr.msk.f32.gmra.mrb[126].mxu1 %vm477_vm4, %v11834_v10 }
0x1a43   :  { %9237 = vmatpush3.xpose.msk.msra.mxu1 %vm477_vm4, %v4816_v0  ;;  %9238 = vmatprep.mubr.msk.f32.mxu1 %vm10522_vm3, %v10521_v6 }
0x1a44   :  { %9262 = vmatprep.subr.bf16.mxu1 %v10521_v6 }
0x1a46   :  { %9239 = vmatmul.mubr.msk.f32.vlgmr.msra.gmra.mrb[128].mxu1 %vm477_vm4, %v4806_v49 }
0x1a47   :  { %9241 = vmatprep.mubr.msk.f32.mxu1 %vm10522_vm3, %v10521_v6 }
0x1a4a   :  { %9242 = vmatmul.mubr.msk.f32.gmra.mrb[130].mxu1 %vm477_vm4, %v4808_v3 }
0x1a4b   :  { %9244 = vmatprep.mubr.msk.f32.mxu1 %vm10522_vm3, %v10521_v6 }
0x1a4e   :  { %9245 = vmatmul.mubr.msk.f32.gmra.mrb[132].mxu1 %vm477_vm4, %v4810_v59 }
0x1a4f   :  { %9266 = vmatprep.mubr.msk.bf16.mxu1 %vm10522_vm3, %v10521_v6 }
0x1afd   :  { %v4160_v2 = vpop.f32.mrb[100].mxu0 }
0x1afe   :  { %v4174_v26 = vmul.f32 0.25, %v4160_v2  ;;  %v9150_v28 = vpop.f32.mrb[101].mxu0 }
0x1b00   :  { %v11910_v35 = vsel %vm138_vm6, %v4174_v26, -1e+30 }
0x1b01   :  { %v4165_v1 = vpop.f32.mrb[102].mxu0  ;;  %v4401_v39 = vpop.f32.mrb[116].mxu1  ;;  %v4180_v12 = vsel %vm576_vm7, %v11910_v35, -inf }
0x1b02   :  { %v4175_v22 = vmul.f32 0.25, %v4165_v1  ;;  %v4415_v11 = vmul.f32 0.25, %v4401_v39  ;;  %v9180_v15 = vpop.f32.mrb[117].mxu1  ;;  %4181 = vmax.xlane.f32.xlu0 %v4180_v12  ;;  %v9153_v14 = vpop.f32.mrb[103].mxu0 }
0x1b04   :  { %v11916_v18 = vsel %vm138_vm6, %v4175_v22, -1e+30  ;;  %v11920_v61 = vsel %vm138_vm6, %v4415_v11, -1e+30 }
0x1b05   :  { %v4170_v17 = vpop.f32.mrb[104].mxu0  ;;  %v4406_v47 = vpop.f32.mrb[118].mxu1  ;;  %v4421_v58 = vsel %vm576_vm7, %v11920_v61, -inf  ;;  %v4183_v25 = vsel %vm576_vm7, %v11916_v18, -inf }
0x1b06   :  { %v4176_v13 = vmul.f32 0.25, %v4170_v17  ;;  %v4416_v32 = vmul.f32 0.25, %v4406_v47  ;;  %4422 = vmax.xlane.f32.xlu0 %v4421_v58  ;;  %4184 = vmax.xlane.f32.xlu1 %v4183_v25  ;;  %v9156_v31 = vpop.f32.mrb[105].mxu0  ;;  %v9183_v36 = vpop.f32.mrb[119].mxu1 }
0x1b08   :  { %v11928_v40 = vsel %vm138_vm6, %v4176_v13, -1e+30  ;;  %v11932_v44 = vsel %vm138_vm6, %v4416_v32, -1e+30 }
0x1b09   :  { %v4411_v33 = vpop.f32.mrb[120].mxu1  ;;  %v4186_v21 = vsel %vm576_vm7, %v11928_v40, -inf  ;;  %v4424_v52 = vsel %vm576_vm7, %v11932_v44, -inf }
0x1b0a   :  { %v4417_v9 = vmul.f32 0.25, %v4411_v33  ;;  %4187 = vmax.xlane.f32.xlu0 %v4186_v21  ;;  %4425 = vmax.xlane.f32.xlu1 %v4424_v52  ;;  %v9186_v46 = vpop.f32.mrb[121].mxu1 }
0x1b0c   :  { %v11940_v54 = vsel %vm138_vm6, %v4417_v9, -1e+30 }
0x1b0d   :  { %v4654_v43 = vpop.f32.mrb[122].mxu1  ;;  %v4427_v45 = vsel %vm576_vm7, %v11940_v54, -inf }
0x1b0e   :  { %v4668_v7 = vmul.f32 0.25, %v4654_v43  ;;  %4428 = vmax.xlane.f32.xlu0 %v4427_v45  ;;  %v9210_v20 = vpop.f32.mrb[123].mxu1 }
0x1b10   :  { %v11946_v37 = vsel %vm138_vm6, %v4668_v7, -1e+30 }
0x1b11   :  { %v4659_v4 = vpop.f32.mrb[124].mxu1  ;;  %v4674_v51 = vsel %vm576_vm7, %v11946_v37, -inf }
0x1b12   :  { %v4669_v27 = vmul.f32 0.25, %v4659_v4  ;;  %4675 = vmax.xlane.f32.xlu1 %v4674_v51  ;;  %v9213_v48 = vpop.f32.mrb[125].mxu1 }
0x1b14   :  { %v11952_v29 = vsel %vm138_vm6, %v4669_v27, -1e+30 }
0x1b15   :  { %v4664_v55 = vpop.f32.mrb[126].mxu1  ;;  %v4677_v16 = vsel %vm576_vm7, %v11952_v29, -inf }
0x1b16   :  { %v4670_v57 = vmul.f32 0.25, %v4664_v55  ;;  %4678 = vmax.xlane.f32.xlu0 %v4677_v16  ;;  %v9216_v24 = vpop.f32.mrb[127].mxu1 }
0x1b18   :  { %v11958_v42 = vsel %vm138_vm6, %v4670_v57, -1e+30 }
0x1b19   :  { %v4895_v34 = vpop.f32.mrb[128].mxu1  ;;  %v4680_v0 = vsel %vm576_vm7, %v11958_v42, -inf }
0x1b1a   :  { %v4909_v49 = vmul.f32 0.25, %v4895_v34  ;;  %4681 = vmax.xlane.f32.xlu1 %v4680_v0  ;;  %v9240_v3 = vpop.f32.mrb[129].mxu1 }
0x1b1c   :  { %v11964_v59 = vsel %vm138_vm6, %v4909_v49, -1e+30 }
0x1b1d   :  { %v4900_v2 = vpop.f32.mrb[130].mxu1  ;;  %v4915_v26 = vsel %vm576_vm7, %v11964_v59, -inf }
0x1b1e   :  { %4916 = vmax.xlane.f32.xlu0 %v4915_v26  ;;  %v9243_v28 = vpop.f32.mrb[131].mxu1  ;;  %v4910_v12 = vmul.f32 0.25, %v4900_v2 }
0x1b20   :  { %v11976_v11 = vsel %vm138_vm6, %v4910_v12, -1e+30 }
0x1b21   :  { %v4905_v1 = vpop.f32.mrb[132].mxu1  ;;  %v4918_v14 = vsel %vm576_vm7, %v11976_v11, -inf }
0x1b22   :  { %v9246_v39 = vpop.f32.mrb[133].mxu1  ;;  %v4911_v22 = vmul.f32 0.25, %v4905_v1 }
0x1b24   :  { %v11980_v15 = vsel %vm138_vm6, %v4911_v22, -1e+30 }
0x1b25   :  { %v4921_v17 = vsel %vm576_vm7, %v11980_v15, -inf }
0x1b2b   :  { %4217 = vrot.lane.b32.xlu1 %v11812_v8, %s10527_s2 }
0x1b2f   :  { %9967 = vrot.lane.b32.xlu1 %v11808_v50, %s10528_s7 }
0x1b34   :  { %9962 = vrot.lane.b32.xlu0 %v11808_v50, %s10527_s2 }
0x1b53   :  { %4919 = vmax.xlane.f32.xlu1 %v4918_v14  ;;  %4922 = vmax.xlane.f32.xlu0 %v4921_v17 }
0x1b8f   :  { %v4182_v47 = vpop.xlane.xlu0 %4181 }
0x1b90   :  { %v4189_v50 = vsub.f32 %v11910_v35, %v4182_v47 }
0x1b92   :  { %v4192_v58 = vmul.f32 1.442695, %v4189_v50 }
0x1b93   :  { %v4185_v25 = vpop.xlane.xlu1 %4184  ;;  %v4423_v13 = vpop.xlane.xlu0 %4422 }
0x1b94   :  { %10303 = vpow2.f32 %v4192_v58  ;;  %v4190_v32 = vsub.f32 %v11916_v18, %v4185_v25  ;;  %v4430_v31 = vsub.f32 %v11920_v61, %v4423_v13 }
0x1b96   :  { %v4433_v36 = vmul.f32 1.442695, %v4430_v31  ;;  %v4194_v33 = vmul.f32 1.442695, %v4190_v32 }
0x1b97   :  { %v4188_v21 = vpop.xlane.xlu0 %4187  ;;  %v4426_v7 = vpop.xlane.xlu1 %4425 }
0x1b98   :  { %10305 = vpow2.f32 %v4433_v36  ;;  %v4431_v24 = vsub.f32 %v11932_v44, %v4426_v7  ;;  %v4191_v0 = vsub.f32 %v11928_v40, %v4188_v21 }
0x1b99   :  { %10307 = vpow2.f32 %v4194_v33 }
0x1b9a   :  { %v4435_v34 = vmul.f32 1.442695, %v4431_v24  ;;  %v4196_v49 = vmul.f32 1.442695, %v4191_v0 }
0x1b9b   :  { %v4429_v46 = vpop.xlane.xlu0 %4428 }
0x1b9c   :  { %10309 = vpow2.f32 %v4435_v34  ;;  %v4432_v25 = vsub.f32 %v11940_v54, %v4429_v46 }
0x1b9d   :  { %10311 = vpow2.f32 %v4196_v49 }
0x1b9e   :  { %v11989_v52 = vpop.eup %10303  ;;  %v4437_v13 = vmul.f32 1.442695, %v4432_v25 }
0x1b9f   :  { %v4198_v9 = vsel %vm576_vm7, %v11989_v52, 0.0  ;;  %v4676_v4 = vpop.xlane.xlu1 %4675 }
0x1ba0   :  { %4199 = vadd.xlane.f32.xlu1 %v4198_v9 }
0x1ba2   :  { %v11993_v35 = vpop.eup %10305 }
0x1ba3   :  { %v4439_v43 = vsel %vm576_vm7, %v11993_v35, 0.0  ;;  %v11997_v18 = vpop.eup %10307  ;;  %v4679_v61 = vpop.xlane.xlu0 %4678 }
0x1ba4   :  { %4440 = vadd.xlane.f32.xlu0 %v4439_v43  ;;  %v4201_v45 = vsel %vm576_vm7, %v11997_v18, 0.0  ;;  %v4684_v3 = vsub.f32 %v11952_v29, %v4679_v61 }
0x1ba6   :  { %v4688_v2 = vmul.f32 1.442695, %v4684_v3  ;;  %v12011_v1 = vpop.eup %10309 }
0x1ba7   :  { %v4682_v55 = vpop.xlane.xlu1 %4681  ;;  %v4442_v44 = vsel %vm576_vm7, %v12011_v1, 0.0 }
0x1ba8   :  { %4202 = vadd.xlane.f32.xlu0 %v4201_v45  ;;  %10313 = vpow2.f32 %v4688_v2  ;;  %v4685_v31 = vsub.f32 %v11958_v42, %v4682_v55 }
0x1baa   :  { %v4690_v33 = vmul.f32 1.442695, %v4685_v31 }
0x1bab   :  { %v4917_v20 = vpop.xlane.xlu0 %4916  ;;  %v4218_v57 = vpop.permute.xlu1 %4217 }
0x1bac   :  { %v4924_v26 = vsub.f32 %v11964_v59, %v4917_v20 }
0x1bae   :  { %v4927_v28 = vmul.f32 1.442695, %v4924_v26 }
0x1baf   :  { %v9963_v51 = vpop.permute.xlu0 %9962  ;;  %v9968_v39 = vpop.permute.xlu1 %9967 }
0x1bb0   :  { %v9965_v27 = vunpack.i.h.bf16 %v9963_v51  ;;  %v9964_v48 = vunpack.i.l.bf16 %v9963_v51  ;;  %10315 = vpow2.f32 %v4927_v28  ;;  %v9970_v20 = vunpack.i.h.bf16 %v9968_v39 }
0x1bb1   :  { %9972 = vrot.lane.b32.xlu1 %v11827_v60, %s10527_s2 }
0x1bb2   :  { %v9681_v16 = vpack.c.bf16 %v9965_v27, %v9964_v48 }
0x1bb4   :  { %9682 = vmatpush3.bf16.msra.mxu0 %v9681_v16 }
0x1bb5   :  { %9161 = vmatprep.subr.mxu0 %v10521_v6 }
0x1bb8   :  { %9162 = vmatpush3.msra.mxu0 %v4218_v57 }
0x1bb9   :  { %9687 = vmatprep.subr.bf16.mxu0 %v10523_v62 }
0x1bbe   :  { %4458 = vrot.lane.b32.xlu0 %v11812_v8, %s10528_s7  ;;  %v12015_v8 = vpop.eup %10311 }
0x1bbf   :  { %v4204_v40 = vsel %vm576_vm7, %v12015_v8, 0.0  ;;  %v12019_v29 = vpop.eup %10313 }
0x1bc0   :  { %v4695_v59 = vsel %vm576_vm7, %v12019_v29, 0.0  ;;  %v12023_v12 = vpop.eup %10315 }
0x1bc1   :  { %v4933_v17 = vsel %vm576_vm7, %v12023_v12, 0.0 }
0x1bd5   :  { %4443 = vadd.xlane.f32.xlu1 %v4442_v44 }
0x1bd9   :  { %4205 = vadd.xlane.f32.xlu1 %v4204_v40 }
0x1bdd   :  { %4696 = vadd.xlane.f32.xlu0 %v4695_v59 }
0x1be0   :  { %v4920_v22 = vpop.xlane.xlu1 %4919  ;;  %v4923_v36 = vpop.xlane.xlu0 %4922 }
0x1be1   :  { %v4925_v14 = vsub.f32 %v11976_v11, %v4920_v22  ;;  %4934 = vadd.xlane.f32.xlu0 %v4933_v17  ;;  %v4683_v11 = vsub.f32 %v11946_v37, %v4676_v4  ;;  %v4926_v21 = vsub.f32 %v11980_v15, %v4923_v36  ;;  %v9969_v4 = vunpack.i.l.bf16 %v9968_v39 }
0x1be3   :  { %v4929_v47 = vmul.f32 1.442695, %v4925_v14  ;;  %v4686_v32 = vmul.f32 1.442695, %v4683_v11  ;;  %v4931_v9 = vmul.f32 1.442695, %v4926_v21  ;;  %v9688_v55 = vpack.c.bf16 %v9970_v20, %v9969_v4 }
0x1be4   :  { %v10093_v20 = vld [vmem:[%s10589_s19 + $0x20] sm:$0xff]  }
0x1be5   :  { %10317 = vpow2.f32 %v4929_v47  ;;  %9263 = vmatpush3.bf16.msra.mxu1 %v10093_v20 }
0x1be6   :  { %10319 = vpow2.f32 %v4437_v13  ;;  %9264 = vmatprep.subr.bf16.mxu1 %v10521_v6 }
0x1be7   :  { %10321 = vpow2.f32 %v4686_v32 }
0x1be8   :  { %10323 = vpow2.f32 %v4690_v33 }
0x1be9   :  { %10325 = vpow2.f32 %v4931_v9 }
0x1bea   :  { %4711 = vrot.lane.b32.xlu1 %v11834_v10, %s10527_s2 }
0x1bef   :  { %v12030_v50 = vpop.eup %10317 }
0x1bf0   :  { %v4936_v58 = vsel %vm576_vm7, %v12030_v50, 0.0  ;;  %v12040_v43 = vpop.eup %10319 }
0x1bf1   :  { %4937 = vadd.xlane.f32.xlu0 %v4936_v58  ;;  %v4445_v54 = vsel %vm576_vm7, %v12040_v43, 0.0  ;;  %v12044_v37 = vpop.eup %10321 }
0x1bf2   :  { %v4692_v42 = vsel %vm576_vm7, %v12044_v37, 0.0  ;;  %v12048_v46 = vpop.eup %10323 }
0x1bf3   :  { %v12052_v15 = vpop.eup %10325 }
0x1bf4   :  { %v4939_v61 = vsel %vm576_vm7, %v12052_v15, 0.0 }
0x1c07   :  { %9977 = vrot.lane.b32.xlu0 %v11827_v60, %s10528_s7  ;;  %v4698_v60 = vsel %vm576_vm7, %v12048_v46, 0.0 }
0x1c0e   :  { %4446 = vadd.xlane.f32.xlu1 %v4445_v54 }
0x1c12   :  { %4693 = vadd.xlane.f32.xlu1 %v4692_v42 }
0x1c16   :  { %4699 = vadd.xlane.f32.xlu1 %v4698_v60 }
0x1c1a   :  { %4940 = vadd.xlane.f32.xlu1 %v4939_v61 }
0x1c2b   :  { %4952 = vrot.lane.b32.xlu1 %v11834_v10, %s10528_s7 }
0x1c2d   :  { %v4200_v45 = vpop.xlane.xlu1 %4199 }
0x1c2e   :  { %10327 = vrcp.f32 %v4200_v45 }
0x1c31   :  { %v4441_v7 = vpop.xlane.xlu0 %4440 }
0x1c35   :  { %v4203_v51 = vpop.xlane.xlu0 %4202 }
0x1c36   :  { %10329 = vrcp.f32 %v4203_v51 }
0x1c38   :  { %v10328_v27 = vpop.eup %10327 }
0x1c39   :  { %v4210_v48 = vmul.f32 %v10328_v27, %v11989_v52  ;;  %v4459_v10 = vpop.permute.xlu0 %4458  ;;  %v9973_v52 = vpop.permute.xlu1 %9972 }
0x1c3a   :  { %v9975_v2 = vunpack.i.h.bf16 %v9973_v52  ;;  %v9974_v26 = vunpack.i.l.bf16 %v9973_v52 }
0x1c3b   :  { %9164 = vmatmul.mubr.msk.f32.vlgmr.msra.gmra.mrb[106].mxu0 %vm576_vm7, %v4210_v48 }
0x1c3c   :  { %9689 = vmatpush3.bf16.msra.mxu0 %v9688_v55  ;;  %9166 = vmatprep.mubr.msk.f32.mxu0 %vm10522_vm3, %v10521_v6  ;;  %v9695_v44 = vpack.c.bf16 %v9975_v2, %v9974_v26 }
0x1c3d   :  { %9191 = vmatprep.subr.mxu0 %v10521_v6 }
0x1c40   :  { %9192 = vmatpush3.msra.mxu0 %v4459_v10  ;;  %v10330_v16 = vpop.eup %10329 }
0x1c41   :  { %9694 = vmatprep.subr.bf16.mxu0 %v10523_v62  ;;  %v4211_v57 = vmul.f32 %v10330_v16, %v11997_v18 }
0x1c43   :  { %9167 = vmatmul.mubr.msk.f32.gmra.mrb[108].mxu0 %vm576_vm7, %v4211_v57 }
0x1c44   :  { %9169 = vmatprep.mubr.msk.f32.mxu0 %vm10522_vm3, %v10521_v6 }
0x1c62   :  { %v4444_v24 = vpop.xlane.xlu1 %4443 }
0x1c66   :  { %v4206_v34 = vpop.xlane.xlu1 %4205 }
0x1c67   :  { %10331 = vrcp.f32 %v4206_v34 }
0x1c68   :  { %10333 = vrcp.f32 %v4441_v7 }
0x1c69   :  { %10335 = vrcp.f32 %v4444_v24 }
0x1c6a   :  { %v4712_v40 = vpop.permute.xlu1 %4711 }
0x1c71   :  { %v10332_v0 = vpop.eup %10331 }
0x1c72   :  { %v4212_v49 = vmul.f32 %v10332_v0, %v12015_v8  ;;  %v10334_v3 = vpop.eup %10333 }
0x1c73   :  { %v4451_v18 = vmul.f32 %v10334_v3, %v11993_v35  ;;  %v10336_v28 = vpop.eup %10335  ;;  %v4697_v35 = vpop.xlane.xlu0 %4696 }
0x1c74   :  { %9170 = vmatmul.mubr.msk.f32.gmra.mrb[110].mxu0 %vm576_vm7, %v4212_v49  ;;  %v4452_v8 = vmul.f32 %v10336_v28, %v12011_v1 }
0x1c75   :  { %9193 = vmatprep.mubr.msk.f32.mxu0 %vm10522_vm3, %v10521_v6 }
0x1c77   :  { %v4935_v39 = vpop.xlane.xlu0 %4934 }
0x1c78   :  { %9194 = vmatmul.mubr.msk.f32.vlgmr.msra.gmra.mrb[112].mxu0 %vm576_vm7, %v4451_v18 }
0x1c79   :  { %9696 = vmatpush3.bf16.msra.mxu0 %v9695_v44  ;;  %9196 = vmatprep.mubr.msk.f32.mxu0 %vm10522_vm3, %v10521_v6 }
0x1c7a   :  { %9221 = vmatprep.subr.mxu0 %v10521_v6 }
0x1c7c   :  { %9197 = vmatmul.mubr.msk.f32.gmra.mrb[114].mxu0 %vm576_vm7, %v4452_v8 }
0x1c7d   :  { %9222 = vmatpush3.msra.mxu0 %v4712_v40  ;;  %9199 = vmatprep.mubr.msk.f32.mxu0 %vm10522_vm3, %v10521_v6 }
0x1c7e   :  { %9701 = vmatprep.subr.bf16.mxu0 %v10523_v62  ;;  %v4938_v22 = vpop.xlane.xlu0 %4937 }
0x1c82   :  { %v9978_v47 = vpop.permute.xlu0 %9977 }
0x1c83   :  { %v9980_v25 = vunpack.i.h.bf16 %v9978_v47  ;;  %v9979_v13 = vunpack.i.l.bf16 %v9978_v47 }
0x1c85   :  { %v9702_v33 = vpack.c.bf16 %v9980_v25, %v9979_v13 }
0x1c9b   :  { %v4447_v59 = vpop.xlane.xlu1 %4446 }
0x1c9c   :  { %10337 = vrcp.f32 %v4447_v59 }
0x1c9f   :  { %v4694_v14 = vpop.xlane.xlu1 %4693 }
0x1ca0   :  { %10339 = vrcp.f32 %v4694_v14 }
0x1ca1   :  { %10341 = vrcp.f32 %v4697_v35 }
0x1ca3   :  { %v4700_v17 = vpop.xlane.xlu1 %4699 }
0x1ca4   :  { %10343 = vrcp.f32 %v4700_v17 }
0x1ca5   :  { %10345 = vrcp.f32 %v4935_v39 }
0x1ca6   :  { %v10338_v1 = vpop.eup %10337  ;;  %10347 = vrcp.f32 %v4938_v22 }
0x1ca7   :  { %v4453_v58 = vmul.f32 %v10338_v1, %v12040_v43  ;;  %v4941_v31 = vpop.xlane.xlu1 %4940 }
0x1ca8   :  { %10349 = vrcp.f32 %v4941_v31 }
0x1ca9   :  { %9200 = vmatmul.mubr.msk.f32.gmra.mrb[116].mxu0 %vm576_vm7, %v4453_v58 }
0x1caa   :  { %v10340_v11 = vpop.eup %10339  ;;  %9223 = vmatprep.mubr.msk.f32.mxu0 %vm10522_vm3, %v10521_v6 }
0x1cab   :  { %v4704_v32 = vmul.f32 %v10340_v11, %v12044_v37  ;;  %v10342_v36 = vpop.eup %10341  ;;  %v4953_v43 = vpop.permute.xlu1 %4952 }
0x1cac   :  { %v4705_v21 = vmul.f32 %v10342_v36, %v12019_v29 }
0x1cad   :  { %9224 = vmatmul.mubr.msk.f32.vlgmr.msra.gmra.mrb[118].mxu0 %vm576_vm7, %v4704_v32 }
0x1cae   :  { %9703 = vmatpush3.bf16.msra.mxu0 %v9702_v33  ;;  %9226 = vmatprep.mubr.msk.f32.mxu0 %vm10522_vm3, %v10521_v6  ;;  %v10344_v9 = vpop.eup %10343 }
0x1caf   :  { %9251 = vmatprep.subr.mxu0 %v10521_v6  ;;  %v4706_v54 = vmul.f32 %v10344_v9, %v12048_v46  ;;  %v10346_v37 = vpop.eup %10345 }
0x1cb0   :  { %v4945_v29 = vmul.f32 %v10346_v37, %v12023_v12  ;;  %v10348_v42 = vpop.eup %10347 }
0x1cb1   :  { %9227 = vmatmul.mubr.msk.f32.gmra.mrb[120].mxu0 %vm576_vm7, %v4705_v21  ;;  %v4946_v46 = vmul.f32 %v10348_v42, %v12030_v50  ;;  %v10094_v50 = vld [vmem:[%s10589_s19 + $0x28] sm:$0xff]  }
0x1cb2   :  { %9252 = vmatpush3.msra.mxu0 %v4953_v43  ;;  %9229 = vmatprep.mubr.msk.f32.mxu0 %vm10522_vm3, %v10521_v6  ;;  %v10350_v60 = vpop.eup %10349 }
0x1cb3   :  { %9278 = vmatprep.subr.bf16.mxu0 %v10521_v6  ;;  %v4947_v61 = vmul.f32 %v10350_v60, %v12052_v15  ;;  %9265 = vmatpush3.bf16.msra.mxu1 %v10094_v50 }
0x1cb4   :  { %9294 = vmatprep.subr.bf16.mxu1 %v10521_v6 }
0x1cb5   :  { %9230 = vmatmul.mubr.msk.f32.gmra.mrb[122].mxu0 %vm576_vm7, %v4706_v54 }
0x1cb6   :  { %9253 = vmatprep.mubr.msk.f32.mxu0 %vm10522_vm3, %v10521_v6 }
0x1cb9   :  { %9254 = vmatmul.mubr.msk.f32.vlgmr.msra.gmra.mrb[124].mxu0 %vm576_vm7, %v4945_v29  ;;  %v8182_v29 = vld [vmem:[%s10594_s24 + $0x2] ss:$0 sm:$0xff] }
0x1cba   :  { %9256 = vmatprep.mubr.msk.f32.mxu0 %vm10522_vm3, %v10521_v6 }
0x1cbd   :  { %9257 = vmatmul.mubr.msk.f32.gmra.mrb[126].mxu0 %vm576_vm7, %v4946_v46 }
0x1cbe   :  { %9259 = vmatprep.mubr.msk.f32.mxu0 %vm10522_vm3, %v10521_v6 }
0x1cc1   :  { %9260 = vmatmul.mubr.msk.f32.gmra.mrb[128].mxu0 %vm576_vm7, %v4947_v61 }
0x1cc2   :  { %9282 = vmatprep.mubr.msk.bf16.mxu0 %vm10522_vm3, %v10521_v6 }
0x1d0e   :  { %v4297_v12 = vpop.f32.mrb[106].mxu0 }
0x1d0f   :  { %v9165_v45 = vpop.f32.mrb[107].mxu0 }
0x1d16   :  { %v4302_v7 = vpop.f32.mrb[108].mxu0 }
0x1d17   :  { %v9168_v4 = vpop.f32.mrb[109].mxu0 }
0x1d47   :  { %v4307_v51 = vpop.f32.mrb[110].mxu0 }
0x1d48   :  { %v9171_v27 = vpop.f32.mrb[111].mxu0 }
0x1d4b   :  { %v4538_v15 = vpop.f32.mrb[112].mxu0 }
0x1d4c   :  { %v9195_v48 = vpop.f32.mrb[113].mxu0 }
0x1d4f   :  { %v4543_v55 = vpop.f32.mrb[114].mxu0 }
0x1d50   :  { %v9981_v10 = vpack.i.bf16 %v4543_v55, %v4538_v15  ;;  %v9198_v16 = vpop.f32.mrb[115].mxu0 }
0x1d52   :  { %9982 = vrot.lane.b32.xlu0 %v9981_v10, %s10529_s10 }
0x1d7c   :  { %v4548_v57 = vpop.f32.mrb[116].mxu0 }
0x1d7d   :  { %v9201_v52 = vpop.f32.mrb[117].mxu0 }
0x1d80   :  { %v4791_v24 = vpop.f32.mrb[118].mxu0 }
0x1d81   :  { %v9225_v34 = vpop.f32.mrb[119].mxu0 }
0x1d84   :  { %v4796_v0 = vpop.f32.mrb[120].mxu0 }
0x1d85   :  { %v9228_v49 = vpop.f32.mrb[121].mxu0 }
0x1d88   :  { %v4801_v3 = vpop.f32.mrb[122].mxu0 }
0x1d89   :  { %v9231_v2 = vpop.f32.mrb[123].mxu0 }
0x1d8c   :  { %v5032_v26 = vpop.f32.mrb[124].mxu0 }
0x1d8d   :  { %v9986_v18 = vpack.i.bf16 %v5032_v26, %v4548_v57  ;;  %v9255_v28 = vpop.f32.mrb[125].mxu0 }
0x1d8f   :  { %9987 = vrot.lane.b32.xlu0 %v9986_v18, %s10529_s10 }
0x1d90   :  { %v5037_v44 = vpop.f32.mrb[126].mxu0 }
0x1d91   :  { %v9258_v8 = vpop.f32.mrb[127].mxu0 }
0x1d94   :  { %v5042_v40 = vpop.f32.mrb[128].mxu0 }
0x1d95   :  { %v9991_v35 = vpack.i.bf16 %v5042_v40, %v5037_v44  ;;  %v9261_v39 = vpop.f32.mrb[129].mxu0 }
0x1d97   :  { %9992 = vrot.lane.b32.xlu0 %v9991_v35, %s10529_s10 }
0x1dc4   :  { %v9983_v59 = vpop.permute.xlu0 %9982 }
0x1dc5   :  { %v9985_v22 = vunpack.i.h.bf16 %v9983_v59  ;;  %v9984_v14 = vunpack.i.l.bf16 %v9983_v59  ;;  %v10095_v59 = vld [vmem:[%s10609_s12 + $0x20] sm:$0xff]  }
0x1dc6   :  { %9279 = vmatpush3.bf16.msra.mxu0 %v10095_v59 }
0x1dc7   :  { %v4565_v17 = vsel %vm477_vm4, %v4302_v7, %v9985_v22  ;;  %v4564_v47 = vsel %vm477_vm4, %v4297_v12, %v9984_v14  ;;  %9280 = vmatprep.subr.bf16.mxu0 %v10521_v6  ;;  %v10096_v22 = vld [vmem:[%s10609_s12 + $0x28] sm:$0xff]  }
0x1dc8   :  { %v5061_v1 = vpack.c.bf16 %v4565_v17, %v4564_v47 }
0x1dca   :  { %9267 = vmatmul.mubr.msk.bf16.vlgmr.msra.gmra.mrb[136].mxu1 %vm272_vm2, %v5061_v1  ;;  %9281 = vmatpush3.bf16.msra.mxu0 %v10096_v22 }
0x1dcb   :  { %9270 = vmatprep.mubr.msk.bf16.mxu1 %vm10522_vm3, %v10521_v6  ;;  %9322 = vmatprep.subr.bf16.mxu0 %v10521_v6 }
0x1e01   :  { %v9988_v58 = vpop.permute.xlu0 %9987 }
0x1e02   :  { %v9990_v25 = vunpack.i.h.bf16 %v9988_v58  ;;  %v9989_v13 = vunpack.i.l.bf16 %v9988_v58 }
0x1e04   :  { %v5058_v11 = vsel %vm477_vm4, %v4791_v24, %v9990_v25  ;;  %v4566_v32 = vsel %vm477_vm4, %v4307_v51, %v9989_v13 }
0x1e05   :  { %v5062_v31 = vpack.c.bf16 %v5058_v11, %v4566_v32 }
0x1e07   :  { %9271 = vmatmul.mubr.msk.bf16.gmra.mrb[140].mxu1 %vm272_vm2, %v5062_v31 }
0x1e08   :  { %9274 = vmatprep.mubr.msk.bf16.mxu1 %vm10522_vm3, %v10521_v6 }
0x1e09   :  { %v9993_v36 = vpop.permute.xlu0 %9992 }
0x1e0a   :  { %v9995_v33 = vunpack.i.h.bf16 %v9993_v36  ;;  %v9994_v21 = vunpack.i.l.bf16 %v9993_v36 }
0x1e0c   :  { %v5060_v9 = vsel %vm477_vm4, %v4801_v3, %v9995_v33  ;;  %v5059_v43 = vsel %vm477_vm4, %v4796_v0, %v9994_v21 }
0x1e0d   :  { %v5063_v54 = vpack.c.bf16 %v5060_v9, %v5059_v43 }
0x1e0f   :  { %9275 = vmatmul.mubr.msk.bf16.gmra.mrb[144].mxu1 %vm272_vm2, %v5063_v54 }
0x1e10   :  { %9310 = vmatprep.mubr.msk.bf16.mxu1 %vm10522_vm3, %v10521_v6 }
0x1e9d   :  { %v5124_v37 = vpop.f32.mrb[136].mxu1 }
0x1e9e   :  { %v5147_v42 = vadd.f32 %v5124_v37, %v11731_v38  ;;  %v9268_v46 = vpop.f32.mrb[137].mxu1 }
0x1e9f   :  { %v5127_v60 = vpop.f32.mrb[138].mxu1 }
0x1ea0   :  { %v12136_v61 = vadd.f32 %v8182_v29, %v5147_v42  ;;  %v5148_v12 = vadd.f32 %v5127_v60, %v11739_v63  ;;  %v9269_v45 = vpop.f32.mrb[139].mxu1 }
0x1ea2   :  { %v12139_v7 = vadd.f32 %v8182_v29, %v5148_v12  ;;  %v5171_v20 = vsel %vm272_vm2, %v12136_v61, 0.0 }
0x1ea3   :  { %5172 = vadd.xlane.f32.xlu1 %v5171_v20 }
0x1ea4   :  { %v5174_v4 = vsel %vm272_vm2, %v12139_v7, 0.0 }
0x1ea5   :  { %5175 = vadd.xlane.f32.xlu0 %v5174_v4 }
0x1eda   :  { %v5132_v50 = vpop.f32.mrb[140].mxu1 }
0x1edb   :  { %v5149_v38 = vadd.f32 %v5132_v50, %v11744_v5  ;;  %v9272_v51 = vpop.f32.mrb[141].mxu1 }
0x1edc   :  { %v5135_v27 = vpop.f32.mrb[142].mxu1  ;;  %v8185_v51 = vld [vmem:[%s10599_s30 + $0x2] ss:$0 sm:$0xff] }
0x1edd   :  { %v12146_v15 = vadd.f32 %v8182_v29, %v5149_v38  ;;  %v5150_v63 = vadd.f32 %v5135_v27, %v11749_v30  ;;  %v9273_v48 = vpop.f32.mrb[143].mxu1 }
0x1edf   :  { %v12149_v55 = vadd.f32 %v8182_v29, %v5150_v63  ;;  %v5177_v10 = vsel %vm272_vm2, %v12146_v15, 0.0 }
0x1ee0   :  { %5178 = vadd.xlane.f32.xlu0 %v5177_v10 }
0x1ee1   :  { %v5180_v16 = vsel %vm272_vm2, %v12149_v55, 0.0 }
0x1ee2   :  { %5181 = vadd.xlane.f32.xlu1 %v5180_v16  ;;  %v5140_v57 = vpop.f32.mrb[144].mxu1  ;;  %v8186_v16 = vld [vmem:[%s12791_s11 + $0x2] ss:$0 sm:$0xff] }
0x1ee3   :  { %v5151_v5 = vadd.f32 %v5140_v57, %v11736_v41  ;;  %v9276_v52 = vpop.f32.mrb[145].mxu1 }
0x1ee4   :  { %v5143_v24 = vpop.f32.mrb[146].mxu1 }
0x1ee5   :  { %v12156_v34 = vadd.f32 %v8182_v29, %v5151_v5  ;;  %v5152_v30 = vadd.f32 %v5143_v24, %v11756_v53  ;;  %v9277_v0 = vpop.f32.mrb[147].mxu1 }
0x1ee7   :  { %v12159_v49 = vadd.f32 %v8182_v29, %v5152_v30  ;;  %v5183_v3 = vsel %vm272_vm2, %v12156_v34, 0.0 }
0x1ee8   :  { %5184 = vadd.xlane.f32.xlu0 %v5183_v3 }
0x1ee9   :  { %v5186_v2 = vsel %vm272_vm2, %v12159_v49, 0.0 }
0x1eea   :  { %5187 = vadd.xlane.f32.xlu1 %v5186_v2 }
0x1f30   :  { %v5173_v41 = vpop.xlane.xlu1 %5172 }
0x1f31   :  { %v5189_v26 = vmul.f32 0.03125, %v5173_v41 }
0x1f32   :  { %v5176_v18 = vpop.xlane.xlu0 %5175 }
0x1f33   :  { %v5195_v28 = vsub.f32 %v12136_v61, %v5189_v26  ;;  %v5190_v44 = vmul.f32 0.03125, %v5176_v18 }
0x1f35   :  { %v5196_v53 = vsub.f32 %v12139_v7, %v5190_v44  ;;  %v5201_v8 = vmul.f32 %v5195_v28, %v5195_v28 }
0x1f37   :  { %v5207_v40 = vsel %vm272_vm2, %v5201_v8, 0.0  ;;  %v5202_v35 = vmul.f32 %v5196_v53, %v5196_v53 }
0x1f38   :  { %5208 = vadd.xlane.f32.xlu0 %v5207_v40 }
0x1f39   :  { %v5210_v39 = vsel %vm272_vm2, %v5202_v35, 0.0 }
0x1f3a   :  { %5211 = vadd.xlane.f32.xlu1 %v5210_v39 }
0x1f6d   :  { %v5179_v14 = vpop.xlane.xlu0 %5178 }
0x1f6e   :  { %v5191_v17 = vmul.f32 0.03125, %v5179_v14 }
0x1f6f   :  { %v5182_v47 = vpop.xlane.xlu1 %5181 }
0x1f70   :  { %v5197_v1 = vsub.f32 %v12146_v15, %v5191_v17  ;;  %v5192_v58 = vmul.f32 0.03125, %v5182_v47 }
0x1f72   :  { %v5198_v25 = vsub.f32 %v12149_v55, %v5192_v58  ;;  %v5203_v13 = vmul.f32 %v5197_v1, %v5197_v1 }
0x1f74   :  { %v5213_v11 = vsel %vm272_vm2, %v5203_v13, 0.0  ;;  %v5204_v32 = vmul.f32 %v5198_v25, %v5198_v25 }
0x1f75   :  { %5214 = vadd.xlane.f32.xlu0 %v5213_v11  ;;  %v5185_v31 = vpop.xlane.xlu0 %5184 }
0x1f76   :  { %v5193_v36 = vmul.f32 0.03125, %v5185_v31  ;;  %v5216_v33 = vsel %vm272_vm2, %v5204_v32, 0.0 }
0x1f77   :  { %5217 = vadd.xlane.f32.xlu1 %v5216_v33  ;;  %v5188_v21 = vpop.xlane.xlu1 %5187 }
0x1f78   :  { %v5199_v9 = vsub.f32 %v12156_v34, %v5193_v36  ;;  %v5194_v43 = vmul.f32 0.03125, %v5188_v21 }
0x1f7a   :  { %v5200_v54 = vsub.f32 %v12159_v49, %v5194_v43  ;;  %v5205_v37 = vmul.f32 %v5199_v9, %v5199_v9 }
0x1f7c   :  { %v5219_v29 = vsel %vm272_vm2, %v5205_v37, 0.0  ;;  %v5206_v42 = vmul.f32 %v5200_v54, %v5200_v54  ;;  %v10099_v37 = vld [vmem:[%s12792_s15 + $0x90] sm:$0xff]  }
0x1f7d   :  { %5220 = vadd.xlane.f32.xlu0 %v5219_v29  ;;  %v10100_v29 = vld [vmem:[%s12792_s15 + $0x98] sm:$0xff]  }
0x1f7e   :  { %v5222_v46 = vsel %vm272_vm2, %v5206_v42, 0.0  ;;  %v10101_v42 = vld [vmem:[%s12792_s15 + $0xa0] sm:$0xff]  }
0x1f7f   :  { %5223 = vadd.xlane.f32.xlu1 %v5222_v46  ;;  %v10102_v46 = vld [vmem:[%s12792_s15 + $0xa8] sm:$0xff]  }
0x1fc5   :  { %v5209_v60 = vpop.xlane.xlu0 %5208 }
0x1fc6   :  { %v5225_v12 = vmul.f32 0.03125, %v5209_v60  ;;  %v10103_v60 = vld [vmem:[%s12792_s15 + $0xb0] sm:$0xff]  }
0x1fc7   :  { %v5212_v45 = vpop.xlane.xlu1 %5211 }
0x1fc8   :  { %v5231_v20 = vadd.f32 1e-12, %v5225_v12  ;;  %v5226_v4 = vmul.f32 0.03125, %v5212_v45  ;;  %v10104_v12 = vld [vmem:[%s12792_s15 + $0xb8] sm:$0xff]   ;;  %v8192_v45 = vld [vmem:[%s12793_s16 + $0x2] ss:$0 sm:$0xff] }
0x1fca   :  { %10351 = vrsqrt.f32 %v5231_v20  ;;  %v5232_v50 = vadd.f32 1e-12, %v5226_v4 }
0x1fcc   :  { %10353 = vrsqrt.f32 %v5232_v50 }
0x1fd4   :  { %v10352_v38 = vpop.eup %10351 }
0x1fd5   :  { %v5243_v27 = vmul.f32 %v10352_v38, %v5195_v28 }
0x1fd6   :  { %v10354_v63 = vpop.eup %10353 }
0x1fd7   :  { %v5255_v48 = vmul.f32 %v8185_v51, %v5243_v27  ;;  %v5244_v10 = vmul.f32 %v10354_v63, %v5196_v53 }
0x1fd9   :  { %v5256_v57 = vmul.f32 %v8185_v51, %v5244_v10  ;;  %v5267_v5 = vadd.f32 %v8186_v16, %v5255_v48 }
0x1fdb   :  { %v5268_v52 = vadd.f32 %v8186_v16, %v5256_v57 }
0x1fdd   :  { %v5273_v24 = vpack.c.bf16 %v5268_v52, %v5267_v5 }
0x1fdf   :  { %9283 = vmatmul.mubr.msk.bf16.vlgmr.msra.gmra.mrb[132].mxu0 %vm272_vm2, %v5273_v24 }
0x1fe0   :  { %9286 = vmatprep.mubr.msk.bf16.mxu0 %vm10522_vm3, %v10521_v6 }
0x2002   :  { %v5215_v30 = vpop.xlane.xlu0 %5214 }
0x2003   :  { %v5227_v0 = vmul.f32 0.03125, %v5215_v30 }
0x2004   :  { %v5218_v3 = vpop.xlane.xlu1 %5217 }
0x2005   :  { %v5233_v2 = vadd.f32 1e-12, %v5227_v0  ;;  %v5228_v41 = vmul.f32 0.03125, %v5218_v3 }
0x2007   :  { %10355 = vrsqrt.f32 %v5233_v2  ;;  %v5234_v26 = vadd.f32 1e-12, %v5228_v41 }
0x2009   :  { %10357 = vrsqrt.f32 %v5234_v26 }
0x200a   :  { %v5221_v18 = vpop.xlane.xlu0 %5220 }
0x200b   :  { %v5229_v28 = vmul.f32 0.03125, %v5221_v18 }
0x200c   :  { %v5224_v44 = vpop.xlane.xlu1 %5223 }
0x200d   :  { %v5235_v53 = vadd.f32 1e-12, %v5229_v28  ;;  %v5230_v8 = vmul.f32 0.03125, %v5224_v44 }
0x200f   :  { %10359 = vrsqrt.f32 %v5235_v53  ;;  %v5236_v40 = vadd.f32 1e-12, %v5230_v8 }
0x2011   :  { %v10356_v35 = vpop.eup %10355  ;;  %10361 = vrsqrt.f32 %v5236_v40 }
0x2012   :  { %v5245_v39 = vmul.f32 %v10356_v35, %v5197_v1 }
0x2013   :  { %v10358_v59 = vpop.eup %10357 }
0x2014   :  { %v5246_v22 = vmul.f32 %v10358_v59, %v5198_v25  ;;  %v5257_v14 = vmul.f32 %v8185_v51, %v5245_v39 }
0x2016   :  { %v5258_v17 = vmul.f32 %v8185_v51, %v5246_v22  ;;  %v5269_v47 = vadd.f32 %v8186_v16, %v5257_v14 }
0x2018   :  { %v5270_v58 = vadd.f32 %v8186_v16, %v5258_v17 }
0x2019   :  { %v10360_v13 = vpop.eup %10359 }
0x201a   :  { %v5247_v11 = vmul.f32 %v10360_v13, %v5199_v9  ;;  %v5274_v32 = vpack.c.bf16 %v5270_v58, %v5269_v47  ;;  %v10097_v9 = vld [vmem:[%s12792_s15 + $0x80] sm:$0xff]  }
0x201b   :  { %v10362_v31 = vpop.eup %10361  ;;  %9295 = vmatpush3.bf16.msra.mxu1 %v10097_v9 }
0x201c   :  { %v5248_v36 = vmul.f32 %v10362_v31, %v5200_v54  ;;  %9287 = vmatmul.mubr.msk.bf16.gmra.mrb[136].mxu0 %vm272_vm2, %v5274_v32  ;;  %v5259_v33 = vmul.f32 %v8185_v51, %v5247_v11  ;;  %9296 = vmatprep.subr.bf16.mxu1 %v10521_v6  ;;  %v10098_v54 = vld [vmem:[%s12792_s15 + $0x88] sm:$0xff]  }
0x201d   :  { %9290 = vmatprep.mubr.msk.bf16.mxu0 %vm10522_vm3, %v10521_v6 }
0x201e   :  { %v5260_v1 = vmul.f32 %v8185_v51, %v5248_v36  ;;  %v5271_v25 = vadd.f32 %v8186_v16, %v5259_v33 }
0x201f   :  { %9297 = vmatpush3.bf16.msra.mxu1 %v10098_v54 }
0x2020   :  { %v5272_v21 = vadd.f32 %v8186_v16, %v5260_v1  ;;  %9298 = vmatprep.subr.bf16.mxu1 %v10521_v6 }
0x2022   :  { %v5275_v43 = vpack.c.bf16 %v5272_v21, %v5271_v25 }
0x2023   :  { %9299 = vmatpush3.bf16.msra.mxu1 %v10099_v37 }
0x2024   :  { %9291 = vmatmul.mubr.msk.bf16.gmra.mrb[140].mxu0 %vm272_vm2, %v5275_v43  ;;  %9300 = vmatprep.subr.bf16.mxu1 %v10521_v6 }
0x2025   :  { %9326 = vmatprep.mubr.msk.bf16.mxu0 %vm10522_vm3, %v10521_v6 }
0x2027   :  { %9301 = vmatpush3.bf16.msra.mxu1 %v10100_v29 }
0x2028   :  { %9302 = vmatprep.subr.bf16.mxu1 %v10521_v6 }
0x202b   :  { %9303 = vmatpush3.bf16.msra.mxu1 %v10101_v42 }
0x202c   :  { %9304 = vmatprep.subr.bf16.mxu1 %v10521_v6 }
0x202f   :  { %9305 = vmatpush3.bf16.msra.mxu1 %v10102_v46 }
0x2030   :  { %9306 = vmatprep.subr.bf16.mxu1 %v10521_v6 }
0x2033   :  { %9307 = vmatpush3.bf16.msra.mxu1 %v10103_v60 }
0x2034   :  { %9308 = vmatprep.subr.bf16.mxu1 %v10521_v6 }
0x2037   :  { %9309 = vmatpush3.bf16.msra.mxu1 %v10104_v12 }
0x2038   :  { %9704 = vmatprep.subr.bf16.mxu1 %v10523_v62 }
0x20b2   :  { %v5344_v20 = vpop.f32.mrb[132].mxu0 }
0x20b3   :  { %v5345_v4 = vadd.f32 %v8192_v45, %v5344_v20  ;;  %v9284_v50 = vpop.f32.mrb[133].mxu0 }
0x20b4   :  { %v5347_v38 = vpop.f32.mrb[134].mxu0 }
0x20b5   :  { %v5373_v51 = vmul.f32 0.044715, %v5345_v4  ;;  %v5348_v27 = vadd.f32 %v8192_v45, %v5347_v38  ;;  %v9285_v63 = vpop.f32.mrb[135].mxu0  ;;  %v5367_v26 = vmul.f32 0.5, %v5345_v4 }
0x20b7   :  { %v5379_v48 = vmul.f32 %v5373_v51, %v5345_v4  ;;  %v5374_v10 = vmul.f32 0.044715, %v5348_v27  ;;  %v5368_v18 = vmul.f32 0.5, %v5348_v27 }
0x20b9   :  { %v5385_v16 = vmul.f32 %v5379_v48, %v5345_v4  ;;  %v5380_v57 = vmul.f32 %v5374_v10, %v5348_v27 }
0x20bb   :  { %v5391_v5 = vadd.f32 %v5385_v16, %v5345_v4  ;;  %v5386_v52 = vmul.f32 %v5380_v57, %v5348_v27 }
0x20bd   :  { %v5397_v24 = vmul.f32 0.7978846, %v5391_v5  ;;  %v5392_v30 = vadd.f32 %v5386_v52, %v5348_v27 }
0x20bf   :  { %10363 = vtanh.f32 %v5397_v24  ;;  %v5398_v0 = vmul.f32 0.7978846, %v5392_v30 }
0x20c1   :  { %10365 = vtanh.f32 %v5398_v0 }
0x20c9   :  { %v10364_v3 = vpop.eup %10363 }
0x20ca   :  { %v5409_v2 = vadd.f32 1.0, %v10364_v3 }
0x20cb   :  { %v10366_v41 = vpop.eup %10365 }
0x20cc   :  { %v5410_v28 = vadd.f32 1.0, %v10366_v41  ;;  %v5415_v44 = vmul.f32 %v5409_v2, %v5367_v26 }
0x20ce   :  { %v5416_v53 = vmul.f32 %v5410_v28, %v5368_v18 }
0x20d0   :  { %v5421_v8 = vpack.c.bf16 %v5416_v53, %v5415_v44  ;;  %v8223_v53 = vld [vmem:[%s12794_s18 + $0x2] ss:$0 sm:$0xff] }
0x20d2   :  { %9311 = vmatmul.mubr.bf16.vlgmr.msra.gmra.mrb[148].mxu1 %v5421_v8 }
0x20d3   :  { %9314 = vmatprep.mubr.msk.bf16.mxu1 %vm10522_vm3, %v10521_v6 }
0x20ef   :  { %v5352_v40 = vpop.f32.mrb[136].mxu0 }
0x20f0   :  { %v5353_v35 = vadd.f32 %v8192_v45, %v5352_v40  ;;  %v9288_v39 = vpop.f32.mrb[137].mxu0 }
0x20f1   :  { %v5355_v59 = vpop.f32.mrb[138].mxu0 }
0x20f2   :  { %v5375_v22 = vmul.f32 0.044715, %v5353_v35  ;;  %v5356_v14 = vadd.f32 %v8192_v45, %v5355_v59  ;;  %v9289_v17 = vpop.f32.mrb[139].mxu0  ;;  %v5369_v48 = vmul.f32 0.5, %v5353_v35 }
0x20f4   :  { %v5381_v47 = vmul.f32 %v5375_v22, %v5353_v35  ;;  %v5376_v58 = vmul.f32 0.044715, %v5356_v14  ;;  %v5370_v10 = vmul.f32 0.5, %v5356_v14 }
0x20f6   :  { %v5387_v13 = vmul.f32 %v5381_v47, %v5353_v35  ;;  %v5382_v11 = vmul.f32 %v5376_v58, %v5356_v14 }
0x20f7   :  { %v5360_v32 = vpop.f32.mrb[140].mxu0 }
0x20f8   :  { %v5388_v31 = vmul.f32 %v5382_v11, %v5356_v14  ;;  %v5361_v36 = vadd.f32 %v8192_v45, %v5360_v32  ;;  %v9292_v33 = vpop.f32.mrb[141].mxu0  ;;  %v5393_v1 = vadd.f32 %v5387_v13, %v5353_v35 }
0x20f9   :  { %v5363_v25 = vpop.f32.mrb[142].mxu0 }
0x20fa   :  { %v5377_v21 = vmul.f32 0.044715, %v5361_v36  ;;  %v5364_v43 = vadd.f32 %v8192_v45, %v5363_v25  ;;  %v9293_v9 = vpop.f32.mrb[143].mxu0  ;;  %v5394_v54 = vadd.f32 %v5388_v31, %v5356_v14  ;;  %v5399_v37 = vmul.f32 0.7978846, %v5393_v1 }
0x20fb   :  { %v5371_v3 = vmul.f32 0.5, %v5361_v36 }
0x20fc   :  { %v5383_v29 = vmul.f32 %v5377_v21, %v5361_v36  ;;  %v5378_v42 = vmul.f32 0.044715, %v5364_v43  ;;  %v5400_v46 = vmul.f32 0.7978846, %v5394_v54  ;;  %10367 = vtanh.f32 %v5399_v37 }
0x20fd   :  { %v5372_v2 = vmul.f32 0.5, %v5364_v43 }
0x20fe   :  { %v5389_v60 = vmul.f32 %v5383_v29, %v5361_v36  ;;  %v5384_v12 = vmul.f32 %v5378_v42, %v5364_v43  ;;  %10369 = vtanh.f32 %v5400_v46 }
0x2100   :  { %v5390_v20 = vmul.f32 %v5384_v12, %v5364_v43  ;;  %v5395_v4 = vadd.f32 %v5389_v60, %v5361_v36 }
0x2102   :  { %v5396_v50 = vadd.f32 %v5390_v20, %v5364_v43  ;;  %v5401_v38 = vmul.f32 0.7978846, %v5395_v4 }
0x2104   :  { %v5402_v51 = vmul.f32 0.7978846, %v5396_v50  ;;  %10371 = vtanh.f32 %v5401_v38 }
0x2106   :  { %v10368_v27 = vpop.eup %10367  ;;  %10373 = vtanh.f32 %v5402_v51 }
0x2107   :  { %v5411_v63 = vadd.f32 1.0, %v10368_v27  ;;  %v10105_v27 = vld [vmem:[%s10579_s8 + $0x30] sm:$0xff]  }
0x2108   :  { %v10370_v45 = vpop.eup %10369  ;;  %9323 = vmatpush3.bf16.msra.mxu0 %v10105_v27 }
0x2109   :  { %v5412_v16 = vadd.f32 1.0, %v10370_v45  ;;  %v5417_v57 = vmul.f32 %v5411_v63, %v5369_v48  ;;  %9324 = vmatprep.subr.bf16.mxu0 %v10521_v6  ;;  %v10106_v63 = vld [vmem:[%s10579_s8 + $0x38] sm:$0xff]   ;;  %s10530_s8 = smov [#allocation2]  }
0x210b   :  { %v5418_v5 = vmul.f32 %v5412_v16, %v5370_v10 }
0x210c   :  { %9325 = vmatpush3.bf16.msra.mxu0 %v10106_v63 }
0x210d   :  { %v5422_v52 = vpack.c.bf16 %v5418_v5, %v5417_v57  ;;  %9708 = vmatprep.subr.bf16.mxu0 %v10523_v62 }
0x210e   :  { %v10372_v24 = vpop.eup %10371 }
0x210f   :  { %9315 = vmatmul.mubr.bf16.gmra.mrb[152].mxu1 %v5422_v52  ;;  %v5413_v30 = vadd.f32 1.0, %v10372_v24 }
0x2110   :  { %v10374_v0 = vpop.eup %10373  ;;  %9318 = vmatprep.mubr.msk.bf16.mxu1 %vm10522_vm3, %v10521_v6 }
0x2111   :  { %v5414_v41 = vadd.f32 1.0, %v10374_v0  ;;  %v5419_v26 = vmul.f32 %v5413_v30, %v5371_v3 }
0x2113   :  { %v5420_v18 = vmul.f32 %v5414_v41, %v5372_v2 }
0x2115   :  { %v5423_v28 = vpack.c.bf16 %v5420_v18, %v5419_v26 }
0x2117   :  { %9319 = vmatmul.mubr.bf16.gmra.mrb[156].mxu1 %v5423_v28 }
0x2118   :  { %9344 = vmatprep.mubr.msk.f32.mxu1 %vm10522_vm3, %v10521_v6 }
0x21a5   :  { %v5523_v44 = vpop.f32.mrb[148].mxu1 }
0x21a6   :  { %v5546_v8 = vadd.f32 %v5523_v44, %v12136_v61  ;;  %v9312_v40 = vpop.f32.mrb[149].mxu1 }
0x21a7   :  { %v5526_v35 = vpop.f32.mrb[150].mxu1 }
0x21a8   :  { %v12217_v39 = vadd.f32 %v8223_v53, %v5546_v8  ;;  %v5547_v59 = vadd.f32 %v5526_v35, %v12139_v7  ;;  %v9313_v22 = vpop.f32.mrb[151].mxu1 }
0x21aa   :  { %v12220_v14 = vadd.f32 %v8223_v53, %v5547_v59  ;;  %v5570_v17 = vsel %vm272_vm2, %v12217_v39, 0.0 }
0x21ab   :  { %5571 = vadd.xlane.f32.xlu0 %v5570_v17 }
0x21ac   :  { %v5573_v47 = vsel %vm272_vm2, %v12220_v14, 0.0 }
0x21ad   :  { %5574 = vadd.xlane.f32.xlu1 %v5573_v47 }
0x21e2   :  { %v5531_v58 = vpop.f32.mrb[152].mxu1 }
0x21e3   :  { %v5548_v61 = vadd.f32 %v5531_v58, %v12146_v15  ;;  %v9316_v13 = vpop.f32.mrb[153].mxu1 }
0x21e4   :  { %v5534_v11 = vpop.f32.mrb[154].mxu1  ;;  %v8226_v13 = vld [vmem:[%s10569_s29 + $0x3] ss:$0 sm:$0xff]  ;;  %s12804_s29 = sld [smem:[#allocation19_spill]] }
0x21e5   :  { %v12227_v32 = vadd.f32 %v8223_v53, %v5548_v61  ;;  %v5549_v7 = vadd.f32 %v5534_v11, %v12149_v55  ;;  %v9317_v31 = vpop.f32.mrb[155].mxu1 }
0x21e7   :  { %v12230_v36 = vadd.f32 %v8223_v53, %v5549_v7  ;;  %v5576_v33 = vsel %vm272_vm2, %v12227_v32, 0.0 }
0x21e8   :  { %5577 = vadd.xlane.f32.xlu0 %v5576_v33 }
0x21e9   :  { %v5579_v1 = vsel %vm272_vm2, %v12230_v36, 0.0 }
0x21ea   :  { %5580 = vadd.xlane.f32.xlu1 %v5579_v1  ;;  %v5539_v25 = vpop.f32.mrb[156].mxu1  ;;  %v8227_v1 = vld [vmem:[%s10574_s3 + $0x3] ss:$0 sm:$0xff]  ;;  %s12805_s3 = sld [smem:[#allocation18_spill]] }
0x21eb   :  { %v5550_v15 = vadd.f32 %v5539_v25, %v12156_v34  ;;  %v9320_v21 = vpop.f32.mrb[157].mxu1 }
0x21ec   :  { %v5542_v43 = vpop.f32.mrb[158].mxu1 }
0x21ed   :  { %v12237_v9 = vadd.f32 %v8223_v53, %v5550_v15  ;;  %v5551_v55 = vadd.f32 %v5542_v43, %v12159_v49  ;;  %v9321_v54 = vpop.f32.mrb[159].mxu1 }
0x21ef   :  { %v12240_v37 = vadd.f32 %v8223_v53, %v5551_v55  ;;  %v5582_v29 = vsel %vm272_vm2, %v12237_v9, 0.0 }
0x21f0   :  { %5583 = vadd.xlane.f32.xlu0 %v5582_v29 }
0x21f1   :  { %v5585_v42 = vsel %vm272_vm2, %v12240_v37, 0.0 }
0x21f2   :  { %5586 = vadd.xlane.f32.xlu1 %v5585_v42 }
0x2238   :  { %v5572_v34 = vpop.xlane.xlu0 %5571 }
0x2239   :  { %v5588_v46 = vmul.f32 0.03125, %v5572_v34 }
0x223a   :  { %v5575_v60 = vpop.xlane.xlu1 %5574 }
0x223b   :  { %v5594_v12 = vsub.f32 %v12217_v39, %v5588_v46  ;;  %v5589_v20 = vmul.f32 0.03125, %v5575_v60 }
0x223d   :  { %v5595_v49 = vsub.f32 %v12220_v14, %v5589_v20  ;;  %v5600_v4 = vmul.f32 %v5594_v12, %v5594_v12 }
0x223f   :  { %v5606_v50 = vsel %vm272_vm2, %v5600_v4, 0.0  ;;  %v5601_v38 = vmul.f32 %v5595_v49, %v5595_v49 }
0x2240   :  { %5607 = vadd.xlane.f32.xlu0 %v5606_v50 }
0x2241   :  { %v5609_v51 = vsel %vm272_vm2, %v5601_v38, 0.0 }
0x2242   :  { %5610 = vadd.xlane.f32.xlu1 %v5609_v51 }
0x2275   :  { %v5578_v45 = vpop.xlane.xlu0 %5577 }
0x2276   :  { %v5590_v48 = vmul.f32 0.03125, %v5578_v45 }
0x2277   :  { %v5581_v10 = vpop.xlane.xlu1 %5580 }
0x2278   :  { %v5596_v16 = vsub.f32 %v12227_v32, %v5590_v48  ;;  %v5591_v57 = vmul.f32 0.03125, %v5581_v10 }
0x227a   :  { %v5597_v5 = vsub.f32 %v12230_v36, %v5591_v57  ;;  %v5602_v52 = vmul.f32 %v5596_v16, %v5596_v16 }
0x227c   :  { %v5612_v24 = vsel %vm272_vm2, %v5602_v52, 0.0  ;;  %v5603_v30 = vmul.f32 %v5597_v5, %v5597_v5 }
0x227d   :  { %5613 = vadd.xlane.f32.xlu0 %v5612_v24  ;;  %v5584_v0 = vpop.xlane.xlu0 %5583 }
0x227e   :  { %v5592_v3 = vmul.f32 0.03125, %v5584_v0  ;;  %v5615_v2 = vsel %vm272_vm2, %v5603_v30, 0.0 }
0x227f   :  { %5616 = vadd.xlane.f32.xlu1 %v5615_v2  ;;  %v5587_v41 = vpop.xlane.xlu1 %5586 }
0x2280   :  { %v5598_v26 = vsub.f32 %v12237_v9, %v5592_v3  ;;  %v5593_v18 = vmul.f32 0.03125, %v5587_v41 }
0x2282   :  { %v5599_v28 = vsub.f32 %v12240_v37, %v5593_v18  ;;  %v5604_v44 = vmul.f32 %v5598_v26, %v5598_v26 }
0x2284   :  { %v5618_v53 = vsel %vm272_vm2, %v5604_v44, 0.0  ;;  %v5605_v8 = vmul.f32 %v5599_v28, %v5599_v28  ;;  %v8233_v44 = vld [vmem:[%s10584_s14 + $0x3] ss:$0 sm:$0xff]  ;;  %s7874_s14 = sshll.u32 %s10530_s8, 4  ;;  %s7875_s14 = int_to_ptr.vmem [resolvable:$true] %s7874_s14 }
0x2285   :  { %5619 = vadd.xlane.f32.xlu0 %v5618_v53  ;;  %p10470_p1 = scmp.lt.s32.totalorder %s7875_s14, %s7875_s14 }
0x2286   :  { %v5621_v40 = vsel %vm272_vm2, %v5605_v8, 0.0 }
0x2287   :  { %5622 = vadd.xlane.f32.xlu1 %v5621_v40 }
0x22cd   :  { %v5608_v35 = vpop.xlane.xlu0 %5607 }
0x22ce   :  { %v5624_v59 = vmul.f32 0.03125, %v5608_v35 }
0x22cf   :  { %v5611_v22 = vpop.xlane.xlu1 %5610 }
0x22d0   :  { %v5630_v17 = vadd.f32 1e-12, %v5624_v59  ;;  %v5625_v47 = vmul.f32 0.03125, %v5611_v22 }
0x22d2   :  { %10375 = vrsqrt.f32 %v5630_v17  ;;  %v5631_v58 = vadd.f32 1e-12, %v5625_v47 }
0x22d4   :  { %10377 = vrsqrt.f32 %v5631_v58 }
0x22dc   :  { %v10376_v61 = vpop.eup %10375 }
0x22dd   :  { %v5642_v11 = vmul.f32 %v10376_v61, %v5594_v12 }
0x22de   :  { %v10378_v7 = vpop.eup %10377 }
0x22df   :  { %v5654_v31 = vmul.f32 %v8226_v13, %v5642_v11  ;;  %v5643_v33 = vmul.f32 %v10378_v7, %v5595_v49 }
0x22e1   :  { %v5655_v25 = vmul.f32 %v8226_v13, %v5643_v33  ;;  %v5666_v15 = vadd.f32 %v8227_v1, %v5654_v31 }
0x22e3   :  { %v5667_v21 = vadd.f32 %v8227_v1, %v5655_v25 }
0x22e5   :  { %v5672_v43 = vpack.c.bf16 %v5667_v21, %v5666_v15 }
0x22e7   :  { %9327 = vmatmul.mubr.msk.bf16.vlgmr.msra.gmra.mrb[144].mxu0 %vm272_vm2, %v5672_v43 }
0x22e8   :  { %9330 = vmatprep.mubr.msk.bf16.mxu0 %vm10522_vm3, %v10521_v6 }
0x230a   :  { %v5614_v55 = vpop.xlane.xlu0 %5613 }
0x230b   :  { %v5626_v54 = vmul.f32 0.03125, %v5614_v55 }
0x230c   :  { %v5617_v29 = vpop.xlane.xlu1 %5616 }
0x230d   :  { %v5632_v42 = vadd.f32 1e-12, %v5626_v54  ;;  %v5627_v34 = vmul.f32 0.03125, %v5617_v29 }
0x230f   :  { %10379 = vrsqrt.f32 %v5632_v42  ;;  %v5633_v46 = vadd.f32 1e-12, %v5627_v34 }
0x2311   :  { %10381 = vrsqrt.f32 %v5633_v46 }
0x2312   :  { %v5620_v60 = vpop.xlane.xlu0 %5619 }
0x2313   :  { %v5628_v12 = vmul.f32 0.03125, %v5620_v60 }
0x2314   :  { %v5623_v20 = vpop.xlane.xlu1 %5622 }
0x2315   :  { %v5634_v49 = vadd.f32 1e-12, %v5628_v12  ;;  %v5629_v4 = vmul.f32 0.03125, %v5623_v20 }
0x2317   :  { %10383 = vrsqrt.f32 %v5634_v49  ;;  %v5635_v50 = vadd.f32 1e-12, %v5629_v4 }
0x2319   :  { %v10380_v38 = vpop.eup %10379  ;;  %10385 = vrsqrt.f32 %v5635_v50 }
0x231a   :  { %v5644_v51 = vmul.f32 %v10380_v38, %v5596_v16 }
0x231b   :  { %v10382_v27 = vpop.eup %10381 }
0x231c   :  { %v5645_v63 = vmul.f32 %v10382_v27, %v5597_v5  ;;  %v5656_v45 = vmul.f32 %v8226_v13, %v5644_v51 }
0x231e   :  { %v5657_v48 = vmul.f32 %v8226_v13, %v5645_v63  ;;  %v5668_v10 = vadd.f32 %v8227_v1, %v5656_v45 }
0x2320   :  { %v5669_v57 = vadd.f32 %v8227_v1, %v5657_v48 }
0x2321   :  { %v10384_v52 = vpop.eup %10383 }
0x2322   :  { %v5646_v24 = vmul.f32 %v10384_v52, %v5598_v26  ;;  %v5673_v30 = vpack.c.bf16 %v5669_v57, %v5668_v10 }
0x2323   :  { %v10386_v0 = vpop.eup %10385 }
0x2324   :  { %v5647_v3 = vmul.f32 %v10386_v0, %v5599_v28  ;;  %9331 = vmatmul.mubr.msk.bf16.gmra.mrb[148].mxu0 %vm272_vm2, %v5673_v30  ;;  %v5658_v2 = vmul.f32 %v8226_v13, %v5646_v24 }
0x2325   :  { %9334 = vmatprep.mubr.msk.bf16.mxu0 %vm10522_vm3, %v10521_v6 }
0x2326   :  { %v5659_v41 = vmul.f32 %v8226_v13, %v5647_v3  ;;  %v5670_v16 = vadd.f32 %v8227_v1, %v5658_v2 }
0x2328   :  { %v5671_v18 = vadd.f32 %v8227_v1, %v5659_v41 }
0x232a   :  { %v5674_v5 = vpack.c.bf16 %v5671_v18, %v5670_v16 }
0x232c   :  { %9335 = vmatmul.mubr.msk.bf16.gmra.mrb[152].mxu0 %vm272_vm2, %v5674_v5 }
0x232d   :  { %9359 = vmatprep.mubr.msk.f32.mxu0 %vm10522_vm3, %v10521_v6 }
0x23ba   :  { %v5743_v26 = vpop.f32.mrb[144].mxu0 }
0x23bb   :  { %v9328_v53 = vpop.f32.mrb[145].mxu0  ;;  %v5744_v28 = vadd.f32 %v8233_v44, %v5743_v26 }
0x23bc   :  { %v5746_v8 = vpop.f32.mrb[146].mxu0 }
0x23bd   :  { %v5747_v40 = vadd.f32 %v8233_v44, %v5746_v8  ;;  %v9329_v35 = vpop.f32.mrb[147].mxu0 }
0x23bf   :  { %v12274_v59 = vpack.i.bf16 %v5747_v40, %v5744_v28 }
0x23c1   :  { %9997 = vrot.lane.b32.xlu0 %v12274_v59, %s10524_s0 }
0x23f7   :  { %v5751_v22 = vpop.f32.mrb[148].mxu0 }
0x23f8   :  { %v12278_v17 = vadd.f32 %v8233_v44, %v5751_v22  ;;  %v9332_v47 = vpop.f32.mrb[149].mxu0 }
0x23f9   :  { %v5754_v58 = vpop.f32.mrb[150].mxu0 }
0x23fa   :  { %6014 = vrot.lane.b32.xlu0 %v12278_v17, %s10525_s28  ;;  %5773 = vrot.lane.b32.xlu1 %v12278_v17, %s10524_s0  ;;  %v9333_v61 = vpop.f32.mrb[151].mxu0  ;;  %v12287_v11 = vadd.f32 %v8233_v44, %v5754_v58 }
0x23fe   :  { %6004 = vrot.lane.b32.xlu0 %v5744_v28, %s10526_s1  ;;  %10002 = vrot.lane.b32.xlu1 %v12274_v59, %s10525_s28 }
0x23ff   :  { %v5759_v13 = vpop.f32.mrb[152].mxu0 }
0x2400   :  { %v12289_v7 = vadd.f32 %v8233_v44, %v5759_v13  ;;  %v9336_v31 = vpop.f32.mrb[153].mxu0 }
0x2401   :  { %v5762_v33 = vpop.f32.mrb[154].mxu0 }
0x2402   :  { %6008 = vrot.lane.b32.xlu0 %v12278_v17, %s10526_s1  ;;  %v9337_v1 = vpop.f32.mrb[155].mxu0  ;;  %v12295_v25 = vpack.i.bf16 %v12289_v7, %v12287_v11  ;;  %v12302_v15 = vadd.f32 %v8233_v44, %v5762_v33 }
0x2404   :  { %10007 = vrot.lane.b32.xlu1 %v12295_v25, %s10524_s0 }
0x2406   :  { %10012 = vrot.lane.b32.xlu0 %v12295_v25, %s10525_s28 }
0x2408   :  { %6006 = vrot.lane.b32.xlu1 %v5747_v40, %s10526_s1 }
0x240a   :  { %6498 = vrot.lane.b32.xlu0 %v12287_v11, %s10526_s1 }
0x240c   :  { %6267 = vrot.lane.b32.xlu1 %v12302_v15, %s10524_s0 }
0x2410   :  { %6508 = vrot.lane.b32.xlu1 %v12302_v15, %s10525_s28 }
0x2414   :  { %10017 = vrot.lane.b32.xlu1 %v12274_v59, %s10527_s2 }
0x2433   :  { %v9998_v21 = vpop.permute.xlu0 %9997 }
0x2434   :  { %v10000_v43 = vunpack.i.h.bf16 %v9998_v21  ;;  %v9999_v55 = vunpack.i.l.bf16 %v9998_v21 }
0x2436   :  { %v9705_v54 = vpack.c.bf16 %v10000_v43, %v9999_v55 }
0x2438   :  { %9707 = vmatpush3.bf16.xpose.msk.msra.mxu1 %vm10849_vm5, %v9705_v54 }
0x2439   :  { %9342 = vmatprep.subr.mxu1 %v10521_v6 }
0x246c   :  { %v5774_v29 = vpop.permute.xlu1 %5773  ;;  %v6015_v60 = vpop.permute.xlu0 %6014 }
0x246d   :  { %9343 = vmatpush3.xpose.msk.msra.mxu1 %vm477_vm4, %v5774_v29 }
0x246e   :  { %9711 = vmatprep.subr.bf16.mxu1 %v10523_v62 }
0x2470   :  { %9345 = vmatmul.mubr.msk.f32.vlgmr.msra.gmra.mrb[134].mxu1 %vm477_vm4, %v5744_v28  ;;  %v10003_v42 = vpop.permute.xlu1 %10002  ;;  %v6005_v49 = vpop.permute.xlu0 %6004 }
0x2471   :  { %v10005_v34 = vunpack.i.h.bf16 %v10003_v42  ;;  %v10004_v46 = vunpack.i.l.bf16 %v10003_v42  ;;  %9347 = vmatprep.mubr.msk.f32.mxu1 %vm10522_vm3, %v10521_v6 }
0x2473   :  { %v9712_v12 = vpack.c.bf16 %v10005_v34, %v10004_v46 }
0x2474   :  { %9348 = vmatmul.mubr.msk.f32.gmra.mrb[160].mxu1 %vm477_vm4, %v5747_v40  ;;  %v6009_v51 = vpop.permute.xlu0 %6008 }
0x2475   :  { %9714 = vmatpush3.bf16.xpose.msk.msra.mxu1 %vm10849_vm5, %v9712_v12  ;;  %9350 = vmatprep.mubr.msk.f32.mxu1 %vm10522_vm3, %v10521_v6 }
0x2476   :  { %v10008_v20 = vpop.permute.xlu1 %10007  ;;  %9372 = vmatprep.subr.mxu1 %v10521_v6 }
0x2477   :  { %v10010_v50 = vunpack.i.h.bf16 %v10008_v20  ;;  %v10009_v38 = vunpack.i.l.bf16 %v10008_v20 }
0x2478   :  { %9351 = vmatmul.mubr.msk.f32.gmra.mrb[162].mxu1 %vm477_vm4, %v12278_v17  ;;  %v10013_v48 = vpop.permute.xlu0 %10012 }
0x2479   :  { %9374 = vmatprep.mubr.msk.f32.mxu1 %vm10522_vm3, %v10521_v6  ;;  %v9719_v63 = vpack.c.bf16 %v10010_v50, %v10009_v38  ;;  %v10015_v57 = vunpack.i.h.bf16 %v10013_v48  ;;  %v10014_v52 = vunpack.i.l.bf16 %v10013_v48 }
0x247a   :  { %v6007_v4 = vpop.permute.xlu1 %6006 }
0x247b   :  { %v9726_v3 = vpack.c.bf16 %v10015_v57, %v10014_v52 }
0x247c   :  { %v6499_v23 = vpop.permute.xlu0 %6498 }
0x247d   :  { %9373 = vmatpush3.xpose.msk.msra.mxu1 %vm477_vm4, %v6015_v60 }
0x247e   :  { %v6268_v27 = vpop.permute.xlu1 %6267  ;;  %9718 = vmatprep.subr.bf16.mxu1 %v10523_v62 }
0x2480   :  { %9375 = vmatmul.mubr.msk.f32.vlgmr.msra.gmra.mrb[164].mxu1 %vm477_vm4, %v6005_v49 }
0x2481   :  { %9721 = vmatpush3.bf16.xpose.msk.msra.mxu1 %vm10849_vm5, %v9719_v63  ;;  %9377 = vmatprep.mubr.msk.f32.mxu1 %vm10522_vm3, %v10521_v6 }
0x2482   :  { %v6509_v45 = vpop.permute.xlu1 %6508  ;;  %9402 = vmatprep.subr.mxu1 %v10521_v6 }
0x2484   :  { %9378 = vmatmul.mubr.msk.f32.gmra.mrb[166].mxu1 %vm477_vm4, %v6007_v4 }
0x2485   :  { %9380 = vmatprep.mubr.msk.f32.mxu1 %vm10522_vm3, %v10521_v6 }
0x2486   :  { %v10018_v10 = vpop.permute.xlu1 %10017 }
0x2487   :  { %v10020_v24 = vunpack.i.h.bf16 %v10018_v10  ;;  %v10019_v30 = vunpack.i.l.bf16 %v10018_v10 }
0x2488   :  { %9381 = vmatmul.mubr.msk.f32.gmra.mrb[168].mxu1 %vm477_vm4, %v6009_v51 }
0x2489   :  { %v9709_v0 = vpack.c.bf16 %v10020_v24, %v10019_v30  ;;  %9403 = vmatpush3.xpose.msk.msra.mxu1 %vm477_vm4, %v6268_v27  ;;  %9404 = vmatprep.mubr.msk.f32.mxu1 %vm10522_vm3, %v10521_v6 }
0x248a   :  { %9725 = vmatprep.subr.bf16.mxu1 %v10523_v62 }
0x248b   :  { %9710 = vmatpush3.bf16.msra.mxu0 %v9709_v0 }
0x248c   :  { %9405 = vmatmul.mubr.msk.f32.vlgmr.msra.gmra.mrb[170].mxu1 %vm477_vm4, %v12287_v11  ;;  %9357 = vmatprep.subr.mxu0 %v10521_v6 }
0x248d   :  { %9728 = vmatpush3.bf16.xpose.msk.msra.mxu1 %vm10849_vm5, %v9726_v3  ;;  %9407 = vmatprep.mubr.msk.f32.mxu1 %vm10522_vm3, %v10521_v6 }
0x248e   :  { %9432 = vmatprep.subr.mxu1 %v10521_v6 }
0x2490   :  { %9408 = vmatmul.mubr.msk.f32.gmra.mrb[172].mxu1 %vm477_vm4, %v12289_v7 }
0x2491   :  { %9410 = vmatprep.mubr.msk.f32.mxu1 %vm10522_vm3, %v10521_v6 }
0x2494   :  { %9411 = vmatmul.mubr.msk.f32.gmra.mrb[174].mxu1 %vm477_vm4, %v12302_v15 }
0x2495   :  { %9433 = vmatpush3.xpose.msk.msra.mxu1 %vm477_vm4, %v6509_v45  ;;  %9434 = vmatprep.mubr.msk.f32.mxu1 %vm10522_vm3, %v10521_v6 }
0x2496   :  { %9458 = vmatprep.subr.bf16.mxu1 %v10521_v6 }
0x2498   :  { %9435 = vmatmul.mubr.msk.f32.vlgmr.msra.gmra.mrb[176].mxu1 %vm477_vm4, %v6499_v23 }
0x2499   :  { %9437 = vmatprep.mubr.msk.f32.mxu1 %vm10522_vm3, %v10521_v6 }
0x2543   :  { %v5853_v2 = vpop.f32.mrb[134].mxu1 }
0x2544   :  { %v5867_v41 = vmul.f32 0.25, %v5853_v2  ;;  %v9346_v16 = vpop.f32.mrb[135].mxu1 }
0x2546   :  { %v5870_v18 = vsel %vm138_vm6, %v5867_v41, -1e+30 }
0x2547   :  { %v5858_v5 = vpop.f32.mrb[160].mxu1  ;;  %v5873_v44 = vsel %vm576_vm7, %v5870_v18, -inf }
0x2548   :  { %v5868_v26 = vmul.f32 0.25, %v5858_v5  ;;  %5874 = vmax.xlane.f32.xlu1 %v5873_v44  ;;  %v9349_v53 = vpop.f32.mrb[161].mxu1 }
0x254a   :  { %v5871_v8 = vsel %vm138_vm6, %v5868_v26, -1e+30 }
0x254b   :  { %v5863_v28 = vpop.f32.mrb[162].mxu1  ;;  %v5876_v40 = vsel %vm576_vm7, %v5871_v8, -inf }
0x254c   :  { %v5869_v35 = vmul.f32 0.25, %v5863_v28  ;;  %5877 = vmax.xlane.f32.xlu0 %v5876_v40  ;;  %v9352_v22 = vpop.f32.mrb[163].mxu1 }
0x254e   :  { %v5872_v47 = vsel %vm138_vm6, %v5869_v35, -1e+30 }
0x254f   :  { %v5879_v58 = vsel %vm576_vm7, %v5872_v47, -inf }
0x2550   :  { %5880 = vmax.xlane.f32.xlu0 %v5879_v58 }
0x2553   :  { %v6094_v61 = vpop.f32.mrb[164].mxu1 }
0x2554   :  { %v6108_v13 = vmul.f32 0.25, %v6094_v61  ;;  %v9376_v11 = vpop.f32.mrb[165].mxu1 }
0x2556   :  { %v6111_v31 = vsel %vm138_vm6, %v6108_v13, -1e+30 }
0x2557   :  { %v6099_v33 = vpop.f32.mrb[166].mxu1  ;;  %v6114_v1 = vsel %vm576_vm7, %v6111_v31, -inf }
0x2558   :  { %v6109_v21 = vmul.f32 0.25, %v6099_v33  ;;  %6115 = vmax.xlane.f32.xlu1 %v6114_v1  ;;  %v9379_v43 = vpop.f32.mrb[167].mxu1 }
0x255a   :  { %v6112_v55 = vsel %vm138_vm6, %v6109_v21, -1e+30 }
0x255b   :  { %v6104_v54 = vpop.f32.mrb[168].mxu1  ;;  %v6117_v29 = vsel %vm576_vm7, %v6112_v55, -inf }
0x255c   :  { %v6110_v42 = vmul.f32 0.25, %v6104_v54  ;;  %6118 = vmax.xlane.f32.xlu0 %v6117_v29  ;;  %v9382_v34 = vpop.f32.mrb[169].mxu1 }
0x255e   :  { %v12384_v46 = vsel %vm138_vm6, %v6110_v42, -1e+30 }
0x255f   :  { %v6347_v60 = vpop.f32.mrb[170].mxu1  ;;  %v6120_v12 = vsel %vm576_vm7, %v12384_v46, -inf }
0x2560   :  { %6121 = vmax.xlane.f32.xlu1 %v6120_v12  ;;  %v9406_v20 = vpop.f32.mrb[171].mxu1  ;;  %v6361_v24 = vmul.f32 0.25, %v6347_v60 }
0x2562   :  { %v12406_v30 = vsel %vm138_vm6, %v6361_v24, -1e+30 }
0x2563   :  { %v6352_v49 = vpop.f32.mrb[172].mxu1  ;;  %v6367_v3 = vsel %vm576_vm7, %v12406_v30, -inf }
0x2564   :  { %v6362_v4 = vmul.f32 0.25, %v6352_v49  ;;  %v9409_v50 = vpop.f32.mrb[173].mxu1 }
0x2566   :  { %v12390_v38 = vsel %vm138_vm6, %v6362_v4, -1e+30 }
0x2567   :  { %v6357_v51 = vpop.f32.mrb[174].mxu1  ;;  %v6370_v27 = vsel %vm576_vm7, %v12390_v38, -inf }
0x2568   :  { %6371 = vmax.xlane.f32.xlu1 %v6370_v27  ;;  %v9412_v63 = vpop.f32.mrb[175].mxu1  ;;  %v6363_v0 = vmul.f32 0.25, %v6357_v51 }
0x256a   :  { %v12412_v23 = vsel %vm138_vm6, %v6363_v0, -1e+30 }
0x256b   :  { %v6588_v45 = vpop.f32.mrb[176].mxu1  ;;  %v6373_v2 = vsel %vm576_vm7, %v12412_v23, -inf }
0x256c   :  { %v6602_v48 = vmul.f32 0.25, %v6588_v45  ;;  %v9436_v10 = vpop.f32.mrb[177].mxu1 }
0x256e   :  { %v12396_v57 = vsel %vm138_vm6, %v6602_v48, -1e+30 }
0x256f   :  { %v6608_v52 = vsel %vm576_vm7, %v12396_v57, -inf }
0x2570   :  { %6609 = vmax.xlane.f32.xlu1 %v6608_v52 }
0x2572   :  { %5910 = vrot.lane.b32.xlu0 %v12278_v17, %s10527_s2 }
0x2581   :  { %6151 = vrot.lane.b32.xlu1 %v12278_v17, %s10528_s7 }
0x2591   :  { %6368 = vmax.xlane.f32.xlu0 %v6367_v3 }
0x2595   :  { %6374 = vmax.xlane.f32.xlu0 %v6373_v2 }
0x25ab   :  { %10022 = vrot.lane.b32.xlu0 %v12274_v59, %s10528_s7 }
0x25d5   :  { %v5875_v17 = vpop.xlane.xlu1 %5874 }
0x25d6   :  { %v5882_v41 = vsub.f32 %v5870_v18, %v5875_v17 }
0x25d8   :  { %v5885_v16 = vmul.f32 1.442695, %v5882_v41 }
0x25d9   :  { %v5878_v5 = vpop.xlane.xlu0 %5877 }
0x25da   :  { %10387 = vpow2.f32 %v5885_v16  ;;  %v5883_v44 = vsub.f32 %v5871_v8, %v5878_v5 }
0x25dc   :  { %v5887_v26 = vmul.f32 1.442695, %v5883_v44 }
0x25dd   :  { %v5881_v53 = vpop.xlane.xlu0 %5880 }
0x25de   :  { %10389 = vpow2.f32 %v5887_v26  ;;  %v5884_v28 = vsub.f32 %v5872_v47, %v5881_v53 }
0x25e0   :  { %v5889_v40 = vmul.f32 1.442695, %v5884_v28 }
0x25e2   :  { %10391 = vpow2.f32 %v5889_v40 }
0x25e4   :  { %v12418_v35 = vpop.eup %10387 }
0x25e5   :  { %v6116_v22 = vpop.xlane.xlu1 %6115  ;;  %v5891_v58 = vsel %vm576_vm7, %v12418_v35, 0.0 }
0x25e6   :  { %v6123_v61 = vsub.f32 %v6111_v31, %v6116_v22  ;;  %5892 = vadd.xlane.f32.xlu0 %v5891_v58 }
0x25e8   :  { %v12422_v59 = vpop.eup %10389  ;;  %v6126_v18 = vmul.f32 1.442695, %v6123_v61 }
0x25e9   :  { %v6119_v13 = vpop.xlane.xlu0 %6118  ;;  %v5894_v8 = vsel %vm576_vm7, %v12422_v59, 0.0 }
0x25ea   :  { %10393 = vpow2.f32 %v6126_v18  ;;  %v6124_v11 = vsub.f32 %v6112_v55, %v6119_v13  ;;  %5895 = vadd.xlane.f32.xlu1 %v5894_v8 }
0x25ec   :  { %v12426_v47 = vpop.eup %10391  ;;  %v6128_v33 = vmul.f32 1.442695, %v6124_v11 }
0x25ed   :  { %v5911_v1 = vpop.permute.xlu0 %5910  ;;  %v6122_v21 = vpop.xlane.xlu1 %6121  ;;  %v5897_v43 = vsel %vm576_vm7, %v12426_v47, 0.0 }
0x25ee   :  { %10395 = vpow2.f32 %v6128_v33  ;;  %v6125_v31 = vsub.f32 %v12384_v46, %v6122_v21  ;;  %9358 = vmatpush3.msra.mxu0 %v5911_v1  ;;  %5898 = vadd.xlane.f32.xlu0 %v5897_v43 }
0x25ef   :  { %9715 = vmatprep.subr.bf16.mxu0 %v10523_v62 }
0x25f0   :  { %v6130_v54 = vmul.f32 1.442695, %v6125_v31 }
0x25f2   :  { %10397 = vpow2.f32 %v6130_v54 }
0x25f4   :  { %v12432_v29 = vpop.eup %10393 }
0x25f5   :  { %v6372_v55 = vpop.xlane.xlu1 %6371  ;;  %v6132_v42 = vsel %vm576_vm7, %v12432_v29, 0.0 }
0x25f6   :  { %v6377_v34 = vsub.f32 %v12390_v38, %v6372_v55  ;;  %6133 = vadd.xlane.f32.xlu1 %v6132_v42 }
0x25f8   :  { %v12437_v60 = vpop.eup %10395  ;;  %v6381_v12 = vmul.f32 1.442695, %v6377_v34 }
0x25f9   :  { %v6135_v46 = vsel %vm576_vm7, %v12437_v60, 0.0 }
0x25fa   :  { %10399 = vpow2.f32 %v6381_v12  ;;  %6136 = vadd.xlane.f32.xlu0 %v6135_v46 }
0x25fc   :  { %v12441_v20 = vpop.eup %10397 }
0x25fd   :  { %v6138_v49 = vsel %vm576_vm7, %v12441_v20, 0.0  ;;  %v6610_v10 = vpop.xlane.xlu1 %6609 }
0x25fe   :  { %6139 = vadd.xlane.f32.xlu0 %v6138_v49  ;;  %v6617_v52 = vsub.f32 %v12396_v57, %v6610_v10 }
0x2600   :  { %v6620_v0 = vmul.f32 1.442695, %v6617_v52 }
0x2601   :  { %v6152_v41 = vpop.permute.xlu1 %6151 }
0x2604   :  { %v12445_v4 = vpop.eup %10399 }
0x2605   :  { %v6388_v50 = vsel %vm576_vm7, %v12445_v4, 0.0 }
0x2606   :  { %6389 = vadd.xlane.f32.xlu1 %v6388_v50 }
0x2617   :  { %6404 = vrot.lane.b32.xlu1 %v12302_v15, %s10527_s2 }
0x261b   :  { %10032 = vrot.lane.b32.xlu1 %v12295_v25, %s10528_s7 }
0x261e   :  { %v6369_v38 = vpop.xlane.xlu0 %6368 }
0x261f   :  { %v6376_v51 = vsub.f32 %v12406_v30, %v6369_v38 }
0x2621   :  { %v6379_v27 = vmul.f32 1.442695, %v6376_v51 }
0x2622   :  { %v6375_v63 = vpop.xlane.xlu0 %6374 }
0x2623   :  { %10401 = vpow2.f32 %v6379_v27  ;;  %v6378_v45 = vsub.f32 %v12412_v23, %v6375_v63 }
0x2625   :  { %v6383_v48 = vmul.f32 1.442695, %v6378_v45 }
0x2626   :  { %v10023_v57 = vpop.permute.xlu0 %10022 }
0x2627   :  { %10403 = vpow2.f32 %v6383_v48  ;;  %v10025_v26 = vunpack.i.h.bf16 %v10023_v57  ;;  %v10024_v53 = vunpack.i.l.bf16 %v10023_v57  ;;  %v10108_v57 = vld [vmem:[%s10589_s19 + $0x38] sm:$0xff]  }
0x2628   :  { %10405 = vpow2.f32 %v6620_v0 }
0x2629   :  { %v9716_v40 = vpack.c.bf16 %v10025_v26, %v10024_v53 }
0x262d   :  { %v12456_v24 = vpop.eup %10401 }
0x262e   :  { %v6385_v3 = vsel %vm576_vm7, %v12456_v24, 0.0 }
0x262f   :  { %6386 = vadd.xlane.f32.xlu0 %v6385_v3 }
0x2631   :  { %v12460_v2 = vpop.eup %10403 }
0x2632   :  { %v6391_v30 = vsel %vm576_vm7, %v12460_v2, 0.0  ;;  %v12464_v23 = vpop.eup %10405 }
0x2633   :  { %6392 = vadd.xlane.f32.xlu0 %v6391_v30  ;;  %v6626_v17 = vsel %vm576_vm7, %v12464_v23, 0.0 }
0x263f   :  { %6627 = vadd.xlane.f32.xlu1 %v6626_v17 }
0x2649   :  { %10027 = vrot.lane.b32.xlu0 %v12295_v25, %s10527_s2 }
0x264d   :  { %6502 = vrot.lane.b32.xlu0 %v12302_v15, %s10526_s1 }
0x2650   :  { %6645 = vrot.lane.b32.xlu1 %v12302_v15, %s10528_s7 }
0x2654   :  { %6500 = vrot.lane.b32.xlu1 %v12289_v7, %s10526_s1 }
0x2673   :  { %v5893_v16 = vpop.xlane.xlu0 %5892 }
0x2674   :  { %10407 = vrcp.f32 %v5893_v16 }
0x2677   :  { %v5896_v5 = vpop.xlane.xlu1 %5895 }
0x2678   :  { %10409 = vrcp.f32 %v5896_v5 }
0x267b   :  { %v5899_v44 = vpop.xlane.xlu0 %5898 }
0x267c   :  { %10411 = vrcp.f32 %v5899_v44 }
0x267e   :  { %v10408_v25 = vpop.eup %10407 }
0x267f   :  { %v5903_v28 = vmul.f32 %v10408_v25, %v12418_v35 }
0x2681   :  { %9360 = vmatmul.mubr.msk.f32.vlgmr.msra.gmra.mrb[130].mxu0 %vm576_vm7, %v5903_v28 }
0x2682   :  { %v10410_v15 = vpop.eup %10409  ;;  %9717 = vmatpush3.bf16.msra.mxu0 %v9716_v40  ;;  %9362 = vmatprep.mubr.msk.f32.mxu0 %vm10522_vm3, %v10521_v6 }
0x2683   :  { %v6134_v7 = vpop.xlane.xlu1 %6133  ;;  %9387 = vmatprep.subr.mxu0 %v10521_v6  ;;  %v5904_v22 = vmul.f32 %v10410_v15, %v12422_v59 }
0x2684   :  { %10413 = vrcp.f32 %v6134_v7 }
0x2685   :  { %9363 = vmatmul.mubr.msk.f32.gmra.mrb[156].mxu0 %vm576_vm7, %v5904_v22 }
0x2686   :  { %v10412_v58 = vpop.eup %10411  ;;  %9388 = vmatpush3.msra.mxu0 %v6152_v41  ;;  %9365 = vmatprep.mubr.msk.f32.mxu0 %vm10522_vm3, %v10521_v6 }
0x2687   :  { %v6137_v35 = vpop.xlane.xlu0 %6136  ;;  %v5905_v61 = vmul.f32 %v10412_v58, %v12426_v47  ;;  %9722 = vmatprep.subr.bf16.mxu0 %v10523_v62 }
0x2688   :  { %10415 = vrcp.f32 %v6137_v35 }
0x2689   :  { %9366 = vmatmul.mubr.msk.f32.gmra.mrb[158].mxu0 %vm576_vm7, %v5905_v61 }
0x268a   :  { %9389 = vmatprep.mubr.msk.f32.mxu0 %vm10522_vm3, %v10521_v6 }
0x268b   :  { %v6140_v59 = vpop.xlane.xlu0 %6139 }
0x268c   :  { %10417 = vrcp.f32 %v6140_v59 }
0x268e   :  { %v10414_v18 = vpop.eup %10413 }
0x268f   :  { %v6144_v13 = vmul.f32 %v10414_v18, %v12432_v29 }
0x2691   :  { %9390 = vmatmul.mubr.msk.f32.vlgmr.msra.gmra.mrb[160].mxu0 %vm576_vm7, %v6144_v13 }
0x2692   :  { %v10416_v8 = vpop.eup %10415  ;;  %9392 = vmatprep.mubr.msk.f32.mxu0 %vm10522_vm3, %v10521_v6 }
0x2693   :  { %v6145_v11 = vmul.f32 %v10416_v8, %v12437_v60  ;;  %v6390_v1 = vpop.xlane.xlu1 %6389 }
0x2695   :  { %9393 = vmatmul.mubr.msk.f32.gmra.mrb[162].mxu0 %vm576_vm7, %v6145_v11 }
0x2696   :  { %v10418_v47 = vpop.eup %10417  ;;  %9395 = vmatprep.mubr.msk.f32.mxu0 %vm10522_vm3, %v10521_v6 }
0x2697   :  { %v6146_v33 = vmul.f32 %v10418_v47, %v12441_v20  ;;  %v6405_v43 = vpop.permute.xlu1 %6404 }
0x2699   :  { %9396 = vmatmul.mubr.msk.f32.gmra.mrb[164].mxu0 %vm576_vm7, %v6146_v33 }
0x269a   :  { %9419 = vmatprep.mubr.msk.f32.mxu0 %vm10522_vm3, %v10521_v6 }
0x269b   :  { %v10033_v42 = vpop.permute.xlu1 %10032 }
0x269c   :  { %v10035_v12 = vunpack.i.h.bf16 %v10033_v42  ;;  %v10034_v46 = vunpack.i.l.bf16 %v10033_v42 }
0x269e   :  { %v9730_v38 = vpack.c.bf16 %v10035_v12, %v10034_v46 }
0x26bc   :  { %v6387_v21 = vpop.xlane.xlu0 %6386 }
0x26bd   :  { %10419 = vrcp.f32 %v6387_v21 }
0x26be   :  { %10421 = vrcp.f32 %v6390_v1 }
0x26c0   :  { %v6393_v31 = vpop.xlane.xlu0 %6392 }
0x26c1   :  { %10423 = vrcp.f32 %v6393_v31 }
0x26c4   :  { %v10028_v54 = vpop.permute.xlu0 %10027 }
0x26c5   :  { %v10030_v29 = vunpack.i.h.bf16 %v10028_v54  ;;  %v10029_v55 = vunpack.i.l.bf16 %v10028_v54 }
0x26c7   :  { %v9723_v34 = vpack.c.bf16 %v10030_v29, %v10029_v55  ;;  %v10420_v60 = vpop.eup %10419 }
0x26c8   :  { %v6397_v20 = vmul.f32 %v10420_v60, %v12456_v24  ;;  %v10422_v50 = vpop.eup %10421  ;;  %v6503_v10 = vpop.permute.xlu0 %6502  ;;  %v10107_v24 = vld [vmem:[%s10589_s19 + $0x30] sm:$0xff]   ;;  %s10465_s19 = scalar_lea.vmem %s7875_s14, 32 }
0x26c9   :  { %9724 = vmatpush3.bf16.msra.mxu0 %v9723_v34  ;;  %v6398_v27 = vmul.f32 %v10422_v50, %v12445_v4  ;;  %9459 = vmatpush3.bf16.msra.mxu1 %v10107_v24  ;;  %p10466_p0 = scmp.ne.s32.totalorder %s7875_s14, %s10465_s19  ;;  %p10471_p2 = scmp.lt.s32.totalorder %s10465_s19, %s10465_s19 }
0x26ca   :  { %9417 = vmatprep.subr.mxu0 %v10521_v6  ;;  %9460 = vmatprep.subr.bf16.mxu1 %v10521_v6 }
0x26cb   :  { %v10424_v63 = vpop.eup %10423  ;;  %p10472_p3 = por %p10471_p2, %p10470_p1 }
0x26cc   :  { %v6628_v49 = vpop.xlane.xlu1 %6627  ;;  %v6399_v48 = vmul.f32 %v10424_v63, %v12460_v2 }
0x26cd   :  { %10425 = vrcp.f32 %v6628_v49  ;;  %9418 = vmatpush3.msra.mxu0 %v6405_v43  ;;  %9461 = vmatpush3.bf16.msra.mxu1 %v10108_v57  ;;  %p10473_p4 = pnand %p10472_p3, %p10466_p0 }
0x26ce   :  { %9420 = vmatmul.mubr.msk.f32.vlgmr.msra.gmra.mrb[166].mxu0 %vm576_vm7, %v6397_v20  ;;  %9729 = vmatprep.subr.bf16.mxu0 %v10523_v62 }
0x26cf   :  { %9731 = vmatpush3.bf16.msra.mxu0 %v9730_v38  ;;  %9422 = vmatprep.mubr.msk.f32.mxu0 %vm10522_vm3, %v10521_v6 }
0x26d0   :  { %v6646_v51 = vpop.permute.xlu1 %6645  ;;  %9447 = vmatprep.subr.mxu0 %v10521_v6  ;;  %9490 = vmatprep.subr.bf16.mxu1 %v10521_v6 }
0x26d2   :  { %9423 = vmatmul.mubr.msk.f32.gmra.mrb[168].mxu0 %vm576_vm7, %v6398_v27 }
0x26d3   :  { %9448 = vmatpush3.msra.mxu0 %v6646_v51  ;;  %9425 = vmatprep.mubr.msk.f32.mxu0 %vm10522_vm3, %v10521_v6  ;;  %v12555_v51 = vld [vmem:[%s10594_s24 + $0x3] ss:$0 sm:$0xff] }
0x26d4   :  { %v6501_v45 = vpop.permute.xlu1 %6500  ;;  %9474 = vmatprep.subr.bf16.mxu0 %v10521_v6 }
0x26d5   :  { %9438 = vmatmul.mubr.msk.f32.gmra.mrb[178].mxu1 %vm477_vm4, %v6501_v45 }
0x26d6   :  { %9426 = vmatmul.mubr.msk.f32.gmra.mrb[170].mxu0 %vm576_vm7, %v6399_v48  ;;  %9440 = vmatprep.mubr.msk.f32.mxu1 %vm10522_vm3, %v10521_v6 }
0x26d7   :  { %v10426_v4 = vpop.eup %10425  ;;  %9449 = vmatprep.mubr.msk.f32.mxu0 %vm10522_vm3, %v10521_v6 }
0x26d8   :  { %v6638_v52 = vmul.f32 %v10426_v4, %v12464_v23 }
0x26d9   :  { %9441 = vmatmul.mubr.msk.f32.gmra.mrb[180].mxu1 %vm477_vm4, %v6503_v10 }
0x26da   :  { %9450 = vmatmul.mubr.msk.f32.vlgmr.msra.gmra.mrb[172].mxu0 %vm576_vm7, %v6638_v52  ;;  %9462 = vmatprep.mubr.msk.bf16.mxu1 %vm10522_vm3, %v10521_v6 }
0x26db   :  { %9452 = vmatprep.mubr.msk.f32.mxu0 %vm10522_vm3, %v10521_v6 }
0x2754   :  { %v5990_v0 = vpop.f32.mrb[130].mxu0 }
0x2755   :  { %v9361_v3 = vpop.f32.mrb[131].mxu0 }
0x2758   :  { %v5995_v2 = vpop.f32.mrb[156].mxu0 }
0x2759   :  { %v9364_v30 = vpop.f32.mrb[157].mxu0 }
0x275c   :  { %v6000_v17 = vpop.f32.mrb[158].mxu0 }
0x275d   :  { %v9367_v23 = vpop.f32.mrb[159].mxu0 }
0x2764   :  { %v6231_v41 = vpop.f32.mrb[160].mxu0 }
0x2765   :  { %v9391_v16 = vpop.f32.mrb[161].mxu0 }
0x2768   :  { %v6236_v5 = vpop.f32.mrb[162].mxu0 }
0x2769   :  { %v10036_v44 = vpack.i.bf16 %v6236_v5, %v6231_v41  ;;  %v9394_v26 = vpop.f32.mrb[163].mxu0 }
0x276b   :  { %10037 = vrot.lane.b32.xlu1 %v10036_v44, %s10529_s10 }
0x276c   :  { %v6241_v53 = vpop.f32.mrb[164].mxu0 }
0x276d   :  { %v9397_v25 = vpop.f32.mrb[165].mxu0 }
0x27a1   :  { %v6484_v28 = vpop.f32.mrb[166].mxu0 }
0x27a2   :  { %v9421_v40 = vpop.f32.mrb[167].mxu0 }
0x27a5   :  { %v12533_v15 = vpop.f32.mrb[168].mxu0 }
0x27a6   :  { %v9424_v7 = vpop.f32.mrb[169].mxu0 }
0x27a8   :  { %v6593_v22 = vpop.f32.mrb[178].mxu1 }
0x27a9   :  { %v6603_v58 = vmul.f32 0.25, %v6593_v22  ;;  %v12535_v35 = vpop.f32.mrb[170].mxu0  ;;  %v9439_v61 = vpop.f32.mrb[179].mxu1 }
0x27aa   :  { %v9427_v59 = vpop.f32.mrb[171].mxu0 }
0x27ab   :  { %v6606_v18 = vsel %vm138_vm6, %v6603_v58, -1e+30 }
0x27ac   :  { %v6598_v13 = vpop.f32.mrb[180].mxu1  ;;  %v6611_v8 = vsel %vm576_vm7, %v6606_v18, -inf }
0x27ad   :  { %v6725_v11 = vpop.f32.mrb[172].mxu0  ;;  %6612 = vmax.xlane.f32.xlu1 %v6611_v8  ;;  %v9442_v47 = vpop.f32.mrb[181].mxu1  ;;  %v6604_v21 = vmul.f32 0.25, %v6598_v13 }
0x27ae   :  { %v10041_v33 = vpack.i.bf16 %v6725_v11, %v6241_v53  ;;  %v9451_v1 = vpop.f32.mrb[173].mxu0 }
0x27af   :  { %v6607_v43 = vsel %vm138_vm6, %v6604_v21, -1e+30  ;;  %v10109_v1 = vld [vmem:[%s10609_s12 + $0x30] sm:$0xff]   ;;  %v10110_v21 = vld [vmem:[%s10609_s12 + $0x38] sm:$0xff]  }
0x27b0   :  { %10042 = vrot.lane.b32.xlu0 %v10041_v33, %s10529_s10  ;;  %v6614_v31 = vsel %vm576_vm7, %v6607_v43, -inf  ;;  %9475 = vmatpush3.bf16.msra.mxu0 %v10109_v1  ;;  %v10115_v1 = vld [vmem:[%s12792_s15 + $0xe0] sm:$0xff]  }
0x27b1   :  { %9476 = vmatprep.subr.bf16.mxu0 %v10521_v6 }
0x27b4   :  { %9477 = vmatpush3.bf16.msra.mxu0 %v10110_v21  ;;  %v10116_v21 = vld [vmem:[%s12792_s15 + $0xe8] sm:$0xff]  }
0x27b5   :  { %9518 = vmatprep.subr.bf16.mxu0 %v10521_v6 }
0x27cf   :  { %6615 = vmax.xlane.f32.xlu0 %v6614_v31 }
0x27dd   :  { %v10038_v54 = vpop.permute.xlu1 %10037 }
0x27de   :  { %v10040_v29 = vunpack.i.h.bf16 %v10038_v54  ;;  %v10039_v55 = vunpack.i.l.bf16 %v10038_v54 }
0x27e0   :  { %v6258_v42 = vsel %vm477_vm4, %v5995_v2, %v10040_v29  ;;  %v6257_v34 = vsel %vm477_vm4, %v5990_v0, %v10039_v55 }
0x27e1   :  { %v6754_v60 = vpack.c.bf16 %v6258_v42, %v6257_v34 }
0x27e3   :  { %9463 = vmatmul.mubr.msk.bf16.vlgmr.msra.gmra.mrb[184].mxu1 %vm272_vm2, %v6754_v60 }
0x27e4   :  { %9466 = vmatprep.mubr.msk.bf16.mxu1 %vm10522_vm3, %v10521_v6 }
0x2822   :  { %v10043_v12 = vpop.permute.xlu0 %10042 }
0x2823   :  { %v10045_v56 = vunpack.i.h.bf16 %v10043_v12  ;;  %v10044_v46 = vunpack.i.l.bf16 %v10043_v12 }
0x2825   :  { %v6751_v20 = vsel %vm477_vm4, %v6484_v28, %v10045_v56  ;;  %v6259_v49 = vsel %vm477_vm4, %v6000_v17, %v10044_v46 }
0x2826   :  { %v6755_v50 = vpack.c.bf16 %v6751_v20, %v6259_v49 }
0x2828   :  { %9467 = vmatmul.mubr.msk.bf16.gmra.mrb[188].mxu1 %vm272_vm2, %v6755_v50 }
0x2829   :  { %9470 = vmatprep.mubr.msk.bf16.mxu1 %vm10522_vm3, %v10521_v6 }
0x283a   :  { %v6613_v3 = vpop.xlane.xlu1 %6612 }
0x285c   :  { %v6616_v2 = vpop.xlane.xlu0 %6615 }
0x285d   :  { %v6619_v30 = vsub.f32 %v6607_v43, %v6616_v2 }
0x285f   :  { %v6624_v23 = vmul.f32 1.442695, %v6619_v30 }
0x28b6   :  { %v6817_v38 = vpop.f32.mrb[184].mxu1 }
0x28b7   :  { %v6840_v27 = vadd.f32 %v6817_v38, %v12217_v39  ;;  %v9464_v63 = vpop.f32.mrb[185].mxu1  ;;  %v6618_v39 = vsub.f32 %v6606_v18, %v6613_v3  ;;  %v12594_v3 = vld [vmem:[%s10599_s30 + $0x3] ss:$0 sm:$0xff] }
0x28b8   :  { %v6820_v45 = vpop.f32.mrb[186].mxu1 }
0x28b9   :  { %v12559_v48 = vadd.f32 %v12555_v51, %v6840_v27  ;;  %v6841_v4 = vadd.f32 %v6820_v45, %v12220_v14  ;;  %v9465_v10 = vpop.f32.mrb[187].mxu1  ;;  %v6622_v17 = vmul.f32 1.442695, %v6618_v39 }
0x28bb   :  { %v6855_v52 = vadd.f32 %v12555_v51, %v6841_v4  ;;  %v6864_v24 = vsel %vm272_vm2, %v12559_v48, 0.0  ;;  %10427 = vpow2.f32 %v6622_v17 }
0x28bc   :  { %6865 = vadd.xlane.f32.xlu0 %v6864_v24  ;;  %10429 = vpow2.f32 %v6624_v23  ;;  %v12598_v23 = vld [vmem:[%s12791_s11 + $0x3] ss:$0 sm:$0xff] }
0x28bd   :  { %v6867_v0 = vsel %vm272_vm2, %v6855_v52, 0.0 }
0x28be   :  { %6868 = vadd.xlane.f32.xlu1 %v6867_v0 }
0x28c5   :  { %v10428_v28 = vpop.eup %10427 }
0x28c6   :  { %v10430_v7 = vpop.eup %10429 }
0x28c7   :  { %v6632_v22 = vsel %vm576_vm7, %v10430_v7, 0.0 }
0x28fb   :  { %v6825_v57 = vpop.f32.mrb[188].mxu1 }
0x28fc   :  { %v6842_v14 = vadd.f32 %v6825_v57, %v12227_v32  ;;  %v9468_v41 = vpop.f32.mrb[189].mxu1  ;;  %v6629_v32 = vsel %vm576_vm7, %v10428_v28, 0.0 }
0x28fd   :  { %v6828_v16 = vpop.f32.mrb[190].mxu1 }
0x28fe   :  { %v6856_v5 = vadd.f32 %v12555_v51, %v6842_v14  ;;  %v6843_v44 = vadd.f32 %v6828_v16, %v12230_v36  ;;  %v9469_v26 = vpop.f32.mrb[191].mxu1 }
0x2900   :  { %v12570_v53 = vadd.f32 %v12555_v51, %v6843_v44  ;;  %v6870_v25 = vsel %vm272_vm2, %v6856_v5, 0.0 }
0x2901   :  { %6871 = vadd.xlane.f32.xlu0 %v6870_v25 }
0x2902   :  { %v6873_v40 = vsel %vm272_vm2, %v12570_v53, 0.0 }
0x2903   :  { %6874 = vadd.xlane.f32.xlu1 %v6873_v40 }
0x2905   :  { %6630 = vadd.xlane.f32.xlu0 %v6629_v32 }
0x2907   :  { %6633 = vadd.xlane.f32.xlu1 %v6632_v22 }
0x2949   :  { %v6866_v36 = vpop.xlane.xlu0 %6865 }
0x294a   :  { %v6882_v58 = vmul.f32 0.03125, %v6866_v36 }
0x294b   :  { %v6869_v61 = vpop.xlane.xlu1 %6868 }
0x294c   :  { %v6888_v59 = vsub.f32 %v12559_v48, %v6882_v58  ;;  %v6883_v18 = vmul.f32 0.03125, %v6869_v61 }
0x294e   :  { %v6889_v13 = vsub.f32 %v6855_v52, %v6883_v18  ;;  %v6894_v8 = vmul.f32 %v6888_v59, %v6888_v59 }
0x2950   :  { %v6900_v11 = vsel %vm272_vm2, %v6894_v8, 0.0  ;;  %v6895_v47 = vmul.f32 %v6889_v13, %v6889_v13  ;;  %v10111_v8 = vld [vmem:[%s12792_s15 + $0xc0] sm:$0xff]  }
0x2951   :  { %6901 = vadd.xlane.f32.xlu0 %v6900_v11  ;;  %9491 = vmatpush3.bf16.msra.mxu1 %v10111_v8  ;;  %v10112_v11 = vld [vmem:[%s12792_s15 + $0xc8] sm:$0xff]  }
0x2952   :  { %v6903_v33 = vsel %vm272_vm2, %v6895_v47, 0.0  ;;  %9492 = vmatprep.subr.bf16.mxu1 %v10521_v6  ;;  %v10113_v47 = vld [vmem:[%s12792_s15 + $0xd0] sm:$0xff]  }
0x2953   :  { %6904 = vadd.xlane.f32.xlu1 %v6903_v33  ;;  %v10114_v33 = vld [vmem:[%s12792_s15 + $0xd8] sm:$0xff]  }
0x2955   :  { %9493 = vmatpush3.bf16.msra.mxu1 %v10112_v11 }
0x2956   :  { %9494 = vmatprep.subr.bf16.mxu1 %v10521_v6 }
0x2959   :  { %9495 = vmatpush3.bf16.msra.mxu1 %v10113_v47 }
0x295a   :  { %9496 = vmatprep.subr.bf16.mxu1 %v10521_v6 }
0x295d   :  { %9497 = vmatpush3.bf16.msra.mxu1 %v10114_v33 }
0x295e   :  { %9498 = vmatprep.subr.bf16.mxu1 %v10521_v6 }
0x2961   :  { %9499 = vmatpush3.bf16.msra.mxu1 %v10115_v1 }
0x2962   :  { %9500 = vmatprep.subr.bf16.mxu1 %v10521_v6 }
0x2965   :  { %9501 = vmatpush3.bf16.msra.mxu1 %v10116_v21 }
0x2966   :  { %9502 = vmatprep.subr.bf16.mxu1 %v10521_v6 }
0x298e   :  { %v6872_v43 = vpop.xlane.xlu0 %6871 }
0x298f   :  { %v6884_v31 = vmul.f32 0.03125, %v6872_v43  ;;  %v10117_v43 = vld [vmem:[%s12792_s15 + $0xf0] sm:$0xff]  }
0x2990   :  { %v6875_v54 = vpop.xlane.xlu1 %6874  ;;  %9503 = vmatpush3.bf16.msra.mxu1 %v10117_v43 }
0x2991   :  { %v6890_v29 = vsub.f32 %v6856_v5, %v6884_v31  ;;  %v6885_v55 = vmul.f32 0.03125, %v6875_v54  ;;  %9504 = vmatprep.subr.bf16.mxu1 %v10521_v6 }
0x2992   :  { %v6631_v42 = vpop.xlane.xlu0 %6630 }
0x2993   :  { %v6891_v34 = vsub.f32 %v12570_v53, %v6885_v55  ;;  %10431 = vrcp.f32 %v6631_v42  ;;  %v6896_v60 = vmul.f32 %v6890_v29, %v6890_v29 }
0x2994   :  { %v6634_v12 = vpop.xlane.xlu1 %6633 }
0x2995   :  { %10433 = vrcp.f32 %v6634_v12  ;;  %v6906_v56 = vsel %vm272_vm2, %v6896_v60, 0.0  ;;  %v6897_v46 = vmul.f32 %v6891_v34, %v6891_v34  ;;  %v12631_v60 = vld [vmem:[%s12793_s16 + $0x3] ss:$0 sm:$0xff] }
0x2996   :  { %6907 = vadd.xlane.f32.xlu0 %v6906_v56 }
0x2997   :  { %v6909_v20 = vsel %vm272_vm2, %v6897_v46, 0.0 }
0x2998   :  { %6910 = vadd.xlane.f32.xlu1 %v6909_v20 }
0x299d   :  { %v10432_v49 = vpop.eup %10431 }
0x299e   :  { %v6639_v50 = vmul.f32 %v10432_v49, %v10428_v28 }
0x299f   :  { %v10434_v38 = vpop.eup %10433 }
0x29a0   :  { %9453 = vmatmul.mubr.msk.f32.gmra.mrb[174].mxu0 %vm576_vm7, %v6639_v50  ;;  %v6640_v27 = vmul.f32 %v10434_v38, %v10430_v7 }
0x29a1   :  { %9455 = vmatprep.mubr.msk.f32.mxu0 %vm10522_vm3, %v10521_v6 }
0x29a4   :  { %9456 = vmatmul.mubr.msk.f32.gmra.mrb[176].mxu0 %vm576_vm7, %v6640_v27 }
0x29a5   :  { %9478 = vmatprep.mubr.msk.bf16.mxu0 %vm10522_vm3, %v10521_v6 }
0x29de   :  { %v6902_v63 = vpop.xlane.xlu0 %6901 }
0x29df   :  { %v6918_v45 = vmul.f32 0.03125, %v6902_v63 }
0x29e0   :  { %v6905_v4 = vpop.xlane.xlu1 %6904 }
0x29e1   :  { %v6924_v10 = vadd.f32 1e-12, %v6918_v45  ;;  %v6919_v52 = vmul.f32 0.03125, %v6905_v4 }
0x29e3   :  { %10435 = vrsqrt.f32 %v6924_v10  ;;  %v6925_v24 = vadd.f32 1e-12, %v6919_v52 }
0x29e5   :  { %10437 = vrsqrt.f32 %v6925_v24 }
0x29ed   :  { %v10436_v0 = vpop.eup %10435 }
0x29ee   :  { %v6936_v2 = vmul.f32 %v10436_v0, %v6888_v59 }
0x29ef   :  { %v10438_v39 = vpop.eup %10437 }
0x29f0   :  { %v6948_v30 = vmul.f32 %v12594_v3, %v6936_v2  ;;  %v6937_v17 = vmul.f32 %v10438_v39, %v6889_v13 }
0x29f2   :  { %v6949_v57 = vmul.f32 %v12594_v3, %v6937_v17  ;;  %v6960_v14 = vadd.f32 %v12598_v23, %v6948_v30 }
0x29f4   :  { %v6961_v41 = vadd.f32 %v12598_v23, %v6949_v57 }
0x29f6   :  { %v6966_v16 = vpack.c.bf16 %v6961_v41, %v6960_v14 }
0x29f8   :  { %9479 = vmatmul.mubr.msk.bf16.vlgmr.msra.gmra.mrb[180].mxu0 %vm272_vm2, %v6966_v16 }
0x29f9   :  { %9482 = vmatprep.mubr.msk.bf16.mxu0 %vm10522_vm3, %v10521_v6 }
0x2a23   :  { %v6908_v5 = vpop.xlane.xlu0 %6907 }
0x2a24   :  { %v6920_v44 = vmul.f32 0.03125, %v6908_v5 }
0x2a25   :  { %v6911_v26 = vpop.xlane.xlu1 %6910 }
0x2a26   :  { %v6926_v25 = vadd.f32 1e-12, %v6920_v44  ;;  %v6921_v28 = vmul.f32 0.03125, %v6911_v26 }
0x2a28   :  { %10439 = vrsqrt.f32 %v6926_v25  ;;  %v6927_v40 = vadd.f32 1e-12, %v6921_v28 }
0x2a2a   :  { %10441 = vrsqrt.f32 %v6927_v40 }
0x2a32   :  { %v10440_v7 = vpop.eup %10439 }
0x2a33   :  { %v6938_v32 = vmul.f32 %v10440_v7, %v6890_v29  ;;  %v10118_v29 = vld [vmem:[%s12792_s15 + $0xf8] sm:$0xff]  }
0x2a34   :  { %v10442_v22 = vpop.eup %10441  ;;  %9505 = vmatpush3.bf16.msra.mxu1 %v10118_v29 }
0x2a35   :  { %v6939_v36 = vmul.f32 %v10442_v22, %v6891_v34  ;;  %v6950_v58 = vmul.f32 %v12594_v3, %v6938_v32  ;;  %9744 = vmatprep.subr.bf16.mxu1 %v10523_v62 }
0x2a37   :  { %v6951_v61 = vmul.f32 %v12594_v3, %v6939_v36  ;;  %v6962_v59 = vadd.f32 %v12598_v23, %v6950_v58 }
0x2a39   :  { %v6963_v18 = vadd.f32 %v12598_v23, %v6951_v61 }
0x2a3b   :  { %v6967_v13 = vpack.c.bf16 %v6963_v18, %v6962_v59 }
0x2a3d   :  { %9483 = vmatmul.mubr.msk.bf16.gmra.mrb[184].mxu0 %vm272_vm2, %v6967_v13 }
0x2a3e   :  { %9486 = vmatprep.mubr.msk.bf16.mxu0 %vm10522_vm3, %v10521_v6 }
0x2a73   :  { %v6730_v31 = vpop.f32.mrb[174].mxu0 }
0x2a74   :  { %v9454_v54 = vpop.f32.mrb[175].mxu0 }
0x2a77   :  { %v6735_v55 = vpop.f32.mrb[176].mxu0 }
0x2a78   :  { %v10046_v42 = vpack.i.bf16 %v6735_v55, %v6730_v31  ;;  %v9457_v34 = vpop.f32.mrb[177].mxu0 }
0x2a7a   :  { %10047 = vrot.lane.b32.xlu0 %v10046_v42, %s10529_s10 }
0x2acb   :  { %v7037_v12 = vpop.f32.mrb[180].mxu0 }
0x2acc   :  { %v7038_v56 = vadd.f32 %v12631_v60, %v7037_v12  ;;  %v9480_v46 = vpop.f32.mrb[181].mxu0 }
0x2acd   :  { %v7040_v20 = vpop.f32.mrb[182].mxu0 }
0x2ace   :  { %v7066_v49 = vmul.f32 0.044715, %v7038_v56  ;;  %v7041_v50 = vadd.f32 %v12631_v60, %v7040_v20  ;;  %v9481_v38 = vpop.f32.mrb[183].mxu0  ;;  %v7060_v57 = vmul.f32 0.5, %v7038_v56 }
0x2ad0   :  { %v7072_v27 = vmul.f32 %v7066_v49, %v7038_v56  ;;  %v7067_v63 = vmul.f32 0.044715, %v7041_v50  ;;  %v7061_v14 = vmul.f32 0.5, %v7041_v50 }
0x2ad2   :  { %v7078_v45 = vmul.f32 %v7072_v27, %v7038_v56  ;;  %v7073_v4 = vmul.f32 %v7067_v63, %v7041_v50 }
0x2ad4   :  { %v7084_v10 = vadd.f32 %v7078_v45, %v7038_v56  ;;  %v7079_v52 = vmul.f32 %v7073_v4, %v7041_v50 }
0x2ad6   :  { %v7090_v24 = vmul.f32 0.7978846, %v7084_v10  ;;  %v7085_v0 = vadd.f32 %v7079_v52, %v7041_v50 }
0x2ad8   :  { %10443 = vtanh.f32 %v7090_v24  ;;  %v7091_v2 = vmul.f32 0.7978846, %v7085_v0 }
0x2ada   :  { %10445 = vtanh.f32 %v7091_v2 }
0x2ae2   :  { %v10444_v39 = vpop.eup %10443 }
0x2ae3   :  { %v7102_v30 = vadd.f32 1.0, %v10444_v39 }
0x2ae4   :  { %v10446_v17 = vpop.eup %10445 }
0x2ae5   :  { %v7103_v41 = vadd.f32 1.0, %v10446_v17  ;;  %v7108_v16 = vmul.f32 %v7102_v30, %v7060_v57 }
0x2ae7   :  { %v7109_v5 = vmul.f32 %v7103_v41, %v7061_v14  ;;  %v8326_v41 = vld [vmem:[%s12794_s18 + $0x3] ss:$0 sm:$0xff] }
0x2ae9   :  { %v7114_v44 = vpack.c.bf16 %v7109_v5, %v7108_v16 }
0x2aec   :  { %v10048_v26 = vpop.permute.xlu0 %10047 }
0x2aed   :  { %v10050_v25 = vunpack.i.h.bf16 %v10048_v26  ;;  %v10049_v28 = vunpack.i.l.bf16 %v10048_v26 }
0x2aef   :  { %v6753_v40 = vsel %vm477_vm4, %v12535_v35, %v10050_v25  ;;  %v6752_v7 = vsel %vm477_vm4, %v12533_v15, %v10049_v28 }
0x2af0   :  { %v6756_v32 = vpack.c.bf16 %v6753_v40, %v6752_v7 }
0x2af2   :  { %9471 = vmatmul.mubr.msk.bf16.gmra.mrb[192].mxu1 %vm272_vm2, %v6756_v32 }
0x2af3   :  { %9506 = vmatprep.mubr.msk.bf16.mxu1 %vm10522_vm3, %v10521_v6 }
0x2afa   :  { %9507 = vmatmul.mubr.bf16.vlgmr.msra.gmra.mrb[196].mxu1 %v7114_v44 }
0x2afb   :  { %9510 = vmatprep.mubr.msk.bf16.mxu1 %vm10522_vm3, %v10521_v6 }
0x2b10   :  { %v7045_v22 = vpop.f32.mrb[184].mxu0 }
0x2b11   :  { %v7046_v36 = vadd.f32 %v12631_v60, %v7045_v22  ;;  %v9484_v58 = vpop.f32.mrb[185].mxu0 }
0x2b12   :  { %v7048_v61 = vpop.f32.mrb[186].mxu0 }
0x2b13   :  { %v7068_v59 = vmul.f32 0.044715, %v7046_v36  ;;  %v7049_v35 = vadd.f32 %v12631_v60, %v7048_v61  ;;  %v9485_v18 = vpop.f32.mrb[187].mxu0  ;;  %v7062_v55 = vmul.f32 0.5, %v7046_v36 }
0x2b15   :  { %v7074_v15 = vmul.f32 %v7068_v59, %v7046_v36  ;;  %v7069_v13 = vmul.f32 0.044715, %v7049_v35  ;;  %v7063_v42 = vmul.f32 0.5, %v7049_v35 }
0x2b17   :  { %v7080_v8 = vmul.f32 %v7074_v15, %v7046_v36  ;;  %v7075_v11 = vmul.f32 %v7069_v13, %v7049_v35  ;;  %v10119_v13 = vld [vmem:[%s12795_s22 + $0x10] sm:$0xff]  }
0x2b18   :  { %9519 = vmatpush3.bf16.msra.mxu0 %v10119_v13 }
0x2b19   :  { %v7081_v47 = vmul.f32 %v7075_v11, %v7049_v35  ;;  %v7086_v33 = vadd.f32 %v7080_v8, %v7046_v36  ;;  %9520 = vmatprep.subr.bf16.mxu0 %v10521_v6  ;;  %v10120_v8 = vld [vmem:[%s12795_s22 + $0x18] sm:$0xff]  }
0x2b1b   :  { %v7087_v1 = vadd.f32 %v7081_v47, %v7049_v35  ;;  %v7092_v21 = vmul.f32 0.7978846, %v7086_v33 }
0x2b1c   :  { %9521 = vmatpush3.bf16.msra.mxu0 %v10120_v8 }
0x2b1d   :  { %v7093_v43 = vmul.f32 0.7978846, %v7087_v1  ;;  %10447 = vtanh.f32 %v7092_v21  ;;  %9732 = vmatprep.subr.bf16.mxu0 %v10523_v62 }
0x2b1f   :  { %10449 = vtanh.f32 %v7093_v43 }
0x2b27   :  { %v10448_v31 = vpop.eup %10447 }
0x2b28   :  { %v7104_v54 = vadd.f32 1.0, %v10448_v31 }
0x2b29   :  { %v10450_v29 = vpop.eup %10449 }
0x2b2a   :  { %v7105_v34 = vadd.f32 1.0, %v10450_v29  ;;  %v7110_v12 = vmul.f32 %v7104_v54, %v7062_v55 }
0x2b2c   :  { %v7111_v56 = vmul.f32 %v7105_v34, %v7063_v42 }
0x2b2e   :  { %v7115_v46 = vpack.c.bf16 %v7111_v56, %v7110_v12 }
0x2b30   :  { %9511 = vmatmul.mubr.bf16.gmra.mrb[200].mxu1 %v7115_v46 }
0x2b31   :  { %9514 = vmatprep.mubr.msk.bf16.mxu1 %vm10522_vm3, %v10521_v6 }
0x2bc5   :  { %v6833_v20 = vpop.f32.mrb[192].mxu1 }
0x2bc6   :  { %v6844_v49 = vadd.f32 %v6833_v20, %v12237_v9  ;;  %v9472_v50 = vpop.f32.mrb[193].mxu1 }
0x2bc7   :  { %v6836_v38 = vpop.f32.mrb[194].mxu1 }
0x2bc8   :  { %v6858_v27 = vadd.f32 %v12555_v51, %v6844_v49  ;;  %v6845_v63 = vadd.f32 %v6836_v38, %v12240_v37  ;;  %v9473_v45 = vpop.f32.mrb[195].mxu1 }
0x2bca   :  { %v6859_v4 = vadd.f32 %v12555_v51, %v6845_v63  ;;  %v6876_v10 = vsel %vm272_vm2, %v6858_v27, 0.0  ;;  %v8330_v63 = vld [vmem:[%s12797_s26 + $0x1] ss:$0 sm:$0xff] }
0x2bcb   :  { %6877 = vadd.xlane.f32.xlu1 %v6876_v10  ;;  %v7356_v10 = vld [vmem:[%s12798_s5 + $0x20] sm:$0xff] }
0x2bcc   :  { %v6879_v0 = vsel %vm272_vm2, %v6859_v4, 0.0 }
0x2bcd   :  { %v7216_v52 = vpop.f32.mrb[196].mxu1 }
0x2bce   :  { %v9508_v24 = vpop.f32.mrb[197].mxu1  ;;  %v7235_v57 = vadd.f32 %v7216_v52, %v12559_v48  ;;  %v7357_v52 = vld [vmem:[%s12798_s5 + $0x28] sm:$0xff] }
0x2bcf   :  { %6880 = vadd.xlane.f32.xlu1 %v6879_v0  ;;  %v7219_v2 = vpop.f32.mrb[198].mxu1  ;;  %v7358_v24 = vld [vmem:[%s12798_s5 + $0x30] sm:$0xff]  ;;  %v9733_v0 = vpack.c.bf16 %v7357_v52, %v7356_v10  ;;  %v7526_v52 = vld [vmem:[%s12800_s13 + $0x58] sm:$0xff] }
0x2bd0   :  { %v9509_v9 = vpop.f32.mrb[199].mxu1  ;;  %v7245_v16 = vadd.f32 %v8326_v41, %v7235_v57  ;;  %v7359_v2 = vld [vmem:[%s12798_s5 + $0x38] sm:$0xff]  ;;  %v7525_v10 = vld [vmem:[%s12800_s13 + $0x50] sm:$0xff] }
0x2bd1   :  { %v9736_v9 = vpack.c.bf16 %v7359_v2, %v7358_v24  ;;  %v9760_v24 = vpack.c.bf16 %v7526_v52, %v7525_v10  ;;  %v7528_v2 = vld [vmem:[%s12800_s13 + $0x68] sm:$0xff] }
0x2c03   :  { %v7223_v39 = vpop.f32.mrb[200].mxu1 }
0x2c04   :  { %v9512_v30 = vpop.f32.mrb[201].mxu1 }
0x2c05   :  { %v7225_v17 = vpop.f32.mrb[202].mxu1 }
0x2c06   :  { %v7236_v37 = vadd.f32 %v7225_v17, %v12570_v53  ;;  %v9513_v14 = vpop.f32.mrb[203].mxu1 }
0x2c08   :  { %v7246_v51 = vadd.f32 %v8326_v41, %v7236_v37 }
0x2c0a   :  { %v7248_v5 = vrot.slane %v7246_v51, 7 }
0x2c0c   :  { %v7250_v44 = vsel %vm251_vm1, %v7245_v16, %v7248_v5 }
0x2c0d   :  { %v7255_v26 = vsel %vm3642_vm8, %v7250_v44, 0.0 }
0x2c0e   :  { %7256 = vadd.xlane.f32.xlu1 %v7255_v26 }
0x2c58   :  { %v6878_v25 = vpop.xlane.xlu1 %6877 }
0x2c59   :  { %v6886_v28 = vmul.f32 0.03125, %v6878_v25 }
0x2c5b   :  { %v6892_v40 = vsub.f32 %v6858_v27, %v6886_v28 }
0x2c5c   :  { %v6881_v7 = vpop.xlane.xlu1 %6880 }
0x2c5d   :  { %v6887_v32 = vmul.f32 0.03125, %v6881_v7  ;;  %v6898_v22 = vmul.f32 %v6892_v40, %v6892_v40 }
0x2c5f   :  { %v6893_v48 = vsub.f32 %v6859_v4, %v6887_v32  ;;  %v6912_v53 = vsel %vm272_vm2, %v6898_v22, 0.0 }
0x2c60   :  { %6913 = vadd.xlane.f32.xlu1 %v6912_v53 }
0x2c61   :  { %v6899_v36 = vmul.f32 %v6893_v48, %v6893_v48 }
0x2c63   :  { %v6915_v58 = vsel %vm272_vm2, %v6899_v36, 0.0 }
0x2c64   :  { %6916 = vadd.xlane.f32.xlu1 %v6915_v58 }
0x2c9b   :  { %v7257_v61 = vpop.xlane.xlu1 %7256 }
0x2c9c   :  { %v7258_v59 = vmul.f32 0.03125, %v7257_v61 }
0x2c9e   :  { %v7259_v35 = vsub.f32 %v7250_v44, %v7258_v59 }
0x2ca0   :  { %v7260_v18 = vmul.f32 %v7259_v35, %v7259_v35 }
0x2ca2   :  { %v7261_v15 = vsel %vm3642_vm8, %v7260_v18, 0.0 }
0x2ca3   :  { %7262 = vadd.xlane.f32.xlu1 %v7261_v15 }
0x2ced   :  { %v6914_v11 = vpop.xlane.xlu1 %6913 }
0x2cee   :  { %v6922_v47 = vmul.f32 0.03125, %v6914_v11 }
0x2cf0   :  { %v6928_v33 = vadd.f32 1e-12, %v6922_v47  ;;  %v8094_v47 = vld [vmem:[%s12799_s9] ss:$0 sm:$0xff] }
0x2cf1   :  { %v6917_v1 = vpop.xlane.xlu1 %6916 }
0x2cf2   :  { %10451 = vrsqrt.f32 %v6928_v33  ;;  %v6923_v21 = vmul.f32 0.03125, %v6917_v1  ;;  %v3732_v33 = vadd.f32 %v8094_v47, %v11723_v19  ;;  %v7352_v1 = vld [vmem:[%s12798_s5] sm:$0xff] }
0x2cf4   :  { %v6929_v43 = vadd.f32 1e-12, %v6923_v21  ;;  %v7353_v21 = vld [vmem:[%s12798_s5 + $0x8] sm:$0xff] }
0x2cf6   :  { %10453 = vrsqrt.f32 %v6929_v43  ;;  %v9739_v43 = vpack.c.bf16 %v7353_v21, %v7352_v1 }
0x2cfc   :  { %v10452_v31 = vpop.eup %10451 }
0x2cfd   :  { %v6940_v54 = vmul.f32 %v10452_v31, %v6892_v40  ;;  %v7354_v31 = vld [vmem:[%s12798_s5 + $0x10] sm:$0xff] }
0x2cff   :  { %v6952_v42 = vmul.f32 %v12594_v3, %v6940_v54  ;;  %v7355_v54 = vld [vmem:[%s12798_s5 + $0x18] sm:$0xff] }
0x2d00   :  { %v10454_v29 = vpop.eup %10453 }
0x2d01   :  { %v6941_v55 = vmul.f32 %v10454_v29, %v6893_v48  ;;  %v6964_v12 = vadd.f32 %v12598_v23, %v6952_v42  ;;  %v7515_v42 = vld [vmem:[%s12800_s13] sm:$0xff] }
0x2d03   :  { %v6953_v34 = vmul.f32 %v12594_v3, %v6941_v55  ;;  %v8329_v3 = vld [vmem:[%s12796_s23 + $0x1] ss:$0 sm:$0xff]  ;;  %v9742_v55 = vpack.c.bf16 %v7355_v54, %v7354_v31  ;;  %v7702_v31 = vld [vmem:[%s12804_s29 + $0x18] sm:$0xff] }
0x2d05   :  { %v6965_v56 = vadd.f32 %v12598_v23, %v6953_v34  ;;  %v7516_v34 = vld [vmem:[%s12800_s13 + $0x8] sm:$0xff] }
0x2d07   :  { %v6968_v46 = vpack.c.bf16 %v6965_v56, %v6964_v12  ;;  %v7517_v12 = vld [vmem:[%s12800_s13 + $0x10] sm:$0xff]  ;;  %v9745_v56 = vpack.c.bf16 %v7516_v34, %v7515_v42 }
0x2d09   :  { %9487 = vmatmul.mubr.msk.bf16.gmra.mrb[188].mxu0 %vm272_vm2, %v6968_v46  ;;  %v7518_v46 = vld [vmem:[%s12800_s13 + $0x18] sm:$0xff]  ;;  %9746 = vmatpush3.bf16.msra.mxu1 %v9745_v56  ;;  %v7785_v56 = vld [vmem:[%s10689_s6 + $0x8] sm:$0xff] }
0x2d0a   :  { %9522 = vmatprep.mubr.msk.bf16.mxu0 %vm10522_vm3, %v10521_v6  ;;  %9747 = vmatprep.subr.bf16.mxu1 %v10523_v62 }
0x2d30   :  { %v7263_v20 = vpop.xlane.xlu1 %7262 }
0x2d31   :  { %v7264_v49 = vmul.f32 0.03125, %v7263_v20  ;;  %v9748_v20 = vpack.c.bf16 %v7518_v46, %v7517_v12  ;;  %v7784_v12 = vld [vmem:[%s10689_s6] sm:$0xff] }
0x2d32   :  { %v9787_v46 = vpack.c.bf16 %v7785_v56, %v7784_v12 }
0x2d33   :  { %v7265_v50 = vadd.f32 1e-12, %v7264_v49  ;;  %v7519_v49 = vld [vmem:[%s12800_s13 + $0x20] sm:$0xff]  ;;  %9749 = vmatpush3.bf16.msra.mxu1 %v9748_v20 }
0x2d34   :  { %9750 = vmatprep.subr.bf16.mxu1 %v10523_v62 }
0x2d35   :  { %10455 = vrsqrt.f32 %v7265_v50  ;;  %v7520_v50 = vld [vmem:[%s12800_s13 + $0x28] sm:$0xff] }
0x2d3f   :  { %v10456_v38 = vpop.eup %10455 }
0x2d40   :  { %v7267_v27 = vmul.f32 %v10456_v38, %v7259_v35  ;;  %v8336_v35 = vld [vmem:[%s12799_s9 + $0x1] ss:$0 sm:$0xff]  ;;  %v9751_v38 = vpack.c.bf16 %v7520_v50, %v7519_v49 }
0x2d42   :  { %v7274_v45 = vmul.f32 %v8329_v3, %v7267_v27  ;;  %v7521_v3 = vld [vmem:[%s12800_s13 + $0x30] sm:$0xff]  ;;  %v7522_v27 = vld [vmem:[%s12800_s13 + $0x38] sm:$0xff]  ;;  %9752 = vmatpush3.bf16.msra.mxu1 %v9751_v38  ;;  %v8348_v38 = vld [vmem:[%s10694_s20] ss:$0 sm:$0xff] }
0x2d43   :  { %9753 = vmatprep.subr.bf16.mxu1 %v10523_v62 }
0x2d44   :  { %v7281_v23 = vadd.f32 %v8330_v63, %v7274_v45  ;;  %v9754_v63 = vpack.c.bf16 %v7522_v27, %v7521_v3  ;;  %v7523_v45 = vld [vmem:[%s12800_s13 + $0x40] sm:$0xff] }
0x2d46   :  { %v7282_v4 = vpack.c.bf16 %v7281_v23, %v7281_v23  ;;  %v7524_v23 = vld [vmem:[%s12800_s13 + $0x48] sm:$0xff]  ;;  %9755 = vmatpush3.bf16.msra.mxu1 %v9754_v63 }
0x2d47   :  { %9756 = vmatprep.subr.bf16.mxu1 %v10523_v62 }
0x2d48   :  { %9523 = vmatmul.mubr.msk.bf16.vlgmr.msra.gmra.mrb[192].mxu0 %vm272_vm2, %v7282_v4  ;;  %v9757_v4 = vpack.c.bf16 %v7524_v23, %v7523_v45 }
0x2d49   :  { %9534 = vmatprep.mubr.msk.f32.mxu0 %vm10522_vm3, %v10521_v6  ;;  %9734 = vmatpush3.bf16.msra.mxu0 %v9733_v0  ;;  %v7527_v0 = vld [vmem:[%s12800_s13 + $0x60] sm:$0xff] }
0x2d4a   :  { %9735 = vmatprep.subr.bf16.mxu0 %v10523_v62  ;;  %9758 = vmatpush3.bf16.msra.mxu1 %v9757_v4 }
0x2d4b   :  { %9759 = vmatprep.subr.bf16.mxu1 %v10523_v62 }
0x2d4d   :  { %9737 = vmatpush3.bf16.msra.mxu0 %v9736_v9  ;;  %v9763_v9 = vpack.c.bf16 %v7528_v2, %v7527_v0 }
0x2d4e   :  { %9738 = vmatprep.subr.bf16.mxu0 %v10523_v62  ;;  %9761 = vmatpush3.bf16.msra.mxu1 %v9760_v24 }
0x2d4f   :  { %9762 = vmatprep.subr.bf16.mxu1 %v10523_v62 }
0x2d52   :  { %9764 = vmatpush3.bf16.msra.mxu1 %v9763_v9 }
0x2d53   :  { %9765 = vmatprep.subr.bf16.mxu1 %v10523_v62 }
0x2ddc   :  { %v7053_v39 = vpop.f32.mrb[188].mxu0 }
0x2ddd   :  { %v7054_v30 = vadd.f32 %v12631_v60, %v7053_v39  ;;  %v9488_v17 = vpop.f32.mrb[189].mxu0  ;;  %v7529_v39 = vld [vmem:[%s12800_s13 + $0x70] sm:$0xff] }
0x2dde   :  { %v7056_v57 = vpop.f32.mrb[190].mxu0 }
0x2ddf   :  { %v7070_v37 = vmul.f32 0.044715, %v7054_v30  ;;  %v7057_v14 = vadd.f32 %v12631_v60, %v7056_v57  ;;  %v9489_v41 = vpop.f32.mrb[191].mxu0  ;;  %v7064_v53 = vmul.f32 0.5, %v7054_v30  ;;  %v7609_v57 = vld [vmem:[%s12801_s17] sm:$0xff] }
0x2de1   :  { %v7076_v51 = vmul.f32 %v7070_v37, %v7054_v30  ;;  %v7071_v16 = vmul.f32 0.044715, %v7057_v14  ;;  %v7065_v36 = vmul.f32 0.5, %v7057_v14  ;;  %v7610_v37 = vld [vmem:[%s12801_s17 + $0x8] sm:$0xff] }
0x2de2   :  { %v9769_v41 = vpack.c.bf16 %v7610_v37, %v7609_v57 }
0x2de3   :  { %v7082_v5 = vmul.f32 %v7076_v51, %v7054_v30  ;;  %v7077_v44 = vmul.f32 %v7071_v16, %v7057_v14  ;;  %v7612_v51 = vld [vmem:[%s12801_s17 + $0x18] sm:$0xff] }
0x2de5   :  { %v7083_v26 = vmul.f32 %v7077_v44, %v7057_v14  ;;  %v7088_v25 = vadd.f32 %v7082_v5, %v7054_v30  ;;  %v7530_v30 = vld [vmem:[%s12800_s13 + $0x78] sm:$0xff]  ;;  %v7613_v5 = vld [vmem:[%s12801_s17 + $0x20] sm:$0xff]  ;;  %v7614_v44 = vld [vmem:[%s12801_s17 + $0x28] sm:$0xff] }
0x2de6   :  { %v9766_v17 = vpack.c.bf16 %v7530_v30, %v7529_v39 }
0x2de7   :  { %v7089_v28 = vadd.f32 %v7083_v26, %v7057_v14  ;;  %v7094_v40 = vmul.f32 0.7978846, %v7088_v25  ;;  %v7611_v14 = vld [vmem:[%s12801_s17 + $0x10] sm:$0xff]  ;;  %v9775_v26 = vpack.c.bf16 %v7614_v44, %v7613_v5 }
0x2de8   :  { %9767 = vmatpush3.bf16.msra.mxu1 %v9766_v17  ;;  %v9772_v16 = vpack.c.bf16 %v7612_v51, %v7611_v14 }
0x2de9   :  { %v7095_v7 = vmul.f32 0.7978846, %v7089_v28  ;;  %10457 = vtanh.f32 %v7094_v40  ;;  %9786 = vmatprep.subr.bf16.mxu1 %v10523_v62 }
0x2deb   :  { %10459 = vtanh.f32 %v7095_v7 }
0x2df3   :  { %v10458_v32 = vpop.eup %10457 }
0x2df4   :  { %v7106_v22 = vadd.f32 1.0, %v10458_v32 }
0x2df5   :  { %v10460_v48 = vpop.eup %10459 }
0x2df6   :  { %v7107_v60 = vadd.f32 1.0, %v10460_v48  ;;  %v7112_v58 = vmul.f32 %v7106_v22, %v7064_v53  ;;  %v8342_v48 = vld [vmem:[%s12802_s21] ss:$0 sm:$0xff] }
0x2df8   :  { %v7113_v61 = vmul.f32 %v7107_v60, %v7065_v36 }
0x2dfa   :  { %v7116_v59 = vpack.c.bf16 %v7113_v61, %v7112_v58 }
0x2dfc   :  { %9515 = vmatmul.mubr.bf16.gmra.mrb[204].mxu1 %v7116_v59  ;;  %v7615_v59 = vld [vmem:[%s12801_s17 + $0x30] sm:$0xff] }
0x2dfd   :  { %9580 = vmatprep.mubr.msk.f32.mxu1 %vm10522_vm3, %v10521_v6 }
0x2e1b   :  { %v7345_v18 = vpop.f32.mrb[192].mxu0 }
0x2e1c   :  { %v7346_v15 = vadd.f32 %v8336_v35, %v7345_v18  ;;  %v9524_v13 = vpop.f32.mrb[193].mxu0  ;;  %v7616_v35 = vld [vmem:[%s12801_s17 + $0x38] sm:$0xff] }
0x2e1d   :  { %v7348_v8 = vpop.f32.mrb[194].mxu0  ;;  %v9778_v18 = vpack.c.bf16 %v7616_v35, %v7615_v59  ;;  %v7699_v13 = vld [vmem:[%s12804_s29] sm:$0xff] }
0x2e1e   :  { %10461 = vtanh.f32 %v7346_v15  ;;  %v9525_v11 = vpop.f32.mrb[195].mxu0  ;;  %v8343_v15 = vld [vmem:[%s12803_s25] ss:$0 sm:$0xff]  ;;  %v7700_v8 = vld [vmem:[%s12804_s29 + $0x8] sm:$0xff] }
0x2e1f   :  { %10463 = vtanh.f32 %v3732_v33  ;;  %v9781_v1 = vpack.c.bf16 %v7700_v8, %v7699_v13 }
0x2e28   :  { %v10462_v29 = vpop.eup %10461 }
0x2e29   :  { %9535 = vmatmul.mubr.msk.f32.vlgmr.msra.gmra.mrb[178].mxu0 %vm272_vm2, %v10462_v29  ;;  %v10464_v19 = vpop.eup %10463  ;;  %v8344_v29 = vld [vmem:[%s12805_s3] ss:$0 sm:$0xff] }
0x2e2a   :  { %9740 = vmatpush3.bf16.msra.mxu0 %v9739_v43  ;;  %9545 = vmatprep.mubr.msk.f32.mxu0 %vm10522_vm3, %v10521_v6  ;;  %v7701_v43 = vld [vmem:[%s12804_s29 + $0x10] sm:$0xff] }
0x2e2b   :  { %9741 = vmatprep.subr.bf16.mxu0 %v10523_v62  ;;  %v9784_v54 = vpack.c.bf16 %v7702_v31, %v7701_v43 }
0x2e2e   :  { %9743 = vmatpush3.bf16.msra.mxu0 %v9742_v55 }
0x2e2f   :  { %9768 = vmatprep.subr.bf16.mxu0 %v10523_v62 }
0x2e31   :  { %9546 = vmatmul.mubr.msk.f32.vlgmr.msra.gmra.mrb[196].mxu0 %vm272_vm2, %v10464_v19 }
0x2e32   :  { %9599 = vmatprep.mubr.msk.f32.mxu0 %vm10522_vm3, %v10521_v6  ;;  %9770 = vmatpush3.bf16.msra.mxu0 %v9769_v41 }
0x2e33   :  { %9771 = vmatprep.subr.bf16.mxu0 %v10523_v62 }
0x2e36   :  { %9773 = vmatpush3.bf16.msra.mxu0 %v9772_v16 }
0x2e37   :  { %9774 = vmatprep.subr.bf16.mxu0 %v10523_v62 }
0x2e3a   :  { %9776 = vmatpush3.bf16.msra.mxu0 %v9775_v26 }
0x2e3b   :  { %9777 = vmatprep.subr.bf16.mxu0 %v10523_v62 }
0x2e3e   :  { %9779 = vmatpush3.bf16.msra.mxu0 %v9778_v18 }
0x2e3f   :  { %9780 = vmatprep.subr.bf16.mxu0 %v10523_v62 }
0x2ecf   :  { %v7230_v25 = vpop.f32.mrb[204].mxu1 }
0x2ed0   :  { %v9516_v28 = vpop.f32.mrb[205].mxu1 }
0x2ed1   :  { %v7232_v40 = vpop.f32.mrb[206].mxu1 }
0x2ed2   :  { %v9517_v7 = vpop.f32.mrb[207].mxu1 }
0x2efc   :  { %v7430_v32 = vpop.f32.mrb[178].mxu0 }
0x2efd   :  { %v9536_v22 = vpop.f32.mrb[179].mxu0 }
0x2f04   :  { %v7503_v53 = vpop.f32.mrb[196].mxu0 }
0x2f05   :  { %v7504_v36 = vadd.f32 %v7503_v53, %v7430_v32  ;;  %v9547_v60 = vpop.f32.mrb[197].mxu0 }
0x2f07   :  { %v7513_v58 = vadd.f32 %v8342_v48, %v7504_v36 }
0x2f09   :  { %v7514_v61 = vmax.f32 %v7513_v58, 0.0 }
0x2f0b   :  { %9581 = vmatmul.mubr.f32.vlgmr.msra.gmra.mrb[182].mxu1 %v7514_v61 }
0x2f0c   :  { %9617 = vmatprep.mubr.msk.f32.mxu1 %vm10522_vm3, %v10521_v6  ;;  %9788 = vmatpush3.bf16.msra.mxu1 %v9787_v46 }
0x2fde   :  { %v7604_v11 = vpop.f32.mrb[182].mxu1 }
0x2fdf   :  { %v7605_v47 = vadd.f32 %v8343_v15, %v7604_v11  ;;  %v9582_v33 = vpop.f32.mrb[183].mxu1 }
0x2fe1   :  { %v7608_v21 = vmax.f32 %v7605_v47, 0.0 }
0x2fe3   :  { %9600 = vmatmul.mubr.msk.f32.vlgmr.msra.gmra.mrb[198].mxu0 %vm7624_vm9, %v7608_v21 }
0x2fe4   :  { %9782 = vmatpush3.bf16.msra.mxu0 %v9781_v1  ;;  %9610 = vmatprep.mubr.msk.f32.mxu0 %vm10522_vm3, %v10521_v6  ;;  %v8346_v6 = vld [vmem:[%s10684_s4] ss:$0 sm:$0xff] }
0x2fe5   :  { %9783 = vmatprep.subr.bf16.mxu0 %v10523_v62 }
0x2fe8   :  { %9785 = vmatpush3.bf16.msra.mxu0 %v9784_v54 }
0x30b6   :  { %v7694_v55 = vpop.f32.mrb[198].mxu0 }
0x30b7   :  { %v7695_v19 = vadd.f32 %v8344_v29, %v7694_v55  ;;  %v9601_v42 = vpop.f32.mrb[199].mxu0 }
0x30b9   :  { %v7698_v34 = vmax.f32 %v7695_v19, 0.0 }
0x30bb   :  { %9611 = vmatmul.mubr.msk.f32.vlgmr.msra.gmra.mrb[200].mxu0 %vm272_vm2, %v7698_v34 }
0x318e   :  { %v7779_v20 = vpop.f32.mrb[200].mxu0 }
0x318f   :  { %v7780_v49 = vadd.f32 %v8346_v6, %v7779_v20  ;;  %v9612_v62 = vpop.f32.mrb[201].mxu0 }
0x3191   :  { %v7783_v50 = vmax.f32 %v7780_v49, 0.0 }
0x3193   :  { %9618 = vmatmul.mubr.msk.f32.vlgmr.msra.gmra.mrb[208].mxu1 %vm477_vm4, %v7783_v50 }
0x3266   :  { %v7862_v3 = vpop.f32.mrb[208].mxu1 }
0x3267   :  { %v7863_v27 = vadd.f32 %v8348_v38, %v7862_v3  ;;  %v9619_v63 = vpop.f32.mrb[209].mxu1 }
0x3269   :  { %7867 = vst.msk [vmem:[#allocation2] sm:$0x3] %vm7866_vm10, %v7863_v27 }
0x326a   :  { %10476 = shalt.err (!%p10473_p4)
}
0x326b   :  { %s10477_s24 = scalar_lea.hbm %s10699_s27, 32 }
0x326c   :  { %p10478_p5 = scmp.ne.s32.totalorder %s10699_s27, %s10477_s24  ;;  %p10481_p6 = scmp.lt.u32.totalorder %s10477_s24, %s10699_s27 }
0x326e   :  { %p10483_p7 = pnand %p10481_p6, %p10478_p5 }
0x3270   :  { %10486 = shalt.err (!%p10483_p7)
}
0x3271   :  { %7877 = dma.vmem_to_hbm [thread:$0]  %s7875_s14, 32, %s10699_s27, [#allocation3]  }
0x3272   :  { %10487 = dma.done.wait [#allocation3], 32  }
0x3273   :  { %10488 = vsyncadd [#allocation3], 4294967264 }
0x3274   :  { %7881 = vsyncpa [#allocation3], 1 }

</bundles_post_ra>
